<compile_context>
chip_gen: v7x
topology: tpu7x:2x2x1
jax: 0.10.0
libtpu: 0.0.40
codegen_flags: <defaults>
</compile_context>

<pallas_src>
import jax
import jax.numpy as jnp
from jax import lax
from jax.experimental import pallas as pl
from jax.experimental.pallas import tpu as pltpu


KH = KW = 5
PAD = 2
ACT_DTYPE = jnp.bfloat16   # activations / matmul operands; accumulation is f32


# ----------------------------------------------------------------------------
# Fused Pallas kernel: conv1 + (ctx @ wc) + relu + conv2 + relu + conv3
# ----------------------------------------------------------------------------
def _make_fused_kernel(N, H, W, Cin, Cout):
    M = N * H * W                      # 128 rows -> fills the MXU row dimension

    def kernel(x_ref, ctx_ref, wc_ref,
               w1_ref, b1_ref, w2_ref, b2_ref, w3_ref, b3_ref,
               o_ref, xpad_ref):
        # Zero the padded-activation scratch once; the border stays zero for all
        # three convs (only the interior is ever rewritten).
        xpad_ref[...] = jnp.zeros(xpad_ref.shape, xpad_ref.dtype)

        def conv(w_ref, b_ref):
            """5x5 'same' conv of the activation currently in xpad_ref as 25
            per-tap accumulating (M, Cin) @ (Cin, Cout) MXU dots (no im2col)."""
            xp = xpad_ref[...]                                  # (N, Hp, Wp, Cin) bf16
            acc = jnp.broadcast_to(b_ref[...], (M, Cout))       # f32, bias-initialised
            for ky in range(KH):
                for kx in range(KW):
                    patch = xp[:, ky:ky + H, kx:kx + W, :].reshape(M, Cin)
                    acc = acc + jnp.dot(patch, w_ref[ky * KW + kx],
                                        preferred_element_type=jnp.float32)
            return acc                                          # (M, Cout) f32

        # ---- conv1(trigger) + bias(+bc) + context projection (extra dot), relu
        xpad_ref[:, PAD:PAD + H, PAD:PAD + W, :] = x_ref[...]
        y = conv(w1_ref, b1_ref)
        y = y + jnp.dot(ctx_ref[...], wc_ref[...],
                        preferred_element_type=jnp.float32)     # folded ctx add
        y = jnp.maximum(y, 0.0)
        xpad_ref[:, PAD:PAD + H, PAD:PAD + W, :] = (
            y.astype(ACT_DTYPE).reshape(N, H, W, Cout))

        # ---- conv2(relu(x)) + bias, relu
        y = jnp.maximum(conv(w2_ref, b2_ref), 0.0)
        xpad_ref[:, PAD:PAD + H, PAD:PAD + W, :] = (
            y.astype(ACT_DTYPE).reshape(N, H, W, Cout))

        # ---- conv3(relu(x)) + bias  (weight is 0 at init; kept general so
        #      trained / nonzero weights stay correct).  Flat (M, Cout) store.
        o_ref[...] = conv(w3_ref, b3_ref)

    return kernel


def _fused_forward(x_nhwc, ctx_rep, kp):
    N, H, W, Cin = x_nhwc.shape
    Dctx = ctx_rep.shape[-1]
    Cout = kp["b1"].shape[-1]
    Hp, Wp = H + 2 * PAD, W + 2 * PAD
    M = N * H * W

    kernel = _make_fused_kernel(N, H, W, Cin, Cout)

    def full(shape):  # full-array block, always at the origin
        return pl.BlockSpec(shape, lambda i, _n=len(shape): (0,) * _n)

    return pl.pallas_call(
        kernel,
        out_shape=jax.ShapeDtypeStruct((M, Cout), jnp.float32),
        grid=(1,),
        in_specs=[
            full((N, H, W, Cin)),          # trigger (NHWC, bf16)
            full((M, Dctx)),               # context repeated per pixel (bf16)
            full((Dctx, Cout)),            # wc  (Linear weight, transposed, bf16)
            full((KH * KW, Cin, Cout)),    # w1  (per-tap layout, bf16)
            full((1, Cout)),               # b1 (+ bc folded in, f32)
            full((KH * KW, Cin, Cout)),    # w2
            full((1, Cout)),               # b2
            full((KH * KW, Cin, Cout)),    # w3
            full((1, Cout)),               # b3
        ],
        out_specs=full((M, Cout)),
        scratch_shapes=[
            pltpu.VMEM((N, Hp, Wp, Cin), ACT_DTYPE),   # zero-padded activations (bf16)
        ],
        compiler_params=pltpu.CompilerParams(
            # Whole problem (<1 MB) is VMEM-resident in one grid step.  For larger
            # batches, add a leading batch-tile axis marked "parallel" so v7x's
            # second TensorCore takes half the rows.
            dimension_semantics=("arbitrary",)),
    )(x_nhwc, ctx_rep, kp["wc"],
      kp["w1"], kp["b1"], kp["w2"], kp["b2"], kp["w3"], kp["b3"])


# ----------------------------------------------------------------------------
# Parameters (PyTorch layout) and one-time repack into kernel layouts
# ----------------------------------------------------------------------------
def init_params(key):
    ks = jax.random.split(key, 8)

    def u(k, shape, fan_in):
        bound = 1.0 / jnp.sqrt(float(fan_in))
        return jax.random.uniform(k, shape, jnp.float32, -bound, bound)

    conv_fan = 20 * 5 * 5
    return {
        "w1": u(ks[0], (20, 20, 5, 5), conv_fan),           # OIHW
        "b1": u(ks[1], (20,), conv_fan),
        "wc": u(ks[2], (20, 10), 10),                       # Linear(10,20): (out,in)
        "bc": u(ks[3], (20,), 10),
        "w2": u(ks[4], (20, 20, 5, 5), conv_fan),
        "b2": u(ks[5], (20,), conv_fan),
        "w3": jnp.zeros((20, 20, 5, 5), jnp.float32),       # nn.init.constant(..., 0)
        "b3": u(ks[7], (20,), conv_fan),
    }


def prepare_kernel_params(params):
    """One-time repack (hoisted out of the per-call jit path)."""
    def conv_w(w_oihw):
        cout, cin, kh, kw = w_oihw.shape
        # OIHW -> (KH, KW, Cin, Cout) -> per-tap (KH*KW, Cin, Cout), bf16 operands
        w = jnp.transpose(w_oihw, (2, 3, 1, 0)).reshape(kh * kw, cin, cout)
        return w.astype(ACT_DTYPE)

    cout = params["b1"].shape[0]
    return {
        "wc": params["wc"].T.astype(ACT_DTYPE),                       # (Dctx, Cout)
        "w1": conv_w(params["w1"]),
        # Linear bias bc broadcasts over all rows exactly like b1 -> fold it in.
        "b1": (params["b1"] + params["bc"]).reshape(1, cout).astype(jnp.float32),
        "w2": conv_w(params["w2"]),
        "b2": params["b2"].reshape(1, cout).astype(jnp.float32),
        "w3": conv_w(params["w3"]),
        "b3": params["b3"].reshape(1, cout).astype(jnp.float32),
    }


# ----------------------------------------------------------------------------
# Forward pass (NCHW in/out, kernel works in NHWC) + pure-JAX reference
# ----------------------------------------------------------------------------
@jax.jit
def conv_synthesizer_forward(trigger_nchw, context, kparams):
    N, _, H, W = trigger_nchw.shape
    x = jnp.transpose(trigger_nchw, (0, 2, 3, 1)).astype(ACT_DTYPE)   # NCHW -> NHWC
    ctx_rep = jnp.repeat(context, H * W, axis=0).astype(ACT_DTYPE)    # (M, Dctx)
    out = _fused_forward(x, ctx_rep, kparams)                         # (M, Cout) f32
    out = out.reshape(N, H, W, -1)                                    # lane-dim unchanged
    return jnp.transpose(out, (0, 3, 1, 2))                           # NHWC -> NCHW


def reference_forward(trigger_nchw, context, params):
    """Pure-JAX (lax.conv, f32) reference for correctness checking."""
    def conv(x, w, b):
        y = lax.conv_general_dilated(
            x, w, window_strides=(1, 1), padding=[(2, 2), (2, 2)],
            dimension_numbers=("NCHW", "OIHW", "NCHW"))
        return y + b[None, :, None, None]

    x = conv(trigger_nchw, params["w1"], params["b1"])
    ctx = context @ params["wc"].T + params["bc"]
    x = x + ctx[:, :, None, None]
    x = conv(jax.nn.relu(x), params["w2"], params["b2"])
    return conv(jax.nn.relu(x), params["w3"], params["b3"])


if __name__ == "__main__":
    key = jax.random.PRNGKey(0)
    k_p, k_t, k_c, k_w3 = jax.random.split(key, 4)

    params = init_params(k_p)
    kparams = prepare_kernel_params(params)

    # shapes fixed by the module: Conv2d(20,20), Linear(10,20); small spatial 8x8, N=2
    trigger = jax.random.normal(k_t, (2, 20, 8, 8), jnp.float32)
    context = jax.random.normal(k_c, (2, 10), jnp.float32)

    out = jax.block_until_ready(conv_synthesizer_forward(trigger, context, kparams))
    ref = reference_forward(trigger, context, params)
    assert out.shape == (2, 20, 8, 8)
    # bf16 activations / matmul operands -> loosened tolerance vs f32 reference
    assert jnp.allclose(out, ref, atol=2e-2, rtol=2e-2), "mismatch vs reference (w3 == 0)"

    # Also exercise the full conv chain with a non-zero output-conv weight
    # (with w3 == 0 the final output reduces to a bias broadcast).
    params2 = dict(params)
    params2["w3"] = jax.random.uniform(k_w3, params["w3"].shape, jnp.float32,
                                       -0.045, 0.045)
    kparams2 = prepare_kernel_params(params2)
    out2 = jax.block_until_ready(conv_synthesizer_forward(trigger, context, kparams2))
    ref2 = reference_forward(trigger, context, params2)
    assert jnp.allclose(out2, ref2, atol=2e-2, rtol=2e-2), "mismatch vs reference (w3 != 0)"

    print("KERNEL_OK")
</pallas_src>

<mosaic_0001>
module attributes {stable_mosaic.version = 11 : i64} {
  func.func @kernel(%arg0: i32, %arg1: memref<2x8x8x20xbf16, #tpu.memory_space<vmem>>, %arg2: memref<128x10xbf16, #tpu.memory_space<vmem>>, %arg3: memref<10x20xbf16, #tpu.memory_space<vmem>>, %arg4: memref<25x20x20xbf16, #tpu.memory_space<vmem>>, %arg5: memref<1x20xf32, #tpu.memory_space<vmem>>, %arg6: memref<25x20x20xbf16, #tpu.memory_space<vmem>>, %arg7: memref<1x20xf32, #tpu.memory_space<vmem>>, %arg8: memref<25x20x20xbf16, #tpu.memory_space<vmem>>, %arg9: memref<1x20xf32, #tpu.memory_space<vmem>>, %arg10: memref<128x20xf32, #tpu.memory_space<vmem>>, %arg11: memref<2x12x12x20xbf16, #tpu.memory_space<vmem>>) attributes {dimension_semantics = [#tpu.dimension_semantics<arbitrary>], iteration_bounds = array<i64: 1>, scalar_prefetch = 0 : i64, scratch_operands = 1 : i64, tpu.core_type = #tpu.core_type<tc>, window_params = [{pipeline_mode = #tpu.pipeline_mode<synchronous>, transform_indices = @transform_0, window_bounds = array<i64: 2, 8, 8, 20>}, {pipeline_mode = #tpu.pipeline_mode<synchronous>, transform_indices = @transform_1, window_bounds = array<i64: 128, 10>}, {pipeline_mode = #tpu.pipeline_mode<synchronous>, transform_indices = @transform_2, window_bounds = array<i64: 10, 20>}, {pipeline_mode = #tpu.pipeline_mode<synchronous>, transform_indices = @transform_3, window_bounds = array<i64: 25, 20, 20>}, {pipeline_mode = #tpu.pipeline_mode<synchronous>, transform_indices = @transform_4, window_bounds = array<i64: 1, 20>}, {pipeline_mode = #tpu.pipeline_mode<synchronous>, transform_indices = @transform_5, window_bounds = array<i64: 25, 20, 20>}, {pipeline_mode = #tpu.pipeline_mode<synchronous>, transform_indices = @transform_6, window_bounds = array<i64: 1, 20>}, {pipeline_mode = #tpu.pipeline_mode<synchronous>, transform_indices = @transform_7, window_bounds = array<i64: 25, 20, 20>}, {pipeline_mode = #tpu.pipeline_mode<synchronous>, transform_indices = @transform_8, window_bounds = array<i64: 1, 20>}, {pipeline_mode = #tpu.pipeline_mode<synchronous>, transform_indices = @transform_9, window_bounds = array<i64: 128, 20>}]} {
    %cst = arith.constant 0.000000e+00 : bf16
    %0 = vector.broadcast %cst : bf16 to vector<2x12x12x20xbf16>
    %c0 = arith.constant 0 : index
    %c0_0 = arith.constant 0 : index
    %c0_1 = arith.constant 0 : index
    %c0_2 = arith.constant 0 : index
    %1 = vector.load %arg11[%c0, %c0_0, %c0_1, %c0_2] : memref<2x12x12x20xbf16, #tpu.memory_space<vmem>>, vector<2x12x12x20xbf16>
    tpu.vector_store %arg11[%c0, %c0_0, %c0_1, %c0_2], %0 {strides = array<i32>} : memref<2x12x12x20xbf16, #tpu.memory_space<vmem>>, vector<2x12x12x20xbf16>,
    %c0_3 = arith.constant 0 : index
    %c0_4 = arith.constant 0 : index
    %c0_5 = arith.constant 0 : index
    %c0_6 = arith.constant 0 : index
    %2 = vector.load %arg1[%c0_3, %c0_4, %c0_5, %c0_6] : memref<2x8x8x20xbf16, #tpu.memory_space<vmem>>, vector<2x8x8x20xbf16>
    %c0_7 = arith.constant 0 : index
    %c2 = arith.constant 2 : index
    %c2_8 = arith.constant 2 : index
    %c0_9 = arith.constant 0 : index
    %3 = vector.load %arg11[%c0_7, %c2, %c2_8, %c0_9] : memref<2x12x12x20xbf16, #tpu.memory_space<vmem>>, vector<2x8x8x20xbf16>
    tpu.vector_store %arg11[%c0_7, %c2, %c2_8, %c0_9], %2 {strides = array<i32>} : memref<2x12x12x20xbf16, #tpu.memory_space<vmem>>, vector<2x8x8x20xbf16>,
    %c0_10 = arith.constant 0 : index
    %c0_11 = arith.constant 0 : index
    %c0_12 = arith.constant 0 : index
    %c0_13 = arith.constant 0 : index
    %4 = vector.load %arg11[%c0_10, %c0_11, %c0_12, %c0_13] : memref<2x12x12x20xbf16, #tpu.memory_space<vmem>>, vector<2x12x12x20xbf16>
    %c0_14 = arith.constant 0 : index
    %c0_15 = arith.constant 0 : index
    %5 = vector.load %arg5[%c0_14, %c0_15] : memref<1x20xf32, #tpu.memory_space<vmem>>, vector<1x20xf32>
    %6 = vector.shape_cast %5 : vector<1x20xf32> to vector<1x20xf32>
    %7 = vector.broadcast %6 : vector<1x20xf32> to vector<128x20xf32>
    %8 = vector.extract_strided_slice %4 {offsets = [0, 0, 0, 0], sizes = [2, 8, 8, 20], strides = [1, 1, 1, 1]} : vector<2x12x12x20xbf16> to vector<2x8x8x20xbf16>
    %9 = vector.shape_cast %8 : vector<2x8x8x20xbf16> to vector<128x20xbf16>
    %c0_16 = arith.constant 0 : index
    %c0_17 = arith.constant 0 : index
    %c0_18 = arith.constant 0 : index
    %10 = vector.load %arg4[%c0_16, %c0_17, %c0_18] : memref<25x20x20xbf16, #tpu.memory_space<vmem>>, vector<1x20x20xbf16>
    %11 = vector.shape_cast %10 : vector<1x20x20xbf16> to vector<20x20xbf16>
    %cst_19 = arith.constant dense<0.000000e+00> : vector<128x20xf32>
    %12 = tpu.matmul %9, %11, %cst_19 {dimension_numbers = #tpu.dot_dimension_numbers<[1], [0], [0], [1], [0, 0, 1, 1], [], []>} : vector<128x20xbf16>, vector<20x20xbf16>, vector<128x20xf32> -> vector<128x20xf32>
    %13 = arith.addf %7, %12 : vector<128x20xf32>
    %14 = vector.extract_strided_slice %4 {offsets = [0, 0, 1, 0], sizes = [2, 8, 8, 20], strides = [1, 1, 1, 1]} : vector<2x12x12x20xbf16> to vector<2x8x8x20xbf16>
    %15 = vector.shape_cast %14 : vector<2x8x8x20xbf16> to vector<128x20xbf16>
    %c1 = arith.constant 1 : index
    %c0_20 = arith.constant 0 : index
    %c0_21 = arith.constant 0 : index
    %16 = vector.load %arg4[%c1, %c0_20, %c0_21] : memref<25x20x20xbf16, #tpu.memory_space<vmem>>, vector<1x20x20xbf16>
    %17 = vector.shape_cast %16 : vector<1x20x20xbf16> to vector<20x20xbf16>
    %cst_22 = arith.constant dense<0.000000e+00> : vector<128x20xf32>
    %18 = tpu.matmul %15, %17, %cst_22 {dimension_numbers = #tpu.dot_dimension_numbers<[1], [0], [0], [1], [0, 0, 1, 1], [], []>} : vector<128x20xbf16>, vector<20x20xbf16>, vector<128x20xf32> -> vector<128x20xf32>
    %19 = arith.addf %13, %18 : vector<128x20xf32>
    %20 = vector.extract_strided_slice %4 {offsets = [0, 0, 2, 0], sizes = [2, 8, 8, 20], strides = [1, 1, 1, 1]} : vector<2x12x12x20xbf16> to vector<2x8x8x20xbf16>
    %21 = vector.shape_cast %20 : vector<2x8x8x20xbf16> to vector<128x20xbf16>
    %c2_23 = arith.constant 2 : index
    %c0_24 = arith.constant 0 : index
    %c0_25 = arith.constant 0 : index
    %22 = vector.load %arg4[%c2_23, %c0_24, %c0_25] : memref<25x20x20xbf16, #tpu.memory_space<vmem>>, vector<1x20x20xbf16>
    %23 = vector.shape_cast %22 : vector<1x20x20xbf16> to vector<20x20xbf16>
    %cst_26 = arith.constant dense<0.000000e+00> : vector<128x20xf32>
    %24 = tpu.matmul %21, %23, %cst_26 {dimension_numbers = #tpu.dot_dimension_numbers<[1], [0], [0], [1], [0, 0, 1, 1], [], []>} : vector<128x20xbf16>, vector<20x20xbf16>, vector<128x20xf32> -> vector<128x20xf32>
    %25 = arith.addf %19, %24 : vector<128x20xf32>
    %26 = vector.extract_strided_slice %4 {offsets = [0, 0, 3, 0], sizes = [2, 8, 8, 20], strides = [1, 1, 1, 1]} : vector<2x12x12x20xbf16> to vector<2x8x8x20xbf16>
    %27 = vector.shape_cast %26 : vector<2x8x8x20xbf16> to vector<128x20xbf16>
    %c3 = arith.constant 3 : index
    %c0_27 = arith.constant 0 : index
    %c0_28 = arith.constant 0 : index
    %28 = vector.load %arg4[%c3, %c0_27, %c0_28] : memref<25x20x20xbf16, #tpu.memory_space<vmem>>, vector<1x20x20xbf16>
    %29 = vector.shape_cast %28 : vector<1x20x20xbf16> to vector<20x20xbf16>
    %cst_29 = arith.constant dense<0.000000e+00> : vector<128x20xf32>
    %30 = tpu.matmul %27, %29, %cst_29 {dimension_numbers = #tpu.dot_dimension_numbers<[1], [0], [0], [1], [0, 0, 1, 1], [], []>} : vector<128x20xbf16>, vector<20x20xbf16>, vector<128x20xf32> -> vector<128x20xf32>
    %31 = arith.addf %25, %30 : vector<128x20xf32>
    %32 = vector.extract_strided_slice %4 {offsets = [0, 0, 4, 0], sizes = [2, 8, 8, 20], strides = [1, 1, 1, 1]} : vector<2x12x12x20xbf16> to vector<2x8x8x20xbf16>
    %33 = vector.shape_cast %32 : vector<2x8x8x20xbf16> to vector<128x20xbf16>
    %c4 = arith.constant 4 : index
    %c0_30 = arith.constant 0 : index
    %c0_31 = arith.constant 0 : index
    %34 = vector.load %arg4[%c4, %c0_30, %c0_31] : memref<25x20x20xbf16, #tpu.memory_space<vmem>>, vector<1x20x20xbf16>
    %35 = vector.shape_cast %34 : vector<1x20x20xbf16> to vector<20x20xbf16>
    %cst_32 = arith.constant dense<0.000000e+00> : vector<128x20xf32>
    %36 = tpu.matmul %33, %35, %cst_32 {dimension_numbers = #tpu.dot_dimension_numbers<[1], [0], [0], [1], [0, 0, 1, 1], [], []>} : vector<128x20xbf16>, vector<20x20xbf16>, vector<128x20xf32> -> vector<128x20xf32>
    %37 = arith.addf %31, %36 : vector<128x20xf32>
    %38 = vector.extract_strided_slice %4 {offsets = [0, 1, 0, 0], sizes = [2, 8, 8, 20], strides = [1, 1, 1, 1]} : vector<2x12x12x20xbf16> to vector<2x8x8x20xbf16>
    %39 = vector.shape_cast %38 : vector<2x8x8x20xbf16> to vector<128x20xbf16>
    %c5 = arith.constant 5 : index
    %c0_33 = arith.constant 0 : index
    %c0_34 = arith.constant 0 : index
    %40 = vector.load %arg4[%c5, %c0_33, %c0_34] : memref<25x20x20xbf16, #tpu.memory_space<vmem>>, vector<1x20x20xbf16>
    %41 = vector.shape_cast %40 : vector<1x20x20xbf16> to vector<20x20xbf16>
    %cst_35 = arith.constant dense<0.000000e+00> : vector<128x20xf32>
    %42 = tpu.matmul %39, %41, %cst_35 {dimension_numbers = #tpu.dot_dimension_numbers<[1], [0], [0], [1], [0, 0, 1, 1], [], []>} : vector<128x20xbf16>, vector<20x20xbf16>, vector<128x20xf32> -> vector<128x20xf32>
    %43 = arith.addf %37, %42 : vector<128x20xf32>
    %44 = vector.extract_strided_slice %4 {offsets = [0, 1, 1, 0], sizes = [2, 8, 8, 20], strides = [1, 1, 1, 1]} : vector<2x12x12x20xbf16> to vector<2x8x8x20xbf16>
    %45 = vector.shape_cast %44 : vector<2x8x8x20xbf16> to vector<128x20xbf16>
    %c6 = arith.constant 6 : index
    %c0_36 = arith.constant 0 : index
    %c0_37 = arith.constant 0 : index
    %46 = vector.load %arg4[%c6, %c0_36, %c0_37] : memref<25x20x20xbf16, #tpu.memory_space<vmem>>, vector<1x20x20xbf16>
    %47 = vector.shape_cast %46 : vector<1x20x20xbf16> to vector<20x20xbf16>
    %cst_38 = arith.constant dense<0.000000e+00> : vector<128x20xf32>
    %48 = tpu.matmul %45, %47, %cst_38 {dimension_numbers = #tpu.dot_dimension_numbers<[1], [0], [0], [1], [0, 0, 1, 1], [], []>} : vector<128x20xbf16>, vector<20x20xbf16>, vector<128x20xf32> -> vector<128x20xf32>
    %49 = arith.addf %43, %48 : vector<128x20xf32>
    %50 = vector.extract_strided_slice %4 {offsets = [0, 1, 2, 0], sizes = [2, 8, 8, 20], strides = [1, 1, 1, 1]} : vector<2x12x12x20xbf16> to vector<2x8x8x20xbf16>
    %51 = vector.shape_cast %50 : vector<2x8x8x20xbf16> to vector<128x20xbf16>
    %c7 = arith.constant 7 : index
    %c0_39 = arith.constant 0 : index
    %c0_40 = arith.constant 0 : index
    %52 = vector.load %arg4[%c7, %c0_39, %c0_40] : memref<25x20x20xbf16, #tpu.memory_space<vmem>>, vector<1x20x20xbf16>
    %53 = vector.shape_cast %52 : vector<1x20x20xbf16> to vector<20x20xbf16>
    %cst_41 = arith.constant dense<0.000000e+00> : vector<128x20xf32>
    %54 = tpu.matmul %51, %53, %cst_41 {dimension_numbers = #tpu.dot_dimension_numbers<[1], [0], [0], [1], [0, 0, 1, 1], [], []>} : vector<128x20xbf16>, vector<20x20xbf16>, vector<128x20xf32> -> vector<128x20xf32>
    %55 = arith.addf %49, %54 : vector<128x20xf32>
    %56 = vector.extract_strided_slice %4 {offsets = [0, 1, 3, 0], sizes = [2, 8, 8, 20], strides = [1, 1, 1, 1]} : vector<2x12x12x20xbf16> to vector<2x8x8x20xbf16>
    %57 = vector.shape_cast %56 : vector<2x8x8x20xbf16> to vector<128x20xbf16>
    %c8 = arith.constant 8 : index
    %c0_42 = arith.constant 0 : index
    %c0_43 = arith.constant 0 : index
    %58 = vector.load %arg4[%c8, %c0_42, %c0_43] : memref<25x20x20xbf16, #tpu.memory_space<vmem>>, vector<1x20x20xbf16>
    %59 = vector.shape_cast %58 : vector<1x20x20xbf16> to vector<20x20xbf16>
    %cst_44 = arith.constant dense<0.000000e+00> : vector<128x20xf32>
    %60 = tpu.matmul %57, %59, %cst_44 {dimension_numbers = #tpu.dot_dimension_numbers<[1], [0], [0], [1], [0, 0, 1, 1], [], []>} : vector<128x20xbf16>, vector<20x20xbf16>, vector<128x20xf32> -> vector<128x20xf32>
    %61 = arith.addf %55, %60 : vector<128x20xf32>
    %62 = vector.extract_strided_slice %4 {offsets = [0, 1, 4, 0], sizes = [2, 8, 8, 20], strides = [1, 1, 1, 1]} : vector<2x12x12x20xbf16> to vector<2x8x8x20xbf16>
    %63 = vector.shape_cast %62 : vector<2x8x8x20xbf16> to vector<128x20xbf16>
    %c9 = arith.constant 9 : index
    %c0_45 = arith.constant 0 : index
    %c0_46 = arith.constant 0 : index
    %64 = vector.load %arg4[%c9, %c0_45, %c0_46] : memref<25x20x20xbf16, #tpu.memory_space<vmem>>, vector<1x20x20xbf16>
    %65 = vector.shape_cast %64 : vector<1x20x20xbf16> to vector<20x20xbf16>
    %cst_47 = arith.constant dense<0.000000e+00> : vector<128x20xf32>
    %66 = tpu.matmul %63, %65, %cst_47 {dimension_numbers = #tpu.dot_dimension_numbers<[1], [0], [0], [1], [0, 0, 1, 1], [], []>} : vector<128x20xbf16>, vector<20x20xbf16>, vector<128x20xf32> -> vector<128x20xf32>
    %67 = arith.addf %61, %66 : vector<128x20xf32>
    %68 = vector.extract_strided_slice %4 {offsets = [0, 2, 0, 0], sizes = [2, 8, 8, 20], strides = [1, 1, 1, 1]} : vector<2x12x12x20xbf16> to vector<2x8x8x20xbf16>
    %69 = vector.shape_cast %68 : vector<2x8x8x20xbf16> to vector<128x20xbf16>
    %c10 = arith.constant 10 : index
    %c0_48 = arith.constant 0 : index
    %c0_49 = arith.constant 0 : index
    %70 = vector.load %arg4[%c10, %c0_48, %c0_49] : memref<25x20x20xbf16, #tpu.memory_space<vmem>>, vector<1x20x20xbf16>
    %71 = vector.shape_cast %70 : vector<1x20x20xbf16> to vector<20x20xbf16>
    %cst_50 = arith.constant dense<0.000000e+00> : vector<128x20xf32>
    %72 = tpu.matmul %69, %71, %cst_50 {dimension_numbers = #tpu.dot_dimension_numbers<[1], [0], [0], [1], [0, 0, 1, 1], [], []>} : vector<128x20xbf16>, vector<20x20xbf16>, vector<128x20xf32> -> vector<128x20xf32>
    %73 = arith.addf %67, %72 : vector<128x20xf32>
    %74 = vector.extract_strided_slice %4 {offsets = [0, 2, 1, 0], sizes = [2, 8, 8, 20], strides = [1, 1, 1, 1]} : vector<2x12x12x20xbf16> to vector<2x8x8x20xbf16>
    %75 = vector.shape_cast %74 : vector<2x8x8x20xbf16> to vector<128x20xbf16>
    %c11 = arith.constant 11 : index
    %c0_51 = arith.constant 0 : index
    %c0_52 = arith.constant 0 : index
    %76 = vector.load %arg4[%c11, %c0_51, %c0_52] : memref<25x20x20xbf16, #tpu.memory_space<vmem>>, vector<1x20x20xbf16>
    %77 = vector.shape_cast %76 : vector<1x20x20xbf16> to vector<20x20xbf16>
    %cst_53 = arith.constant dense<0.000000e+00> : vector<128x20xf32>
    %78 = tpu.matmul %75, %77, %cst_53 {dimension_numbers = #tpu.dot_dimension_numbers<[1], [0], [0], [1], [0, 0, 1, 1], [], []>} : vector<128x20xbf16>, vector<20x20xbf16>, vector<128x20xf32> -> vector<128x20xf32>
    %79 = arith.addf %73, %78 : vector<128x20xf32>
    %80 = vector.extract_strided_slice %4 {offsets = [0, 2, 2, 0], sizes = [2, 8, 8, 20], strides = [1, 1, 1, 1]} : vector<2x12x12x20xbf16> to vector<2x8x8x20xbf16>
    %81 = vector.shape_cast %80 : vector<2x8x8x20xbf16> to vector<128x20xbf16>
    %c12 = arith.constant 12 : index
    %c0_54 = arith.constant 0 : index
    %c0_55 = arith.constant 0 : index
    %82 = vector.load %arg4[%c12, %c0_54, %c0_55] : memref<25x20x20xbf16, #tpu.memory_space<vmem>>, vector<1x20x20xbf16>
    %83 = vector.shape_cast %82 : vector<1x20x20xbf16> to vector<20x20xbf16>
    %cst_56 = arith.constant dense<0.000000e+00> : vector<128x20xf32>
    %84 = tpu.matmul %81, %83, %cst_56 {dimension_numbers = #tpu.dot_dimension_numbers<[1], [0], [0], [1], [0, 0, 1, 1], [], []>} : vector<128x20xbf16>, vector<20x20xbf16>, vector<128x20xf32> -> vector<128x20xf32>
    %85 = arith.addf %79, %84 : vector<128x20xf32>
    %86 = vector.extract_strided_slice %4 {offsets = [0, 2, 3, 0], sizes = [2, 8, 8, 20], strides = [1, 1, 1, 1]} : vector<2x12x12x20xbf16> to vector<2x8x8x20xbf16>
    %87 = vector.shape_cast %86 : vector<2x8x8x20xbf16> to vector<128x20xbf16>
    %c13 = arith.constant 13 : index
    %c0_57 = arith.constant 0 : index
    %c0_58 = arith.constant 0 : index
    %88 = vector.load %arg4[%c13, %c0_57, %c0_58] : memref<25x20x20xbf16, #tpu.memory_space<vmem>>, vector<1x20x20xbf16>
    %89 = vector.shape_cast %88 : vector<1x20x20xbf16> to vector<20x20xbf16>
    %cst_59 = arith.constant dense<0.000000e+00> : vector<128x20xf32>
    %90 = tpu.matmul %87, %89, %cst_59 {dimension_numbers = #tpu.dot_dimension_numbers<[1], [0], [0], [1], [0, 0, 1, 1], [], []>} : vector<128x20xbf16>, vector<20x20xbf16>, vector<128x20xf32> -> vector<128x20xf32>
    %91 = arith.addf %85, %90 : vector<128x20xf32>
    %92 = vector.extract_strided_slice %4 {offsets = [0, 2, 4, 0], sizes = [2, 8, 8, 20], strides = [1, 1, 1, 1]} : vector<2x12x12x20xbf16> to vector<2x8x8x20xbf16>
    %93 = vector.shape_cast %92 : vector<2x8x8x20xbf16> to vector<128x20xbf16>
    %c14 = arith.constant 14 : index
    %c0_60 = arith.constant 0 : index
    %c0_61 = arith.constant 0 : index
    %94 = vector.load %arg4[%c14, %c0_60, %c0_61] : memref<25x20x20xbf16, #tpu.memory_space<vmem>>, vector<1x20x20xbf16>
    %95 = vector.shape_cast %94 : vector<1x20x20xbf16> to vector<20x20xbf16>
    %cst_62 = arith.constant dense<0.000000e+00> : vector<128x20xf32>
    %96 = tpu.matmul %93, %95, %cst_62 {dimension_numbers = #tpu.dot_dimension_numbers<[1], [0], [0], [1], [0, 0, 1, 1], [], []>} : vector<128x20xbf16>, vector<20x20xbf16>, vector<128x20xf32> -> vector<128x20xf32>
    %97 = arith.addf %91, %96 : vector<128x20xf32>
    %98 = vector.extract_strided_slice %4 {offsets = [0, 3, 0, 0], sizes = [2, 8, 8, 20], strides = [1, 1, 1, 1]} : vector<2x12x12x20xbf16> to vector<2x8x8x20xbf16>
    %99 = vector.shape_cast %98 : vector<2x8x8x20xbf16> to vector<128x20xbf16>
    %c15 = arith.constant 15 : index
    %c0_63 = arith.constant 0 : index
    %c0_64 = arith.constant 0 : index
    %100 = vector.load %arg4[%c15, %c0_63, %c0_64] : memref<25x20x20xbf16, #tpu.memory_space<vmem>>, vector<1x20x20xbf16>
    %101 = vector.shape_cast %100 : vector<1x20x20xbf16> to vector<20x20xbf16>
    %cst_65 = arith.constant dense<0.000000e+00> : vector<128x20xf32>
    %102 = tpu.matmul %99, %101, %cst_65 {dimension_numbers = #tpu.dot_dimension_numbers<[1], [0], [0], [1], [0, 0, 1, 1], [], []>} : vector<128x20xbf16>, vector<20x20xbf16>, vector<128x20xf32> -> vector<128x20xf32>
    %103 = arith.addf %97, %102 : vector<128x20xf32>
    %104 = vector.extract_strided_slice %4 {offsets = [0, 3, 1, 0], sizes = [2, 8, 8, 20], strides = [1, 1, 1, 1]} : vector<2x12x12x20xbf16> to vector<2x8x8x20xbf16>
    %105 = vector.shape_cast %104 : vector<2x8x8x20xbf16> to vector<128x20xbf16>
    %c16 = arith.constant 16 : index
    %c0_66 = arith.constant 0 : index
    %c0_67 = arith.constant 0 : index
    %106 = vector.load %arg4[%c16, %c0_66, %c0_67] : memref<25x20x20xbf16, #tpu.memory_space<vmem>>, vector<1x20x20xbf16>
    %107 = vector.shape_cast %106 : vector<1x20x20xbf16> to vector<20x20xbf16>
    %cst_68 = arith.constant dense<0.000000e+00> : vector<128x20xf32>
    %108 = tpu.matmul %105, %107, %cst_68 {dimension_numbers = #tpu.dot_dimension_numbers<[1], [0], [0], [1], [0, 0, 1, 1], [], []>} : vector<128x20xbf16>, vector<20x20xbf16>, vector<128x20xf32> -> vector<128x20xf32>
    %109 = arith.addf %103, %108 : vector<128x20xf32>
    %110 = vector.extract_strided_slice %4 {offsets = [0, 3, 2, 0], sizes = [2, 8, 8, 20], strides = [1, 1, 1, 1]} : vector<2x12x12x20xbf16> to vector<2x8x8x20xbf16>
    %111 = vector.shape_cast %110 : vector<2x8x8x20xbf16> to vector<128x20xbf16>
    %c17 = arith.constant 17 : index
    %c0_69 = arith.constant 0 : index
    %c0_70 = arith.constant 0 : index
    %112 = vector.load %arg4[%c17, %c0_69, %c0_70] : memref<25x20x20xbf16, #tpu.memory_space<vmem>>, vector<1x20x20xbf16>
    %113 = vector.shape_cast %112 : vector<1x20x20xbf16> to vector<20x20xbf16>
    %cst_71 = arith.constant dense<0.000000e+00> : vector<128x20xf32>
    %114 = tpu.matmul %111, %113, %cst_71 {dimension_numbers = #tpu.dot_dimension_numbers<[1], [0], [0], [1], [0, 0, 1, 1], [], []>} : vector<128x20xbf16>, vector<20x20xbf16>, vector<128x20xf32> -> vector<128x20xf32>
    %115 = arith.addf %109, %114 : vector<128x20xf32>
    %116 = vector.extract_strided_slice %4 {offsets = [0, 3, 3, 0], sizes = [2, 8, 8, 20], strides = [1, 1, 1, 1]} : vector<2x12x12x20xbf16> to vector<2x8x8x20xbf16>
    %117 = vector.shape_cast %116 : vector<2x8x8x20xbf16> to vector<128x20xbf16>
    %c18 = arith.constant 18 : index
    %c0_72 = arith.constant 0 : index
    %c0_73 = arith.constant 0 : index
    %118 = vector.load %arg4[%c18, %c0_72, %c0_73] : memref<25x20x20xbf16, #tpu.memory_space<vmem>>, vector<1x20x20xbf16>
    %119 = vector.shape_cast %118 : vector<1x20x20xbf16> to vector<20x20xbf16>
    %cst_74 = arith.constant dense<0.000000e+00> : vector<128x20xf32>
    %120 = tpu.matmul %117, %119, %cst_74 {dimension_numbers = #tpu.dot_dimension_numbers<[1], [0], [0], [1], [0, 0, 1, 1], [], []>} : vector<128x20xbf16>, vector<20x20xbf16>, vector<128x20xf32> -> vector<128x20xf32>
    %121 = arith.addf %115, %120 : vector<128x20xf32>
    %122 = vector.extract_strided_slice %4 {offsets = [0, 3, 4, 0], sizes = [2, 8, 8, 20], strides = [1, 1, 1, 1]} : vector<2x12x12x20xbf16> to vector<2x8x8x20xbf16>
    %123 = vector.shape_cast %122 : vector<2x8x8x20xbf16> to vector<128x20xbf16>
    %c19 = arith.constant 19 : index
    %c0_75 = arith.constant 0 : index
    %c0_76 = arith.constant 0 : index
    %124 = vector.load %arg4[%c19, %c0_75, %c0_76] : memref<25x20x20xbf16, #tpu.memory_space<vmem>>, vector<1x20x20xbf16>
    %125 = vector.shape_cast %124 : vector<1x20x20xbf16> to vector<20x20xbf16>
    %cst_77 = arith.constant dense<0.000000e+00> : vector<128x20xf32>
    %126 = tpu.matmul %123, %125, %cst_77 {dimension_numbers = #tpu.dot_dimension_numbers<[1], [0], [0], [1], [0, 0, 1, 1], [], []>} : vector<128x20xbf16>, vector<20x20xbf16>, vector<128x20xf32> -> vector<128x20xf32>
    %127 = arith.addf %121, %126 : vector<128x20xf32>
    %128 = vector.extract_strided_slice %4 {offsets = [0, 4, 0, 0], sizes = [2, 8, 8, 20], strides = [1, 1, 1, 1]} : vector<2x12x12x20xbf16> to vector<2x8x8x20xbf16>
    %129 = vector.shape_cast %128 : vector<2x8x8x20xbf16> to vector<128x20xbf16>
    %c20 = arith.constant 20 : index
    %c0_78 = arith.constant 0 : index
    %c0_79 = arith.constant 0 : index
    %130 = vector.load %arg4[%c20, %c0_78, %c0_79] : memref<25x20x20xbf16, #tpu.memory_space<vmem>>, vector<1x20x20xbf16>
    %131 = vector.shape_cast %130 : vector<1x20x20xbf16> to vector<20x20xbf16>
    %cst_80 = arith.constant dense<0.000000e+00> : vector<128x20xf32>
    %132 = tpu.matmul %129, %131, %cst_80 {dimension_numbers = #tpu.dot_dimension_numbers<[1], [0], [0], [1], [0, 0, 1, 1], [], []>} : vector<128x20xbf16>, vector<20x20xbf16>, vector<128x20xf32> -> vector<128x20xf32>
    %133 = arith.addf %127, %132 : vector<128x20xf32>
    %134 = vector.extract_strided_slice %4 {offsets = [0, 4, 1, 0], sizes = [2, 8, 8, 20], strides = [1, 1, 1, 1]} : vector<2x12x12x20xbf16> to vector<2x8x8x20xbf16>
    %135 = vector.shape_cast %134 : vector<2x8x8x20xbf16> to vector<128x20xbf16>
    %c21 = arith.constant 21 : index
    %c0_81 = arith.constant 0 : index
    %c0_82 = arith.constant 0 : index
    %136 = vector.load %arg4[%c21, %c0_81, %c0_82] : memref<25x20x20xbf16, #tpu.memory_space<vmem>>, vector<1x20x20xbf16>
    %137 = vector.shape_cast %136 : vector<1x20x20xbf16> to vector<20x20xbf16>
    %cst_83 = arith.constant dense<0.000000e+00> : vector<128x20xf32>
    %138 = tpu.matmul %135, %137, %cst_83 {dimension_numbers = #tpu.dot_dimension_numbers<[1], [0], [0], [1], [0, 0, 1, 1], [], []>} : vector<128x20xbf16>, vector<20x20xbf16>, vector<128x20xf32> -> vector<128x20xf32>
    %139 = arith.addf %133, %138 : vector<128x20xf32>
    %140 = vector.extract_strided_slice %4 {offsets = [0, 4, 2, 0], sizes = [2, 8, 8, 20], strides = [1, 1, 1, 1]} : vector<2x12x12x20xbf16> to vector<2x8x8x20xbf16>
    %141 = vector.shape_cast %140 : vector<2x8x8x20xbf16> to vector<128x20xbf16>
    %c22 = arith.constant 22 : index
    %c0_84 = arith.constant 0 : index
    %c0_85 = arith.constant 0 : index
    %142 = vector.load %arg4[%c22, %c0_84, %c0_85] : memref<25x20x20xbf16, #tpu.memory_space<vmem>>, vector<1x20x20xbf16>
    %143 = vector.shape_cast %142 : vector<1x20x20xbf16> to vector<20x20xbf16>
    %cst_86 = arith.constant dense<0.000000e+00> : vector<128x20xf32>
    %144 = tpu.matmul %141, %143, %cst_86 {dimension_numbers = #tpu.dot_dimension_numbers<[1], [0], [0], [1], [0, 0, 1, 1], [], []>} : vector<128x20xbf16>, vector<20x20xbf16>, vector<128x20xf32> -> vector<128x20xf32>
    %145 = arith.addf %139, %144 : vector<128x20xf32>
    %146 = vector.extract_strided_slice %4 {offsets = [0, 4, 3, 0], sizes = [2, 8, 8, 20], strides = [1, 1, 1, 1]} : vector<2x12x12x20xbf16> to vector<2x8x8x20xbf16>
    %147 = vector.shape_cast %146 : vector<2x8x8x20xbf16> to vector<128x20xbf16>
    %c23 = arith.constant 23 : index
    %c0_87 = arith.constant 0 : index
    %c0_88 = arith.constant 0 : index
    %148 = vector.load %arg4[%c23, %c0_87, %c0_88] : memref<25x20x20xbf16, #tpu.memory_space<vmem>>, vector<1x20x20xbf16>
    %149 = vector.shape_cast %148 : vector<1x20x20xbf16> to vector<20x20xbf16>
    %cst_89 = arith.constant dense<0.000000e+00> : vector<128x20xf32>
    %150 = tpu.matmul %147, %149, %cst_89 {dimension_numbers = #tpu.dot_dimension_numbers<[1], [0], [0], [1], [0, 0, 1, 1], [], []>} : vector<128x20xbf16>, vector<20x20xbf16>, vector<128x20xf32> -> vector<128x20xf32>
    %151 = arith.addf %145, %150 : vector<128x20xf32>
    %152 = vector.extract_strided_slice %4 {offsets = [0, 4, 4, 0], sizes = [2, 8, 8, 20], strides = [1, 1, 1, 1]} : vector<2x12x12x20xbf16> to vector<2x8x8x20xbf16>
    %153 = vector.shape_cast %152 : vector<2x8x8x20xbf16> to vector<128x20xbf16>
    %c24 = arith.constant 24 : index
    %c0_90 = arith.constant 0 : index
    %c0_91 = arith.constant 0 : index
    %154 = vector.load %arg4[%c24, %c0_90, %c0_91] : memref<25x20x20xbf16, #tpu.memory_space<vmem>>, vector<1x20x20xbf16>
    %155 = vector.shape_cast %154 : vector<1x20x20xbf16> to vector<20x20xbf16>
    %cst_92 = arith.constant dense<0.000000e+00> : vector<128x20xf32>
    %156 = tpu.matmul %153, %155, %cst_92 {dimension_numbers = #tpu.dot_dimension_numbers<[1], [0], [0], [1], [0, 0, 1, 1], [], []>} : vector<128x20xbf16>, vector<20x20xbf16>, vector<128x20xf32> -> vector<128x20xf32>
    %157 = arith.addf %151, %156 : vector<128x20xf32>
    %c0_93 = arith.constant 0 : index
    %c0_94 = arith.constant 0 : index
    %158 = vector.load %arg2[%c0_93, %c0_94] : memref<128x10xbf16, #tpu.memory_space<vmem>>, vector<128x10xbf16>
    %c0_95 = arith.constant 0 : index
    %c0_96 = arith.constant 0 : index
    %159 = vector.load %arg3[%c0_95, %c0_96] : memref<10x20xbf16, #tpu.memory_space<vmem>>, vector<10x20xbf16>
    %cst_97 = arith.constant dense<0.000000e+00> : vector<128x20xf32>
    %160 = tpu.matmul %158, %159, %cst_97 {dimension_numbers = #tpu.dot_dimension_numbers<[1], [0], [0], [1], [0, 0, 1, 1], [], []>} : vector<128x10xbf16>, vector<10x20xbf16>, vector<128x20xf32> -> vector<128x20xf32>
    %161 = arith.addf %157, %160 : vector<128x20xf32>
    %cst_98 = arith.constant 0.000000e+00 : f32
    %162 = vector.broadcast %cst_98 : f32 to vector<128x20xf32>
    %163 = arith.maximumf %161, %162 : vector<128x20xf32>
    %164 = arith.truncf %163 : vector<128x20xf32> to vector<128x20xbf16>
    %165 = vector.shape_cast %164 : vector<128x20xbf16> to vector<2x8x8x20xbf16>
    %c0_99 = arith.constant 0 : index
    %c2_100 = arith.constant 2 : index
    %c2_101 = arith.constant 2 : index
    %c0_102 = arith.constant 0 : index
    %166 = vector.load %arg11[%c0_99, %c2_100, %c2_101, %c0_102] : memref<2x12x12x20xbf16, #tpu.memory_space<vmem>>, vector<2x8x8x20xbf16>
    tpu.vector_store %arg11[%c0_99, %c2_100, %c2_101, %c0_102], %165 {strides = array<i32>} : memref<2x12x12x20xbf16, #tpu.memory_space<vmem>>, vector<2x8x8x20xbf16>,
    %c0_103 = arith.constant 0 : index
    %c0_104 = arith.constant 0 : index
    %c0_105 = arith.constant 0 : index
    %c0_106 = arith.constant 0 : index
    %167 = vector.load %arg11[%c0_103, %c0_104, %c0_105, %c0_106] : memref<2x12x12x20xbf16, #tpu.memory_space<vmem>>, vector<2x12x12x20xbf16>
    %c0_107 = arith.constant 0 : index
    %c0_108 = arith.constant 0 : index
    %168 = vector.load %arg7[%c0_107, %c0_108] : memref<1x20xf32, #tpu.memory_space<vmem>>, vector<1x20xf32>
    %169 = vector.shape_cast %168 : vector<1x20xf32> to vector<1x20xf32>
    %170 = vector.broadcast %169 : vector<1x20xf32> to vector<128x20xf32>
    %171 = vector.extract_strided_slice %167 {offsets = [0, 0, 0, 0], sizes = [2, 8, 8, 20], strides = [1, 1, 1, 1]} : vector<2x12x12x20xbf16> to vector<2x8x8x20xbf16>
    %172 = vector.shape_cast %171 : vector<2x8x8x20xbf16> to vector<128x20xbf16>
    %c0_109 = arith.constant 0 : index
    %c0_110 = arith.constant 0 : index
    %c0_111 = arith.constant 0 : index
    %173 = vector.load %arg6[%c0_109, %c0_110, %c0_111] : memref<25x20x20xbf16, #tpu.memory_space<vmem>>, vector<1x20x20xbf16>
    %174 = vector.shape_cast %173 : vector<1x20x20xbf16> to vector<20x20xbf16>
    %cst_112 = arith.constant dense<0.000000e+00> : vector<128x20xf32>
    %175 = tpu.matmul %172, %174, %cst_112 {dimension_numbers = #tpu.dot_dimension_numbers<[1], [0], [0], [1], [0, 0, 1, 1], [], []>} : vector<128x20xbf16>, vector<20x20xbf16>, vector<128x20xf32> -> vector<128x20xf32>
    %176 = arith.addf %170, %175 : vector<128x20xf32>
    %177 = vector.extract_strided_slice %167 {offsets = [0, 0, 1, 0], sizes = [2, 8, 8, 20], strides = [1, 1, 1, 1]} : vector<2x12x12x20xbf16> to vector<2x8x8x20xbf16>
    %178 = vector.shape_cast %177 : vector<2x8x8x20xbf16> to vector<128x20xbf16>
    %c1_113 = arith.constant 1 : index
    %c0_114 = arith.constant 0 : index
    %c0_115 = arith.constant 0 : index
    %179 = vector.load %arg6[%c1_113, %c0_114, %c0_115] : memref<25x20x20xbf16, #tpu.memory_space<vmem>>, vector<1x20x20xbf16>
    %180 = vector.shape_cast %179 : vector<1x20x20xbf16> to vector<20x20xbf16>
    %cst_116 = arith.constant dense<0.000000e+00> : vector<128x20xf32>
    %181 = tpu.matmul %178, %180, %cst_116 {dimension_numbers = #tpu.dot_dimension_numbers<[1], [0], [0], [1], [0, 0, 1, 1], [], []>} : vector<128x20xbf16>, vector<20x20xbf16>, vector<128x20xf32> -> vector<128x20xf32>
    %182 = arith.addf %176, %181 : vector<128x20xf32>
    %183 = vector.extract_strided_slice %167 {offsets = [0, 0, 2, 0], sizes = [2, 8, 8, 20], strides = [1, 1, 1, 1]} : vector<2x12x12x20xbf16> to vector<2x8x8x20xbf16>
    %184 = vector.shape_cast %183 : vector<2x8x8x20xbf16> to vector<128x20xbf16>
    %c2_117 = arith.constant 2 : index
    %c0_118 = arith.constant 0 : index
    %c0_119 = arith.constant 0 : index
    %185 = vector.load %arg6[%c2_117, %c0_118, %c0_119] : memref<25x20x20xbf16, #tpu.memory_space<vmem>>, vector<1x20x20xbf16>
    %186 = vector.shape_cast %185 : vector<1x20x20xbf16> to vector<20x20xbf16>
    %cst_120 = arith.constant dense<0.000000e+00> : vector<128x20xf32>
    %187 = tpu.matmul %184, %186, %cst_120 {dimension_numbers = #tpu.dot_dimension_numbers<[1], [0], [0], [1], [0, 0, 1, 1], [], []>} : vector<128x20xbf16>, vector<20x20xbf16>, vector<128x20xf32> -> vector<128x20xf32>
    %188 = arith.addf %182, %187 : vector<128x20xf32>
    %189 = vector.extract_strided_slice %167 {offsets = [0, 0, 3, 0], sizes = [2, 8, 8, 20], strides = [1, 1, 1, 1]} : vector<2x12x12x20xbf16> to vector<2x8x8x20xbf16>
    %190 = vector.shape_cast %189 : vector<2x8x8x20xbf16> to vector<128x20xbf16>
    %c3_121 = arith.constant 3 : index
    %c0_122 = arith.constant 0 : index
    %c0_123 = arith.constant 0 : index
    %191 = vector.load %arg6[%c3_121, %c0_122, %c0_123] : memref<25x20x20xbf16, #tpu.memory_space<vmem>>, vector<1x20x20xbf16>
    %192 = vector.shape_cast %191 : vector<1x20x20xbf16> to vector<20x20xbf16>
    %cst_124 = arith.constant dense<0.000000e+00> : vector<128x20xf32>
    %193 = tpu.matmul %190, %192, %cst_124 {dimension_numbers = #tpu.dot_dimension_numbers<[1], [0], [0], [1], [0, 0, 1, 1], [], []>} : vector<128x20xbf16>, vector<20x20xbf16>, vector<128x20xf32> -> vector<128x20xf32>
    %194 = arith.addf %188, %193 : vector<128x20xf32>
    %195 = vector.extract_strided_slice %167 {offsets = [0, 0, 4, 0], sizes = [2, 8, 8, 20], strides = [1, 1, 1, 1]} : vector<2x12x12x20xbf16> to vector<2x8x8x20xbf16>
    %196 = vector.shape_cast %195 : vector<2x8x8x20xbf16> to vector<128x20xbf16>
    %c4_125 = arith.constant 4 : index
    %c0_126 = arith.constant 0 : index
    %c0_127 = arith.constant 0 : index
    %197 = vector.load %arg6[%c4_125, %c0_126, %c0_127] : memref<25x20x20xbf16, #tpu.memory_space<vmem>>, vector<1x20x20xbf16>
    %198 = vector.shape_cast %197 : vector<1x20x20xbf16> to vector<20x20xbf16>
    %cst_128 = arith.constant dense<0.000000e+00> : vector<128x20xf32>
    %199 = tpu.matmul %196, %198, %cst_128 {dimension_numbers = #tpu.dot_dimension_numbers<[1], [0], [0], [1], [0, 0, 1, 1], [], []>} : vector<128x20xbf16>, vector<20x20xbf16>, vector<128x20xf32> -> vector<128x20xf32>
    %200 = arith.addf %194, %199 : vector<128x20xf32>
    %201 = vector.extract_strided_slice %167 {offsets = [0, 1, 0, 0], sizes = [2, 8, 8, 20], strides = [1, 1, 1, 1]} : vector<2x12x12x20xbf16> to vector<2x8x8x20xbf16>
    %202 = vector.shape_cast %201 : vector<2x8x8x20xbf16> to vector<128x20xbf16>
    %c5_129 = arith.constant 5 : index
    %c0_130 = arith.constant 0 : index
    %c0_131 = arith.constant 0 : index
    %203 = vector.load %arg6[%c5_129, %c0_130, %c0_131] : memref<25x20x20xbf16, #tpu.memory_space<vmem>>, vector<1x20x20xbf16>
    %204 = vector.shape_cast %203 : vector<1x20x20xbf16> to vector<20x20xbf16>
    %cst_132 = arith.constant dense<0.000000e+00> : vector<128x20xf32>
    %205 = tpu.matmul %202, %204, %cst_132 {dimension_numbers = #tpu.dot_dimension_numbers<[1], [0], [0], [1], [0, 0, 1, 1], [], []>} : vector<128x20xbf16>, vector<20x20xbf16>, vector<128x20xf32> -> vector<128x20xf32>
    %206 = arith.addf %200, %205 : vector<128x20xf32>
    %207 = vector.extract_strided_slice %167 {offsets = [0, 1, 1, 0], sizes = [2, 8, 8, 20], strides = [1, 1, 1, 1]} : vector<2x12x12x20xbf16> to vector<2x8x8x20xbf16>
    %208 = vector.shape_cast %207 : vector<2x8x8x20xbf16> to vector<128x20xbf16>
    %c6_133 = arith.constant 6 : index
    %c0_134 = arith.constant 0 : index
    %c0_135 = arith.constant 0 : index
    %209 = vector.load %arg6[%c6_133, %c0_134, %c0_135] : memref<25x20x20xbf16, #tpu.memory_space<vmem>>, vector<1x20x20xbf16>
    %210 = vector.shape_cast %209 : vector<1x20x20xbf16> to vector<20x20xbf16>
    %cst_136 = arith.constant dense<0.000000e+00> : vector<128x20xf32>
    %211 = tpu.matmul %208, %210, %cst_136 {dimension_numbers = #tpu.dot_dimension_numbers<[1], [0], [0], [1], [0, 0, 1, 1], [], []>} : vector<128x20xbf16>, vector<20x20xbf16>, vector<128x20xf32> -> vector<128x20xf32>
    %212 = arith.addf %206, %211 : vector<128x20xf32>
    %213 = vector.extract_strided_slice %167 {offsets = [0, 1, 2, 0], sizes = [2, 8, 8, 20], strides = [1, 1, 1, 1]} : vector<2x12x12x20xbf16> to vector<2x8x8x20xbf16>
    %214 = vector.shape_cast %213 : vector<2x8x8x20xbf16> to vector<128x20xbf16>
    %c7_137 = arith.constant 7 : index
    %c0_138 = arith.constant 0 : index
    %c0_139 = arith.constant 0 : index
    %215 = vector.load %arg6[%c7_137, %c0_138, %c0_139] : memref<25x20x20xbf16, #tpu.memory_space<vmem>>, vector<1x20x20xbf16>
    %216 = vector.shape_cast %215 : vector<1x20x20xbf16> to vector<20x20xbf16>
    %cst_140 = arith.constant dense<0.000000e+00> : vector<128x20xf32>
    %217 = tpu.matmul %214, %216, %cst_140 {dimension_numbers = #tpu.dot_dimension_numbers<[1], [0], [0], [1], [0, 0, 1, 1], [], []>} : vector<128x20xbf16>, vector<20x20xbf16>, vector<128x20xf32> -> vector<128x20xf32>
    %218 = arith.addf %212, %217 : vector<128x20xf32>
    %219 = vector.extract_strided_slice %167 {offsets = [0, 1, 3, 0], sizes = [2, 8, 8, 20], strides = [1, 1, 1, 1]} : vector<2x12x12x20xbf16> to vector<2x8x8x20xbf16>
    %220 = vector.shape_cast %219 : vector<2x8x8x20xbf16> to vector<128x20xbf16>
    %c8_141 = arith.constant 8 : index
    %c0_142 = arith.constant 0 : index
    %c0_143 = arith.constant 0 : index
    %221 = vector.load %arg6[%c8_141, %c0_142, %c0_143] : memref<25x20x20xbf16, #tpu.memory_space<vmem>>, vector<1x20x20xbf16>
    %222 = vector.shape_cast %221 : vector<1x20x20xbf16> to vector<20x20xbf16>
    %cst_144 = arith.constant dense<0.000000e+00> : vector<128x20xf32>
    %223 = tpu.matmul %220, %222, %cst_144 {dimension_numbers = #tpu.dot_dimension_numbers<[1], [0], [0], [1], [0, 0, 1, 1], [], []>} : vector<128x20xbf16>, vector<20x20xbf16>, vector<128x20xf32> -> vector<128x20xf32>
    %224 = arith.addf %218, %223 : vector<128x20xf32>
    %225 = vector.extract_strided_slice %167 {offsets = [0, 1, 4, 0], sizes = [2, 8, 8, 20], strides = [1, 1, 1, 1]} : vector<2x12x12x20xbf16> to vector<2x8x8x20xbf16>
    %226 = vector.shape_cast %225 : vector<2x8x8x20xbf16> to vector<128x20xbf16>
    %c9_145 = arith.constant 9 : index
    %c0_146 = arith.constant 0 : index
    %c0_147 = arith.constant 0 : index
    %227 = vector.load %arg6[%c9_145, %c0_146, %c0_147] : memref<25x20x20xbf16, #tpu.memory_space<vmem>>, vector<1x20x20xbf16>
    %228 = vector.shape_cast %227 : vector<1x20x20xbf16> to vector<20x20xbf16>
    %cst_148 = arith.constant dense<0.000000e+00> : vector<128x20xf32>
    %229 = tpu.matmul %226, %228, %cst_148 {dimension_numbers = #tpu.dot_dimension_numbers<[1], [0], [0], [1], [0, 0, 1, 1], [], []>} : vector<128x20xbf16>, vector<20x20xbf16>, vector<128x20xf32> -> vector<128x20xf32>
    %230 = arith.addf %224, %229 : vector<128x20xf32>
    %231 = vector.extract_strided_slice %167 {offsets = [0, 2, 0, 0], sizes = [2, 8, 8, 20], strides = [1, 1, 1, 1]} : vector<2x12x12x20xbf16> to vector<2x8x8x20xbf16>
    %232 = vector.shape_cast %231 : vector<2x8x8x20xbf16> to vector<128x20xbf16>
    %c10_149 = arith.constant 10 : index
    %c0_150 = arith.constant 0 : index
    %c0_151 = arith.constant 0 : index
    %233 = vector.load %arg6[%c10_149, %c0_150, %c0_151] : memref<25x20x20xbf16, #tpu.memory_space<vmem>>, vector<1x20x20xbf16>
    %234 = vector.shape_cast %233 : vector<1x20x20xbf16> to vector<20x20xbf16>
    %cst_152 = arith.constant dense<0.000000e+00> : vector<128x20xf32>
    %235 = tpu.matmul %232, %234, %cst_152 {dimension_numbers = #tpu.dot_dimension_numbers<[1], [0], [0], [1], [0, 0, 1, 1], [], []>} : vector<128x20xbf16>, vector<20x20xbf16>, vector<128x20xf32> -> vector<128x20xf32>
    %236 = arith.addf %230, %235 : vector<128x20xf32>
    %237 = vector.extract_strided_slice %167 {offsets = [0, 2, 1, 0], sizes = [2, 8, 8, 20], strides = [1, 1, 1, 1]} : vector<2x12x12x20xbf16> to vector<2x8x8x20xbf16>
    %238 = vector.shape_cast %237 : vector<2x8x8x20xbf16> to vector<128x20xbf16>
    %c11_153 = arith.constant 11 : index
    %c0_154 = arith.constant 0 : index
    %c0_155 = arith.constant 0 : index
    %239 = vector.load %arg6[%c11_153, %c0_154, %c0_155] : memref<25x20x20xbf16, #tpu.memory_space<vmem>>, vector<1x20x20xbf16>
    %240 = vector.shape_cast %239 : vector<1x20x20xbf16> to vector<20x20xbf16>
    %cst_156 = arith.constant dense<0.000000e+00> : vector<128x20xf32>
    %241 = tpu.matmul %238, %240, %cst_156 {dimension_numbers = #tpu.dot_dimension_numbers<[1], [0], [0], [1], [0, 0, 1, 1], [], []>} : vector<128x20xbf16>, vector<20x20xbf16>, vector<128x20xf32> -> vector<128x20xf32>
    %242 = arith.addf %236, %241 : vector<128x20xf32>
    %243 = vector.extract_strided_slice %167 {offsets = [0, 2, 2, 0], sizes = [2, 8, 8, 20], strides = [1, 1, 1, 1]} : vector<2x12x12x20xbf16> to vector<2x8x8x20xbf16>
    %244 = vector.shape_cast %243 : vector<2x8x8x20xbf16> to vector<128x20xbf16>
    %c12_157 = arith.constant 12 : index
    %c0_158 = arith.constant 0 : index
    %c0_159 = arith.constant 0 : index
    %245 = vector.load %arg6[%c12_157, %c0_158, %c0_159] : memref<25x20x20xbf16, #tpu.memory_space<vmem>>, vector<1x20x20xbf16>
    %246 = vector.shape_cast %245 : vector<1x20x20xbf16> to vector<20x20xbf16>
    %cst_160 = arith.constant dense<0.000000e+00> : vector<128x20xf32>
    %247 = tpu.matmul %244, %246, %cst_160 {dimension_numbers = #tpu.dot_dimension_numbers<[1], [0], [0], [1], [0, 0, 1, 1], [], []>} : vector<128x20xbf16>, vector<20x20xbf16>, vector<128x20xf32> -> vector<128x20xf32>
    %248 = arith.addf %242, %247 : vector<128x20xf32>
    %249 = vector.extract_strided_slice %167 {offsets = [0, 2, 3, 0], sizes = [2, 8, 8, 20], strides = [1, 1, 1, 1]} : vector<2x12x12x20xbf16> to vector<2x8x8x20xbf16>
    %250 = vector.shape_cast %249 : vector<2x8x8x20xbf16> to vector<128x20xbf16>
    %c13_161 = arith.constant 13 : index
    %c0_162 = arith.constant 0 : index
    %c0_163 = arith.constant 0 : index
    %251 = vector.load %arg6[%c13_161, %c0_162, %c0_163] : memref<25x20x20xbf16, #tpu.memory_space<vmem>>, vector<1x20x20xbf16>
    %252 = vector.shape_cast %251 : vector<1x20x20xbf16> to vector<20x20xbf16>
    %cst_164 = arith.constant dense<0.000000e+00> : vector<128x20xf32>
    %253 = tpu.matmul %250, %252, %cst_164 {dimension_numbers = #tpu.dot_dimension_numbers<[1], [0], [0], [1], [0, 0, 1, 1], [], []>} : vector<128x20xbf16>, vector<20x20xbf16>, vector<128x20xf32> -> vector<128x20xf32>
    %254 = arith.addf %248, %253 : vector<128x20xf32>
    %255 = vector.extract_strided_slice %167 {offsets = [0, 2, 4, 0], sizes = [2, 8, 8, 20], strides = [1, 1, 1, 1]} : vector<2x12x12x20xbf16> to vector<2x8x8x20xbf16>
    %256 = vector.shape_cast %255 : vector<2x8x8x20xbf16> to vector<128x20xbf16>
    %c14_165 = arith.constant 14 : index
    %c0_166 = arith.constant 0 : index
    %c0_167 = arith.constant 0 : index
    %257 = vector.load %arg6[%c14_165, %c0_166, %c0_167] : memref<25x20x20xbf16, #tpu.memory_space<vmem>>, vector<1x20x20xbf16>
    %258 = vector.shape_cast %257 : vector<1x20x20xbf16> to vector<20x20xbf16>
    %cst_168 = arith.constant dense<0.000000e+00> : vector<128x20xf32>
    %259 = tpu.matmul %256, %258, %cst_168 {dimension_numbers = #tpu.dot_dimension_numbers<[1], [0], [0], [1], [0, 0, 1, 1], [], []>} : vector<128x20xbf16>, vector<20x20xbf16>, vector<128x20xf32> -> vector<128x20xf32>
    %260 = arith.addf %254, %259 : vector<128x20xf32>
    %261 = vector.extract_strided_slice %167 {offsets = [0, 3, 0, 0], sizes = [2, 8, 8, 20], strides = [1, 1, 1, 1]} : vector<2x12x12x20xbf16> to vector<2x8x8x20xbf16>
    %262 = vector.shape_cast %261 : vector<2x8x8x20xbf16> to vector<128x20xbf16>
    %c15_169 = arith.constant 15 : index
    %c0_170 = arith.constant 0 : index
    %c0_171 = arith.constant 0 : index
    %263 = vector.load %arg6[%c15_169, %c0_170, %c0_171] : memref<25x20x20xbf16, #tpu.memory_space<vmem>>, vector<1x20x20xbf16>
    %264 = vector.shape_cast %263 : vector<1x20x20xbf16> to vector<20x20xbf16>
    %cst_172 = arith.constant dense<0.000000e+00> : vector<128x20xf32>
    %265 = tpu.matmul %262, %264, %cst_172 {dimension_numbers = #tpu.dot_dimension_numbers<[1], [0], [0], [1], [0, 0, 1, 1], [], []>} : vector<128x20xbf16>, vector<20x20xbf16>, vector<128x20xf32> -> vector<128x20xf32>
    %266 = arith.addf %260, %265 : vector<128x20xf32>
    %267 = vector.extract_strided_slice %167 {offsets = [0, 3, 1, 0], sizes = [2, 8, 8, 20], strides = [1, 1, 1, 1]} : vector<2x12x12x20xbf16> to vector<2x8x8x20xbf16>
    %268 = vector.shape_cast %267 : vector<2x8x8x20xbf16> to vector<128x20xbf16>
    %c16_173 = arith.constant 16 : index
    %c0_174 = arith.constant 0 : index
    %c0_175 = arith.constant 0 : index
    %269 = vector.load %arg6[%c16_173, %c0_174, %c0_175] : memref<25x20x20xbf16, #tpu.memory_space<vmem>>, vector<1x20x20xbf16>
    %270 = vector.shape_cast %269 : vector<1x20x20xbf16> to vector<20x20xbf16>
    %cst_176 = arith.constant dense<0.000000e+00> : vector<128x20xf32>
    %271 = tpu.matmul %268, %270, %cst_176 {dimension_numbers = #tpu.dot_dimension_numbers<[1], [0], [0], [1], [0, 0, 1, 1], [], []>} : vector<128x20xbf16>, vector<20x20xbf16>, vector<128x20xf32> -> vector<128x20xf32>
    %272 = arith.addf %266, %271 : vector<128x20xf32>
    %273 = vector.extract_strided_slice %167 {offsets = [0, 3, 2, 0], sizes = [2, 8, 8, 20], strides = [1, 1, 1, 1]} : vector<2x12x12x20xbf16> to vector<2x8x8x20xbf16>
    %274 = vector.shape_cast %273 : vector<2x8x8x20xbf16> to vector<128x20xbf16>
    %c17_177 = arith.constant 17 : index
    %c0_178 = arith.constant 0 : index
    %c0_179 = arith.constant 0 : index
    %275 = vector.load %arg6[%c17_177, %c0_178, %c0_179] : memref<25x20x20xbf16, #tpu.memory_space<vmem>>, vector<1x20x20xbf16>
    %276 = vector.shape_cast %275 : vector<1x20x20xbf16> to vector<20x20xbf16>
    %cst_180 = arith.constant dense<0.000000e+00> : vector<128x20xf32>
    %277 = tpu.matmul %274, %276, %cst_180 {dimension_numbers = #tpu.dot_dimension_numbers<[1], [0], [0], [1], [0, 0, 1, 1], [], []>} : vector<128x20xbf16>, vector<20x20xbf16>, vector<128x20xf32> -> vector<128x20xf32>
    %278 = arith.addf %272, %277 : vector<128x20xf32>
    %279 = vector.extract_strided_slice %167 {offsets = [0, 3, 3, 0], sizes = [2, 8, 8, 20], strides = [1, 1, 1, 1]} : vector<2x12x12x20xbf16> to vector<2x8x8x20xbf16>
    %280 = vector.shape_cast %279 : vector<2x8x8x20xbf16> to vector<128x20xbf16>
    %c18_181 = arith.constant 18 : index
    %c0_182 = arith.constant 0 : index
    %c0_183 = arith.constant 0 : index
    %281 = vector.load %arg6[%c18_181, %c0_182, %c0_183] : memref<25x20x20xbf16, #tpu.memory_space<vmem>>, vector<1x20x20xbf16>
    %282 = vector.shape_cast %281 : vector<1x20x20xbf16> to vector<20x20xbf16>
    %cst_184 = arith.constant dense<0.000000e+00> : vector<128x20xf32>
    %283 = tpu.matmul %280, %282, %cst_184 {dimension_numbers = #tpu.dot_dimension_numbers<[1], [0], [0], [1], [0, 0, 1, 1], [], []>} : vector<128x20xbf16>, vector<20x20xbf16>, vector<128x20xf32> -> vector<128x20xf32>
    %284 = arith.addf %278, %283 : vector<128x20xf32>
    %285 = vector.extract_strided_slice %167 {offsets = [0, 3, 4, 0], sizes = [2, 8, 8, 20], strides = [1, 1, 1, 1]} : vector<2x12x12x20xbf16> to vector<2x8x8x20xbf16>
    %286 = vector.shape_cast %285 : vector<2x8x8x20xbf16> to vector<128x20xbf16>
    %c19_185 = arith.constant 19 : index
    %c0_186 = arith.constant 0 : index
    %c0_187 = arith.constant 0 : index
    %287 = vector.load %arg6[%c19_185, %c0_186, %c0_187] : memref<25x20x20xbf16, #tpu.memory_space<vmem>>, vector<1x20x20xbf16>
    %288 = vector.shape_cast %287 : vector<1x20x20xbf16> to vector<20x20xbf16>
    %cst_188 = arith.constant dense<0.000000e+00> : vector<128x20xf32>
    %289 = tpu.matmul %286, %288, %cst_188 {dimension_numbers = #tpu.dot_dimension_numbers<[1], [0], [0], [1], [0, 0, 1, 1], [], []>} : vector<128x20xbf16>, vector<20x20xbf16>, vector<128x20xf32> -> vector<128x20xf32>
    %290 = arith.addf %284, %289 : vector<128x20xf32>
    %291 = vector.extract_strided_slice %167 {offsets = [0, 4, 0, 0], sizes = [2, 8, 8, 20], strides = [1, 1, 1, 1]} : vector<2x12x12x20xbf16> to vector<2x8x8x20xbf16>
    %292 = vector.shape_cast %291 : vector<2x8x8x20xbf16> to vector<128x20xbf16>
    %c20_189 = arith.constant 20 : index
    %c0_190 = arith.constant 0 : index
    %c0_191 = arith.constant 0 : index
    %293 = vector.load %arg6[%c20_189, %c0_190, %c0_191] : memref<25x20x20xbf16, #tpu.memory_space<vmem>>, vector<1x20x20xbf16>
    %294 = vector.shape_cast %293 : vector<1x20x20xbf16> to vector<20x20xbf16>
    %cst_192 = arith.constant dense<0.000000e+00> : vector<128x20xf32>
    %295 = tpu.matmul %292, %294, %cst_192 {dimension_numbers = #tpu.dot_dimension_numbers<[1], [0], [0], [1], [0, 0, 1, 1], [], []>} : vector<128x20xbf16>, vector<20x20xbf16>, vector<128x20xf32> -> vector<128x20xf32>
    %296 = arith.addf %290, %295 : vector<128x20xf32>
    %297 = vector.extract_strided_slice %167 {offsets = [0, 4, 1, 0], sizes = [2, 8, 8, 20], strides = [1, 1, 1, 1]} : vector<2x12x12x20xbf16> to vector<2x8x8x20xbf16>
    %298 = vector.shape_cast %297 : vector<2x8x8x20xbf16> to vector<128x20xbf16>
    %c21_193 = arith.constant 21 : index
    %c0_194 = arith.constant 0 : index
    %c0_195 = arith.constant 0 : index
    %299 = vector.load %arg6[%c21_193, %c0_194, %c0_195] : memref<25x20x20xbf16, #tpu.memory_space<vmem>>, vector<1x20x20xbf16>
    %300 = vector.shape_cast %299 : vector<1x20x20xbf16> to vector<20x20xbf16>
    %cst_196 = arith.constant dense<0.000000e+00> : vector<128x20xf32>
    %301 = tpu.matmul %298, %300, %cst_196 {dimension_numbers = #tpu.dot_dimension_numbers<[1], [0], [0], [1], [0, 0, 1, 1], [], []>} : vector<128x20xbf16>, vector<20x20xbf16>, vector<128x20xf32> -> vector<128x20xf32>
    %302 = arith.addf %296, %301 : vector<128x20xf32>
    %303 = vector.extract_strided_slice %167 {offsets = [0, 4, 2, 0], sizes = [2, 8, 8, 20], strides = [1, 1, 1, 1]} : vector<2x12x12x20xbf16> to vector<2x8x8x20xbf16>
    %304 = vector.shape_cast %303 : vector<2x8x8x20xbf16> to vector<128x20xbf16>
    %c22_197 = arith.constant 22 : index
    %c0_198 = arith.constant 0 : index
    %c0_199 = arith.constant 0 : index
    %305 = vector.load %arg6[%c22_197, %c0_198, %c0_199] : memref<25x20x20xbf16, #tpu.memory_space<vmem>>, vector<1x20x20xbf16>
    %306 = vector.shape_cast %305 : vector<1x20x20xbf16> to vector<20x20xbf16>
    %cst_200 = arith.constant dense<0.000000e+00> : vector<128x20xf32>
    %307 = tpu.matmul %304, %306, %cst_200 {dimension_numbers = #tpu.dot_dimension_numbers<[1], [0], [0], [1], [0, 0, 1, 1], [], []>} : vector<128x20xbf16>, vector<20x20xbf16>, vector<128x20xf32> -> vector<128x20xf32>
    %308 = arith.addf %302, %307 : vector<128x20xf32>
    %309 = vector.extract_strided_slice %167 {offsets = [0, 4, 3, 0], sizes = [2, 8, 8, 20], strides = [1, 1, 1, 1]} : vector<2x12x12x20xbf16> to vector<2x8x8x20xbf16>
    %310 = vector.shape_cast %309 : vector<2x8x8x20xbf16> to vector<128x20xbf16>
    %c23_201 = arith.constant 23 : index
    %c0_202 = arith.constant 0 : index
    %c0_203 = arith.constant 0 : index
    %311 = vector.load %arg6[%c23_201, %c0_202, %c0_203] : memref<25x20x20xbf16, #tpu.memory_space<vmem>>, vector<1x20x20xbf16>
    %312 = vector.shape_cast %311 : vector<1x20x20xbf16> to vector<20x20xbf16>
    %cst_204 = arith.constant dense<0.000000e+00> : vector<128x20xf32>
    %313 = tpu.matmul %310, %312, %cst_204 {dimension_numbers = #tpu.dot_dimension_numbers<[1], [0], [0], [1], [0, 0, 1, 1], [], []>} : vector<128x20xbf16>, vector<20x20xbf16>, vector<128x20xf32> -> vector<128x20xf32>
    %314 = arith.addf %308, %313 : vector<128x20xf32>
    %315 = vector.extract_strided_slice %167 {offsets = [0, 4, 4, 0], sizes = [2, 8, 8, 20], strides = [1, 1, 1, 1]} : vector<2x12x12x20xbf16> to vector<2x8x8x20xbf16>
    %316 = vector.shape_cast %315 : vector<2x8x8x20xbf16> to vector<128x20xbf16>
    %c24_205 = arith.constant 24 : index
    %c0_206 = arith.constant 0 : index
    %c0_207 = arith.constant 0 : index
    %317 = vector.load %arg6[%c24_205, %c0_206, %c0_207] : memref<25x20x20xbf16, #tpu.memory_space<vmem>>, vector<1x20x20xbf16>
    %318 = vector.shape_cast %317 : vector<1x20x20xbf16> to vector<20x20xbf16>
    %cst_208 = arith.constant dense<0.000000e+00> : vector<128x20xf32>
    %319 = tpu.matmul %316, %318, %cst_208 {dimension_numbers = #tpu.dot_dimension_numbers<[1], [0], [0], [1], [0, 0, 1, 1], [], []>} : vector<128x20xbf16>, vector<20x20xbf16>, vector<128x20xf32> -> vector<128x20xf32>
    %320 = arith.addf %314, %319 : vector<128x20xf32>
    %cst_209 = arith.constant 0.000000e+00 : f32
    %321 = vector.broadcast %cst_209 : f32 to vector<128x20xf32>
    %322 = arith.maximumf %320, %321 : vector<128x20xf32>
    %323 = arith.truncf %322 : vector<128x20xf32> to vector<128x20xbf16>
    %324 = vector.shape_cast %323 : vector<128x20xbf16> to vector<2x8x8x20xbf16>
    %c0_210 = arith.constant 0 : index
    %c2_211 = arith.constant 2 : index
    %c2_212 = arith.constant 2 : index
    %c0_213 = arith.constant 0 : index
    %325 = vector.load %arg11[%c0_210, %c2_211, %c2_212, %c0_213] : memref<2x12x12x20xbf16, #tpu.memory_space<vmem>>, vector<2x8x8x20xbf16>
    tpu.vector_store %arg11[%c0_210, %c2_211, %c2_212, %c0_213], %324 {strides = array<i32>} : memref<2x12x12x20xbf16, #tpu.memory_space<vmem>>, vector<2x8x8x20xbf16>,
    %c0_214 = arith.constant 0 : index
    %c0_215 = arith.constant 0 : index
    %c0_216 = arith.constant 0 : index
    %c0_217 = arith.constant 0 : index
    %326 = vector.load %arg11[%c0_214, %c0_215, %c0_216, %c0_217] : memref<2x12x12x20xbf16, #tpu.memory_space<vmem>>, vector<2x12x12x20xbf16>
    %c0_218 = arith.constant 0 : index
    %c0_219 = arith.constant 0 : index
    %327 = vector.load %arg9[%c0_218, %c0_219] : memref<1x20xf32, #tpu.memory_space<vmem>>, vector<1x20xf32>
    %328 = vector.shape_cast %327 : vector<1x20xf32> to vector<1x20xf32>
    %329 = vector.broadcast %328 : vector<1x20xf32> to vector<128x20xf32>
    %330 = vector.extract_strided_slice %326 {offsets = [0, 0, 0, 0], sizes = [2, 8, 8, 20], strides = [1, 1, 1, 1]} : vector<2x12x12x20xbf16> to vector<2x8x8x20xbf16>
    %331 = vector.shape_cast %330 : vector<2x8x8x20xbf16> to vector<128x20xbf16>
    %c0_220 = arith.constant 0 : index
    %c0_221 = arith.constant 0 : index
    %c0_222 = arith.constant 0 : index
    %332 = vector.load %arg8[%c0_220, %c0_221, %c0_222] : memref<25x20x20xbf16, #tpu.memory_space<vmem>>, vector<1x20x20xbf16>
    %333 = vector.shape_cast %332 : vector<1x20x20xbf16> to vector<20x20xbf16>
    %cst_223 = arith.constant dense<0.000000e+00> : vector<128x20xf32>
    %334 = tpu.matmul %331, %333, %cst_223 {dimension_numbers = #tpu.dot_dimension_numbers<[1], [0], [0], [1], [0, 0, 1, 1], [], []>} : vector<128x20xbf16>, vector<20x20xbf16>, vector<128x20xf32> -> vector<128x20xf32>
    %335 = arith.addf %329, %334 : vector<128x20xf32>
    %336 = vector.extract_strided_slice %326 {offsets = [0, 0, 1, 0], sizes = [2, 8, 8, 20], strides = [1, 1, 1, 1]} : vector<2x12x12x20xbf16> to vector<2x8x8x20xbf16>
    %337 = vector.shape_cast %336 : vector<2x8x8x20xbf16> to vector<128x20xbf16>
    %c1_224 = arith.constant 1 : index
    %c0_225 = arith.constant 0 : index
    %c0_226 = arith.constant 0 : index
    %338 = vector.load %arg8[%c1_224, %c0_225, %c0_226] : memref<25x20x20xbf16, #tpu.memory_space<vmem>>, vector<1x20x20xbf16>
    %339 = vector.shape_cast %338 : vector<1x20x20xbf16> to vector<20x20xbf16>
    %cst_227 = arith.constant dense<0.000000e+00> : vector<128x20xf32>
    %340 = tpu.matmul %337, %339, %cst_227 {dimension_numbers = #tpu.dot_dimension_numbers<[1], [0], [0], [1], [0, 0, 1, 1], [], []>} : vector<128x20xbf16>, vector<20x20xbf16>, vector<128x20xf32> -> vector<128x20xf32>
    %341 = arith.addf %335, %340 : vector<128x20xf32>
    %342 = vector.extract_strided_slice %326 {offsets = [0, 0, 2, 0], sizes = [2, 8, 8, 20], strides = [1, 1, 1, 1]} : vector<2x12x12x20xbf16> to vector<2x8x8x20xbf16>
    %343 = vector.shape_cast %342 : vector<2x8x8x20xbf16> to vector<128x20xbf16>
    %c2_228 = arith.constant 2 : index
    %c0_229 = arith.constant 0 : index
    %c0_230 = arith.constant 0 : index
    %344 = vector.load %arg8[%c2_228, %c0_229, %c0_230] : memref<25x20x20xbf16, #tpu.memory_space<vmem>>, vector<1x20x20xbf16>
    %345 = vector.shape_cast %344 : vector<1x20x20xbf16> to vector<20x20xbf16>
    %cst_231 = arith.constant dense<0.000000e+00> : vector<128x20xf32>
    %346 = tpu.matmul %343, %345, %cst_231 {dimension_numbers = #tpu.dot_dimension_numbers<[1], [0], [0], [1], [0, 0, 1, 1], [], []>} : vector<128x20xbf16>, vector<20x20xbf16>, vector<128x20xf32> -> vector<128x20xf32>
    %347 = arith.addf %341, %346 : vector<128x20xf32>
    %348 = vector.extract_strided_slice %326 {offsets = [0, 0, 3, 0], sizes = [2, 8, 8, 20], strides = [1, 1, 1, 1]} : vector<2x12x12x20xbf16> to vector<2x8x8x20xbf16>
    %349 = vector.shape_cast %348 : vector<2x8x8x20xbf16> to vector<128x20xbf16>
    %c3_232 = arith.constant 3 : index
    %c0_233 = arith.constant 0 : index
    %c0_234 = arith.constant 0 : index
    %350 = vector.load %arg8[%c3_232, %c0_233, %c0_234] : memref<25x20x20xbf16, #tpu.memory_space<vmem>>, vector<1x20x20xbf16>
    %351 = vector.shape_cast %350 : vector<1x20x20xbf16> to vector<20x20xbf16>
    %cst_235 = arith.constant dense<0.000000e+00> : vector<128x20xf32>
    %352 = tpu.matmul %349, %351, %cst_235 {dimension_numbers = #tpu.dot_dimension_numbers<[1], [0], [0], [1], [0, 0, 1, 1], [], []>} : vector<128x20xbf16>, vector<20x20xbf16>, vector<128x20xf32> -> vector<128x20xf32>
    %353 = arith.addf %347, %352 : vector<128x20xf32>
    %354 = vector.extract_strided_slice %326 {offsets = [0, 0, 4, 0], sizes = [2, 8, 8, 20], strides = [1, 1, 1, 1]} : vector<2x12x12x20xbf16> to vector<2x8x8x20xbf16>
    %355 = vector.shape_cast %354 : vector<2x8x8x20xbf16> to vector<128x20xbf16>
    %c4_236 = arith.constant 4 : index
    %c0_237 = arith.constant 0 : index
    %c0_238 = arith.constant 0 : index
    %356 = vector.load %arg8[%c4_236, %c0_237, %c0_238] : memref<25x20x20xbf16, #tpu.memory_space<vmem>>, vector<1x20x20xbf16>
    %357 = vector.shape_cast %356 : vector<1x20x20xbf16> to vector<20x20xbf16>
    %cst_239 = arith.constant dense<0.000000e+00> : vector<128x20xf32>
    %358 = tpu.matmul %355, %357, %cst_239 {dimension_numbers = #tpu.dot_dimension_numbers<[1], [0], [0], [1], [0, 0, 1, 1], [], []>} : vector<128x20xbf16>, vector<20x20xbf16>, vector<128x20xf32> -> vector<128x20xf32>
    %359 = arith.addf %353, %358 : vector<128x20xf32>
    %360 = vector.extract_strided_slice %326 {offsets = [0, 1, 0, 0], sizes = [2, 8, 8, 20], strides = [1, 1, 1, 1]} : vector<2x12x12x20xbf16> to vector<2x8x8x20xbf16>
    %361 = vector.shape_cast %360 : vector<2x8x8x20xbf16> to vector<128x20xbf16>
    %c5_240 = arith.constant 5 : index
    %c0_241 = arith.constant 0 : index
    %c0_242 = arith.constant 0 : index
    %362 = vector.load %arg8[%c5_240, %c0_241, %c0_242] : memref<25x20x20xbf16, #tpu.memory_space<vmem>>, vector<1x20x20xbf16>
    %363 = vector.shape_cast %362 : vector<1x20x20xbf16> to vector<20x20xbf16>
    %cst_243 = arith.constant dense<0.000000e+00> : vector<128x20xf32>
    %364 = tpu.matmul %361, %363, %cst_243 {dimension_numbers = #tpu.dot_dimension_numbers<[1], [0], [0], [1], [0, 0, 1, 1], [], []>} : vector<128x20xbf16>, vector<20x20xbf16>, vector<128x20xf32> -> vector<128x20xf32>
    %365 = arith.addf %359, %364 : vector<128x20xf32>
    %366 = vector.extract_strided_slice %326 {offsets = [0, 1, 1, 0], sizes = [2, 8, 8, 20], strides = [1, 1, 1, 1]} : vector<2x12x12x20xbf16> to vector<2x8x8x20xbf16>
    %367 = vector.shape_cast %366 : vector<2x8x8x20xbf16> to vector<128x20xbf16>
    %c6_244 = arith.constant 6 : index
    %c0_245 = arith.constant 0 : index
    %c0_246 = arith.constant 0 : index
    %368 = vector.load %arg8[%c6_244, %c0_245, %c0_246] : memref<25x20x20xbf16, #tpu.memory_space<vmem>>, vector<1x20x20xbf16>
    %369 = vector.shape_cast %368 : vector<1x20x20xbf16> to vector<20x20xbf16>
    %cst_247 = arith.constant dense<0.000000e+00> : vector<128x20xf32>
    %370 = tpu.matmul %367, %369, %cst_247 {dimension_numbers = #tpu.dot_dimension_numbers<[1], [0], [0], [1], [0, 0, 1, 1], [], []>} : vector<128x20xbf16>, vector<20x20xbf16>, vector<128x20xf32> -> vector<128x20xf32>
    %371 = arith.addf %365, %370 : vector<128x20xf32>
    %372 = vector.extract_strided_slice %326 {offsets = [0, 1, 2, 0], sizes = [2, 8, 8, 20], strides = [1, 1, 1, 1]} : vector<2x12x12x20xbf16> to vector<2x8x8x20xbf16>
    %373 = vector.shape_cast %372 : vector<2x8x8x20xbf16> to vector<128x20xbf16>
    %c7_248 = arith.constant 7 : index
    %c0_249 = arith.constant 0 : index
    %c0_250 = arith.constant 0 : index
    %374 = vector.load %arg8[%c7_248, %c0_249, %c0_250] : memref<25x20x20xbf16, #tpu.memory_space<vmem>>, vector<1x20x20xbf16>
    %375 = vector.shape_cast %374 : vector<1x20x20xbf16> to vector<20x20xbf16>
    %cst_251 = arith.constant dense<0.000000e+00> : vector<128x20xf32>
    %376 = tpu.matmul %373, %375, %cst_251 {dimension_numbers = #tpu.dot_dimension_numbers<[1], [0], [0], [1], [0, 0, 1, 1], [], []>} : vector<128x20xbf16>, vector<20x20xbf16>, vector<128x20xf32> -> vector<128x20xf32>
    %377 = arith.addf %371, %376 : vector<128x20xf32>
    %378 = vector.extract_strided_slice %326 {offsets = [0, 1, 3, 0], sizes = [2, 8, 8, 20], strides = [1, 1, 1, 1]} : vector<2x12x12x20xbf16> to vector<2x8x8x20xbf16>
    %379 = vector.shape_cast %378 : vector<2x8x8x20xbf16> to vector<128x20xbf16>
    %c8_252 = arith.constant 8 : index
    %c0_253 = arith.constant 0 : index
    %c0_254 = arith.constant 0 : index
    %380 = vector.load %arg8[%c8_252, %c0_253, %c0_254] : memref<25x20x20xbf16, #tpu.memory_space<vmem>>, vector<1x20x20xbf16>
    %381 = vector.shape_cast %380 : vector<1x20x20xbf16> to vector<20x20xbf16>
    %cst_255 = arith.constant dense<0.000000e+00> : vector<128x20xf32>
    %382 = tpu.matmul %379, %381, %cst_255 {dimension_numbers = #tpu.dot_dimension_numbers<[1], [0], [0], [1], [0, 0, 1, 1], [], []>} : vector<128x20xbf16>, vector<20x20xbf16>, vector<128x20xf32> -> vector<128x20xf32>
    %383 = arith.addf %377, %382 : vector<128x20xf32>
    %384 = vector.extract_strided_slice %326 {offsets = [0, 1, 4, 0], sizes = [2, 8, 8, 20], strides = [1, 1, 1, 1]} : vector<2x12x12x20xbf16> to vector<2x8x8x20xbf16>
    %385 = vector.shape_cast %384 : vector<2x8x8x20xbf16> to vector<128x20xbf16>
    %c9_256 = arith.constant 9 : index
    %c0_257 = arith.constant 0 : index
    %c0_258 = arith.constant 0 : index
    %386 = vector.load %arg8[%c9_256, %c0_257, %c0_258] : memref<25x20x20xbf16, #tpu.memory_space<vmem>>, vector<1x20x20xbf16>
    %387 = vector.shape_cast %386 : vector<1x20x20xbf16> to vector<20x20xbf16>
    %cst_259 = arith.constant dense<0.000000e+00> : vector<128x20xf32>
    %388 = tpu.matmul %385, %387, %cst_259 {dimension_numbers = #tpu.dot_dimension_numbers<[1], [0], [0], [1], [0, 0, 1, 1], [], []>} : vector<128x20xbf16>, vector<20x20xbf16>, vector<128x20xf32> -> vector<128x20xf32>
    %389 = arith.addf %383, %388 : vector<128x20xf32>
    %390 = vector.extract_strided_slice %326 {offsets = [0, 2, 0, 0], sizes = [2, 8, 8, 20], strides = [1, 1, 1, 1]} : vector<2x12x12x20xbf16> to vector<2x8x8x20xbf16>
    %391 = vector.shape_cast %390 : vector<2x8x8x20xbf16> to vector<128x20xbf16>
    %c10_260 = arith.constant 10 : index
    %c0_261 = arith.constant 0 : index
    %c0_262 = arith.constant 0 : index
    %392 = vector.load %arg8[%c10_260, %c0_261, %c0_262] : memref<25x20x20xbf16, #tpu.memory_space<vmem>>, vector<1x20x20xbf16>
    %393 = vector.shape_cast %392 : vector<1x20x20xbf16> to vector<20x20xbf16>
    %cst_263 = arith.constant dense<0.000000e+00> : vector<128x20xf32>
    %394 = tpu.matmul %391, %393, %cst_263 {dimension_numbers = #tpu.dot_dimension_numbers<[1], [0], [0], [1], [0, 0, 1, 1], [], []>} : vector<128x20xbf16>, vector<20x20xbf16>, vector<128x20xf32> -> vector<128x20xf32>
    %395 = arith.addf %389, %394 : vector<128x20xf32>
    %396 = vector.extract_strided_slice %326 {offsets = [0, 2, 1, 0], sizes = [2, 8, 8, 20], strides = [1, 1, 1, 1]} : vector<2x12x12x20xbf16> to vector<2x8x8x20xbf16>
    %397 = vector.shape_cast %396 : vector<2x8x8x20xbf16> to vector<128x20xbf16>
    %c11_264 = arith.constant 11 : index
    %c0_265 = arith.constant 0 : index
    %c0_266 = arith.constant 0 : index
    %398 = vector.load %arg8[%c11_264, %c0_265, %c0_266] : memref<25x20x20xbf16, #tpu.memory_space<vmem>>, vector<1x20x20xbf16>
    %399 = vector.shape_cast %398 : vector<1x20x20xbf16> to vector<20x20xbf16>
    %cst_267 = arith.constant dense<0.000000e+00> : vector<128x20xf32>
    %400 = tpu.matmul %397, %399, %cst_267 {dimension_numbers = #tpu.dot_dimension_numbers<[1], [0], [0], [1], [0, 0, 1, 1], [], []>} : vector<128x20xbf16>, vector<20x20xbf16>, vector<128x20xf32> -> vector<128x20xf32>
    %401 = arith.addf %395, %400 : vector<128x20xf32>
    %402 = vector.extract_strided_slice %326 {offsets = [0, 2, 2, 0], sizes = [2, 8, 8, 20], strides = [1, 1, 1, 1]} : vector<2x12x12x20xbf16> to vector<2x8x8x20xbf16>
    %403 = vector.shape_cast %402 : vector<2x8x8x20xbf16> to vector<128x20xbf16>
    %c12_268 = arith.constant 12 : index
    %c0_269 = arith.constant 0 : index
    %c0_270 = arith.constant 0 : index
    %404 = vector.load %arg8[%c12_268, %c0_269, %c0_270] : memref<25x20x20xbf16, #tpu.memory_space<vmem>>, vector<1x20x20xbf16>
    %405 = vector.shape_cast %404 : vector<1x20x20xbf16> to vector<20x20xbf16>
    %cst_271 = arith.constant dense<0.000000e+00> : vector<128x20xf32>
    %406 = tpu.matmul %403, %405, %cst_271 {dimension_numbers = #tpu.dot_dimension_numbers<[1], [0], [0], [1], [0, 0, 1, 1], [], []>} : vector<128x20xbf16>, vector<20x20xbf16>, vector<128x20xf32> -> vector<128x20xf32>
    %407 = arith.addf %401, %406 : vector<128x20xf32>
    %408 = vector.extract_strided_slice %326 {offsets = [0, 2, 3, 0], sizes = [2, 8, 8, 20], strides = [1, 1, 1, 1]} : vector<2x12x12x20xbf16> to vector<2x8x8x20xbf16>
    %409 = vector.shape_cast %408 : vector<2x8x8x20xbf16> to vector<128x20xbf16>
    %c13_272 = arith.constant 13 : index
    %c0_273 = arith.constant 0 : index
    %c0_274 = arith.constant 0 : index
    %410 = vector.load %arg8[%c13_272, %c0_273, %c0_274] : memref<25x20x20xbf16, #tpu.memory_space<vmem>>, vector<1x20x20xbf16>
    %411 = vector.shape_cast %410 : vector<1x20x20xbf16> to vector<20x20xbf16>
    %cst_275 = arith.constant dense<0.000000e+00> : vector<128x20xf32>
    %412 = tpu.matmul %409, %411, %cst_275 {dimension_numbers = #tpu.dot_dimension_numbers<[1], [0], [0], [1], [0, 0, 1, 1], [], []>} : vector<128x20xbf16>, vector<20x20xbf16>, vector<128x20xf32> -> vector<128x20xf32>
    %413 = arith.addf %407, %412 : vector<128x20xf32>
    %414 = vector.extract_strided_slice %326 {offsets = [0, 2, 4, 0], sizes = [2, 8, 8, 20], strides = [1, 1, 1, 1]} : vector<2x12x12x20xbf16> to vector<2x8x8x20xbf16>
    %415 = vector.shape_cast %414 : vector<2x8x8x20xbf16> to vector<128x20xbf16>
    %c14_276 = arith.constant 14 : index
    %c0_277 = arith.constant 0 : index
    %c0_278 = arith.constant 0 : index
    %416 = vector.load %arg8[%c14_276, %c0_277, %c0_278] : memref<25x20x20xbf16, #tpu.memory_space<vmem>>, vector<1x20x20xbf16>
    %417 = vector.shape_cast %416 : vector<1x20x20xbf16> to vector<20x20xbf16>
    %cst_279 = arith.constant dense<0.000000e+00> : vector<128x20xf32>
    %418 = tpu.matmul %415, %417, %cst_279 {dimension_numbers = #tpu.dot_dimension_numbers<[1], [0], [0], [1], [0, 0, 1, 1], [], []>} : vector<128x20xbf16>, vector<20x20xbf16>, vector<128x20xf32> -> vector<128x20xf32>
    %419 = arith.addf %413, %418 : vector<128x20xf32>
    %420 = vector.extract_strided_slice %326 {offsets = [0, 3, 0, 0], sizes = [2, 8, 8, 20], strides = [1, 1, 1, 1]} : vector<2x12x12x20xbf16> to vector<2x8x8x20xbf16>
    %421 = vector.shape_cast %420 : vector<2x8x8x20xbf16> to vector<128x20xbf16>
    %c15_280 = arith.constant 15 : index
    %c0_281 = arith.constant 0 : index
    %c0_282 = arith.constant 0 : index
    %422 = vector.load %arg8[%c15_280, %c0_281, %c0_282] : memref<25x20x20xbf16, #tpu.memory_space<vmem>>, vector<1x20x20xbf16>
    %423 = vector.shape_cast %422 : vector<1x20x20xbf16> to vector<20x20xbf16>
    %cst_283 = arith.constant dense<0.000000e+00> : vector<128x20xf32>
    %424 = tpu.matmul %421, %423, %cst_283 {dimension_numbers = #tpu.dot_dimension_numbers<[1], [0], [0], [1], [0, 0, 1, 1], [], []>} : vector<128x20xbf16>, vector<20x20xbf16>, vector<128x20xf32> -> vector<128x20xf32>
    %425 = arith.addf %419, %424 : vector<128x20xf32>
    %426 = vector.extract_strided_slice %326 {offsets = [0, 3, 1, 0], sizes = [2, 8, 8, 20], strides = [1, 1, 1, 1]} : vector<2x12x12x20xbf16> to vector<2x8x8x20xbf16>
    %427 = vector.shape_cast %426 : vector<2x8x8x20xbf16> to vector<128x20xbf16>
    %c16_284 = arith.constant 16 : index
    %c0_285 = arith.constant 0 : index
    %c0_286 = arith.constant 0 : index
    %428 = vector.load %arg8[%c16_284, %c0_285, %c0_286] : memref<25x20x20xbf16, #tpu.memory_space<vmem>>, vector<1x20x20xbf16>
    %429 = vector.shape_cast %428 : vector<1x20x20xbf16> to vector<20x20xbf16>
    %cst_287 = arith.constant dense<0.000000e+00> : vector<128x20xf32>
    %430 = tpu.matmul %427, %429, %cst_287 {dimension_numbers = #tpu.dot_dimension_numbers<[1], [0], [0], [1], [0, 0, 1, 1], [], []>} : vector<128x20xbf16>, vector<20x20xbf16>, vector<128x20xf32> -> vector<128x20xf32>
    %431 = arith.addf %425, %430 : vector<128x20xf32>
    %432 = vector.extract_strided_slice %326 {offsets = [0, 3, 2, 0], sizes = [2, 8, 8, 20], strides = [1, 1, 1, 1]} : vector<2x12x12x20xbf16> to vector<2x8x8x20xbf16>
    %433 = vector.shape_cast %432 : vector<2x8x8x20xbf16> to vector<128x20xbf16>
    %c17_288 = arith.constant 17 : index
    %c0_289 = arith.constant 0 : index
    %c0_290 = arith.constant 0 : index
    %434 = vector.load %arg8[%c17_288, %c0_289, %c0_290] : memref<25x20x20xbf16, #tpu.memory_space<vmem>>, vector<1x20x20xbf16>
    %435 = vector.shape_cast %434 : vector<1x20x20xbf16> to vector<20x20xbf16>
    %cst_291 = arith.constant dense<0.000000e+00> : vector<128x20xf32>
    %436 = tpu.matmul %433, %435, %cst_291 {dimension_numbers = #tpu.dot_dimension_numbers<[1], [0], [0], [1], [0, 0, 1, 1], [], []>} : vector<128x20xbf16>, vector<20x20xbf16>, vector<128x20xf32> -> vector<128x20xf32>
    %437 = arith.addf %431, %436 : vector<128x20xf32>
    %438 = vector.extract_strided_slice %326 {offsets = [0, 3, 3, 0], sizes = [2, 8, 8, 20], strides = [1, 1, 1, 1]} : vector<2x12x12x20xbf16> to vector<2x8x8x20xbf16>
    %439 = vector.shape_cast %438 : vector<2x8x8x20xbf16> to vector<128x20xbf16>
    %c18_292 = arith.constant 18 : index
    %c0_293 = arith.constant 0 : index
    %c0_294 = arith.constant 0 : index
    %440 = vector.load %arg8[%c18_292, %c0_293, %c0_294] : memref<25x20x20xbf16, #tpu.memory_space<vmem>>, vector<1x20x20xbf16>
    %441 = vector.shape_cast %440 : vector<1x20x20xbf16> to vector<20x20xbf16>
    %cst_295 = arith.constant dense<0.000000e+00> : vector<128x20xf32>
    %442 = tpu.matmul %439, %441, %cst_295 {dimension_numbers = #tpu.dot_dimension_numbers<[1], [0], [0], [1], [0, 0, 1, 1], [], []>} : vector<128x20xbf16>, vector<20x20xbf16>, vector<128x20xf32> -> vector<128x20xf32>
    %443 = arith.addf %437, %442 : vector<128x20xf32>
    %444 = vector.extract_strided_slice %326 {offsets = [0, 3, 4, 0], sizes = [2, 8, 8, 20], strides = [1, 1, 1, 1]} : vector<2x12x12x20xbf16> to vector<2x8x8x20xbf16>
    %445 = vector.shape_cast %444 : vector<2x8x8x20xbf16> to vector<128x20xbf16>
    %c19_296 = arith.constant 19 : index
    %c0_297 = arith.constant 0 : index
    %c0_298 = arith.constant 0 : index
    %446 = vector.load %arg8[%c19_296, %c0_297, %c0_298] : memref<25x20x20xbf16, #tpu.memory_space<vmem>>, vector<1x20x20xbf16>
    %447 = vector.shape_cast %446 : vector<1x20x20xbf16> to vector<20x20xbf16>
    %cst_299 = arith.constant dense<0.000000e+00> : vector<128x20xf32>
    %448 = tpu.matmul %445, %447, %cst_299 {dimension_numbers = #tpu.dot_dimension_numbers<[1], [0], [0], [1], [0, 0, 1, 1], [], []>} : vector<128x20xbf16>, vector<20x20xbf16>, vector<128x20xf32> -> vector<128x20xf32>
    %449 = arith.addf %443, %448 : vector<128x20xf32>
    %450 = vector.extract_strided_slice %326 {offsets = [0, 4, 0, 0], sizes = [2, 8, 8, 20], strides = [1, 1, 1, 1]} : vector<2x12x12x20xbf16> to vector<2x8x8x20xbf16>
    %451 = vector.shape_cast %450 : vector<2x8x8x20xbf16> to vector<128x20xbf16>
    %c20_300 = arith.constant 20 : index
    %c0_301 = arith.constant 0 : index
    %c0_302 = arith.constant 0 : index
    %452 = vector.load %arg8[%c20_300, %c0_301, %c0_302] : memref<25x20x20xbf16, #tpu.memory_space<vmem>>, vector<1x20x20xbf16>
    %453 = vector.shape_cast %452 : vector<1x20x20xbf16> to vector<20x20xbf16>
    %cst_303 = arith.constant dense<0.000000e+00> : vector<128x20xf32>
    %454 = tpu.matmul %451, %453, %cst_303 {dimension_numbers = #tpu.dot_dimension_numbers<[1], [0], [0], [1], [0, 0, 1, 1], [], []>} : vector<128x20xbf16>, vector<20x20xbf16>, vector<128x20xf32> -> vector<128x20xf32>
    %455 = arith.addf %449, %454 : vector<128x20xf32>
    %456 = vector.extract_strided_slice %326 {offsets = [0, 4, 1, 0], sizes = [2, 8, 8, 20], strides = [1, 1, 1, 1]} : vector<2x12x12x20xbf16> to vector<2x8x8x20xbf16>
    %457 = vector.shape_cast %456 : vector<2x8x8x20xbf16> to vector<128x20xbf16>
    %c21_304 = arith.constant 21 : index
    %c0_305 = arith.constant 0 : index
    %c0_306 = arith.constant 0 : index
    %458 = vector.load %arg8[%c21_304, %c0_305, %c0_306] : memref<25x20x20xbf16, #tpu.memory_space<vmem>>, vector<1x20x20xbf16>
    %459 = vector.shape_cast %458 : vector<1x20x20xbf16> to vector<20x20xbf16>
    %cst_307 = arith.constant dense<0.000000e+00> : vector<128x20xf32>
    %460 = tpu.matmul %457, %459, %cst_307 {dimension_numbers = #tpu.dot_dimension_numbers<[1], [0], [0], [1], [0, 0, 1, 1], [], []>} : vector<128x20xbf16>, vector<20x20xbf16>, vector<128x20xf32> -> vector<128x20xf32>
    %461 = arith.addf %455, %460 : vector<128x20xf32>
    %462 = vector.extract_strided_slice %326 {offsets = [0, 4, 2, 0], sizes = [2, 8, 8, 20], strides = [1, 1, 1, 1]} : vector<2x12x12x20xbf16> to vector<2x8x8x20xbf16>
    %463 = vector.shape_cast %462 : vector<2x8x8x20xbf16> to vector<128x20xbf16>
    %c22_308 = arith.constant 22 : index
    %c0_309 = arith.constant 0 : index
    %c0_310 = arith.constant 0 : index
    %464 = vector.load %arg8[%c22_308, %c0_309, %c0_310] : memref<25x20x20xbf16, #tpu.memory_space<vmem>>, vector<1x20x20xbf16>
    %465 = vector.shape_cast %464 : vector<1x20x20xbf16> to vector<20x20xbf16>
    %cst_311 = arith.constant dense<0.000000e+00> : vector<128x20xf32>
    %466 = tpu.matmul %463, %465, %cst_311 {dimension_numbers = #tpu.dot_dimension_numbers<[1], [0], [0], [1], [0, 0, 1, 1], [], []>} : vector<128x20xbf16>, vector<20x20xbf16>, vector<128x20xf32> -> vector<128x20xf32>
    %467 = arith.addf %461, %466 : vector<128x20xf32>
    %468 = vector.extract_strided_slice %326 {offsets = [0, 4, 3, 0], sizes = [2, 8, 8, 20], strides = [1, 1, 1, 1]} : vector<2x12x12x20xbf16> to vector<2x8x8x20xbf16>
    %469 = vector.shape_cast %468 : vector<2x8x8x20xbf16> to vector<128x20xbf16>
    %c23_312 = arith.constant 23 : index
    %c0_313 = arith.constant 0 : index
    %c0_314 = arith.constant 0 : index
    %470 = vector.load %arg8[%c23_312, %c0_313, %c0_314] : memref<25x20x20xbf16, #tpu.memory_space<vmem>>, vector<1x20x20xbf16>
    %471 = vector.shape_cast %470 : vector<1x20x20xbf16> to vector<20x20xbf16>
    %cst_315 = arith.constant dense<0.000000e+00> : vector<128x20xf32>
    %472 = tpu.matmul %469, %471, %cst_315 {dimension_numbers = #tpu.dot_dimension_numbers<[1], [0], [0], [1], [0, 0, 1, 1], [], []>} : vector<128x20xbf16>, vector<20x20xbf16>, vector<128x20xf32> -> vector<128x20xf32>
    %473 = arith.addf %467, %472 : vector<128x20xf32>
    %474 = vector.extract_strided_slice %326 {offsets = [0, 4, 4, 0], sizes = [2, 8, 8, 20], strides = [1, 1, 1, 1]} : vector<2x12x12x20xbf16> to vector<2x8x8x20xbf16>
    %475 = vector.shape_cast %474 : vector<2x8x8x20xbf16> to vector<128x20xbf16>
    %c24_316 = arith.constant 24 : index
    %c0_317 = arith.constant 0 : index
    %c0_318 = arith.constant 0 : index
    %476 = vector.load %arg8[%c24_316, %c0_317, %c0_318] : memref<25x20x20xbf16, #tpu.memory_space<vmem>>, vector<1x20x20xbf16>
    %477 = vector.shape_cast %476 : vector<1x20x20xbf16> to vector<20x20xbf16>
    %cst_319 = arith.constant dense<0.000000e+00> : vector<128x20xf32>
    %478 = tpu.matmul %475, %477, %cst_319 {dimension_numbers = #tpu.dot_dimension_numbers<[1], [0], [0], [1], [0, 0, 1, 1], [], []>} : vector<128x20xbf16>, vector<20x20xbf16>, vector<128x20xf32> -> vector<128x20xf32>
    %479 = arith.addf %473, %478 : vector<128x20xf32>
    %c0_320 = arith.constant 0 : index
    %c0_321 = arith.constant 0 : index
    %480 = vector.load %arg10[%c0_320, %c0_321] : memref<128x20xf32, #tpu.memory_space<vmem>>, vector<128x20xf32>
    tpu.vector_store %arg10[%c0_320, %c0_321], %479 {strides = array<i32>} : memref<128x20xf32, #tpu.memory_space<vmem>>, vector<128x20xf32>,
    return
  }
  func.func @transform_0(%arg0: i32) -> (i32, i32, i32, i32) {
    %c0_i32 = arith.constant 0 : i32
    %c0_i32_0 = arith.constant 0 : i32
    %c0_i32_1 = arith.constant 0 : i32
    %c0_i32_2 = arith.constant 0 : i32
    %c0_i32_3 = arith.constant 0 : i32
    return %c0_i32, %c0_i32_0, %c0_i32_1, %c0_i32_2 : i32, i32, i32, i32
  }
  func.func @transform_1(%arg0: i32) -> (i32, i32) {
    %c0_i32 = arith.constant 0 : i32
    %c0_i32_0 = arith.constant 0 : i32
    %c0_i32_1 = arith.constant 0 : i32
    return %c0_i32, %c0_i32_0 : i32, i32
  }
  func.func @transform_2(%arg0: i32) -> (i32, i32) {
    %c0_i32 = arith.constant 0 : i32
    %c0_i32_0 = arith.constant 0 : i32
    %c0_i32_1 = arith.constant 0 : i32
    return %c0_i32, %c0_i32_0 : i32, i32
  }
  func.func @transform_3(%arg0: i32) -> (i32, i32, i32) {
    %c0_i32 = arith.constant 0 : i32
    %c0_i32_0 = arith.constant 0 : i32
    %c0_i32_1 = arith.constant 0 : i32
    %c0_i32_2 = arith.constant 0 : i32
    return %c0_i32, %c0_i32_0, %c0_i32_1 : i32, i32, i32
  }
  func.func @transform_4(%arg0: i32) -> (i32, i32) {
    %c0_i32 = arith.constant 0 : i32
    %c0_i32_0 = arith.constant 0 : i32
    %c0_i32_1 = arith.constant 0 : i32
    return %c0_i32, %c0_i32_0 : i32, i32
  }
  func.func @transform_5(%arg0: i32) -> (i32, i32, i32) {
    %c0_i32 = arith.constant 0 : i32
    %c0_i32_0 = arith.constant 0 : i32
    %c0_i32_1 = arith.constant 0 : i32
    %c0_i32_2 = arith.constant 0 : i32
    return %c0_i32, %c0_i32_0, %c0_i32_1 : i32, i32, i32
  }
  func.func @transform_6(%arg0: i32) -> (i32, i32) {
    %c0_i32 = arith.constant 0 : i32
    %c0_i32_0 = arith.constant 0 : i32
    %c0_i32_1 = arith.constant 0 : i32
    return %c0_i32, %c0_i32_0 : i32, i32
  }
  func.func @transform_7(%arg0: i32) -> (i32, i32, i32) {
    %c0_i32 = arith.constant 0 : i32
    %c0_i32_0 = arith.constant 0 : i32
    %c0_i32_1 = arith.constant 0 : i32
    %c0_i32_2 = arith.constant 0 : i32
    return %c0_i32, %c0_i32_0, %c0_i32_1 : i32, i32, i32
  }
  func.func @transform_8(%arg0: i32) -> (i32, i32) {
    %c0_i32 = arith.constant 0 : i32
    %c0_i32_0 = arith.constant 0 : i32
    %c0_i32_1 = arith.constant 0 : i32
    return %c0_i32, %c0_i32_0 : i32, i32
  }
  func.func @transform_9(%arg0: i32) -> (i32, i32) {
    %c0_i32 = arith.constant 0 : i32
    %c0_i32_0 = arith.constant 0 : i32
    %c0_i32_1 = arith.constant 0 : i32
    return %c0_i32, %c0_i32_0 : i32, i32
  }
}

</mosaic_0001>

<bundles_post_ra>
// kernel: conv_synthesizer_forward.1
= control target key start
LH: loop header
LB: loop body
LE: loop exit
PB: predicated region body
PF: predicated region fallthrough
CT: control target
= control target key end

     0   :  { %vm347_vm0 = vcmask 1041408   ;;  %vm34_vm1 = vcmask 158720   ;;  %v20145_v3 = vmov 0   ;;  %vm181_vm2 = vcmask 158721   ;;  %s26187_s0 = inlined_call_operand.vmem [shape: bf16[2,8,8,20], index: 0, kind: input, shape index: {}]   ;;  %s26188_s1 = inlined_call_operand.vmem [shape: bf16[128,10], index: 1, kind: input, shape index: {}]   ;;  %s26189_s2 = inlined_call_operand.vmem [shape: bf16[10,20], index: 2, kind: input, shape index: {}]   ;;  %s26190_s3 = inlined_call_operand.vmem [shape: bf16[25,20,20], index: 3, kind: input, shape index: {}]   ;;  %s26191_s4 = inlined_call_operand.vmem [shape: f32[1,20], index: 4, kind: input, shape index: {}]   ;;  %s26192_s5 = inlined_call_operand.vmem [shape: bf16[25,20,20], index: 5, kind: input, shape index: {}]   ;;  %s26193_s6 = inlined_call_operand.vmem [shape: f32[1,20], index: 6, kind: input, shape index: {}]   ;;  %s26194_s7 = inlined_call_operand.vmem [shape: bf16[25,20,20], index: 7, kind: input, shape index: {}]   ;;  %s26195_s8 = inlined_call_operand.vmem [shape: f32[1,20], index: 8, kind: input, shape index: {}]   ;;  %s26196_s9 = inlined_call_operand.hbm [shape: f32[128,20], index: 9, kind: output, shape index: {}]  }
   0x1   :  { %v19848_v0 = vld [vmem:[%s26190_s3] sm:$0xff]   ;;  %v19849_v1 = vld [vmem:[%s26190_s3 + $0x8] ss:$0 sps:$4 sm:$0x33]   ;;  %35 = vst.msk [vmem:[#allocation2] sm:$0xf] %vm34_vm1, %v20145_v3 }
   0x2   :  { %17034 = vmatprep.subr.bf16.mxu0 %v19848_v0  ;;  %v20206_v2 = vsel %vm347_vm0, %v19849_v1, 0  ;;  %38 = vst.msk [vmem:[#allocation2 + $0x8] sm:$0xf] %vm34_vm1, %v20145_v3  ;;  %40 = vst.msk [vmem:[#allocation2 + $0x10] sm:$0xf] %vm34_vm1, %v20145_v3  ;;  %v20235_v4 = vld [vmem:[%s26190_s3 + $0xc] sm:$0xff]  }
   0x3   :  { %17035 = vmatpush3.bf16.msra.mxu0 %v19848_v0  ;;  %42 = vst.msk [vmem:[#allocation2 + $0x18] sm:$0xf] %vm34_vm1, %v20145_v3  ;;  %44 = vst.msk [vmem:[#allocation2 + $0x20] sm:$0xf] %vm34_vm1, %v20145_v3  ;;  %v84_v5 = vld [vmem:[%s26187_s0] sm:$0xf] }
   0x4   :  { %46 = vst.msk [vmem:[#allocation2 + $0x28] sm:$0xf] %vm34_vm1, %v20145_v3  ;;  %48 = vst.msk [vmem:[#allocation2 + $0x30] sm:$0xf] %vm34_vm1, %v20145_v3  ;;  %v20243_v6 = vld [vmem:[%s26187_s0 + $0x4] sm:$0xf]  ;;  %19768 = vmatprep.subr.msk.bf16.mxu0 %vm347_vm0, %v19849_v1 }
   0x5   :  { %50 = vst.msk [vmem:[#allocation2 + $0x38] sm:$0xf] %vm34_vm1, %v20145_v3  ;;  %52 = vst.msk [vmem:[#allocation2 + $0x40] sm:$0xf] %vm34_vm1, %v20145_v3  ;;  %v116_v7 = vrot.slane %v84_v5, 7  ;;  %v118_v8 = vrot.slane %v20243_v6, 7 }
   0x6   :  { %54 = vst.msk [vmem:[#allocation2 + $0x48] sm:$0xf] %vm34_vm1, %v20145_v3  ;;  %56 = vst.msk [vmem:[#allocation2 + $0x50] sm:$0xf] %vm34_vm1, %v20145_v3  ;;  %v20250_v9 = vld [vmem:[%s26187_s0 + $0x8] sm:$0xf] }
   0x7   :  { %58 = vst.msk [vmem:[#allocation2 + $0x58] sm:$0xf] %vm34_vm1, %v20145_v3  ;;  %60 = vst.msk [vmem:[#allocation2 + $0x60] sm:$0xf] %vm34_vm1, %v20145_v3  ;;  %vm36_vm3 = vcmask 156672   ;;  %v120_v11 = vrot.slane %v20250_v9, 7  ;;  %17037 = vmatpush3.bf16.msra.mxu0 %v20206_v2 }
   0x8   :  { %62 = vst.msk [vmem:[#allocation2 + $0x68] sm:$0xf] %vm34_vm1, %v20145_v3  ;;  %64 = vst.msk [vmem:[#allocation2 + $0x70] sm:$0xf] %vm34_vm1, %v20145_v3  ;;  %v20255_v10 = vld [vmem:[%s26187_s0 + $0xc] sm:$0xf]  ;;  %17054 = vmatprep.subr.bf16.mxu0 %v20235_v4 }
   0x9   :  { %66 = vst.msk [vmem:[#allocation2 + $0x78] sm:$0xf] %vm34_vm1, %v20145_v3  ;;  %68 = vst.msk [vmem:[#allocation2 + $0x80] sm:$0xf] %vm34_vm1, %v20145_v3  ;;  %v20261_v12 = vld [vmem:[%s26187_s0 + $0x10] sm:$0xf] }
   0xa   :  { %70 = vst.msk [vmem:[#allocation2 + $0x88] sm:$0xf] %vm34_vm1, %v20145_v3  ;;  %72 = vst.msk [vmem:[#allocation2 + $0x90] sm:$0xf] %vm34_vm1, %v20145_v3  ;;  %v122_v13 = vrot.slane %v20255_v10, 7  ;;  %v124_v15 = vrot.slane %v20261_v12, 7 }
   0xb   :  { %74 = vst.msk [vmem:[#allocation2 + $0x98] sm:$0xf] %vm34_vm1, %v20145_v3  ;;  %76 = vst.msk [vmem:[#allocation2 + $0xa0] sm:$0xf] %vm34_vm1, %v20145_v3  ;;  %v20295_v14 = vld [vmem:[%s26187_s0 + $0x14] sm:$0xf] }
   0xc   :  { %78 = vst.msk [vmem:[#allocation2 + $0xa8] sm:$0xf] %vm34_vm1, %v20145_v3  ;;  %80 = vst.msk [vmem:[#allocation2 + $0xb0] sm:$0xf] %vm34_vm1, %v20145_v3  ;;  %v126_v16 = vrot.slane %v20295_v14, 7  ;;  %vm322_vm4 = vcmask 162816  }
   0xd   :  { %82 = vst.msk [vmem:[#allocation2 + $0xb8] sm:$0xf] %vm34_vm1, %v20145_v3  ;;  %v20313_v17 = vld [vmem:[%s26187_s0 + $0x20] sm:$0xf]  ;;  %v20318_v18 = vld [vmem:[%s26187_s0 + $0x24] sm:$0xf] }
   0xe   :  { %37 = vst.msk [vmem:[#allocation2 + $0x4] sm:$0x3] %vm36_vm3, %v20145_v3  ;;  %39 = vst.msk [vmem:[#allocation2 + $0xc] sm:$0x3] %vm36_vm3, %v20145_v3  ;;  %v20323_v19 = vld [vmem:[%s26187_s0 + $0x28] sm:$0xf] }
   0xf   :  { %41 = vst.msk [vmem:[#allocation2 + $0x14] sm:$0x3] %vm36_vm3, %v20145_v3  ;;  %43 = vst.msk [vmem:[#allocation2 + $0x1c] sm:$0x3] %vm36_vm3, %v20145_v3  ;;  %v132_v20 = vrot.slane %v20313_v17, 7  ;;  %v26224_v21 = vrot.slane %v20318_v18, 7 }
  0x10   :  { %45 = vst.msk [vmem:[#allocation2 + $0x24] sm:$0x3] %vm36_vm3, %v20145_v3  ;;  %47 = vst.msk [vmem:[#allocation2 + $0x2c] sm:$0x3] %vm36_vm3, %v20145_v3  ;;  %v20333_v22 = vld [vmem:[%s26187_s0 + $0x2c] sm:$0xf] }
  0x11   :  { %49 = vst.msk [vmem:[#allocation2 + $0x34] sm:$0x3] %vm36_vm3, %v20145_v3  ;;  %51 = vst.msk [vmem:[#allocation2 + $0x3c] sm:$0x3] %vm36_vm3, %v20145_v3  ;;  %v26223_v23 = vrot.slane %v20323_v19, 7  ;;  %v117_v26 = vrot.slane %v116_v7, 4 }
  0x12   :  { %53 = vst.msk [vmem:[#allocation2 + $0x44] sm:$0x3] %vm36_vm3, %v20145_v3  ;;  %55 = vst.msk [vmem:[#allocation2 + $0x4c] sm:$0x3] %vm36_vm3, %v20145_v3  ;;  %v20336_v24 = vld [vmem:[#allocation2] sm:$0xf] }
  0x13   :  { %57 = vst.msk [vmem:[#allocation2 + $0x54] sm:$0x3] %vm36_vm3, %v20145_v3  ;;  %59 = vst.msk [vmem:[#allocation2 + $0x5c] sm:$0x3] %vm36_vm3, %v20145_v3  ;;  %v20338_v25 = vld [vmem:[#allocation2 + $0x8] sm:$0xf] }
  0x14   :  { %61 = vst.msk [vmem:[#allocation2 + $0x64] sm:$0x3] %vm36_vm3, %v20145_v3  ;;  %63 = vst.msk [vmem:[#allocation2 + $0x6c] sm:$0x3] %vm36_vm3, %v20145_v3  ;;  %v14752_v27 = vcombine.low %v20336_v24, %v20338_v25  ;;  %v26216_v28 = vshrl.u32 %v20336_v24, 16  ;;  %v26214_v29 = vshll.u32 %v20336_v24, 16 }
  0x15   :  { %65 = vst.msk [vmem:[#allocation2 + $0x74] sm:$0x3] %vm36_vm3, %v20145_v3  ;;  %67 = vst.msk [vmem:[#allocation2 + $0x7c] sm:$0x3] %vm36_vm3, %v20145_v3  ;;  %v26219_v30 = vrot.slane %v20333_v22, 7  ;;  %v119_v51 = vrot.slane %v118_v8, 4 }
  0x16   :  { %69 = vst.msk [vmem:[#allocation2 + $0x84] sm:$0x3] %vm36_vm3, %v20145_v3  ;;  %71 = vst.msk [vmem:[#allocation2 + $0x8c] sm:$0x3] %vm36_vm3, %v20145_v3  ;;  %v20360_v32 = vld [vmem:[%s26187_s0 + $0x30] sm:$0xf]  ;;  %17038 = vmatprep.mubr.msk.bf16.mxu0 %vm322_vm4, %v14752_v27 }
  0x17   :  { %73 = vst.msk [vmem:[#allocation2 + $0x94] sm:$0x3] %vm36_vm3, %v20145_v3  ;;  %75 = vst.msk [vmem:[#allocation2 + $0x9c] sm:$0x3] %vm36_vm3, %v20145_v3  ;;  %v20365_v33 = vld [vmem:[%s26187_s0 + $0x34] sm:$0xf] }
  0x18   :  { %77 = vst.msk [vmem:[#allocation2 + $0xa4] sm:$0x3] %vm36_vm3, %v20145_v3  ;;  %79 = vst.msk [vmem:[#allocation2 + $0xac] sm:$0x3] %vm36_vm3, %v20145_v3  ;;  %v20367_v34 = vld [vmem:[#allocation2 + $0x4] sm:$0x3] }
  0x19   :  { %81 = vst.msk [vmem:[#allocation2 + $0xb4] sm:$0x3] %vm36_vm3, %v20145_v3  ;;  %83 = vst.msk [vmem:[#allocation2 + $0xbc] sm:$0x3] %vm36_vm3, %v20145_v3  ;;  %v26218_v37 = vrot.slane %v20360_v32, 7  ;;  %v26217_v38 = vrot.slane %v20365_v33, 7 }
  0x1a   :  { %182 = vst.msk [vmem:[#allocation2 + $0x10] sm:$0xe] %vm181_vm2, %v116_v7  ;;  %185 = vst.msk [vmem:[#allocation2 + $0x18] sm:$0xe] %vm181_vm2, %v118_v8  ;;  %v20385_v41 = vld [vmem:[#allocation2 + $0x60] sm:$0xf] }
  0x1b   :  { %187 = vst.msk [vmem:[#allocation2 + $0x20] sm:$0xe] %vm181_vm2, %v120_v11  ;;  %189 = vst.msk [vmem:[#allocation2 + $0x28] sm:$0xe] %vm181_vm2, %v122_v13  ;;  %v20387_v42 = vld [vmem:[#allocation2 + $0x68] sm:$0xf] }
  0x1c   :  { %191 = vst.msk [vmem:[#allocation2 + $0x30] sm:$0xe] %vm181_vm2, %v124_v15  ;;  %193 = vst.msk [vmem:[#allocation2 + $0x38] sm:$0xe] %vm181_vm2, %v126_v16  ;;  %v20389_v43 = vld [vmem:[#allocation2 + $0xc] sm:$0x3]  ;;  %v14756_v60 = vcombine.low %v20385_v41, %v20387_v42 }
  0x1d   :  { %199 = vst.msk [vmem:[#allocation2 + $0x70] sm:$0xe] %vm181_vm2, %v132_v20  ;;  %201 = vst.msk [vmem:[#allocation2 + $0x78] sm:$0xe] %vm181_vm2, %v26224_v21  ;;  %vm464_vm5 = vsmask.f32 3328 }
  0x1e   :  { %203 = vst.msk [vmem:[#allocation2 + $0x80] sm:$0xe] %vm181_vm2, %v26223_v23  ;;  %v19856_v31 = vld [vmem:[%s26190_s3 + $0x14] ss:$0 sps:$4 sm:$0x33]   ;;  %v470_v48 = vrot.slane %v26216_v28, 4 }
  0x1f   :  { %205 = vst.msk [vmem:[#allocation2 + $0x88] sm:$0xe] %vm181_vm2, %v26219_v30  ;;  %207 = vst.msk [vmem:[#allocation2 + $0x90] sm:$0xe] %vm181_vm2, %v26218_v37  ;;  %vm465_vm6 = vsmask.f32 7440 }
  0x20   :  { %209 = vst.msk [vmem:[#allocation2 + $0x98] sm:$0xe] %vm181_vm2, %v26217_v38  ;;  %v473_v49 = vrot.slane %v26214_v29, 5  ;;  %v26213_v50 = vshll.u32 %v20367_v34, 16  ;;  %v26206_v52 = vshrl.u32 %v20338_v25, 16  ;;  %v26205_v53 = vshll.u32 %v20338_v25, 16  ;;  %vm20447_vm7 = vmor %vm464_vm5, %vm465_vm6 }
  0x21   :  { %v20370_v35 = vld [vmem:[#allocation2 + $0x10] sm:$0xf]  ;;  %v20372_v36 = vld [vmem:[#allocation2 + $0x18] sm:$0xf]  ;;  %v26204_v54 = vshll.u32 %v20389_v43, 16  ;;  %v753_v57 = vsel %vm347_vm0, %v19856_v31, 0 }
  0x22   :  { %v20381_v39 = vcombine.low %v20370_v35, %v20372_v36  ;;  %v20383_v40 = vld [vmem:[#allocation2 + $0x20] sm:$0xf]  ;;  %v20391_v44 = vld [vmem:[#allocation2 + $0x28] sm:$0xf]  ;;  %v474_v58 = vor.u32 %v473_v49, %v470_v48  ;;  %v20431_v59 = vld [vmem:[%s26190_s3 + $0x18] sm:$0xff]   ;;  %v479_v61 = vrot.slane %v26213_v50, 5 }
  0x23   :  { %v20393_v45 = vld [vmem:[#allocation2 + $0x30] sm:$0xf]  ;;  %v20405_v46 = vcombine.low %v20383_v40, %v20391_v44  ;;  %v20407_v47 = vld [vmem:[#allocation2 + $0x38] sm:$0xf]  ;;  %v484_v62 = vrot.slane %v26206_v52, 4  ;;  %v487_v63 = vrot.slane %v26205_v53, 5 }
  0x24   :  { %26604 = vst [vmem:[#allocation6_spill] sm:$0xff] %v20381_v39  ;;  %17039 = vmatmul.mubr.msk.bf16.vlgmr.msra.gmra.mrb[0].mxu0 %vm322_vm4, %v20381_v39  ;;  %v20423_v55 = vld [vmem:[#allocation2 + $0x70] sm:$0xf]  ;;  %v20425_v56 = vld [vmem:[#allocation2 + $0x78] sm:$0xf]  ;;  %v20443_v0 = vcombine.low %v20393_v45, %v20407_v47  ;;  %v26607_v1 = vmov 0 }
  0x25   :  { %26605 = vst [vmem:[#allocation7_spill] sm:$0xff] %v20405_v46  ;;  %17055 = vmatpush3.bf16.msra.mxu0 %v20235_v4  ;;  %17042 = vmatprep.mubr.msk.bf16.mxu0 %vm322_vm4, %v20405_v46  ;;  %v26608_v1 = vsel %vm20447_vm7, 4294967295, %v26607_v1  ;;  %v475_v2 = vrot.slane %v474_v58, 4  ;;  %vm183_vm8 = vcmask 155648   ;;  %v26197_v3 = vshrl.u32 %v20370_v35, 16 }
  0x26   :  { %19769 = vmatprep.subr.msk.bf16.mxu0 %vm347_vm0, %v19856_v31  ;;  %26606 = vst [vmem:[#allocation8_spill] sm:$0xff] %v20443_v0  ;;  %26609 = vst [vmem:[#allocation9_spill] sm:$0xff] %v26608_v1  ;;  %v488_v4 = vor.u32 %v487_v63, %v484_v62  ;;  %v493_v5 = vrot.slane %v26204_v54, 5  ;;  %v26199_v6 = vshll.u32 %v20370_v35, 16  ;;  %v26198_v7 = vshrl.u32 %v20372_v36, 16 }
  0x27   :  { %184 = vst.msk [vmem:[#allocation2 + $0x14] sm:$0x1] %vm183_vm8, %v117_v26  ;;  %186 = vst.msk [vmem:[#allocation2 + $0x1c] sm:$0x1] %vm183_vm8, %v119_v51  ;;  %v20460_v8 = vcombine.low %v20423_v55, %v20425_v56  ;;  %v20462_v27 = vld [vmem:[#allocation2 + $0x80] sm:$0xf]  ;;  %v480_v49 = vsel %vm20447_vm7, %v475_v2, %v479_v61 }
  0x28   :  { %v20464_v31 = vld [vmem:[#allocation2 + $0x88] sm:$0xf]  ;;  %v498_v48 = vrot.slane %v26197_v3, 4  ;;  %v26200_v26 = vshll.u32 %v20372_v36, 16  ;;  %v489_v51 = vrot.slane %v488_v4, 4  ;;  %v512_v58 = vrot.slane %v26198_v7, 4 }
  0x29   :  { %17057 = vmatpush3.bf16.msra.mxu0 %v753_v57  ;;  %26610 = vst [vmem:[#allocation10_spill] sm:$0xff] %v20460_v8  ;;  %v501_v57 = vrot.slane %v26199_v6, 5  ;;  %v121_v63 = vrot.slane %v120_v11, 4  ;;  %v123_v3 = vrot.slane %v122_v13, 4  ;;  %v26203_v61 = vshrl.u32 %v20383_v40, 16 }
  0x2a   :  { %17074 = vmatprep.subr.bf16.mxu0 %v20431_v59  ;;  %v515_v62 = vrot.slane %v26200_v26, 5  ;;  %v20486_v2 = vld [vmem:[#allocation2 + $0x90] sm:$0xf]  ;;  %v20488_v4 = vld [vmem:[#allocation2 + $0x98] sm:$0xf]  ;;  %v20492_v7 = vsel %vm20447_vm7, %v489_v51, %v493_v5  ;;  %v26201_v26 = vshll.u32 %v20383_v40, 16  ;;  %v20498_v10 = vcombine.low %v20462_v27, %v20464_v31 }
  0x2b   :  { %26611 = vst [vmem:[#allocation11_spill] sm:$0xff] %v20492_v7  ;;  %v502_v6 = vor.u32 %v501_v57, %v498_v48  ;;  %v26202_v9 = vshrl.u32 %v20391_v44, 16  ;;  %188 = vst.msk [vmem:[#allocation2 + $0x24] sm:$0x1] %vm183_vm8, %v121_v63  ;;  %v526_v13 = vrot.slane %v26203_v61, 4  ;;  %v125_v57 = vrot.slane %v124_v15, 4 }
  0x2c   :  { %17043 = vmatmul.mubr.msk.bf16.gmra.mrb[4].mxu0 %vm322_vm4, %v20443_v0  ;;  %26612 = vst [vmem:[#allocation12_spill] sm:$0xff] %v20498_v10  ;;  %v516_v11 = vor.u32 %v515_v62, %v512_v58  ;;  %190 = vst.msk [vmem:[#allocation2 + $0x2c] sm:$0x1] %vm183_vm8, %v123_v3  ;;  %v529_v48 = vrot.slane %v26201_v26, 5  ;;  %v20513_v58 = vcombine.low %v20486_v2, %v20488_v4  ;;  %v127_v61 = vrot.slane %v126_v16, 4 }
  0x2d   :  { %17046 = vmatprep.mubr.msk.bf16.mxu0 %vm322_vm4, %v14756_v60  ;;  %v26207_v60 = vshll.u32 %v20391_v44, 16  ;;  %v503_v5 = vrot.slane %v502_v6, 4  ;;  %v540_v51 = vrot.slane %v26202_v9, 4  ;;  %v20516_v3 = vcombine.low %v480_v49, %v20492_v7  ;;  %192 = vst.msk [vmem:[#allocation2 + $0x34] sm:$0x1] %vm183_vm8, %v125_v57 }
  0x2e   :  { %26613 = vst [vmem:[#allocation13_spill] sm:$0xff] %v20513_v58  ;;  %v20518_v62 = vld [vmem:[#allocation2 + $0x14] sm:$0x3]  ;;  %v20520_v63 = vld [vmem:[#allocation2 + $0x1c] sm:$0x3]  ;;  %v517_v6 = vrot.slane %v516_v11, 4  ;;  %v530_v15 = vor.u32 %v529_v48, %v526_v13 }
  0x2f   :  { %v543_v26 = vrot.slane %v26207_v60, 5  ;;  %v26212_v9 = vshll.u32 %v20518_v62, 16  ;;  %v26208_v12 = vshll.u32 %v20520_v63, 16  ;;  %v26210_v54 = vshrl.u32 %v20393_v45, 16  ;;  %v20532_v52 = vld [vmem:[#allocation2 + $0x64] sm:$0x3] }
  0x30   :  { %v26209_v53 = vshll.u32 %v20393_v45, 16  ;;  %v26211_v11 = vshrl.u32 %v20407_v47, 16  ;;  %v531_v48 = vrot.slane %v530_v15, 4  ;;  %194 = vst.msk [vmem:[#allocation2 + $0x3c] sm:$0x1] %vm183_vm8, %v127_v61  ;;  %v26215_v14 = vshll.u32 %v20407_v47, 16 }
  0x31   :  { %v544_v49 = vor.u32 %v543_v26, %v540_v51  ;;  %v507_v60 = vrot.slane %v26212_v9, 5  ;;  %v521_v13 = vrot.slane %v26208_v12, 5  ;;  %v554_v26 = vrot.slane %v26210_v54, 4  ;;  %v20568_v29 = vld [vmem:[#allocation2 + $0x6c] sm:$0x3] }
  0x32   :  { %v557_v51 = vrot.slane %v26209_v53, 5  ;;  %v568_v57 = vrot.slane %v26211_v11, 4  ;;  %v571_v53 = vrot.slane %v26215_v14, 5  ;;  %v26220_v54 = vshrl.u32 %v20385_v41, 16 }
  0x33   :  { %v545_v16 = vrot.slane %v544_v49, 4  ;;  %v20552_v61 = vsel %vm20447_vm7, %v503_v5, %v507_v60  ;;  %v522_v15 = vsel %vm20447_vm7, %v517_v6, %v521_v13  ;;  %v20556_v49 = vld [vmem:[#allocation2 + $0x24] sm:$0x3]  ;;  %v20558_v12 = vld [vmem:[#allocation2 + $0x2c] sm:$0x3]  ;;  %v26225_v13 = vshll.u32 %v20385_v41, 16 }
  0x34   :  { %17047 = vmatmul.mubr.msk.bf16.gmra.mrb[8].mxu0 %vm322_vm4, %v20460_v8  ;;  %26614 = vst [vmem:[#allocation14_spill] sm:$0xff] %v20552_v61  ;;  %v20564_v11 = vcombine.low %v20552_v61, %v522_v15  ;;  %v26221_v9 = vshll.u32 %v20556_v49, 16  ;;  %v26222_v60 = vshll.u32 %v20558_v12, 16  ;;  %v558_v5 = vor.u32 %v557_v51, %v554_v26  ;;  %v20578_v37 = vld [vmem:[#allocation2 + $0x34] sm:$0x3] }
  0x35   :  { %17050 = vmatprep.mubr.msk.bf16.mxu0 %vm322_vm4, %v20498_v10  ;;  %v572_v50 = vor.u32 %v571_v53, %v568_v57  ;;  %v582_v6 = vrot.slane %v26220_v54, 4  ;;  %v26226_v14 = vshll.u32 %v20532_v52, 16  ;;  %v26227_v53 = vshrl.u32 %v20387_v42, 16 }
  0x36   :  { %26615 = vst [vmem:[#allocation15_spill] sm:$0xff] %v20564_v11  ;;  %v535_v28 = vrot.slane %v26221_v9, 5  ;;  %v549_v38 = vrot.slane %v26222_v60, 5  ;;  %v559_v30 = vrot.slane %v558_v5, 4  ;;  %v26228_v26 = vshll.u32 %v20578_v37, 16 }
  0x37   :  { %v573_v51 = vrot.slane %v572_v50, 4  ;;  %v585_v57 = vrot.slane %v26225_v13, 5  ;;  %v591_v54 = vrot.slane %v26226_v14, 5  ;;  %v20592_v23 = vld [vmem:[#allocation2 + $0x3c] sm:$0x3]  ;;  %v596_v5 = vrot.slane %v26227_v53, 4 }
  0x38   :  { %v536_v9 = vsel %vm20447_vm7, %v531_v48, %v535_v28  ;;  %v20590_v60 = vsel %vm20447_vm7, %v545_v16, %v549_v38  ;;  %v26229_v50 = vshll.u32 %v20387_v42, 16  ;;  %v563_v14 = vrot.slane %v26228_v26, 5  ;;  %v19861_v38 = vld [vmem:[%s26190_s3 + $0x20] ss:$0 sps:$4 sm:$0x33]  }
  0x39   :  { %26616 = vst [vmem:[#allocation16_spill] sm:$0xff] %v20590_v60  ;;  %v20598_v21 = vcombine.low %v536_v9, %v20590_v60  ;;  %v20600_v13 = vcombine.low %v522_v15, %v536_v9  ;;  %v26233_v28 = vshll.u32 %v20592_v23, 16  ;;  %v586_v48 = vor.u32 %v585_v57, %v582_v6 }
  0x3a   :  { %v599_v16 = vrot.slane %v26229_v50, 5  ;;  %v133_v9 = vrot.slane %v132_v20, 4  ;;  %v20619_v15 = vsel %vm20447_vm7, %v559_v30, %v563_v14  ;;  %v26620_v6 = vrot.slane %v20318_v18, 7 }
  0x3b   :  { %26617 = vst [vmem:[#allocation17_spill] sm:$0xff] %v20598_v21  ;;  %26618 = vst [vmem:[#allocation18_spill] sm:$0xff] %v20600_v13  ;;  %v577_v26 = vrot.slane %v26233_v28, 5  ;;  %v26232_v50 = vshrl.u32 %v20423_v55, 16  ;;  %v26621_v17 = vshll.u32 %v20568_v29, 16  ;;  %v26235_v14 = vshrl.u32 %v20425_v56, 16 }
  0x3c   :  { %17051 = vmatmul.mubr.msk.bf16.gmra.mrb[12].mxu0 %vm322_vm4, %v20513_v58  ;;  %26619 = vst [vmem:[#allocation19_spill] sm:$0xff] %v20619_v15  ;;  %v135_v57 = vrot.slane %v26620_v6, 4  ;;  %v587_v58 = vrot.slane %v586_v48, 4  ;;  %v600_v53 = vor.u32 %v599_v16, %v596_v5  ;;  %200 = vst.msk [vmem:[#allocation2 + $0x74] sm:$0x1] %vm183_vm8, %v133_v9  ;;  %v26238_v5 = vshll.u32 %v20425_v56, 16 }
  0x3d   :  { %17058 = vmatprep.mubr.msk.bf16.mxu0 %vm322_vm4, %v20516_v3  ;;  %v605_v20 = vrot.slane %v26621_v17, 5  ;;  %v26234_v3 = vshll.u32 %v20423_v55, 16  ;;  %v20632_v30 = vsel %vm20447_vm7, %v573_v51, %v577_v26  ;;  %v610_v18 = vrot.slane %v26232_v50, 4 }
  0x3e   :  { %26622 = vst [vmem:[#allocation20_spill] sm:$0xff] %v20632_v30  ;;  %202 = vst.msk [vmem:[#allocation2 + $0x7c] sm:$0x1] %vm183_vm8, %v135_v57  ;;  %v20641_v48 = vcombine.low %v20619_v15, %v20632_v30  ;;  %v592_v16 = vsel %vm20447_vm7, %v587_v58, %v591_v54  ;;  %v601_v9 = vrot.slane %v600_v53, 4  ;;  %v624_v51 = vrot.slane %v26235_v14, 4 }
  0x3f   :  { %v613_v26 = vrot.slane %v26234_v3, 5  ;;  %v627_v6 = vrot.slane %v26238_v5, 5  ;;  %v1013_v57 = vsel %vm347_vm0, %v19861_v38, 0  ;;  %v26624_v17 = vrot.slane %v20323_v19, 7 }
  0x40   :  { %26623 = vst [vmem:[#allocation21_spill] sm:$0xff] %v20641_v48  ;;  %v20656_v28 = vsel %vm20447_vm7, %v601_v9, %v605_v20  ;;  %v26626_v58 = vrot.slane %v20333_v22, 7  ;;  %v26241_v3 = vshrl.u32 %v20462_v27, 16  ;;  %v26240_v5 = vshll.u32 %v20462_v27, 16 }
  0x41   :  { %v137_v50 = vrot.slane %v26624_v17, 4  ;;  %26625 = vst [vmem:[#allocation22_spill] sm:$0xff] %v20656_v28  ;;  %v614_v54 = vor.u32 %v613_v26, %v610_v18  ;;  %v14777_v14 = vcombine.low %v592_v16, %v20656_v28  ;;  %v628_v10 = vor.u32 %v627_v6, %v624_v51 }
  0x42   :  { %v139_v53 = vrot.slane %v26626_v58, 4  ;;  %v26239_v19 = vshrl.u32 %v20464_v31, 16  ;;  %v638_v22 = vrot.slane %v26241_v3, 4  ;;  %v26242_v18 = vshll.u32 %v20464_v31, 16 }
  0x43   :  { %204 = vst.msk [vmem:[#allocation2 + $0x84] sm:$0x1] %vm183_vm8, %v137_v50  ;;  %v615_v20 = vrot.slane %v614_v54, 4  ;;  %v26627_v16 = vrot.slane %v20360_v32, 7  ;;  %v20676_v50 = vld [vmem:[%s26190_s3 + $0x24] sm:$0xff]   ;;  %v629_v51 = vrot.slane %v628_v10, 4 }
  0x44   :  { %17059 = vmatmul.mubr.msk.bf16.vlgmr.msra.gmra.mrb[0].mxu0 %vm322_vm4, %v20564_v11  ;;  %206 = vst.msk [vmem:[#allocation2 + $0x8c] sm:$0x1] %vm183_vm8, %v139_v53  ;;  %v20681_v26 = vld [vmem:[#allocation2 + $0x74] sm:$0x3]  ;;  %v641_v6 = vrot.slane %v26240_v5, 5  ;;  %v652_v32 = vrot.slane %v26239_v19, 4 }
  0x45   :  { %v141_v9 = vrot.slane %v26627_v16, 4  ;;  %17075 = vmatpush3.bf16.msra.mxu0 %v20431_v59  ;;  %17062 = vmatprep.mubr.msk.bf16.mxu0 %vm322_vm4, %v20598_v21  ;;  %v26628_v17 = vrot.slane %v20365_v33, 7  ;;  %v20690_v58 = vld [vmem:[#allocation2 + $0x7c] sm:$0x3]  ;;  %v26246_v59 = vshll.u32 %v20681_v26, 16  ;;  %v655_v53 = vrot.slane %v26242_v18, 5 }
  0x46   :  { %19770 = vmatprep.subr.msk.bf16.mxu0 %vm347_vm0, %v19861_v38  ;;  %v26245_v10 = vshrl.u32 %v20486_v2, 16  ;;  %v26249_v16 = vshll.u32 %v20486_v2, 16  ;;  %v26250_v19 = vshll.u32 %v20690_v58, 16  ;;  %v642_v5 = vor.u32 %v641_v6, %v638_v22 }
  0x47   :  { %v143_v54 = vrot.slane %v26628_v17, 4  ;;  %208 = vst.msk [vmem:[#allocation2 + $0x94] sm:$0x1] %vm183_vm8, %v141_v9  ;;  %v26247_v33 = vshrl.u32 %v20488_v4, 16  ;;  %v26248_v38 = vshll.u32 %v20488_v4, 16  ;;  %v619_v17 = vrot.slane %v26246_v59, 5 }
  0x48   :  { %v656_v3 = vor.u32 %v655_v53, %v652_v32  ;;  %v666_v9 = vrot.slane %v26245_v10, 4  ;;  %v669_v18 = vrot.slane %v26249_v16, 5  ;;  %v633_v21 = vrot.slane %v26250_v19, 5 }
  0x49   :  { %210 = vst.msk [vmem:[#allocation2 + $0x9c] sm:$0x1] %vm183_vm8, %v143_v54  ;;  %17077 = vmatpush3.bf16.msra.mxu0 %v1013_v57  ;;  %v643_v22 = vrot.slane %v642_v5, 4  ;;  %v680_v6 = vrot.slane %v26247_v33, 4  ;;  %v683_v54 = vrot.slane %v26248_v38, 5  ;;  %v20716_v32 = vsel %vm20447_vm7, %v615_v20, %v619_v17 }
  0x4a   :  { %26629 = vst [vmem:[#allocation23_spill] sm:$0xff] %v20716_v32  ;;  %v20718_v53 = vld [vmem:[#allocation2 + $0x84] sm:$0x3]  ;;  %v657_v10 = vrot.slane %v656_v3, 4  ;;  %v670_v59 = vor.u32 %v669_v18, %v666_v9  ;;  %vm884_vm9 = vcmask 1042432   ;;  %17094 = vmatprep.subr.bf16.mxu0 %v20676_v50  ;;  %v20723_v5 = vsel %vm20447_vm7, %v629_v51, %v633_v21 }
  0x4b   :  { %26630 = vst [vmem:[#allocation24_spill] sm:$0xff] %v20723_v5  ;;  %v20725_v57 = vld [vmem:[#allocation2 + $0x8c] sm:$0x3]  ;;  %v26254_v33 = vshll.u32 %v20718_v53, 16  ;;  %v684_v38 = vor.u32 %v683_v54, %v680_v6  ;;  %vm885_vm10 = vcmask 1046532   ;;  %v20732_v3 = vcombine.low %v20716_v32, %v20723_v5 }
  0x4c   :  { %17063 = vmatmul.mubr.msk.bf16.gmra.mrb[4].mxu0 %vm322_vm4, %v20641_v48  ;;  %v26258_v20 = vshll.u32 %v20725_v57, 16  ;;  %v671_v18 = vrot.slane %v670_v59, 4  ;;  %vm20735_vm11 = vmor %vm884_vm9, %vm885_vm10  ;;  %v26632_v17 = vmov 0  ;;  %v14791_v21 = vrot.slane %v20336_v24, 9 }
  0x4d   :  { %26631 = vst [vmem:[#allocation25_spill] sm:$0xff] %v20732_v3  ;;  %v26633_v17 = vsel %vm20735_vm11, 4294967295, %v26632_v17  ;;  %17066 = vmatprep.mubr.msk.bf16.mxu0 %vm322_vm4, %v14777_v14  ;;  %v647_v51 = vrot.slane %v26254_v33, 5  ;;  %v685_v6 = vrot.slane %v684_v38, 4  ;;  %v889_v54 = vrot.slane %v20367_v34, 5 }
  0x4e   :  { %26634 = vst [vmem:[#allocation26_spill] sm:$0xff] %v26633_v17  ;;  %v20743_v9 = vld [vmem:[#allocation2 + $0x94] sm:$0x3]  ;;  %v14792_v16 = vrot.slane %v20338_v25, 9  ;;  %v661_v59 = vrot.slane %v26258_v20, 5  ;;  %v893_v11 = vrot.slane %v20389_v43, 5 }
  0x4f   :  { %v26262_v48 = vshll.u32 %v20743_v9, 16  ;;  %v14793_v14 = vrot.slane %v20370_v35, 9  ;;  %v20756_v33 = vsel %vm20447_vm7, %v643_v22, %v647_v51  ;;  %v890_v8 = vsel %vm20735_vm11, %v14791_v21, %v889_v54 }
  0x50   :  { %v20749_v19 = vld [vmem:[#allocation2 + $0x9c] sm:$0x3]  ;;  %26635 = vst [vmem:[#allocation27_spill] sm:$0xff] %v20756_v33  ;;  %v897_v0 = vrot.slane %v20518_v62, 5  ;;  %v20764_v20 = vsel %vm20447_vm7, %v657_v10, %v661_v59  ;;  %v20770_v39 = vsel %vm20735_vm11, %v14792_v16, %v893_v11  ;;  %v14794_v22 = vrot.slane %v20372_v36, 9 }
  0x51   :  { %v26264_v38 = vshll.u32 %v20749_v19, 16  ;;  %26636 = vst [vmem:[#allocation28_spill] sm:$0xff] %v20764_v20  ;;  %v675_v46 = vrot.slane %v26262_v48, 5  ;;  %26637 = vst [vmem:[#allocation29_spill] sm:$0xff] %v20770_v39  ;;  %v20775_v51 = vcombine.low %v20756_v33, %v20764_v20  ;;  %v14810_v54 = vcombine.low %v890_v8, %v20770_v39 }
  0x52   :  { %v20782_v10 = vsel %vm20735_vm11, %v14793_v14, %v897_v0  ;;  %v901_v11 = vrot.slane %v20520_v63, 5  ;;  %v14795_v16 = vrot.slane %v20383_v40, 9  ;;  %v905_v48 = vrot.slane %v20556_v49, 5 }
  0x53   :  { %26638 = vst [vmem:[#allocation30_spill] sm:$0xff] %v20775_v51  ;;  %v689_v21 = vrot.slane %v26264_v38, 5  ;;  %26639 = vst [vmem:[#allocation31_spill] sm:$0xff] %v20782_v10  ;;  %v20786_v59 = vsel %vm20447_vm7, %v671_v18, %v675_v46  ;;  %v14796_v8 = vrot.slane %v20391_v44, 9  ;;  %v909_v38 = vrot.slane %v20558_v12, 5 }
  0x54   :  { %26640 = vst [vmem:[#allocation32_spill] sm:$0xff] %v20786_v59  ;;  %v14797_v0 = vrot.slane %v20393_v45, 9  ;;  %v20801_v46 = vld [vmem:[%s26190_s3 + $0x2c] ss:$0 sps:$4 sm:$0x33]   ;;  %17067 = vmatmul.mubr.msk.bf16.gmra.mrb[8].mxu0 %vm322_vm4, %v20732_v3  ;;  %v906_v14 = vsel %vm20735_vm11, %v14795_v16, %v905_v48  ;;  %v14799_v16 = vrot.slane %v20385_v41, 9 }
  0x55   :  { %v20793_v20 = vsel %vm20447_vm7, %v685_v6, %v689_v21  ;;  %v902_v6 = vsel %vm20735_vm11, %v14794_v22, %v901_v11  ;;  %v913_v21 = vrot.slane %v20578_v37, 5  ;;  %17070 = vmatprep.mubr.msk.bf16.mxu0 %vm322_vm4, %v20775_v51  ;;  %v20821_v3 = vsel %vm20735_vm11, %v14796_v8, %v909_v38 }
  0x56   :  { %26641 = vst [vmem:[#allocation33_spill] sm:$0xff] %v20793_v20  ;;  %v20807_v18 = vcombine.low %v20786_v59, %v20793_v20  ;;  %v20817_v39 = vcombine.low %v20782_v10, %v902_v6  ;;  %26644 = vst [vmem:[#allocation36_spill] sm:$0xff] %v20821_v3  ;;  %v20823_v20 = vcombine.low %v902_v6, %v906_v14  ;;  %v14798_v59 = vrot.slane %v20407_v47, 9 }
  0x57   :  { %v20827_v22 = vcombine.low %v906_v14, %v20821_v3  ;;  %v20831_v48 = vsel %vm20735_vm11, %v14797_v0, %v913_v21  ;;  %v917_v11 = vrot.slane %v20592_v23, 5  ;;  %v921_v51 = vrot.slane %v20532_v52, 5 }
  0x58   :  { %26642 = vst [vmem:[#allocation34_spill] sm:$0xff] %v20807_v18  ;;  %26643 = vst [vmem:[#allocation35_spill] sm:$0xff] %v20817_v39  ;;  %v14800_v38 = vrot.slane %v20387_v42, 9  ;;  %v925_v8 = vrot.slane %v20568_v29, 5  ;;  %v14801_v6 = vrot.slane %v20423_v55, 9  ;;  %v14802_v0 = vrot.slane %v20425_v56, 9 }
  0x59   :  { %26645 = vst [vmem:[#allocation37_spill] sm:$0xff] %v20823_v20  ;;  %26646 = vst [vmem:[#allocation38_spill] sm:$0xff] %v20827_v22  ;;  %v20841_v14 = vsel %vm20735_vm11, %v14798_v59, %v917_v11  ;;  %v929_v20 = vrot.slane %v20681_v26, 5  ;;  %v933_v21 = vrot.slane %v20690_v58, 5  ;;  %v20852_v10 = vsel %vm20735_vm11, %v14799_v16, %v921_v51 }
  0x5a   :  { %26647 = vst [vmem:[#allocation39_spill] sm:$0xff] %v20831_v48  ;;  %26648 = vst [vmem:[#allocation40_spill] sm:$0xff] %v20841_v14  ;;  %v20848_v3 = vcombine.low %v20831_v48, %v20841_v14  ;;  %v20856_v5 = vsel %vm20735_vm11, %v14800_v38, %v925_v8  ;;  %v20860_v59 = vsel %vm347_vm0, %v20801_v46, 0  ;;  %v14803_v51 = vrot.slane %v20462_v27, 9 }
  0x5b   :  { %v20866_v33 = vsel %vm20735_vm11, %v14801_v6, %v929_v20  ;;  %v20870_v14 = vsel %vm20735_vm11, %v14802_v0, %v933_v21  ;;  %v937_v38 = vrot.slane %v20718_v53, 5  ;;  %v14804_v8 = vrot.slane %v20464_v31, 9 }
  0x5c   :  { %26649 = vst [vmem:[#allocation41_spill] sm:$0xff] %v20848_v3  ;;  %v20875_v16 = vcombine.low %v20866_v33, %v20870_v14  ;;  %v941_v11 = vrot.slane %v20725_v57, 5  ;;  %17071 = vmatmul.mubr.msk.bf16.gmra.mrb[12].mxu0 %vm322_vm4, %v20807_v18  ;;  %v14805_v20 = vrot.slane %v20486_v2, 9  ;;  %v945_v6 = vrot.slane %v20743_v9, 5 }
  0x5d   :  { %v14806_v0 = vrot.slane %v20488_v4, 9  ;;  %v949_v21 = vrot.slane %v20749_v19, 5  ;;  %17078 = vmatprep.mubr.msk.bf16.mxu0 %vm322_vm4, %v14810_v54  ;;  %v20889_v48 = vsel %vm20735_vm11, %v14803_v51, %v937_v38  ;;  %vm1128_vm12 = vsmask.f32 2304 }
  0x5e   :  { %26650 = vst [vmem:[#allocation42_spill] sm:$0xff] %v20875_v16  ;;  %v20893_v28 = vsel %vm20735_vm11, %v14804_v8, %v941_v11  ;;  %vm1129_vm13 = vsmask.f32 6416  ;;  %v20901_v32 = vsel %vm20735_vm11, %v14805_v20, %v945_v6  ;;  %v26655_v51 = vshrl.u32 %v20336_v24, 16 }
  0x5f   :  { %26651 = vst [vmem:[#allocation43_spill] sm:$0xff] %v20893_v28  ;;  %v20897_v18 = vcombine.low %v20889_v48, %v20893_v28  ;;  %26653 = vst [vmem:[#allocation45_spill] sm:$0xff] %v20901_v32  ;;  %v20905_v54 = vsel %vm20735_vm11, %v14806_v0, %v949_v21  ;;  %v26657_v8 = vshll.u32 %v20336_v24, 16  ;;  %v1135_v1 = vshrl.u32 %v20367_v34, 16 }
  0x60   :  { %26654 = vst [vmem:[#allocation46_spill] sm:$0xff] %v20905_v54  ;;  %v1131_v38 = vrot.slane %v26655_v51, 5  ;;  %v20911_v11 = vcombine.low %v20901_v32, %v20905_v54  ;;  %v26658_v13 = vshll.u32 %v20367_v34, 16  ;;  %v26659_v6 = vshrl.u32 %v20338_v25, 16  ;;  %vm20931_vm14 = vmor %vm1128_vm12, %vm1129_vm13 }
  0x61   :  { %26652 = vst [vmem:[#allocation44_spill] sm:$0xff] %v20897_v18  ;;  %v1132_v30 = vrot.slane %v26657_v8, 6  ;;  %v26660_v0 = vshll.u32 %v20338_v25, 16  ;;  %v1145_v51 = vshrl.u32 %v20389_v43, 16  ;;  %v26661_v60 = vshll.u32 %v20389_v43, 16 }
  0x62   :  { %26656 = vst [vmem:[#allocation47_spill] sm:$0xff] %v20911_v11  ;;  %v1138_v20 = vrot.slane %v26658_v13, 6  ;;  %v1141_v17 = vrot.slane %v26659_v6, 5  ;;  %v1137_v7 = vrot.slane %v1135_v1, 5  ;;  %v26662_v24 = vshrl.u32 %v20370_v35, 16 }
  0x63   :  { %v1142_v21 = vrot.slane %v26660_v0, 6  ;;  %v1148_v54 = vrot.slane %v26661_v60, 6  ;;  %v1133_v15 = vor.u32 %v1132_v30, %v1131_v38  ;;  %v26663_v61 = vshll.u32 %v20370_v35, 16 }
  0x64   :  { %v1151_v8 = vrot.slane %v26662_v24, 5  ;;  %v26664_v13 = vmov 0  ;;  %v1147_v6 = vrot.slane %v1145_v51, 5  ;;  %v1155_v0 = vshrl.u32 %v20518_v62, 16  ;;  %17079 = vmatmul.mubr.msk.bf16.vlgmr.msra.gmra.mrb[0].mxu0 %vm322_vm4, %v20817_v39 }
  0x65   :  { %v1152_v34 = vrot.slane %v26663_v61, 6  ;;  %v26665_v13 = vsel %vm20931_vm14, 4294967295, %v26664_v13  ;;  %v1143_v25 = vor.u32 %v1142_v21, %v1141_v17  ;;  %v26667_v43 = vshll.u32 %v20518_v62, 16  ;;  %17095 = vmatpush3.bf16.msra.mxu0 %v20676_v50  ;;  %17082 = vmatprep.mubr.msk.bf16.mxu0 %vm322_vm4, %v20827_v22  ;;  %v20963_v50 = vld [vmem:[%s26190_s3 + $0x30] sm:$0xff]  }
  0x66   :  { %26666 = vst [vmem:[#allocation48_spill] sm:$0xff] %v26665_v13  ;;  %v1134_v1 = vrot.slane %v1133_v15, 4  ;;  %v1139_v30 = vor.u32 %v1138_v20, %v1137_v7  ;;  %v26668_v24 = vshrl.u32 %v20372_v36, 16  ;;  %v1149_v28 = vor.u32 %v1148_v54, %v1147_v6  ;;  %19771 = vmatprep.subr.msk.bf16.mxu0 %vm347_vm0, %v20801_v46 }
  0x67   :  { %v1158_v60 = vrot.slane %v26667_v43, 6  ;;  %v1153_v38 = vor.u32 %v1152_v34, %v1151_v8  ;;  %v1144_v61 = vrot.slane %v1143_v25, 4  ;;  %v1157_v32 = vrot.slane %v1155_v0, 5 }
  0x68   :  { %v1161_v35 = vrot.slane %v26668_v24, 5  ;;  %v26669_v17 = vshll.u32 %v20372_v36, 16  ;;  %v20949_v7 = vsel %vm20931_vm14, %v1134_v1, %v1139_v30  ;;  %v1165_v15 = vshrl.u32 %v20520_v63, 16 }
  0x69   :  { %v1154_v62 = vrot.slane %v1153_v38, 4  ;;  %v26670_v20 = vshll.u32 %v20520_v63, 16  ;;  %v20958_v36 = vsel %vm20931_vm14, %v1144_v61, %v1149_v28  ;;  %v1159_v54 = vor.u32 %v1158_v60, %v1157_v32  ;;  %17097 = vmatpush3.bf16.msra.mxu0 %v20860_v59 }
  0x6a   :  { %v1162_v21 = vrot.slane %v26669_v17, 6  ;;  %v26671_v34 = vshrl.u32 %v20383_v40, 16  ;;  %v14831_v6 = vcombine.low %v20949_v7, %v20958_v36  ;;  %v1167_v0 = vrot.slane %v1165_v15, 5  ;;  %17114 = vmatprep.subr.bf16.mxu0 %v20963_v50 }
  0x6b   :  { %v1168_v51 = vrot.slane %v26670_v20, 6  ;;  %v26672_v46 = vshll.u32 %v20383_v40, 16  ;;  %v1175_v28 = vshrl.u32 %v20556_v49, 16  ;;  %v20974_v1 = vsel %vm20931_vm14, %v1154_v62, %v1159_v54 }
  0x6c   :  { %v1163_v8 = vor.u32 %v1162_v21, %v1161_v35  ;;  %v1171_v25 = vrot.slane %v26671_v34, 5  ;;  %v26673_v32 = vshll.u32 %v20556_v49, 16  ;;  %v26674_v38 = vshrl.u32 %v20391_v44, 16  ;;  %17083 = vmatmul.mubr.msk.bf16.gmra.mrb[4].mxu0 %vm322_vm4, %v20848_v3  ;;  %v20078_v3 = vld [vmem:[#allocation2 + $0x98] sm:$0xf] }
  0x6d   :  { %v1172_v43 = vrot.slane %v26672_v46, 6  ;;  %v1169_v35 = vor.u32 %v1168_v51, %v1167_v0  ;;  %v1177_v17 = vrot.slane %v1175_v28, 5  ;;  %v26675_v40 = vshll.u32 %v20391_v44, 16 }
  0x6e   :  { %v1164_v30 = vrot.slane %v1163_v8, 4  ;;  %v1178_v60 = vrot.slane %v26673_v32, 6  ;;  %v1181_v24 = vrot.slane %v26674_v38, 5  ;;  %v1185_v62 = vshrl.u32 %v20558_v12, 16 }
  0x6f   :  { %v1173_v61 = vor.u32 %v1172_v43, %v1171_v25  ;;  %v1182_v21 = vrot.slane %v26675_v40, 6  ;;  %v26676_v15 = vshll.u32 %v20558_v12, 16  ;;  %v26677_v54 = vshrl.u32 %v20393_v45, 16 }
  0x70   :  { %v26678_v34 = vshll.u32 %v20393_v45, 16  ;;  %v1170_v59 = vsel %vm20931_vm14, %v1164_v30, %v1169_v35  ;;  %v1179_v25 = vor.u32 %v1178_v60, %v1177_v17  ;;  %v1187_v12 = vrot.slane %v1185_v62, 5 }
  0x71   :  { %v1188_v20 = vrot.slane %v26676_v15, 6  ;;  %v1191_v8 = vrot.slane %v26677_v54, 5  ;;  %v1174_v51 = vrot.slane %v1173_v61, 4  ;;  %v1183_v44 = vor.u32 %v1182_v21, %v1181_v24 }
  0x72   :  { %v1192_v46 = vrot.slane %v26678_v34, 6  ;;  %v20996_v0 = vcombine.low %v20974_v1, %v1170_v59  ;;  %v1195_v28 = vshrl.u32 %v20578_v37, 16  ;;  %v26680_v45 = vcombine.low %v20852_v10, %v20856_v5 }
  0x73   :  { %v1180_v30 = vsel %vm20931_vm14, %v1174_v51, %v1179_v25  ;;  %v1184_v32 = vrot.slane %v1183_v44, 4  ;;  %v26681_v60 = vshll.u32 %v20578_v37, 16  ;;  %v26682_v24 = vshrl.u32 %v20407_v47, 16 }
  0x74   :  { %26679 = vst [vmem:[#allocation49_spill] sm:$0xff] %v20996_v0  ;;  %v1193_v43 = vor.u32 %v1192_v46, %v1191_v8  ;;  %17086 = vmatprep.mubr.msk.bf16.mxu0 %vm322_vm4, %v26680_v45  ;;  %v1189_v61 = vor.u32 %v1188_v20, %v1187_v12  ;;  %v21009_v17 = vcombine.low %v1170_v59, %v1180_v30  ;;  %v1197_v21 = vrot.slane %v1195_v28, 5 }
  0x75   :  { %v1198_v38 = vrot.slane %v26681_v60, 6  ;;  %v1201_v35 = vrot.slane %v26682_v24, 5  ;;  %v26683_v62 = vshll.u32 %v20407_v47, 16  ;;  %v1205_v15 = vshrl.u32 %v20592_v23, 16  ;;  %17087 = vmatmul.mubr.msk.bf16.gmra.mrb[8].mxu0 %vm322_vm4, %v20875_v16 }
  0x76   :  { %v1194_v40 = vrot.slane %v1193_v43, 4  ;;  %v26684_v54 = vshll.u32 %v20592_v23, 16  ;;  %v26685_v34 = vshrl.u32 %v20385_v41, 16  ;;  %v21020_v46 = vsel %vm20931_vm14, %v1184_v32, %v1189_v61  ;;  %17090 = vmatprep.mubr.msk.bf16.mxu0 %vm322_vm4, %v20897_v18 }
  0x77   :  { %v1202_v10 = vrot.slane %v26683_v62, 6  ;;  %v1199_v20 = vor.u32 %v1198_v38, %v1197_v21  ;;  %v26686_v59 = vshll.u32 %v20385_v41, 16  ;;  %v1215_v25 = vshrl.u32 %v20532_v52, 16 }
  0x78   :  { %v1208_v8 = vrot.slane %v26684_v54, 6  ;;  %v1211_v37 = vrot.slane %v26685_v34, 5  ;;  %v21026_v47 = vcombine.low %v1180_v30, %v21020_v46  ;;  %v1207_v12 = vrot.slane %v1205_v15, 5 }
  0x79   :  { %v1212_v51 = vrot.slane %v26686_v59, 6  ;;  %v1203_v44 = vor.u32 %v1202_v10, %v1201_v35  ;;  %v26688_v23 = vshll.u32 %v20532_v52, 16  ;;  %v21032_v28 = vsel %vm20931_vm14, %v1194_v40, %v1199_v20 }
  0x7a   :  { %26687 = vst [vmem:[#allocation50_spill] sm:$0xff] %v21026_v47  ;;  %v1217_v32 = vrot.slane %v1215_v25, 5  ;;  %v26689_v60 = vshrl.u32 %v20387_v42, 16  ;;  %v1209_v24 = vor.u32 %v1208_v8, %v1207_v12  ;;  %v26690_v61 = vshll.u32 %v20387_v42, 16 }
  0x7b   :  { %v1218_v43 = vrot.slane %v26688_v23, 6  ;;  %v1213_v45 = vor.u32 %v1212_v51, %v1211_v37  ;;  %v1204_v38 = vrot.slane %v1203_v44, 4  ;;  %v1225_v35 = vshrl.u32 %v20568_v29, 16 }
  0x7c   :  { %v1221_v41 = vrot.slane %v26689_v60, 5  ;;  %v1222_v30 = vrot.slane %v26690_v61, 6  ;;  %v26691_v40 = vshll.u32 %v20568_v29, 16  ;;  %v26692_v10 = vshrl.u32 %v20423_v55, 16 }
  0x7d   :  { %v1214_v52 = vrot.slane %v1213_v45, 4  ;;  %v1219_v21 = vor.u32 %v1218_v43, %v1217_v32  ;;  %v21049_v42 = vsel %vm20931_vm14, %v1204_v38, %v1209_v24  ;;  %v1227_v8 = vrot.slane %v1225_v35, 5  ;;  %17091 = vmatmul.mubr.msk.bf16.gmra.mrb[12].mxu0 %vm322_vm4, %v20911_v11 }
  0x7e   :  { %v1228_v62 = vrot.slane %v26691_v40, 6  ;;  %v1231_v15 = vrot.slane %v26692_v10, 5  ;;  %v1223_v54 = vor.u32 %v1222_v30, %v1221_v41  ;;  %v26693_v34 = vshll.u32 %v20423_v55, 16  ;;  %17098 = vmatprep.mubr.msk.bf16.mxu0 %vm322_vm4, %v14831_v6 }
  0x7f   :  { %v21055_v20 = vcombine.low %v21032_v28, %v21049_v42  ;;  %v21059_v29 = vsel %vm20931_vm14, %v1214_v52, %v1219_v21  ;;  %v1235_v59 = vshrl.u32 %v20681_v26, 16  ;;  %v26695_v51 = vshll.u32 %v20681_v26, 16 }
  0x80   :  { %v1232_v37 = vrot.slane %v26693_v34, 6  ;;  %v1224_v44 = vrot.slane %v1223_v54, 4  ;;  %v1229_v12 = vor.u32 %v1228_v62, %v1227_v8  ;;  %v26696_v43 = vshrl.u32 %v20425_v56, 16 }
  0x81   :  { %26694 = vst [vmem:[#allocation51_spill] sm:$0xff] %v21055_v20  ;;  %v1238_v25 = vrot.slane %v26695_v51, 6  ;;  %v1237_v45 = vrot.slane %v1235_v59, 5  ;;  %v26697_v32 = vshll.u32 %v20425_v56, 16  ;;  %v1245_v41 = vshrl.u32 %v20690_v58, 16 }
  0x82   :  { %v1233_v23 = vor.u32 %v1232_v37, %v1231_v15  ;;  %v1241_v55 = vrot.slane %v26696_v43, 5  ;;  %v26698_v38 = vshll.u32 %v20690_v58, 16  ;;  %v21073_v61 = vsel %vm20931_vm14, %v1224_v44, %v1229_v12 }
  0x83   :  { %v1242_v60 = vrot.slane %v26697_v32, 6  ;;  %v26699_v35 = vshrl.u32 %v20462_v27, 16  ;;  %v14835_v21 = vcombine.low %v21059_v29, %v21073_v61  ;;  %v1239_v40 = vor.u32 %v1238_v25, %v1237_v45  ;;  %v98_v29 = vld [vmem:[%s26187_s0 + $0x38] sm:$0xf] }
  0x84   :  { %v1248_v24 = vrot.slane %v26698_v38, 6  ;;  %v1234_v30 = vrot.slane %v1233_v23, 4  ;;  %v1247_v56 = vrot.slane %v1245_v41, 5  ;;  %v26700_v10 = vshll.u32 %v20462_v27, 16 }
  0x85   :  { %v1251_v52 = vrot.slane %v26699_v35, 5  ;;  %v1243_v62 = vor.u32 %v1242_v60, %v1241_v55  ;;  %v1255_v54 = vshrl.u32 %v20718_v53, 16  ;;  %v26701_v8 = vshll.u32 %v20718_v53, 16  ;;  %17099 = vmatmul.mubr.msk.bf16.vlgmr.msra.gmra.mrb[0].mxu0 %vm322_vm4, %v20996_v0 }
  0x86   :  { %v1252_v15 = vrot.slane %v26700_v10, 6  ;;  %v26702_v37 = vshrl.u32 %v20464_v31, 16  ;;  %v21090_v51 = vsel %vm20931_vm14, %v1234_v30, %v1239_v40  ;;  %v1249_v44 = vor.u32 %v1248_v24, %v1247_v56  ;;  %v19865_v40 = vld [vmem:[%s26190_s3 + $0x38] ss:$0 sps:$4 sm:$0x33]   ;;  %17115 = vmatpush3.bf16.msra.mxu0 %v20963_v50  ;;  %17102 = vmatprep.mubr.msk.bf16.mxu0 %vm322_vm4, %v21026_v47  ;;  %v19868_v47 = vld [vmem:[%s26190_s3 + $0x48] sm:$0xff]  }
  0x87   :  { %v1258_v34 = vrot.slane %v26701_v8, 6  ;;  %v1244_v25 = vrot.slane %v1243_v62, 4  ;;  %v26703_v27 = vshll.u32 %v20464_v31, 16  ;;  %v1257_v43 = vrot.slane %v1255_v54, 5  ;;  %19772 = vmatprep.subr.msk.bf16.mxu0 %vm347_vm0, %v19865_v40 }
  0x88   :  { %v1261_v59 = vrot.slane %v26702_v37, 5  ;;  %v1253_v23 = vor.u32 %v1252_v15, %v1251_v52  ;;  %v1265_v55 = vshrl.u32 %v20725_v57, 16  ;;  %v26704_v45 = vshll.u32 %v20725_v57, 16 }
  0x89   :  { %v1262_v12 = vrot.slane %v26703_v27, 6  ;;  %v21103_v60 = vsel %vm20931_vm14, %v1244_v25, %v1249_v44  ;;  %v26705_v31 = vshrl.u32 %v20486_v2, 16  ;;  %v26706_v24 = vshll.u32 %v20486_v2, 16 }
  0x8a   :  { %v1268_v32 = vrot.slane %v26704_v45, 6  ;;  %v21111_v6 = vcombine.low %v21090_v51, %v21103_v60  ;;  %v1254_v30 = vrot.slane %v1253_v23, 4  ;;  %v1259_v35 = vor.u32 %v1258_v34, %v1257_v43 }
  0x8b   :  { %v1263_v41 = vor.u32 %v1262_v12, %v1261_v59  ;;  %v1271_v38 = vrot.slane %v26705_v31, 5  ;;  %v1272_v7 = vrot.slane %v26706_v24, 6  ;;  %v1267_v52 = vrot.slane %v1265_v55, 5 }
  0x8c   :  { %26707 = vst [vmem:[#allocation52_spill] sm:$0xff] %v21111_v6  ;;  %v1275_v10 = vshrl.u32 %v20743_v9, 16  ;;  %v26708_v15 = vshll.u32 %v20743_v9, 16  ;;  %v21121_v2 = vsel %vm20931_vm14, %v1254_v30, %v1259_v35  ;;  %v26709_v37 = vshrl.u32 %v20488_v4, 16  ;;  %v21152_v30 = vld [vmem:[%s26190_s3 + $0x3c] sm:$0xff]  }
  0x8d   :  { %v1264_v62 = vrot.slane %v1263_v41, 4  ;;  %v1273_v56 = vor.u32 %v1272_v7, %v1271_v38  ;;  %v1269_v8 = vor.u32 %v1268_v32, %v1267_v52  ;;  %v26710_v59 = vshll.u32 %v20488_v4, 16  ;;  %v21159_v35 = vld [vmem:[#allocation2 + $0x18] sm:$0xf]  ;;  %17103 = vmatmul.mubr.msk.bf16.gmra.mrb[4].mxu0 %vm322_vm4, %v21055_v20  ;;  %v21262_v20 = vld [vmem:[#allocation2 + $0x70] sm:$0xf] }
  0x8e   :  { %v1278_v54 = vrot.slane %v26708_v15, 6  ;;  %v1281_v34 = vrot.slane %v26709_v37, 5  ;;  %v1277_v27 = vrot.slane %v1275_v10, 5  ;;  %v1285_v12 = vshrl.u32 %v20749_v19, 16  ;;  %17106 = vmatprep.mubr.msk.bf16.mxu0 %vm322_vm4, %v14835_v21 }
  0x8f   :  { %v1282_v25 = vrot.slane %v26710_v59, 6  ;;  %v1274_v44 = vrot.slane %v1273_v56, 4  ;;  %v26711_v23 = vshll.u32 %v20749_v19, 16  ;;  %v21132_v55 = vsel %vm20931_vm14, %v1264_v62, %v1269_v8  ;;  %v21163_v62 = vld [vmem:[#allocation2 + $0x20] sm:$0xf] }
  0x90   :  { %v21138_v32 = vcombine.low %v21121_v2, %v21132_v55  ;;  %v1279_v4 = vor.u32 %v1278_v54, %v1277_v27  ;;  %v1287_v41 = vrot.slane %v1285_v12, 5  ;;  %vm1469_vm15 = vcmask 1045508   ;;  %v21191_v27 = vld [vmem:[#allocation2 + $0x8] sm:$0xf] }
  0x91   :  { %v1288_v43 = vrot.slane %v26711_v23, 6  ;;  %v1283_v45 = vor.u32 %v1282_v25, %v1281_v34  ;;  %v1597_v38 = vsel %vm347_vm0, %v19865_v40, 0  ;;  %vm21155_vm1 = vmor %vm347_vm0, %vm1469_vm15  ;;  %v26713_v50 = vmov 0  ;;  %v20057_v34 = vld [vmem:[#allocation2] sm:$0xf] }
  0x92   :  { %26712 = vst [vmem:[#allocation53_spill] sm:$0xff] %v21138_v32  ;;  %v21147_v24 = vsel %vm20931_vm14, %v1274_v44, %v1279_v4  ;;  %v26714_v50 = vsel %vm21155_vm1, 4294967295, %v26713_v50  ;;  %v14852_v52 = vrot.slane %v21159_v35, 10  ;;  %v1485_v40 = vrot.slane %v20520_v63, 6  ;;  %17117 = vmatpush3.bf16.msra.mxu0 %v1597_v38  ;;  %v20058_v25 = vld [vmem:[#allocation2 + $0x4] sm:$0x3] }
  0x93   :  { %v1284_v31 = vrot.slane %v1283_v45, 4  ;;  %v1289_v7 = vor.u32 %v1288_v43, %v1287_v41  ;;  %26715 = vst [vmem:[#allocation54_spill] sm:$0xff] %v26714_v50  ;;  %v14853_v56 = vrot.slane %v21163_v62, 10  ;;  %v1489_v15 = vrot.slane %v20556_v49, 6  ;;  %17134 = vmatprep.subr.bf16.mxu0 %v21152_v30  ;;  %v90_v49 = vld [vmem:[%s26187_s0 + $0x18] sm:$0xf] }
  0x94   :  { %v1486_v63 = vsel %vm21155_vm1, %v14852_v52, %v1485_v40  ;;  %v14849_v59 = vrot.slane %v20057_v34, 10  ;;  %v1473_v44 = vrot.slane %v20058_v25, 6  ;;  %v14850_v12 = vrot.slane %v21191_v27, 10  ;;  %v20060_v23 = vld [vmem:[#allocation2 + $0xc] sm:$0x3] }
  0x95   :  { %v21168_v10 = vsel %vm20931_vm14, %v1284_v31, %v1289_v7  ;;  %v1490_v8 = vsel %vm21155_vm1, %v14853_v56, %v1489_v15  ;;  %v1477_v43 = vrot.slane %v20060_v23, 6  ;;  %17107 = vmatmul.mubr.msk.bf16.gmra.mrb[8].mxu0 %vm322_vm4, %v21111_v6  ;;  %v128_v21 = vrot.slane %v90_v49, 7  ;;  %v21207_v41 = vld [vmem:[#allocation2 + $0x10] sm:$0xf]  ;;  %v20062_v7 = vld [vmem:[#allocation2 + $0x14] sm:$0x3] }
  0x96   :  { %v21173_v54 = vcombine.low %v21147_v24, %v21168_v10  ;;  %v21180_v37 = vcombine.low %v1486_v63, %v1490_v8  ;;  %17110 = vmatprep.mubr.msk.bf16.mxu0 %vm322_vm4, %v21138_v32  ;;  %v1474_v45 = vsel %vm21155_vm1, %v14849_v59, %v1473_v44  ;;  %v14851_v31 = vrot.slane %v21207_v41, 10  ;;  %v21212_v15 = vld [vmem:[#allocation2 + $0x28] sm:$0xf]  ;;  %v20064_v59 = vld [vmem:[#allocation2 + $0x2c] sm:$0x3]  ;;  %v26718_v23 = vld [vmem:[#allocation45_spill] sm:$0xff] }
  0x97   :  { %v21205_v4 = vsel %vm21155_vm1, %v14850_v12, %v1477_v43  ;;  %195 = vst.msk [vmem:[#allocation2 + $0x40] sm:$0xe] %vm181_vm2, %v128_v21  ;;  %v144_v38 = vrot.slane %v98_v29, 7  ;;  %v1481_v52 = vrot.slane %v20062_v7, 6  ;;  %v129_v40 = vrot.slane %v128_v21, 4  ;;  %v26719_v43 = vld [vmem:[#allocation43_spill] sm:$0xff] }
  0x98   :  { %26716 = vst [vmem:[#allocation55_spill] sm:$0xff] %v21173_v54  ;;  %v14868_v56 = vcombine.low %v1474_v45, %v21205_v4  ;;  %v14854_v49 = vrot.slane %v21212_v15, 10  ;;  %v1493_v25 = vrot.slane %v20064_v59, 6  ;;  %v21221_v12 = vcombine.low %v20870_v14, %v20889_v48  ;;  %v20072_v32 = vld [vmem:[#allocation2 + $0x6c] sm:$0x3] }
  0x99   :  { %211 = vst.msk [vmem:[#allocation2 + $0xa0] sm:$0xe] %vm181_vm2, %v144_v38  ;;  %v145_v34 = vrot.slane %v144_v38, 4  ;;  %v21225_v29 = vcombine.low %v26719_v43, %v26718_v23  ;;  %v21235_v45 = vsel %vm21155_vm1, %v14851_v31, %v1481_v52  ;;  %v21244_v38 = vld [vmem:[#allocation2 + $0x30] sm:$0xf]  ;;  %v1509_v6 = vrot.slane %v20072_v32, 6 }
  0x9a   :  { %196 = vst.msk [vmem:[#allocation2 + $0x44] sm:$0x1] %vm183_vm8, %v129_v40  ;;  %26717 = vst [vmem:[#allocation56_spill] sm:$0xff] %v21221_v12  ;;  %v21239_v48 = vsel %vm21155_vm1, %v14854_v49, %v1493_v25  ;;  %v21242_v14 = vcombine.low %v21235_v45, %v1486_v63  ;;  %v14855_v7 = vrot.slane %v21244_v38, 10  ;;  %v20066_v40 = vld [vmem:[#allocation2 + $0x34] sm:$0x3] }
  0x9b   :  { %26720 = vst [vmem:[#allocation45_spill] sm:$0xff] %v21225_v29  ;;  %212 = vst.msk [vmem:[#allocation2 + $0xa4] sm:$0x1] %vm183_vm8, %v145_v34  ;;  %v1497_v34 = vrot.slane %v20066_v40, 6  ;;  %v21252_v31 = vld [vmem:[#allocation2 + $0x38] sm:$0xf] }
  0x9c   :  { %26721 = vst [vmem:[#allocation43_spill] sm:$0xff] %v21242_v14  ;;  %v14856_v52 = vrot.slane %v21252_v31, 10  ;;  %v20068_v49 = vld [vmem:[#allocation2 + $0x3c] sm:$0x3]  ;;  %v20069_v43 = vld [vmem:[#allocation2 + $0x60] sm:$0xf] }
  0x9d   :  { %17111 = vmatmul.mubr.msk.bf16.gmra.mrb[12].mxu0 %vm322_vm4, %v21173_v54  ;;  %v1501_v25 = vrot.slane %v20068_v49, 6  ;;  %v19867_v63 = vld [vmem:[%s26190_s3 + $0x44] ss:$0 sps:$4 sm:$0x33]   ;;  %v14857_v21 = vrot.slane %v20069_v43, 10  ;;  %v14859_v49 = vrot.slane %v21262_v20, 10  ;;  %v21274_v43 = vsel %vm21155_vm1, %v14855_v7, %v1497_v34 }
  0x9e   :  { %17118 = vmatprep.mubr.msk.bf16.mxu0 %vm322_vm4, %v14868_v56  ;;  %v21247_v59 = vld [vmem:[#allocation2 + $0x40] sm:$0xf]  ;;  %v21250_v56 = vcombine.low %v1490_v8, %v21239_v48  ;;  %v20070_v40 = vld [vmem:[#allocation2 + $0x64] sm:$0x3]  ;;  %v21259_v54 = vld [vmem:[#allocation2 + $0x68] sm:$0xf] }
  0x9f   :  { %v26307_v23 = vshrl.u32 %v21247_v59, 16  ;;  %v1505_v44 = vrot.slane %v20070_v40, 6  ;;  %v14858_v8 = vrot.slane %v21259_v54, 10  ;;  %v1513_v40 = vrot.slane %v20681_v26, 6  ;;  %v21277_v32 = vld [vmem:[#allocation2 + $0x78] sm:$0xf] }
  0xa0   :  { %26722 = vst [vmem:[#allocation57_spill] sm:$0xff] %v21250_v56  ;;  %v14860_v11 = vrot.slane %v21277_v32, 10  ;;  %v1517_v7 = vrot.slane %v20690_v58, 6  ;;  %v21293_v26 = vcombine.low %v21020_v46, %v21032_v28  ;;  %v26723_v34 = vshll.u32 %v21247_v59, 16  ;;  %v20075_v58 = vld [vmem:[#allocation2 + $0x80] sm:$0xf] }
  0xa1   :  { %v21268_v0 = vrot.slane %v26307_v23, 5  ;;  %v21288_v23 = vsel %vm21155_vm1, %v14856_v52, %v1501_v25  ;;  %v1762_v52 = vsel %vm347_vm0, %v19867_v63, 0  ;;  %v14861_v25 = vrot.slane %v20075_v58, 10  ;;  %v20076_v28 = vld [vmem:[#allocation2 + $0x88] sm:$0xf] }
  0xa2   :  { %v1521_v46 = vrot.slane %v20718_v53, 6  ;;  %v14862_v18 = vrot.slane %v20076_v28, 10  ;;  %v14864_v53 = vrot.slane %v20078_v3, 10  ;;  %v21317_v22 = vld [vmem:[#allocation2 + $0xa0] sm:$0xf] }
  0xa3   :  { %v1895_v39 = vshll.u32 %v21317_v22, 16 }
  0xa5   :  { %17119 = vmatmul.mubr.msk.bf16.vlgmr.msra.gmra.mrb[0].mxu0 %vm322_vm4, %v21242_v14  ;;  %v21297_v14 = vrot.slane %v26723_v34, 6  ;;  %v21323_v34 = vsel %vm21155_vm1, %v14859_v49, %v1513_v40  ;;  %v1522_v49 = vsel %vm21155_vm1, %v14861_v25, %v1521_v46 }
  0xa6   :  { %17135 = vmatpush3.bf16.msra.mxu0 %v21152_v30  ;;  %17122 = vmatprep.mubr.msk.bf16.mxu0 %vm322_vm4, %v21250_v56  ;;  %v1506_v30 = vsel %vm21155_vm1, %v14857_v21, %v1505_v44  ;;  %v21303_v56 = vsel %vm21155_vm1, %v14858_v8, %v1509_v6  ;;  %v21312_v44 = vcombine.low %v21274_v43, %v21288_v23  ;;  %v1525_v6 = vrot.slane %v20725_v57, 6  ;;  %v20077_v21 = vld [vmem:[#allocation2 + $0x90] sm:$0xf] }
  0xa7   :  { %19773 = vmatprep.subr.msk.bf16.mxu0 %vm347_vm0, %v19867_v63  ;;  %v14863_v8 = vrot.slane %v20077_v21, 10  ;;  %v14872_v16 = vcombine.low %v1506_v30, %v21303_v56  ;;  %v1529_v63 = vrot.slane %v20743_v9, 6  ;;  %v1518_v57 = vsel %vm21155_vm1, %v14860_v11, %v1517_v7 }
  0xa8   :  { %26724 = vst [vmem:[#allocation58_spill] sm:$0xff] %v21312_v44  ;;  %v1533_v9 = vrot.slane %v20749_v19, 6  ;;  %v1526_v11 = vsel %vm21155_vm1, %v14862_v18, %v1525_v6  ;;  %v21342_v40 = vcombine.low %v21323_v34, %v1518_v57  ;;  %v21352_v7 = vrot.slane %v1895_v39, 6 }
  0xa9   :  { %v1530_v18 = vsel %vm21155_vm1, %v14863_v8, %v1529_v63  ;;  %v21382_v6 = vcombine.low %v21159_v35, %v21163_v62  ;;  %v19869_v8 = vld [vmem:[%s26190_s3 + $0x50] ss:$0 sps:$4 sm:$0x33]   ;;  %v21389_v63 = vcombine.low %v21212_v15, %v21244_v38 }
  0xaa   :  { %17137 = vmatpush3.bf16.msra.mxu0 %v1762_v52  ;;  %v1892_v52 = vshrl.u32 %v21317_v22, 16 }
  0xab   :  { %17154 = vmatprep.subr.bf16.mxu0 %v19868_v47 }
  0xac   :  { %v21348_v19 = vrot.slane %v1892_v52, 5 }
  0xad   :  { %17123 = vmatmul.mubr.msk.bf16.gmra.mrb[4].mxu0 %vm322_vm4, %v21312_v44  ;;  %v21335_v44 = vcombine.low %v21103_v60, %v21121_v2  ;;  %v21358_v60 = vcombine.low %v21132_v55, %v21147_v24  ;;  %v21366_v2 = vsel %vm21155_vm1, %v14864_v53, %v1533_v9  ;;  %v14889_v55 = vcombine.low %v21191_v27, %v21207_v41 }
  0xae   :  { %17126 = vmatprep.mubr.msk.bf16.mxu0 %vm322_vm4, %v14872_v16  ;;  %v21344_v16 = vcombine.low %v1522_v49, %v1526_v11  ;;  %v21371_v46 = vcombine.low %v1530_v18, %v21366_v2 }
  0xb0   :  { %26725 = vst [vmem:[#allocation59_spill] sm:$0xff] %v21371_v46 }
  0xb5   :  { %17127 = vmatmul.mubr.msk.bf16.gmra.mrb[8].mxu0 %vm322_vm4, %v21342_v40 }
  0xb6   :  { %17130 = vmatprep.mubr.msk.bf16.mxu0 %vm322_vm4, %v21344_v16 }
  0xbd   :  { %17131 = vmatmul.mubr.msk.bf16.gmra.mrb[12].mxu0 %vm322_vm4, %v21371_v46 }
  0xbe   :  { %17138 = vmatprep.mubr.msk.bf16.mxu0 %vm322_vm4, %v14889_v55 }
  0xbf   :  { %14 = vsyncpa [#allocation4], 0  ;;  %v21397_v35 = vcombine.low %v21239_v48, %v21274_v43  ;;  %v1953_v62 = vsel %vm347_vm0, %v19869_v8, 0  ;;  %v19870_v27 = vld [vmem:[%s26190_s3 + $0x54] sm:$0xff]   ;;  %v21406_v41 = vcombine.low %v21252_v31, %v21247_v59  ;;  %v21415_v48 = vcombine.low %v1518_v57, %v1522_v49  ;;  %v26726_v43 = vld [vmem:[#allocation14_spill] sm:$0xff] }
  0xc0   :  { %v21418_v38 = vcombine.low %v21277_v32, %v20075_v58  ;;  %v21420_v31 = vcombine.low %v20076_v28, %v20077_v21  ;;  %v26727_v53 = vld [vmem:[#allocation11_spill] sm:$0xff]  ;;  %v26728_v9 = vshrl.u32 %v21247_v59, 16  ;;  %v26729_v58 = vshll.u32 %v21247_v59, 16  ;;  %v21437_v21 = vld [vmem:[#allocation2 + $0x44] sm:$0x3]  ;;  %v26740_v24 = vld [vmem:[#allocation32_spill] sm:$0xff] }
  0xc1   :  { %v14910_v57 = vcombine.low %v26727_v53, %v26726_v43  ;;  %v26730_v55 = vld [vmem:[#allocation19_spill] sm:$0xff]  ;;  %v19871_v53 = vld [vmem:[%s26190_s3 + $0x5c] ss:$0 sps:$4 sm:$0x33]   ;;  %v21479_v15 = vld [vmem:[#allocation2 + $0xa4] sm:$0x3] }
  0xc2   :  { %v1880_v32 = vrot.slane %v26728_v9, 4  ;;  %v1883_v28 = vrot.slane %v26729_v58, 5  ;;  %v2126_v58 = vsel %vm347_vm0, %v19871_v53, 0  ;;  %v26741_v25 = vld [vmem:[#allocation28_spill] sm:$0xff]  ;;  %vm4972_vm3 = vcmask 1044480  }
  0xc3   :  { %v21494_v30 = vcombine.low %v26741_v25, %v26740_v24  ;;  %v26744_v25 = vld [vmem:[#allocation31_spill] sm:$0xff]  ;;  %v26745_v24 = vld [vmem:[#allocation29_spill] sm:$0xff]  ;;  %vm4947_vm5 = vcmask 80896  }
  0xc4   :  { %v1884_v49 = vor.u32 %v1883_v28, %v1880_v32  ;;  %v19872_v28 = vld [vmem:[%s26190_s3 + $0x60] sm:$0xff]  }
  0xc5   :  { %17139 = vmatmul.mubr.msk.bf16.vlgmr.msra.gmra.mrb[0].mxu0 %vm322_vm4, %v21382_v6  ;;  %26742 = vst [vmem:[#allocation11_spill] sm:$0xff] %v21494_v30 }
  0xc6   :  { %17155 = vmatpush3.bf16.msra.mxu0 %v19868_v47  ;;  %17142 = vmatprep.mubr.msk.bf16.mxu0 %vm322_vm4, %v21389_v63  ;;  %v14893_v47 = vcombine.low %v21259_v54, %v21262_v20  ;;  %v21424_v20 = vcombine.low %v1526_v11, %v1530_v18  ;;  %v21429_v54 = vcombine.low %v20078_v3, %v21317_v22  ;;  %v26321_v3 = vshll.u32 %v21437_v21, 16  ;;  %v91_v11 = vld [vmem:[%s26187_s0 + $0x1c] sm:$0xf] }
  0xc7   :  { %19774 = vmatprep.subr.msk.bf16.mxu0 %vm347_vm0, %v19869_v8  ;;  %v130_v18 = vrot.slane %v91_v11, 7  ;;  %v26731_v8 = vld [vmem:[#allocation16_spill] sm:$0xff] }
  0xc8   :  { %v1889_v43 = vrot.slane %v26321_v3, 5 }
  0xc9   :  { %197 = vst.msk [vmem:[#allocation2 + $0x48] sm:$0xe] %vm181_vm2, %v130_v18 }
  0xca   :  { %17157 = vmatpush3.bf16.msra.mxu0 %v1953_v62  ;;  %v21448_v62 = vcombine.low %v26731_v8, %v26730_v55  ;;  %v26737_v55 = vld [vmem:[#allocation22_spill] sm:$0xff] }
  0xcb   :  { %17174 = vmatprep.subr.bf16.mxu0 %v19870_v27 }
  0xcd   :  { %17143 = vmatmul.mubr.msk.bf16.gmra.mrb[4].mxu0 %vm322_vm4, %v21406_v41 }
  0xce   :  { %17146 = vmatprep.mubr.msk.bf16.mxu0 %vm322_vm4, %v14893_v47  ;;  %v1885_v47 = vrot.slane %v1884_v49, 4  ;;  %v26734_v49 = vld [vmem:[#allocation20_spill] sm:$0xff] }
  0xd0   :  { %v21462_v32 = vsel %vm20447_vm7, %v1885_v47, %v1889_v43  ;;  %v1894_v47 = vrot.slane %v1892_v52, 4  ;;  %v1897_v43 = vrot.slane %v1895_v39, 5  ;;  %v26739_v52 = vld [vmem:[#allocation24_spill] sm:$0xff] }
  0xd1   :  { %v21471_v11 = vcombine.low %v26734_v49, %v21462_v32  ;;  %v1901_v49 = vshll.u32 %v21479_v15, 16 }
  0xd3   :  { %26735 = vst [vmem:[#allocation14_spill] sm:$0xff] %v21471_v11 }
  0xd5   :  { %17147 = vmatmul.mubr.msk.bf16.gmra.mrb[8].mxu0 %vm322_vm4, %v21418_v38 }
  0xd6   :  { %17150 = vmatprep.mubr.msk.bf16.mxu0 %vm322_vm4, %v21420_v31 }
  0xdd   :  { %17151 = vmatmul.mubr.msk.bf16.gmra.mrb[12].mxu0 %vm322_vm4, %v21429_v54 }
  0xde   :  { %17158 = vmatprep.mubr.msk.bf16.mxu0 %vm322_vm4, %v14910_v57  ;;  %v26732_v57 = vld [vmem:[#allocation18_spill] sm:$0xff] }
  0xe5   :  { %17159 = vmatmul.mubr.msk.bf16.vlgmr.msra.gmra.mrb[0].mxu0 %vm322_vm4, %v26732_v57 }
  0xe6   :  { %17175 = vmatpush3.bf16.msra.mxu0 %v19870_v27  ;;  %17162 = vmatprep.mubr.msk.bf16.mxu0 %vm322_vm4, %v21448_v62  ;;  %v26736_v27 = vld [vmem:[#allocation23_spill] sm:$0xff] }
  0xe7   :  { %19775 = vmatprep.subr.msk.bf16.mxu0 %vm347_vm0, %v19871_v53  ;;  %v14914_v8 = vcombine.low %v26737_v55, %v26736_v27  ;;  %v1898_v53 = vor.u32 %v1897_v43, %v1894_v47  ;;  %v26738_v27 = vld [vmem:[#allocation27_spill] sm:$0xff]  ;;  %v26743_v47 = vld [vmem:[#allocation33_spill] sm:$0xff] }
  0xe8   :  { %v21490_v55 = vcombine.low %v26739_v52, %v26738_v27  ;;  %v26746_v27 = vld [vmem:[#allocation39_spill] sm:$0xff]  ;;  %v26747_v52 = vld [vmem:[#allocation36_spill] sm:$0xff] }
  0xe9   :  { %v1899_v3 = vrot.slane %v1898_v53, 4  ;;  %v14933_v53 = vcombine.low %v26745_v24, %v26744_v25 }
  0xea   :  { %17177 = vmatpush3.bf16.msra.mxu0 %v2126_v58  ;;  %v99_v58 = vld [vmem:[%s26187_s0 + $0x3c] sm:$0xf] }
  0xeb   :  { %17194 = vmatprep.subr.bf16.mxu0 %v19872_v28  ;;  %v146_v39 = vrot.slane %v99_v58, 7  ;;  %v131_v58 = vrot.slane %v130_v18, 4  ;;  %v26748_v18 = vld [vmem:[#allocation37_spill] sm:$0xff] }
  0xed   :  { %17163 = vmatmul.mubr.msk.bf16.gmra.mrb[4].mxu0 %vm322_vm4, %v21471_v11  ;;  %v1903_v11 = vrot.slane %v1901_v49, 5  ;;  %213 = vst.msk [vmem:[#allocation2 + $0xa8] sm:$0xe] %vm181_vm2, %v146_v39 }
  0xee   :  { %17166 = vmatprep.mubr.msk.bf16.mxu0 %vm322_vm4, %v14914_v8  ;;  %198 = vst.msk [vmem:[#allocation2 + $0x4c] sm:$0x1] %vm183_vm8, %v131_v58  ;;  %v19874_v58 = vld [vmem:[%s26190_s3 + $0x6c] sm:$0xff]  }
  0xef   :  { %v21503_v8 = vsel %vm20447_vm7, %v1899_v3, %v1903_v11  ;;  %v14928_v3 = vrot.slane %v21247_v59, 9  ;;  %v2072_v11 = vrot.slane %v21437_v21, 5 }
  0xf0   :  { %v21507_v43 = vcombine.low %v26743_v47, %v21503_v8  ;;  %v19873_v47 = vld [vmem:[%s26190_s3 + $0x68] ss:$0 sps:$4 sm:$0x33]  }
  0xf1   :  { %v21530_v24 = vsel %vm20735_vm11, %v14928_v3, %v2072_v11  ;;  %v26751_v3 = vcombine.low %v20856_v5, %v20866_v33  ;;  %v14929_v11 = vrot.slane %v21317_v22, 9  ;;  %v26752_v33 = vld [vmem:[#allocation46_spill] sm:$0xff] }
  0xf5   :  { %17167 = vmatmul.mubr.msk.bf16.gmra.mrb[8].mxu0 %vm322_vm4, %v21490_v55 }
  0xf6   :  { %17170 = vmatprep.mubr.msk.bf16.mxu0 %vm322_vm4, %v21494_v30  ;;  %v21517_v30 = vcombine.low %v26747_v52, %v26746_v27  ;;  %v26750_v27 = vld [vmem:[#allocation40_spill] sm:$0xff] }
  0xf7   :  { %v21539_v52 = vcombine.low %v26750_v27, %v21530_v24  ;;  %v26753_v27 = vcombine.low %v20958_v36, %v20974_v1 }
  0xfd   :  { %17171 = vmatmul.mubr.msk.bf16.gmra.mrb[12].mxu0 %vm322_vm4, %v21507_v43 }
  0xfe   :  { %17178 = vmatprep.mubr.msk.bf16.mxu0 %vm322_vm4, %v14933_v53  ;;  %v2309_v53 = vsel %vm347_vm0, %v19873_v47, 0 }
 0x105   :  { %17179 = vmatmul.mubr.msk.bf16.vlgmr.msra.gmra.mrb[0].mxu0 %vm322_vm4, %v26748_v18 }
 0x106   :  { %17195 = vmatpush3.bf16.msra.mxu0 %v19872_v28  ;;  %17182 = vmatprep.mubr.msk.bf16.mxu0 %vm322_vm4, %v21517_v30  ;;  %v147_v28 = vrot.slane %v146_v39, 4 }
 0x107   :  { %19776 = vmatprep.subr.msk.bf16.mxu0 %vm347_vm0, %v19873_v47  ;;  %v2076_v47 = vrot.slane %v21479_v15, 5 }
 0x108   :  { %214 = vst.msk [vmem:[#allocation2 + $0xac] sm:$0x1] %vm183_vm8, %v147_v28 }
 0x109   :  { %v21556_v39 = vsel %vm20735_vm11, %v14929_v11, %v2076_v47  ;;  %v26755_v11 = vor.u32 %v21297_v14, %v21268_v0  ;;  %v19876_v0 = vld [vmem:[%s26190_s3 + $0x78] sm:$0xff]   ;;  %v2255_v14 = vshrl.u32 %v21479_v15, 16 }
 0x10a   :  { %17197 = vmatpush3.bf16.msra.mxu0 %v2309_v53  ;;  %v21560_v5 = vcombine.low %v26752_v33, %v21556_v39  ;;  %v2245_v53 = vshrl.u32 %v21437_v21, 16 }
 0x10b   :  { %17214 = vmatprep.subr.bf16.mxu0 %v19874_v58  ;;  %v2244_v47 = vrot.slane %v26755_v11, 4 }
 0x10c   :  { %v2247_v28 = vrot.slane %v2245_v53, 5  ;;  %v2258_v53 = vrot.slane %v1901_v49, 6  ;;  %v2426_v49 = vrot.slane %v21437_v21, 6 }
 0x10d   :  { %17183 = vmatmul.mubr.msk.bf16.gmra.mrb[4].mxu0 %vm322_vm4, %v21539_v52 }
 0x10e   :  { %17186 = vmatprep.mubr.msk.bf16.mxu0 %vm322_vm4, %v26751_v3  ;;  %v26754_v3 = vshll.u32 %v21437_v21, 16 }
 0x115   :  { %17187 = vmatmul.mubr.msk.bf16.gmra.mrb[8].mxu0 %vm322_vm4, %v21221_v12  ;;  %v19875_v12 = vld [vmem:[%s26190_s3 + $0x74] ss:$0 sps:$4 sm:$0x33]  }
 0x116   :  { %17190 = vmatprep.mubr.msk.bf16.mxu0 %vm322_vm4, %v21225_v29  ;;  %v2248_v29 = vrot.slane %v26754_v3, 6  ;;  %v2480_v1 = vsel %vm347_vm0, %v19875_v12, 0 }
 0x118   :  { %v2249_v33 = vor.u32 %v2248_v29, %v2247_v28 }
 0x11a   :  { %v21583_v36 = vsel %vm20931_vm14, %v2244_v47, %v2249_v33 }
 0x11b   :  { %v21592_v29 = vcombine.low %v21049_v42, %v21583_v36 }
 0x11d   :  { %17191 = vmatmul.mubr.msk.bf16.gmra.mrb[12].mxu0 %vm322_vm4, %v21560_v5 }
 0x11e   :  { %17198 = vmatprep.mubr.msk.bf16.mxu0 %vm322_vm4, %v26753_v27  ;;  %v26757_v27 = vor.u32 %v21352_v7, %v21348_v19  ;;  %v21622_v19 = vld [vmem:[#allocation2 + $0x48] sm:$0xf]  ;;  %v14972_v7 = vrot.slane %v21247_v59, 10 }
 0x11f   :  { %v2737_v11 = vshrl.u32 %v21622_v19, 16  ;;  %v2740_v47 = vshll.u32 %v21622_v19, 16 }
 0x120   :  { %v2254_v28 = vrot.slane %v26757_v27, 4  ;;  %v2430_v27 = vrot.slane %v21479_v15, 6 }
 0x121   :  { %v21631_v33 = vrot.slane %v2737_v11, 5 }
 0x125   :  { %17199 = vmatmul.mubr.msk.bf16.vlgmr.msra.gmra.mrb[0].mxu0 %vm322_vm4, %v21009_v17 }
 0x126   :  { %17215 = vmatpush3.bf16.msra.mxu0 %v19874_v58  ;;  %17202 = vmatprep.mubr.msk.bf16.mxu0 %vm322_vm4, %v21293_v26  ;;  %v26756_v58 = vcombine.low %v21073_v61, %v21090_v51  ;;  %v26758_v51 = vcombine.low %v21205_v4, %v21235_v45  ;;  %v21641_v4 = vsel %vm21155_vm1, %v14972_v7, %v2426_v49  ;;  %v26760_v7 = vld [vmem:[#allocation6_spill] sm:$0xff]  ;;  %v19879_v49 = vld [vmem:[%s26190_s3 + $0x8c] ss:$0 sps:$4 sm:$0x33]  }
 0x127   :  { %19777 = vmatprep.subr.msk.bf16.mxu0 %vm347_vm0, %v19875_v12  ;;  %v2257_v12 = vrot.slane %v2255_v14, 5  ;;  %v19878_v14 = vld [vmem:[%s26190_s3 + $0x84] sm:$0xff]  }
 0x128   :  { %v26768_v45 = vld [vmem:[#allocation15_spill] sm:$0xff] }
 0x129   :  { %v2259_v42 = vor.u32 %v2258_v53, %v2257_v12  ;;  %v21660_v12 = vld [vmem:[#allocation2 + $0xa8] sm:$0xf]  ;;  %v14973_v53 = vrot.slane %v21317_v22, 10 }
 0x12a   :  { %17217 = vmatpush3.bf16.msra.mxu0 %v2480_v1  ;;  %v21633_v1 = vrot.slane %v2740_v47, 6 }
 0x12b   :  { %17234 = vmatprep.subr.bf16.mxu0 %v19876_v0  ;;  %v21610_v3 = vsel %vm20931_vm14, %v2254_v28, %v2259_v42  ;;  %v2751_v28 = vshrl.u32 %v21660_v12, 16 }
 0x12c   :  { %v21614_v61 = vcombine.low %v21168_v10, %v21610_v3  ;;  %v19877_v10 = vld [vmem:[%s26190_s3 + $0x80] ss:$0 sps:$4 sm:$0x33]  }
 0x12d   :  { %17203 = vmatmul.mubr.msk.bf16.gmra.mrb[4].mxu0 %vm322_vm4, %v21592_v29  ;;  %v2621_v21 = vsel %vm347_vm0, %v19877_v10, 0  ;;  %v21666_v42 = vrot.slane %v2751_v28, 5 }
 0x12e   :  { %17206 = vmatprep.mubr.msk.bf16.mxu0 %vm322_vm4, %v26756_v58  ;;  %v26759_v58 = vcombine.low %v21303_v56, %v21323_v34  ;;  %v21676_v56 = vsel %vm21155_vm1, %v14973_v53, %v2430_v27  ;;  %v21702_v53 = vcombine.low %v21247_v59, %v21622_v19  ;;  %v26765_v27 = vld [vmem:[#allocation12_spill] sm:$0xff]  ;;  %v2739_v59 = vrot.slane %v2737_v11, 4  ;;  %v26770_v11 = vld [vmem:[#allocation21_spill] sm:$0xff] }
 0x12f   :  { %v21682_v15 = vcombine.low %v21366_v2, %v21676_v56  ;;  %v2788_v2 = vsel %vm347_vm0, %v19879_v49, 0  ;;  %v2742_v34 = vrot.slane %v2740_v47, 5 }
 0x130   :  { %26763 = vst [vmem:[#allocation19_spill] sm:$0xff] %v21702_v53 }
 0x135   :  { %17207 = vmatmul.mubr.msk.bf16.gmra.mrb[8].mxu0 %vm322_vm4, %v21335_v44 }
 0x136   :  { %17210 = vmatprep.mubr.msk.bf16.mxu0 %vm322_vm4, %v21358_v60 }
 0x13d   :  { %17211 = vmatmul.mubr.msk.bf16.gmra.mrb[12].mxu0 %vm322_vm4, %v21614_v61 }
 0x13e   :  { %17218 = vmatprep.mubr.msk.bf16.mxu0 %vm322_vm4, %v26758_v51 }
 0x145   :  { %17219 = vmatmul.mubr.msk.bf16.vlgmr.msra.gmra.mrb[0].mxu0 %vm322_vm4, %v21180_v37 }
 0x146   :  { %17235 = vmatpush3.bf16.msra.mxu0 %v19876_v0  ;;  %17222 = vmatprep.mubr.msk.bf16.mxu0 %vm322_vm4, %v21397_v35  ;;  %v21652_v0 = vcombine.low %v21288_v23, %v21641_v4  ;;  %v2754_v23 = vshll.u32 %v21660_v12, 16 }
 0x147   :  { %19778 = vmatprep.subr.msk.bf16.mxu0 %vm347_vm0, %v19877_v10  ;;  %v26761_v10 = vld [vmem:[#allocation7_spill] sm:$0xff] }
 0x148   :  { %v21668_v51 = vrot.slane %v2754_v23, 6 }
 0x14a   :  { %17237 = vmatpush3.bf16.msra.mxu0 %v2621_v21  ;;  %v26762_v21 = vld [vmem:[#allocation8_spill] sm:$0xff] }
 0x14b   :  { %17254 = vmatprep.subr.bf16.mxu0 %v19878_v14 }
 0x14d   :  { %17223 = vmatmul.mubr.msk.bf16.gmra.mrb[4].mxu0 %vm322_vm4, %v21652_v0 }
 0x14e   :  { %17226 = vmatprep.mubr.msk.bf16.mxu0 %vm322_vm4, %v26759_v58  ;;  %v19880_v58 = vld [vmem:[%s26190_s3 + $0x90] sm:$0xff]  }
 0x155   :  { %17227 = vmatmul.mubr.msk.bf16.gmra.mrb[8].mxu0 %vm322_vm4, %v21415_v48 }
 0x156   :  { %17230 = vmatprep.mubr.msk.bf16.mxu0 %vm322_vm4, %v21424_v20 }
 0x15d   :  { %17231 = vmatmul.mubr.msk.bf16.gmra.mrb[12].mxu0 %vm322_vm4, %v21682_v15 }
 0x15e   :  { %17238 = vmatprep.mubr.msk.bf16.mxu0 %vm322_vm4, %v26760_v7  ;;  %v26766_v7 = vld [vmem:[#allocation13_spill] sm:$0xff] }
 0x165   :  { %17239 = vmatmul.mubr.msk.bf16.vlgmr.msra.gmra.mrb[0].mxu0 %vm322_vm4, %v26761_v10  ;;  %v26772_v10 = vld [vmem:[#allocation30_spill] sm:$0xff] }
 0x166   :  { %17255 = vmatpush3.bf16.msra.mxu0 %v19878_v14  ;;  %17242 = vmatprep.mubr.msk.bf16.mxu0 %vm322_vm4, %v26762_v21  ;;  %v26764_v14 = vld [vmem:[#allocation10_spill] sm:$0xff] }
 0x167   :  { %19779 = vmatprep.subr.msk.bf16.mxu0 %vm347_vm0, %v19879_v49  ;;  %v21714_v49 = vcombine.low %v21317_v22, %v21660_v12  ;;  %v19881_v22 = vld [vmem:[%s26190_s3 + $0x98] ss:$0 sps:$4 sm:$0x33]  }
 0x169   :  { %26767 = vst [vmem:[#allocation16_spill] sm:$0xff] %v21714_v49 }
 0x16a   :  { %17257 = vmatpush3.bf16.msra.mxu0 %v2788_v2  ;;  %v21716_v2 = vld [vmem:[#allocation2 + $0x4c] sm:$0x3] }
 0x16b   :  { %17274 = vmatprep.subr.bf16.mxu0 %v19880_v58 }
 0x16d   :  { %17243 = vmatmul.mubr.msk.bf16.gmra.mrb[4].mxu0 %vm322_vm4, %v21702_v53 }
 0x16e   :  { %17246 = vmatprep.mubr.msk.bf16.mxu0 %vm322_vm4, %v26764_v14  ;;  %v2743_v14 = vor.u32 %v2742_v34, %v2739_v59  ;;  %v19882_v34 = vld [vmem:[%s26190_s3 + $0x9c] sm:$0xff]  }
 0x170   :  { %v2744_v53 = vrot.slane %v2743_v14, 4  ;;  %v2756_v14 = vrot.slane %v2754_v23, 5 }
 0x175   :  { %17247 = vmatmul.mubr.msk.bf16.gmra.mrb[8].mxu0 %vm322_vm4, %v26765_v27  ;;  %v2746_v27 = vshll.u32 %v21716_v2, 16 }
 0x176   :  { %17250 = vmatprep.mubr.msk.bf16.mxu0 %vm322_vm4, %v26766_v7  ;;  %v26769_v7 = vld [vmem:[#allocation17_spill] sm:$0xff] }
 0x177   :  { %v2748_v21 = vrot.slane %v2746_v27, 5 }
 0x179   :  { %v21732_v47 = vsel %vm20447_vm7, %v2744_v53, %v2748_v21  ;;  %v26771_v21 = vld [vmem:[#allocation25_spill] sm:$0xff] }
 0x17a   :  { %v21741_v59 = vcombine.low %v21462_v32, %v21732_v47  ;;  %v26773_v32 = vld [vmem:[#allocation34_spill] sm:$0xff] }
 0x17d   :  { %17251 = vmatmul.mubr.msk.bf16.gmra.mrb[12].mxu0 %vm322_vm4, %v21714_v49 }
 0x17e   :  { %17258 = vmatprep.mubr.msk.bf16.mxu0 %vm322_vm4, %v26768_v45  ;;  %v2937_v45 = vsel %vm347_vm0, %v19881_v22, 0 }
 0x185   :  { %17259 = vmatmul.mubr.msk.bf16.vlgmr.msra.gmra.mrb[0].mxu0 %vm322_vm4, %v26769_v7 }
 0x186   :  { %17275 = vmatpush3.bf16.msra.mxu0 %v19880_v58  ;;  %17262 = vmatprep.mubr.msk.bf16.mxu0 %vm322_vm4, %v26770_v11  ;;  %v2753_v58 = vrot.slane %v2751_v28, 4  ;;  %v21743_v11 = vld [vmem:[#allocation2 + $0xac] sm:$0x3] }
 0x187   :  { %19780 = vmatprep.subr.msk.bf16.mxu0 %vm347_vm0, %v19881_v22  ;;  %v2760_v22 = vshll.u32 %v21743_v11, 16 }
 0x188   :  { %v2757_v53 = vor.u32 %v2756_v14, %v2753_v58  ;;  %v15025_v58 = vrot.slane %v21622_v19, 9  ;;  %v2907_v14 = vrot.slane %v21716_v2, 5 }
 0x189   :  { %v2762_v49 = vrot.slane %v2760_v22, 5 }
 0x18a   :  { %17277 = vmatpush3.bf16.msra.mxu0 %v2937_v45  ;;  %v2758_v7 = vrot.slane %v2757_v53, 4  ;;  %v26775_v45 = vld [vmem:[#allocation35_spill] sm:$0xff] }
 0x18b   :  { %17294 = vmatprep.subr.bf16.mxu0 %v19882_v34 }
 0x18c   :  { %v21756_v28 = vsel %vm20447_vm7, %v2758_v7, %v2762_v49  ;;  %v26776_v7 = vld [vmem:[#allocation38_spill] sm:$0xff]  ;;  %v21777_v49 = vsel %vm20735_vm11, %v15025_v58, %v2907_v14  ;;  %v15026_v58 = vrot.slane %v21660_v12, 9  ;;  %v2911_v14 = vrot.slane %v21743_v11, 5 }
 0x18d   :  { %17263 = vmatmul.mubr.msk.bf16.gmra.mrb[4].mxu0 %vm322_vm4, %v21741_v59  ;;  %v21760_v23 = vcombine.low %v21503_v8, %v21756_v28  ;;  %v26777_v8 = vld [vmem:[#allocation41_spill] sm:$0xff] }
 0x18e   :  { %17266 = vmatprep.mubr.msk.bf16.mxu0 %vm322_vm4, %v26771_v21  ;;  %v19883_v21 = vld [vmem:[%s26190_s3 + $0xa4] ss:$0 sps:$4 sm:$0x33]  }
 0x18f   :  { %26774 = vst [vmem:[#allocation18_spill] sm:$0xff] %v21760_v23  ;;  %v3096_v53 = vsel %vm347_vm0, %v19883_v21, 0 }
 0x195   :  { %17267 = vmatmul.mubr.msk.bf16.gmra.mrb[8].mxu0 %vm322_vm4, %v26772_v10  ;;  %v26785_v10 = vld [vmem:[#allocation51_spill] sm:$0xff] }
 0x196   :  { %17270 = vmatprep.mubr.msk.bf16.mxu0 %vm322_vm4, %v26773_v32 }
 0x19d   :  { %17271 = vmatmul.mubr.msk.bf16.gmra.mrb[12].mxu0 %vm322_vm4, %v21760_v23  ;;  %v21786_v23 = vcombine.low %v21530_v24, %v21777_v49  ;;  %v21800_v24 = vsel %vm20735_vm11, %v15026_v58, %v2911_v14  ;;  %v26784_v14 = vld [vmem:[#allocation50_spill] sm:$0xff] }
 0x19e   :  { %17278 = vmatprep.mubr.msk.bf16.mxu0 %vm322_vm4, %v26775_v45  ;;  %v19884_v45 = vld [vmem:[%s26190_s3 + $0xa8] sm:$0xff]  }
 0x19f   :  { %26778 = vst [vmem:[#allocation20_spill] sm:$0xff] %v21786_v23 }
 0x1a5   :  { %17279 = vmatmul.mubr.msk.bf16.vlgmr.msra.gmra.mrb[0].mxu0 %vm322_vm4, %v26776_v7  ;;  %v3059_v7 = vrot.slane %v2746_v27, 6 }
 0x1a6   :  { %17295 = vmatpush3.bf16.msra.mxu0 %v19882_v34  ;;  %17282 = vmatprep.mubr.msk.bf16.mxu0 %vm322_vm4, %v26777_v8  ;;  %v26779_v34 = vld [vmem:[#allocation42_spill] sm:$0xff]  ;;  %v26781_v8 = vld [vmem:[#allocation47_spill] sm:$0xff] }
 0x1a7   :  { %19781 = vmatprep.subr.msk.bf16.mxu0 %vm347_vm0, %v19883_v21  ;;  %v26780_v21 = vld [vmem:[#allocation44_spill] sm:$0xff] }
 0x1aa   :  { %17297 = vmatpush3.bf16.msra.mxu0 %v3096_v53  ;;  %v21804_v53 = vcombine.low %v21556_v39, %v21800_v24  ;;  %v19885_v39 = vld [vmem:[%s26190_s3 + $0xb0] ss:$0 sps:$4 sm:$0x33]  }
 0x1ab   :  { %17314 = vmatprep.subr.bf16.mxu0 %v19884_v45 }
 0x1ad   :  { %17283 = vmatmul.mubr.msk.bf16.gmra.mrb[4].mxu0 %vm322_vm4, %v21786_v23  ;;  %v26782_v23 = vld [vmem:[#allocation49_spill] sm:$0xff] }
 0x1ae   :  { %17286 = vmatprep.mubr.msk.bf16.mxu0 %vm322_vm4, %v26779_v34  ;;  %v3056_v34 = vshrl.u32 %v21716_v2, 16 }
 0x1b5   :  { %17287 = vmatmul.mubr.msk.bf16.gmra.mrb[8].mxu0 %vm322_vm4, %v26780_v21  ;;  %v3058_v21 = vrot.slane %v3056_v34, 5 }
 0x1b6   :  { %17290 = vmatprep.mubr.msk.bf16.mxu0 %vm322_vm4, %v26781_v8  ;;  %v26783_v8 = vor.u32 %v21633_v1, %v21631_v33  ;;  %v3243_v33 = vsel %vm347_vm0, %v19885_v39, 0  ;;  %v19886_v1 = vld [vmem:[%s26190_s3 + $0xb4] sm:$0xff]  }
 0x1b7   :  { %v3060_v58 = vor.u32 %v3059_v7, %v3058_v21  ;;  %v3066_v7 = vshrl.u32 %v21743_v11, 16  ;;  %v26787_v21 = vor.u32 %v21668_v51, %v21666_v42  ;;  %v26791_v42 = vld [vmem:[#allocation43_spill] sm:$0xff]  ;;  %v21858_v51 = vld [vmem:[#allocation2 + $0x50] sm:$0xf] }
 0x1b8   :  { %v3055_v32 = vrot.slane %v26783_v8, 4 }
 0x1b9   :  { %v3068_v8 = vrot.slane %v3066_v7, 5  ;;  %v3065_v34 = vrot.slane %v26787_v21, 4  ;;  %v3213_v7 = vrot.slane %v21716_v2, 6 }
 0x1bd   :  { %17291 = vmatmul.mubr.msk.bf16.gmra.mrb[12].mxu0 %vm322_vm4, %v21804_v53 }
 0x1be   :  { %17298 = vmatprep.mubr.msk.bf16.mxu0 %vm322_vm4, %v26782_v23  ;;  %v21823_v23 = vsel %vm20931_vm14, %v3055_v32, %v3060_v58  ;;  %v26786_v32 = vld [vmem:[#allocation52_spill] sm:$0xff] }
 0x1bf   :  { %v21832_v27 = vcombine.low %v21583_v36, %v21823_v23  ;;  %v26789_v36 = vld [vmem:[#allocation55_spill] sm:$0xff] }
 0x1c5   :  { %17299 = vmatmul.mubr.msk.bf16.vlgmr.msra.gmra.mrb[0].mxu0 %vm322_vm4, %v26784_v14 }
 0x1c6   :  { %17315 = vmatpush3.bf16.msra.mxu0 %v19884_v45  ;;  %17302 = vmatprep.mubr.msk.bf16.mxu0 %vm322_vm4, %v26785_v10  ;;  %v3069_v45 = vrot.slane %v2760_v22, 6  ;;  %v15057_v22 = vrot.slane %v21622_v19, 10 }
 0x1c7   :  { %19782 = vmatprep.subr.msk.bf16.mxu0 %vm347_vm0, %v19885_v39  ;;  %v26788_v39 = vld [vmem:[#allocation53_spill] sm:$0xff] }
 0x1c8   :  { %v3070_v58 = vor.u32 %v3069_v45, %v3068_v8  ;;  %v3500_v8 = vshrl.u32 %v21858_v51, 16  ;;  %v3503_v45 = vshll.u32 %v21858_v51, 16  ;;  %v21877_v2 = vsel %vm21155_vm1, %v15057_v22, %v3213_v7  ;;  %v21894_v22 = vld [vmem:[#allocation2 + $0xb0] sm:$0xf] }
 0x1c9   :  { %v15058_v7 = vrot.slane %v21660_v12, 10 }
 0x1ca   :  { %17317 = vmatpush3.bf16.msra.mxu0 %v3243_v33  ;;  %v21848_v33 = vsel %vm20931_vm14, %v3065_v34, %v3070_v58  ;;  %v21867_v21 = vrot.slane %v3500_v8, 5  ;;  %v21869_v34 = vrot.slane %v3503_v45, 6  ;;  %v26792_v58 = vld [vmem:[#allocation57_spill] sm:$0xff] }
 0x1cb   :  { %17334 = vmatprep.subr.bf16.mxu0 %v19886_v1 }
 0x1cd   :  { %17303 = vmatmul.mubr.msk.bf16.gmra.mrb[4].mxu0 %vm322_vm4, %v21832_v27 }
 0x1ce   :  { %17306 = vmatprep.mubr.msk.bf16.mxu0 %vm322_vm4, %v26786_v32  ;;  %v21852_v32 = vcombine.low %v21610_v3, %v21848_v33  ;;  %v19887_v3 = vld [vmem:[%s26190_s3 + $0xbc] ss:$0 sps:$4 sm:$0x33]  }
 0x1d0   :  { %26790 = vst [vmem:[#allocation23_spill] sm:$0xff] %v21852_v32 }
 0x1d5   :  { %17307 = vmatmul.mubr.msk.bf16.gmra.mrb[8].mxu0 %vm322_vm4, %v26788_v39  ;;  %v19888_v39 = vld [vmem:[%s26190_s3 + $0xc0] sm:$0xff]  }
 0x1d6   :  { %17310 = vmatprep.mubr.msk.bf16.mxu0 %vm322_vm4, %v26789_v36  ;;  %v3384_v36 = vsel %vm347_vm0, %v19887_v3, 0 }
 0x1dd   :  { %17311 = vmatmul.mubr.msk.bf16.gmra.mrb[12].mxu0 %vm322_vm4, %v21852_v32  ;;  %v3514_v32 = vshrl.u32 %v21894_v22, 16 }
 0x1de   :  { %17318 = vmatprep.mubr.msk.bf16.mxu0 %vm322_vm4, %v26791_v42  ;;  %v26793_v42 = vld [vmem:[#allocation58_spill] sm:$0xff] }
 0x1e5   :  { %17319 = vmatmul.mubr.msk.bf16.vlgmr.msra.gmra.mrb[0].mxu0 %vm322_vm4, %v26792_v58 }
 0x1e6   :  { %17335 = vmatpush3.bf16.msra.mxu0 %v19886_v1  ;;  %17322 = vmatprep.mubr.msk.bf16.mxu0 %vm322_vm4, %v26793_v42  ;;  %v21888_v1 = vcombine.low %v21641_v4, %v21877_v2  ;;  %v3517_v42 = vshll.u32 %v21894_v22, 16  ;;  %v21900_v4 = vrot.slane %v3514_v32, 5 }
 0x1e7   :  { %19783 = vmatprep.subr.msk.bf16.mxu0 %vm347_vm0, %v19887_v3  ;;  %v3217_v3 = vrot.slane %v21743_v11, 6 }
 0x1e8   :  { %26794 = vst [vmem:[#allocation22_spill] sm:$0xff] %v21888_v1 }
 0x1ea   :  { %17337 = vmatpush3.bf16.msra.mxu0 %v3384_v36  ;;  %v21902_v36 = vrot.slane %v3517_v42, 6 }
 0x1eb   :  { %17354 = vmatprep.subr.bf16.mxu0 %v19888_v39 }
 0x1ec   :  { %v3827_v11 = vor.u32 %v21902_v36, %v21900_v4  ;;  %v22068_v4 = vld [vmem:[#allocation2 + $0x58] sm:$0xf]  ;;  %v15136_v36 = vrot.slane %v21858_v51, 10 }
 0x1ed   :  { %17323 = vmatmul.mubr.msk.bf16.gmra.mrb[4].mxu0 %vm322_vm4, %v21888_v1 }
 0x1ee   :  { %17326 = vmatprep.mubr.msk.bf16.mxu0 %vm322_vm4, %v21342_v40  ;;  %v21910_v40 = vsel %vm21155_vm1, %v15058_v7, %v3217_v3  ;;  %v19890_v7 = vld [vmem:[%s26190_s3 + $0xcc] sm:$0xff]  }
 0x1ef   :  { %v21916_v1 = vcombine.low %v21676_v56, %v21910_v40 }
 0x1f5   :  { %17327 = vmatmul.mubr.msk.bf16.gmra.mrb[8].mxu0 %vm322_vm4, %v21344_v16 }
 0x1f6   :  { %17330 = vmatprep.mubr.msk.bf16.mxu0 %vm322_vm4, %v21371_v46  ;;  %v19889_v46 = vld [vmem:[%s26190_s3 + $0xc8] ss:$0 sps:$4 sm:$0x33]  }
 0x1f7   :  { %v3551_v56 = vsel %vm347_vm0, %v19889_v46, 0 }
 0x1fd   :  { %17331 = vmatmul.mubr.msk.bf16.gmra.mrb[12].mxu0 %vm322_vm4, %v21916_v1 }
 0x1fe   :  { %17338 = vmatprep.mubr.msk.bf16.mxu0 %vm322_vm4, %v21382_v6  ;;  %v15077_v6 = vcombine.low %v21622_v19, %v21858_v51 }
 0x205   :  { %17339 = vmatmul.mubr.msk.bf16.vlgmr.msra.gmra.mrb[0].mxu0 %vm322_vm4, %v21389_v63  ;;  %v3502_v63 = vrot.slane %v3500_v8, 4 }
 0x206   :  { %17355 = vmatpush3.bf16.msra.mxu0 %v19888_v39  ;;  %17342 = vmatprep.mubr.msk.bf16.mxu0 %vm322_vm4, %v21406_v41  ;;  %v3505_v41 = vrot.slane %v3503_v45, 5  ;;  %v21945_v39 = vld [vmem:[#allocation2 + $0x54] sm:$0x3]  ;;  %v19892_v45 = vld [vmem:[%s26190_s3 + $0xd8] sm:$0xff]  }
 0x207   :  { %19784 = vmatprep.subr.msk.bf16.mxu0 %vm347_vm0, %v19889_v46  ;;  %v15078_v46 = vcombine.low %v21660_v12, %v21894_v22  ;;  %v26795_v12 = vld [vmem:[#allocation14_spill] sm:$0xff] }
 0x208   :  { %v3506_v19 = vor.u32 %v3505_v41, %v3502_v63 }
 0x20a   :  { %17357 = vmatpush3.bf16.msra.mxu0 %v3551_v56  ;;  %v3507_v3 = vrot.slane %v3506_v19, 4 }
 0x20b   :  { %17374 = vmatprep.subr.bf16.mxu0 %v19890_v7 }
 0x20d   :  { %17343 = vmatmul.mubr.msk.bf16.gmra.mrb[4].mxu0 %vm322_vm4, %v15077_v6  ;;  %v21969_v6 = vld [vmem:[#allocation2 + $0xb4] sm:$0x3] }
 0x20e   :  { %17346 = vmatprep.mubr.msk.bf16.mxu0 %vm322_vm4, %v21418_v38  ;;  %v3509_v38 = vshll.u32 %v21945_v39, 16  ;;  %v3523_v63 = vshll.u32 %v21969_v6, 16 }
 0x210   :  { %v3525_v19 = vrot.slane %v3523_v63, 5 }
 0x215   :  { %17347 = vmatmul.mubr.msk.bf16.gmra.mrb[8].mxu0 %vm322_vm4, %v21420_v31  ;;  %v3511_v31 = vrot.slane %v3509_v38, 5 }
 0x216   :  { %17350 = vmatprep.mubr.msk.bf16.mxu0 %vm322_vm4, %v21429_v54  ;;  %v19891_v54 = vld [vmem:[%s26190_s3 + $0xd4] ss:$0 sps:$4 sm:$0x33]  }
 0x217   :  { %v21960_v8 = vsel %vm20447_vm7, %v3507_v3, %v3511_v31  ;;  %v26796_v3 = vld [vmem:[#allocation11_spill] sm:$0xff] }
 0x218   :  { %v15092_v56 = vcombine.low %v21732_v47, %v21960_v8  ;;  %v19894_v31 = vld [vmem:[%s26190_s3 + $0xe4] sm:$0xff]  }
 0x21d   :  { %17351 = vmatmul.mubr.msk.bf16.gmra.mrb[12].mxu0 %vm322_vm4, %v15078_v46 }
 0x21e   :  { %17358 = vmatprep.mubr.msk.bf16.mxu0 %vm322_vm4, %v26732_v57  ;;  %v3700_v57 = vsel %vm347_vm0, %v19891_v54, 0 }
 0x225   :  { %17359 = vmatmul.mubr.msk.bf16.vlgmr.msra.gmra.mrb[0].mxu0 %vm322_vm4, %v21448_v62  ;;  %v3516_v62 = vrot.slane %v3514_v32, 4 }
 0x226   :  { %17375 = vmatpush3.bf16.msra.mxu0 %v19890_v7  ;;  %17362 = vmatprep.mubr.msk.bf16.mxu0 %vm322_vm4, %v26795_v12  ;;  %v3519_v7 = vrot.slane %v3517_v42, 5  ;;  %v3670_v42 = vrot.slane %v21945_v39, 5  ;;  %v3674_v12 = vrot.slane %v21969_v6, 5 }
 0x227   :  { %19785 = vmatprep.subr.msk.bf16.mxu0 %vm347_vm0, %v19891_v54 }
 0x228   :  { %v3520_v46 = vor.u32 %v3519_v7, %v3516_v62  ;;  %v3822_v7 = vrot.slane %v3509_v38, 6  ;;  %v3832_v38 = vrot.slane %v3523_v63, 6  ;;  %v19897_v63 = vld [vmem:[%s26190_s3 + $0xf8] ss:$0 sps:$4 sm:$0x33]  }
 0x22a   :  { %17377 = vmatpush3.bf16.msra.mxu0 %v3700_v57  ;;  %v3521_v41 = vrot.slane %v3520_v46, 4  ;;  %v26798_v57 = vld [vmem:[#allocation45_spill] sm:$0xff]  ;;  %v26799_v46 = vor.u32 %v21869_v34, %v21867_v21  ;;  %v19896_v21 = vld [vmem:[%s26190_s3 + $0xf0] sm:$0xff]  }
 0x22b   :  { %17394 = vmatprep.subr.bf16.mxu0 %v19892_v45 }
 0x22c   :  { %v21981_v47 = vsel %vm20447_vm7, %v3521_v41, %v3525_v19  ;;  %v19895_v19 = vld [vmem:[%s26190_s3 + $0xec] ss:$0 sps:$4 sm:$0x33]  }
 0x22d   :  { %17363 = vmatmul.mubr.msk.bf16.gmra.mrb[4].mxu0 %vm322_vm4, %v15092_v56  ;;  %v15093_v32 = vcombine.low %v21756_v28, %v21981_v47  ;;  %v3819_v56 = vshrl.u32 %v21945_v39, 16 }
 0x22e   :  { %17366 = vmatprep.mubr.msk.bf16.mxu0 %vm322_vm4, %v21490_v55  ;;  %v15104_v55 = vrot.slane %v21858_v51, 9 }
 0x22f   :  { %v3821_v62 = vrot.slane %v3819_v56, 5  ;;  %v19902_v56 = vld [vmem:[%s26190_s3 + $0x108] sm:$0xff]  }
 0x230   :  { %v21999_v28 = vsel %vm20735_vm11, %v15104_v55, %v3670_v42  ;;  %v4147_v42 = vsel %vm347_vm0, %v19897_v63, 0 }
 0x231   :  { %v15109_v54 = vcombine.low %v21777_v49, %v21999_v28  ;;  %v3823_v41 = vor.u32 %v3822_v7, %v3821_v62  ;;  %v15156_v62 = vcombine.low %v21858_v51, %v22068_v4  ;;  %v26803_v7 = vld [vmem:[#allocation12_spill] sm:$0xff]  ;;  %v26806_v51 = vld [vmem:[#allocation17_spill] sm:$0xff] }
 0x235   :  { %17367 = vmatmul.mubr.msk.bf16.gmra.mrb[8].mxu0 %vm322_vm4, %v26796_v3  ;;  %v3828_v3 = vrot.slane %v3827_v11, 4  ;;  %v4266_v11 = vshll.u32 %v22068_v4, 16 }
 0x236   :  { %17370 = vmatprep.mubr.msk.bf16.mxu0 %vm322_vm4, %v21507_v43  ;;  %v19893_v43 = vld [vmem:[%s26190_s3 + $0xe0] ss:$0 sps:$4 sm:$0x33]  }
 0x237   :  { %v22079_v55 = vrot.slane %v4266_v11, 6 }
 0x23d   :  { %17371 = vmatmul.mubr.msk.bf16.gmra.mrb[12].mxu0 %vm322_vm4, %v15093_v32 }
 0x23e   :  { %17378 = vmatprep.mubr.msk.bf16.mxu0 %vm322_vm4, %v26748_v18  ;;  %v3859_v18 = vsel %vm347_vm0, %v19893_v43, 0 }
 0x245   :  { %17379 = vmatmul.mubr.msk.bf16.vlgmr.msra.gmra.mrb[0].mxu0 %vm322_vm4, %v21517_v30  ;;  %v26797_v30 = vld [vmem:[#allocation56_spill] sm:$0xff] }
 0x246   :  { %17395 = vmatpush3.bf16.msra.mxu0 %v19892_v45  ;;  %17382 = vmatprep.mubr.msk.bf16.mxu0 %vm322_vm4, %v21539_v52  ;;  %v15105_v52 = vrot.slane %v21894_v22, 9 }
 0x247   :  { %19786 = vmatprep.subr.msk.bf16.mxu0 %vm347_vm0, %v19893_v43  ;;  %v19898_v43 = vld [vmem:[%s26190_s3 + $0xfc] sm:$0xff]  }
 0x248   :  { %v22019_v49 = vsel %vm20735_vm11, %v15105_v52, %v3674_v12 }
 0x249   :  { %v15110_v45 = vcombine.low %v21800_v24, %v22019_v49  ;;  %v4006_v24 = vsel %vm347_vm0, %v19895_v19, 0 }
 0x24a   :  { %17397 = vmatpush3.bf16.msra.mxu0 %v3859_v18  ;;  %v15137_v18 = vrot.slane %v21894_v22, 10 }
 0x24b   :  { %17414 = vmatprep.subr.bf16.mxu0 %v19894_v31 }
 0x24d   :  { %17383 = vmatmul.mubr.msk.bf16.gmra.mrb[4].mxu0 %vm322_vm4, %v15109_v54 }
 0x24e   :  { %17386 = vmatprep.mubr.msk.bf16.mxu0 %vm322_vm4, %v26797_v30 }
 0x255   :  { %17387 = vmatmul.mubr.msk.bf16.gmra.mrb[8].mxu0 %vm322_vm4, %v26798_v57  ;;  %v26800_v57 = vld [vmem:[#allocation7_spill] sm:$0xff] }
 0x256   :  { %17390 = vmatprep.mubr.msk.bf16.mxu0 %vm322_vm4, %v21560_v5  ;;  %v3818_v5 = vrot.slane %v26799_v46, 4  ;;  %v26804_v46 = vld [vmem:[#allocation13_spill] sm:$0xff] }
 0x25d   :  { %17391 = vmatmul.mubr.msk.bf16.gmra.mrb[12].mxu0 %vm322_vm4, %v15110_v45  ;;  %v26802_v45 = vld [vmem:[#allocation19_spill] sm:$0xff] }
 0x25e   :  { %17398 = vmatprep.mubr.msk.bf16.mxu0 %vm322_vm4, %v21009_v17  ;;  %v22039_v17 = vsel %vm20931_vm14, %v3818_v5, %v3823_v41  ;;  %v26805_v5 = vld [vmem:[#allocation16_spill] sm:$0xff] }
 0x25f   :  { %v15124_v34 = vcombine.low %v21823_v23, %v22039_v17 }
 0x265   :  { %17399 = vmatmul.mubr.msk.bf16.vlgmr.msra.gmra.mrb[0].mxu0 %vm322_vm4, %v21293_v26  ;;  %v3829_v26 = vshrl.u32 %v21969_v6, 16 }
 0x266   :  { %17415 = vmatpush3.bf16.msra.mxu0 %v19894_v31  ;;  %17402 = vmatprep.mubr.msk.bf16.mxu0 %vm322_vm4, %v21592_v29  ;;  %v3980_v31 = vrot.slane %v21969_v6, 6 }
 0x267   :  { %19787 = vmatprep.subr.msk.bf16.mxu0 %vm347_vm0, %v19895_v19  ;;  %v3831_v29 = vrot.slane %v3829_v26, 5 }
 0x269   :  { %v3833_v32 = vor.u32 %v3832_v38, %v3831_v29 }
 0x26a   :  { %17417 = vmatpush3.bf16.msra.mxu0 %v4006_v24  ;;  %v4268_v24 = vrot.slane %v4266_v11, 5 }
 0x26b   :  { %17434 = vmatprep.subr.bf16.mxu0 %v19896_v21  ;;  %v22061_v23 = vsel %vm20931_vm14, %v3828_v3, %v3833_v32  ;;  %v19903_v3 = vld [vmem:[%s26190_s3 + $0x110] ss:$0 sps:$4 sm:$0x33]   ;;  %v26807_v32 = vld [vmem:[#allocation21_spill] sm:$0xff] }
 0x26d   :  { %17403 = vmatmul.mubr.msk.bf16.gmra.mrb[4].mxu0 %vm322_vm4, %v15124_v34 }
 0x26e   :  { %17406 = vmatprep.mubr.msk.bf16.mxu0 %vm322_vm4, %v21335_v44  ;;  %v15125_v44 = vcombine.low %v21848_v33, %v22061_v23 }
 0x275   :  { %17407 = vmatmul.mubr.msk.bf16.gmra.mrb[8].mxu0 %vm322_vm4, %v21358_v60  ;;  %v3976_v60 = vrot.slane %v21945_v39, 6 }
 0x276   :  { %17410 = vmatprep.mubr.msk.bf16.mxu0 %vm322_vm4, %v21614_v61  ;;  %v4263_v61 = vshrl.u32 %v22068_v4, 16 }
 0x278   :  { %v22077_v33 = vrot.slane %v4263_v61, 5  ;;  %v4265_v19 = vrot.slane %v4263_v61, 4 }
 0x27a   :  { %v4580_v39 = vor.u32 %v22079_v55, %v22077_v33  ;;  %v4269_v34 = vor.u32 %v4268_v24, %v4265_v19  ;;  %v26815_v19 = vld [vmem:[#allocation47_spill] sm:$0xff]  ;;  %v19908_v33 = vld [vmem:[%s26189_s2] sm:$0x1f]  }
 0x27c   :  { %v4270_v29 = vrot.slane %v4269_v34, 4 }
 0x27d   :  { %17411 = vmatmul.mubr.msk.bf16.gmra.mrb[12].mxu0 %vm322_vm4, %v15125_v44  ;;  %v4463_v44 = vsel %vm347_vm0, %v19903_v3, 0 }
 0x27e   :  { %17418 = vmatprep.mubr.msk.bf16.mxu0 %vm322_vm4, %v21180_v37  ;;  %v22087_v37 = vsel %vm21155_vm1, %v15136_v36, %v3976_v60  ;;  %v19904_v36 = vld [vmem:[%s26190_s3 + $0x114] sm:$0xff]  }
 0x285   :  { %17419 = vmatmul.mubr.msk.bf16.vlgmr.msra.gmra.mrb[0].mxu0 %vm322_vm4, %v21397_v35  ;;  %v15141_v35 = vcombine.low %v21877_v2, %v22087_v37 }
 0x286   :  { %17435 = vmatpush3.bf16.msra.mxu0 %v19896_v21  ;;  %17422 = vmatprep.mubr.msk.bf16.mxu0 %vm322_vm4, %v21652_v0  ;;  %v22101_v0 = vld [vmem:[#allocation2 + $0xb8] sm:$0xf]  ;;  %v22149_v21 = vld [vmem:[#allocation2 + $0x5c] sm:$0x3] }
 0x287   :  { %19788 = vmatprep.subr.msk.bf16.mxu0 %vm347_vm0, %v19897_v63  ;;  %v4277_v54 = vshrl.u32 %v22101_v0, 16  ;;  %v4280_v30 = vshll.u32 %v22101_v0, 16  ;;  %v15157_v41 = vcombine.low %v21894_v22, %v22101_v0  ;;  %v4272_v26 = vshll.u32 %v22149_v21, 16  ;;  %v22170_v63 = vld [vmem:[#allocation2 + $0xbc] sm:$0x3] }
 0x289   :  { %v22107_v52 = vrot.slane %v4277_v54, 5  ;;  %v22109_v2 = vrot.slane %v4280_v30, 6  ;;  %v4274_v38 = vrot.slane %v4272_v26, 5  ;;  %v4279_v61 = vrot.slane %v4277_v54, 4 }
 0x28a   :  { %17437 = vmatpush3.bf16.msra.mxu0 %v4147_v42  ;;  %v4282_v11 = vrot.slane %v4280_v30, 5 }
 0x28b   :  { %17454 = vmatprep.subr.bf16.mxu0 %v19898_v43  ;;  %v4590_v6 = vor.u32 %v22109_v2, %v22107_v52  ;;  %v4275_v22 = vsel %vm20447_vm7, %v4270_v29, %v4274_v38  ;;  %v4585_v29 = vrot.slane %v4272_v26, 6  ;;  %v4581_v38 = vrot.slane %v4580_v39, 4 }
 0x28c   :  { %v15171_v60 = vcombine.low %v21960_v8, %v4275_v22  ;;  %v4283_v42 = vor.u32 %v4282_v11, %v4279_v61  ;;  %v26810_v8 = vld [vmem:[#allocation18_spill] sm:$0xff]  ;;  %v15215_v52 = vrot.slane %v22068_v4, 10  ;;  %v4739_v2 = vrot.slane %v22149_v21, 6 }
 0x28d   :  { %17423 = vmatmul.mubr.msk.bf16.gmra.mrb[4].mxu0 %vm322_vm4, %v15141_v35  ;;  %v26819_v61 = vld [vmem:[#allocation58_spill] sm:$0xff] }
 0x28e   :  { %17426 = vmatprep.mubr.msk.bf16.mxu0 %vm322_vm4, %v21415_v48  ;;  %v22117_v48 = vsel %vm21155_vm1, %v15137_v18, %v3980_v31  ;;  %v4284_v35 = vrot.slane %v4283_v42, 4  ;;  %v26809_v31 = vld [vmem:[#allocation34_spill] sm:$0xff] }
 0x28f   :  { %v15142_v12 = vcombine.low %v21910_v40, %v22117_v48  ;;  %v26820_v11 = vld [vmem:[#allocation22_spill] sm:$0xff] }
 0x295   :  { %17427 = vmatmul.mubr.msk.bf16.gmra.mrb[8].mxu0 %vm322_vm4, %v21424_v20  ;;  %v19900_v20 = vld [vmem:[%s26190_s3 + $0x104] ss:$0 sps:$4 sm:$0x33]  }
 0x296   :  { %17430 = vmatprep.mubr.msk.bf16.mxu0 %vm322_vm4, %v21682_v15  ;;  %v26801_v15 = vld [vmem:[#allocation8_spill] sm:$0xff]  ;;  %v4314_v40 = vsel %vm347_vm0, %v19900_v20, 0 }
 0x29d   :  { %17431 = vmatmul.mubr.msk.bf16.gmra.mrb[12].mxu0 %vm322_vm4, %v15142_v12  ;;  %v26811_v12 = vld [vmem:[#allocation38_spill] sm:$0xff] }
 0x29e   :  { %17438 = vmatprep.mubr.msk.bf16.mxu0 %vm322_vm4, %v26800_v57  ;;  %v15183_v57 = vrot.slane %v22068_v4, 9  ;;  %v4743_v4 = vrot.slane %v22170_v63, 6 }
 0x2a5   :  { %17439 = vmatmul.mubr.msk.bf16.vlgmr.msra.gmra.mrb[0].mxu0 %vm322_vm4, %v26801_v15  ;;  %v19905_v15 = vld [vmem:[%s26190_s3 + $0x11c] ss:$0 sps:$4 sm:$0x33]  }
 0x2a6   :  { %17455 = vmatpush3.bf16.msra.mxu0 %v19898_v43  ;;  %17442 = vmatprep.mubr.msk.bf16.mxu0 %vm322_vm4, %v26802_v45  ;;  %v4286_v43 = vshll.u32 %v22170_v63, 16  ;;  %v26812_v45 = vld [vmem:[#allocation41_spill] sm:$0xff] }
 0x2a7   :  { %19789 = vmatprep.subr.msk.bf16.mxu0 %vm347_vm0, %v19900_v20  ;;  %v4433_v20 = vrot.slane %v22149_v21, 5 }
 0x2a8   :  { %v4288_v18 = vrot.slane %v4286_v43, 5  ;;  %v4595_v26 = vrot.slane %v4286_v43, 6  ;;  %v19909_v43 = vld [vmem:[%s26188_s1] sm:$0xff]  }
 0x2aa   :  { %17457 = vmatpush3.bf16.msra.mxu0 %v4314_v40  ;;  %v4289_v54 = vsel %vm20447_vm7, %v4284_v35, %v4288_v18  ;;  %v26813_v40 = vld [vmem:[#allocation20_spill] sm:$0xff]  ;;  %v19916_v18 = vld [vmem:[%s26188_s1 + $0x38] sm:$0xff]  }
 0x2ab   :  { %17474 = vmatprep.subr.bf16.mxu0 %v19902_v56  ;;  %v15172_v30 = vcombine.low %v21981_v47, %v4289_v54  ;;  %v4434_v47 = vsel %vm20735_vm11, %v15183_v57, %v4433_v20  ;;  %v19915_v35 = vld [vmem:[%s26188_s1 + $0x30] sm:$0xff]   ;;  %v22316_v54 = vld [vmem:[#allocation2 + $0x8] sm:$0xf]  ;;  %v22323_v57 = vld [vmem:[#allocation2] sm:$0xf] }
 0x2ac   :  { %26822 = vst [vmem:[#allocation27_spill] sm:$0xff] %v22316_v54  ;;  %26823 = vst [vmem:[#allocation24_spill] sm:$0xff] %v22323_v57  ;;  %v15266_v20 = vcombine.low %v22323_v57, %v22316_v54 }
 0x2ad   :  { %17443 = vmatmul.mubr.msk.bf16.gmra.mrb[4].mxu0 %vm322_vm4, %v15156_v62  ;;  %v19906_v62 = vld [vmem:[%s26190_s3 + $0x120] sm:$0xff]  }
 0x2ae   :  { %17446 = vmatprep.mubr.msk.bf16.mxu0 %vm322_vm4, %v26803_v7  ;;  %v15188_v7 = vcombine.low %v21999_v28, %v4434_v47  ;;  %v22342_v47 = vld [vmem:[%s26192_s5 + $0xc] sm:$0xff]  }
 0x2b5   :  { %17447 = vmatmul.mubr.msk.bf16.gmra.mrb[8].mxu0 %vm322_vm4, %v26804_v46  ;;  %v26814_v46 = vld [vmem:[#allocation44_spill] sm:$0xff] }
 0x2b6   :  { %17450 = vmatprep.mubr.msk.bf16.mxu0 %vm322_vm4, %v26805_v5  ;;  %v15184_v5 = vrot.slane %v22101_v0, 9 }
 0x2bd   :  { %17451 = vmatmul.mubr.msk.bf16.gmra.mrb[12].mxu0 %vm322_vm4, %v15157_v41  ;;  %v4437_v41 = vrot.slane %v22170_v63, 5 }
 0x2be   :  { %17458 = vmatprep.mubr.msk.bf16.mxu0 %vm322_vm4, %v26806_v51  ;;  %v4582_v51 = vshrl.u32 %v22149_v21, 16  ;;  %v26821_v21 = vld [vmem:[#allocation59_spill] sm:$0xff] }
 0x2bf   :  { %v4438_v28 = vsel %vm20735_vm11, %v15184_v5, %v4437_v41  ;;  %v22351_v5 = vld [vmem:[#allocation2 + $0xc] sm:$0x3]  ;;  %v26339_v41 = vshrl.u32 %v22323_v57, 16 }
 0x2c0   :  { %v15189_v24 = vcombine.low %v22019_v49, %v4438_v28  ;;  %v4584_v34 = vrot.slane %v4582_v51, 5  ;;  %26824 = vst [vmem:[#allocation32_spill] sm:$0xff] %v22351_v5  ;;  %v15305_v51 = vrot.slane %v22323_v57, 9 }
 0x2c5   :  { %17459 = vmatmul.mubr.msk.bf16.vlgmr.msra.gmra.mrb[0].mxu0 %vm322_vm4, %v26807_v32  ;;  %v4591_v32 = vrot.slane %v4590_v6, 4  ;;  %v4974_v6 = vsel %vm4972_vm3, %v19908_v33, 0 }
 0x2c6   :  { %17475 = vmatpush3.bf16.msra.mxu0 %v19902_v56  ;;  %17462 = vmatprep.mubr.msk.bf16.mxu0 %vm322_vm4, %v21741_v59  ;;  %v26808_v59 = vld [vmem:[#allocation30_spill] sm:$0xff]  ;;  %v4622_v56 = vsel %vm347_vm0, %v19905_v15, 0 }
 0x2c7   :  { %19790 = vmatprep.subr.msk.bf16.mxu0 %vm347_vm0, %v19903_v3  ;;  %v4586_v3 = vor.u32 %v4585_v29, %v4584_v34  ;;  %v26337_v29 = vshll.u32 %v22351_v5, 16 }
 0x2ca   :  { %17477 = vmatpush3.bf16.msra.mxu0 %v4463_v44  ;;  %v26817_v44 = vld [vmem:[#allocation55_spill] sm:$0xff] }
 0x2cb   :  { %17494 = vmatprep.subr.bf16.mxu0 %v19904_v36 }
 0x2cd   :  { %17463 = vmatmul.mubr.msk.bf16.gmra.mrb[4].mxu0 %vm322_vm4, %v15171_v60 }
 0x2ce   :  { %17466 = vmatprep.mubr.msk.bf16.mxu0 %vm322_vm4, %v26808_v59 }
 0x2d5   :  { %17467 = vmatmul.mubr.msk.bf16.gmra.mrb[8].mxu0 %vm322_vm4, %v26809_v31  ;;  %v19917_v31 = vld [vmem:[%s26192_s5] sm:$0xff]  }
 0x2d6   :  { %17470 = vmatprep.mubr.msk.bf16.mxu0 %vm322_vm4, %v26810_v8  ;;  %v19918_v8 = vld [vmem:[%s26192_s5 + $0x8] ss:$0 sps:$4 sm:$0x33]  }
 0x2dd   :  { %17471 = vmatmul.mubr.msk.bf16.gmra.mrb[12].mxu0 %vm322_vm4, %v15172_v30  ;;  %v5381_v30 = vsel %vm347_vm0, %v19918_v8, 0 }
 0x2de   :  { %17478 = vmatprep.mubr.msk.bf16.mxu0 %vm322_vm4, %v26811_v12  ;;  %v19919_v12 = vld [vmem:[%s26192_s5 + $0x90] sm:$0xff]  }
 0x2df   :  { %17792 = vmatprep.subr.bf16.mxu1 %v19919_v12 }
 0x2e0   :  { %17793 = vmatpush3.bf16.msra.mxu1 %v19919_v12 }
 0x2e5   :  { %17479 = vmatmul.mubr.msk.bf16.vlgmr.msra.gmra.mrb[0].mxu0 %vm322_vm4, %v26812_v45 }
 0x2e6   :  { %17495 = vmatpush3.bf16.msra.mxu0 %v19904_v36  ;;  %17482 = vmatprep.mubr.msk.bf16.mxu0 %vm322_vm4, %v26813_v40  ;;  %v22336_v40 = vld [vmem:[%s26192_s5 + $0x9c] sm:$0xff]  }
 0x2e7   :  { %19791 = vmatprep.subr.msk.bf16.mxu0 %vm347_vm0, %v19905_v15  ;;  %v19923_v15 = vld [vmem:[%s26192_s5 + $0x98] ss:$0 sps:$4 sm:$0x33]  }
 0x2e8   :  { %19806 = vmatprep.subr.msk.bf16.mxu1 %vm347_vm0, %v19923_v15  ;;  %v7957_v45 = vsel %vm347_vm0, %v19923_v15, 0 }
 0x2e9   :  { %17795 = vmatpush3.bf16.msra.mxu1 %v7957_v45 }
 0x2ea   :  { %17497 = vmatpush3.bf16.msra.mxu0 %v4622_v56  ;;  %17812 = vmatprep.subr.bf16.mxu1 %v22336_v40  ;;  %v26342_v56 = vshrl.u32 %v22316_v54, 16 }
 0x2eb   :  { %17514 = vmatprep.subr.bf16.mxu0 %v19906_v62 }
 0x2ed   :  { %17483 = vmatmul.mubr.msk.bf16.gmra.mrb[4].mxu0 %vm322_vm4, %v15188_v7  ;;  %v5513_v7 = vrot.slane %v26342_v56, 4 }
 0x2ee   :  { %17486 = vmatprep.mubr.msk.bf16.mxu0 %vm322_vm4, %v26814_v46 }
 0x2f5   :  { %17487 = vmatmul.mubr.msk.bf16.gmra.mrb[8].mxu0 %vm322_vm4, %v26815_v19  ;;  %v26338_v19 = vshll.u32 %v22323_v57, 16 }
 0x2f6   :  { %17490 = vmatprep.mubr.msk.bf16.mxu0 %vm322_vm4, %v21804_v53  ;;  %v19907_v53 = vld [vmem:[%s26190_s3 + $0x128] ss:$0 sps:$4 sm:$0x33]  }
 0x2f7   :  { %v4769_v49 = vsel %vm347_vm0, %v19907_v53, 0 }
 0x2fd   :  { %17491 = vmatmul.mubr.msk.bf16.gmra.mrb[12].mxu0 %vm322_vm4, %v15189_v24  ;;  %v22355_v24 = vld [vmem:[#allocation2 + $0x4] sm:$0x3] }
 0x2fe   :  { %17498 = vmatprep.mubr.msk.bf16.mxu0 %vm322_vm4, %v26784_v14  ;;  %v4587_v14 = vsel %vm20931_vm14, %v4581_v38, %v4586_v3  ;;  %26825 = vst [vmem:[#allocation28_spill] sm:$0xff] %v22355_v24  ;;  %v5915_v34 = vrot.slane %v22355_v24, 5  ;;  %v15306_v38 = vrot.slane %v22316_v54, 9  ;;  %v5919_v3 = vrot.slane %v22351_v5, 5 }
 0x2ff   :  { %v15203_v55 = vcombine.low %v22039_v17, %v4587_v14  ;;  %v26818_v17 = vld [vmem:[#allocation23_spill] sm:$0xff]  ;;  %v5502_v14 = vrot.slane %v26338_v19, 5 }
 0x305   :  { %17499 = vmatmul.mubr.msk.bf16.vlgmr.msra.gmra.mrb[0].mxu0 %vm322_vm4, %v26785_v10  ;;  %v4592_v10 = vshrl.u32 %v22170_v63, 16  ;;  %v19914_v63 = vld [vmem:[%s26188_s1 + $0x28] sm:$0xff]  }
 0x306   :  { %17515 = vmatpush3.bf16.msra.mxu0 %v19906_v62  ;;  %17502 = vmatprep.mubr.msk.bf16.mxu0 %vm322_vm4, %v21832_v27  ;;  %v26816_v27 = vld [vmem:[#allocation53_spill] sm:$0xff]  ;;  %v26341_v62 = vshll.u32 %v22316_v54, 16 }
 0x307   :  { %19792 = vmatprep.subr.msk.bf16.mxu0 %vm347_vm0, %v19907_v53  ;;  %v4594_v39 = vrot.slane %v4592_v10, 5  ;;  %v5499_v53 = vrot.slane %v26339_v41, 4  ;;  %v22373_v10 = vld [vmem:[#allocation2 + $0x68] sm:$0xf] }
 0x308   :  { %v5516_v46 = vrot.slane %v26341_v62, 5 }
 0x309   :  { %v4596_v22 = vor.u32 %v4595_v26, %v4594_v39  ;;  %v22377_v39 = vsel %vm20735_vm11, %v15305_v51, %v5915_v34  ;;  %v22379_v26 = vld [vmem:[#allocation2 + $0x60] sm:$0xf] }
 0x30a   :  { %17517 = vmatpush3.bf16.msra.mxu0 %v4769_v49  ;;  %v5517_v28 = vor.u32 %v5516_v46, %v5513_v7  ;;  %v22369_v49 = vld [vmem:[%s26191_s4] ss:$0 sm:$0xff]  ;;  %26826 = vst [vmem:[#allocation33_spill] sm:$0xff] %v22377_v39  ;;  %26827 = vst [vmem:[#allocation31_spill] sm:$0xff] %v22379_v26 }
 0x30b   :  { %19793 = vmatprep.subr.msk.bf16.mxu0 %vm4972_vm3, %v19908_v33  ;;  %v4597_v36 = vsel %vm20931_vm14, %v4591_v32, %v4596_v22  ;;  %v22411_v46 = vld [vmem:[%s26192_s5 + $0xa4] ss:$0 sps:$4 sm:$0x33]  }
 0x30c   :  { %v15204_v60 = vcombine.low %v22061_v23, %v4597_v36  ;;  %v4740_v23 = vsel %vm21155_vm1, %v15215_v52, %v4739_v2  ;;  %v5518_v33 = vrot.slane %v5517_v28, 4  ;;  %v26336_v36 = vshll.u32 %v22355_v24, 16  ;;  %v22416_v28 = vld [vmem:[%s26192_s5 + $0x14] ss:$0 sps:$4 sm:$0x33]  }
 0x30d   :  { %17503 = vmatmul.mubr.msk.bf16.gmra.mrb[4].mxu0 %vm322_vm4, %v15203_v55  ;;  %v15220_v59 = vcombine.low %v22087_v37, %v4740_v23  ;;  %v5522_v55 = vrot.slane %v26337_v29, 5 }
 0x30e   :  { %17506 = vmatprep.mubr.msk.bf16.mxu0 %vm322_vm4, %v26816_v27 }
 0x30f   :  { %v22390_v2 = vsel %vm20447_vm7, %v5518_v33, %v5522_v55  ;;  %v22424_v33 = vld [vmem:[#allocation2 + $0x64] sm:$0x3] }
 0x310   :  { %26829 = vst [vmem:[#allocation39_spill] sm:$0xff] %v22390_v2  ;;  %26832 = vst [vmem:[#allocation40_spill] sm:$0xff] %v22424_v33 }
 0x315   :  { %17507 = vmatmul.mubr.msk.bf16.gmra.mrb[8].mxu0 %vm322_vm4, %v26817_v44  ;;  %v22384_v44 = vsel %vm20735_vm11, %v15306_v38, %v5919_v3 }
 0x316   :  { %17510 = vmatprep.mubr.msk.bf16.mxu0 %vm322_vm4, %v26818_v17  ;;  %26828 = vst [vmem:[#allocation29_spill] sm:$0xff] %v22384_v44  ;;  %v5503_v17 = vor.u32 %v5502_v14, %v5499_v53 }
 0x31d   :  { %17511 = vmatmul.mubr.msk.bf16.gmra.mrb[12].mxu0 %vm322_vm4, %v15204_v60 }
 0x31e   :  { %17518 = vmatprep.mubr.msk.bf16.mxu0 %vm322_vm4, %v26792_v58  ;;  %v15216_v58 = vrot.slane %v22101_v0, 10  ;;  %v19912_v0 = vld [vmem:[%s26188_s1 + $0x18] sm:$0xff]  }
 0x320   :  { %v4744_v42 = vsel %vm21155_vm1, %v15216_v58, %v4743_v4 }
 0x321   :  { %v15221_v37 = vcombine.low %v22117_v48, %v4744_v42  ;;  %v19913_v48 = vld [vmem:[%s26188_s1 + $0x20] sm:$0xff]  }
 0x325   :  { %17519 = vmatmul.mubr.msk.bf16.vlgmr.msra.gmra.mrb[0].mxu0 %vm322_vm4, %v26819_v61  ;;  %v5626_v61 = vshll.u32 %v22373_v10, 16 }
 0x326   :  { %17535 = vmatpush3.bf16.msra.mxu0 %v4974_v6  ;;  %17522 = vmatprep.mubr.msk.bf16.mxu0 %vm322_vm4, %v26820_v11  ;;  %v5623_v6 = vshrl.u32 %v22373_v10, 16 }
 0x327   :  { %17552 = vmatprep.subr.bf16.mxu0 %v19917_v31 }
 0x328   :  { %v22404_v12 = vrot.slane %v5623_v6, 5 }
 0x32a   :  { %26830 = vst [vmem:[#allocation36_spill] sm:$0xff] %v22404_v12 }
 0x32d   :  { %17523 = vmatmul.mubr.msk.bf16.gmra.mrb[4].mxu0 %vm322_vm4, %v15220_v59 }
 0x32e   :  { %17526 = vmatprep.mubr.msk.bf16.mxu0 %vm322_vm4, %v21344_v16  ;;  %v19910_v16 = vld [vmem:[%s26188_s1 + $0x8] sm:$0xff]  }
 0x335   :  { %17527 = vmatmul.mubr.msk.bf16.gmra.mrb[8].mxu0 %vm322_vm4, %v26821_v21 }
 0x336   :  { %17530 = vmatprep.mubr.msk.bf16.mxu0 %vm322_vm4, %v21916_v1  ;;  %v19911_v1 = vld [vmem:[%s26188_s1 + $0x10] sm:$0xff]  }
 0x33d   :  { %17531 = vmatmul.mubr.msk.bf16.gmra.mrb[12].mxu0 %vm322_vm4, %v15221_v37  ;;  %v26335_v37 = vshrl.u32 %v22379_v26, 16 }
 0x33e   :  { %17536 = vmatprep.mubr.msk.bf16.mxu0 %vm4947_vm5, %v19909_v43  ;;  %v26334_v43 = vshll.u32 %v22379_v26, 16 }
 0x33f   :  { %v5611_v51 = vrot.slane %v26335_v37, 4 }
 0x340   :  { %v5614_v34 = vrot.slane %v26334_v43, 5 }
 0x345   :  { %17537 = vmatmul.mubr.msk.bf16.vlgmr.msra.gmra.mrb[0].mxu0 %vm4947_vm5, %v19910_v16 }
 0x346   :  { %17540 = vmatprep.mubr.msk.bf16.mxu0 %vm4947_vm5, %v19911_v1  ;;  %17553 = vmatpush3.bf16.msra.mxu0 %v19917_v31  ;;  %v5628_v31 = vrot.slane %v5626_v61, 5 }
 0x347   :  { %19794 = vmatprep.subr.msk.bf16.mxu0 %vm347_vm0, %v19918_v8 }
 0x34a   :  { %17555 = vmatpush3.bf16.msra.mxu0 %v5381_v30 }
 0x34b   :  { %17572 = vmatprep.subr.bf16.mxu0 %v22342_v47 }
 0x34d   :  { %17541 = vmatmul.mubr.msk.bf16.gmra.mrb[4].mxu0 %vm4947_vm5, %v19912_v0  ;;  %v5504_v0 = vrot.slane %v5503_v17, 4 }
 0x34e   :  { %17544 = vmatprep.mubr.msk.bf16.mxu0 %vm4947_vm5, %v19913_v48  ;;  %v5508_v48 = vrot.slane %v26336_v36, 5 }
 0x355   :  { %17545 = vmatmul.mubr.msk.bf16.gmra.mrb[8].mxu0 %vm4947_vm5, %v19914_v63 }
 0x356   :  { %17548 = vmatprep.mubr.msk.bf16.mxu0 %vm4947_vm5, %v19915_v35 }
 0x35d   :  { %17549 = vmatmul.mubr.msk.bf16.gmra.mrb[12].mxu0 %vm4947_vm5, %v19916_v18  ;;  %v5625_v18 = vrot.slane %v5623_v6, 4 }
 0x35e   :  { %17556 = vmatprep.mubr.msk.bf16.mxu0 %vm322_vm4, %v15266_v20  ;;  %v22406_v20 = vrot.slane %v5626_v61, 6 }
 0x360   :  { %26831 = vst [vmem:[#allocation37_spill] sm:$0xff] %v22406_v20 }
 0x418   :  { %v17538_v27 = vpop.f32.mrb[0].mxu0 }
 0x419   :  { %v18552_v32 = vadd.f32 %v17538_v27, %v22369_v49  ;;  %v5010_v22 = vpop.f32.mrb[1].mxu0 }
 0x41a   :  { %v18553_v60 = vadd.f32 %v22369_v49, %v5010_v22  ;;  %v17539_v52 = vpop.f32.mrb[2].mxu0 }
 0x41b   :  { %v5091_v11 = vmax.f32 %v18552_v32, 0.0  ;;  %v18554_v23 = vadd.f32 %v17539_v52, %v22369_v49  ;;  %v5013_v59 = vpop.f32.mrb[3].mxu0  ;;  %v22432_v52 = vld [vmem:[#allocation2 + $0x6c] sm:$0x3] }
 0x41c   :  { %v5089_v21 = vmax.f32 %v18553_v60, 0.0  ;;  %v18555_v42 = vadd.f32 %v22369_v49, %v5013_v59  ;;  %v5509_v60 = vsel %vm20447_vm7, %v5504_v0, %v5508_v48  ;;  %26833 = vst [vmem:[#allocation46_spill] sm:$0xff] %v22432_v52  ;;  %v5629_v59 = vor.u32 %v5628_v31, %v5625_v18 }
 0x41d   :  { %v16245_v16 = vpack.c.bf16 %v5091_v11, %v5091_v11  ;;  %v5092_v1 = vmax.f32 %v18554_v23, 0.0 }
 0x41e   :  { %v16243_v63 = vpack.c.bf16 %v5089_v21, %v5089_v21  ;;  %v5090_v35 = vmax.f32 %v18555_v42, 0.0 }
 0x41f   :  { %v5157_v8 = vrot.slane %v16245_v16, 7  ;;  %v16246_v30 = vpack.c.bf16 %v5092_v1, %v5092_v1  ;;  %v26333_v1 = vshll.u32 %v22424_v33, 16 }
 0x420   :  { %v5153_v15 = vrot.slane %v16243_v63, 7  ;;  %v16244_v45 = vpack.c.bf16 %v5090_v35, %v5090_v35  ;;  %v17542_v7 = vpop.f32.mrb[4].mxu0  ;;  %v5615_v63 = vor.u32 %v5614_v34, %v5611_v51  ;;  %v26340_v35 = vshll.u32 %v22432_v52, 16 }
 0x421   :  { %v5158_v38 = vrot.slane %v5157_v8, 4  ;;  %5221 = vst.msk [vmem:[#allocation2 + $0x20] sm:$0xe] %vm181_vm2, %v5157_v8  ;;  %v5159_v3 = vrot.slane %v16246_v30, 7  ;;  %v18556_v53 = vadd.f32 %v17542_v7, %v22369_v49  ;;  %v5026_v14 = vpop.f32.mrb[5].mxu0  ;;  %v22446_v8 = vsel %vm347_vm0, %v22411_v46, 0 }
 0x422   :  { %v5154_v27 = vrot.slane %v5153_v15, 4  ;;  %5217 = vst.msk [vmem:[#allocation2 + $0x10] sm:$0xe] %vm181_vm2, %v5153_v15  ;;  %v5155_v32 = vrot.slane %v16244_v45, 7  ;;  %v18557_v22 = vadd.f32 %v22369_v49, %v5026_v14  ;;  %v17543_v17 = vpop.f32.mrb[6].mxu0  ;;  %v22450_v30 = vsel %vm347_vm0, %v22416_v28, 0 }
 0x423   :  { %5222 = vst.msk [vmem:[#allocation2 + $0x24] sm:$0x1] %vm183_vm8, %v5158_v38  ;;  %v5160_v6 = vrot.slane %v5159_v3, 4  ;;  %v5095_v61 = vmax.f32 %v18556_v53, 0.0  ;;  %v18558_v11 = vadd.f32 %v17543_v17, %v22369_v49  ;;  %v5029_v23 = vpop.f32.mrb[7].mxu0  ;;  %v22453_v7 = vcombine.low %v5509_v60, %v22390_v2 }
 0x424   :  { %5223 = vst.msk [vmem:[#allocation2 + $0x28] sm:$0xe] %vm181_vm2, %v5159_v3  ;;  %v5156_v21 = vrot.slane %v5155_v32, 4  ;;  %5219 = vst.msk [vmem:[#allocation2 + $0x18] sm:$0xe] %vm181_vm2, %v5155_v32  ;;  %v5093_v42 = vmax.f32 %v18557_v22, 0.0  ;;  %v18559_v16 = vadd.f32 %v22369_v49, %v5029_v23 }
 0x425   :  { %5218 = vst.msk [vmem:[#allocation2 + $0x14] sm:$0x1] %vm183_vm8, %v5154_v27  ;;  %5224 = vst.msk [vmem:[#allocation2 + $0x2c] sm:$0x1] %vm183_vm8, %v5160_v6  ;;  %v16249_v0 = vpack.c.bf16 %v5095_v61, %v5095_v61  ;;  %v5096_v48 = vmax.f32 %v18558_v11, 0.0  ;;  %v22457_v51 = vrot.slane %v26340_v35, 5 }
 0x426   :  { %5220 = vst.msk [vmem:[#allocation2 + $0x1c] sm:$0x1] %vm183_vm8, %v5156_v21  ;;  %v16247_v18 = vpack.c.bf16 %v5093_v42, %v5093_v42  ;;  %v5094_v31 = vmax.f32 %v18559_v16, 0.0  ;;  %v22463_v14 = vrot.slane %v26333_v1, 5  ;;  %v22465_v27 = vrot.slane %v5629_v59, 4 }
 0x427   :  { %v5165_v15 = vrot.slane %v16249_v0, 7  ;;  %v16250_v45 = vpack.c.bf16 %v5096_v48, %v5096_v48  ;;  %v22471_v61 = vrot.slane %v5615_v63, 4 }
 0x428   :  { %v5161_v34 = vrot.slane %v16247_v18, 7  ;;  %v16248_v38 = vpack.c.bf16 %v5094_v31, %v5094_v31  ;;  %v17546_v3 = vpop.f32.mrb[8].mxu0  ;;  %v22459_v53 = vld [vmem:[#allocation2 + $0x20] sm:$0xf] }
 0x429   :  { %v5166_v32 = vrot.slane %v5165_v15, 4  ;;  %5229 = vst.msk [vmem:[#allocation2 + $0x40] sm:$0xe] %vm181_vm2, %v5165_v15  ;;  %v5167_v22 = vrot.slane %v16250_v45, 7  ;;  %v18560_v17 = vadd.f32 %v17546_v3, %v22369_v49  ;;  %v5042_v60 = vpop.f32.mrb[9].mxu0  ;;  %v15309_v16 = vrot.slane %v22459_v53, 9 }
 0x42a   :  { %v22469_v6 = vld [vmem:[#allocation2 + $0x10] sm:$0xf]  ;;  %v5162_v11 = vrot.slane %v5161_v34, 4  ;;  %5225 = vst.msk [vmem:[#allocation2 + $0x30] sm:$0xe] %vm181_vm2, %v5161_v34  ;;  %v5163_v23 = vrot.slane %v16248_v38, 7  ;;  %v18561_v21 = vadd.f32 %v22369_v49, %v5042_v60 }
 0x42b   :  { %26834 = vst [vmem:[#allocation6_spill] sm:$0xff] %v22469_v6  ;;  %v17547_v42 = vpop.f32.mrb[10].mxu0  ;;  %v22475_v59 = vld [vmem:[#allocation2 + $0x28] sm:$0xf]  ;;  %5230 = vst.msk [vmem:[#allocation2 + $0x44] sm:$0x1] %vm183_vm8, %v5166_v32 }
 0x42c   :  { %v5168_v0 = vrot.slane %v5167_v22, 4  ;;  %5231 = vst.msk [vmem:[#allocation2 + $0x48] sm:$0xe] %vm181_vm2, %v5167_v22  ;;  %v5099_v48 = vmax.f32 %v18560_v17, 0.0  ;;  %v18562_v63 = vadd.f32 %v17547_v42, %v22369_v49  ;;  %v5045_v18 = vpop.f32.mrb[11].mxu0  ;;  %v15307_v15 = vrot.slane %v22469_v6, 9 }
 0x42d   :  { %v22481_v31 = vld [vmem:[#allocation2 + $0x18] sm:$0xf]  ;;  %5226 = vst.msk [vmem:[#allocation2 + $0x34] sm:$0x1] %vm183_vm8, %v5162_v11  ;;  %v5164_v45 = vrot.slane %v5163_v23, 4  ;;  %v5097_v34 = vmax.f32 %v18561_v21, 0.0  ;;  %v18563_v38 = vadd.f32 %v22369_v49, %v5045_v18  ;;  %v22498_v11 = vcombine.low %v22459_v53, %v22475_v59 }
 0x42e   :  { %26835 = vst [vmem:[#allocation10_spill] sm:$0xff] %v22481_v31  ;;  %5227 = vst.msk [vmem:[#allocation2 + $0x38] sm:$0xe] %vm181_vm2, %v5163_v23  ;;  %v22489_v3 = vcombine.low %v22469_v6, %v22481_v31  ;;  %v22491_v32 = vld [vmem:[#allocation2 + $0x14] sm:$0x3]  ;;  %v16253_v17 = vpack.c.bf16 %v5099_v48, %v5099_v48  ;;  %v5100_v60 = vmax.f32 %v18562_v63, 0.0 }
 0x42f   :  { %v22493_v22 = vld [vmem:[#allocation2 + $0x24] sm:$0x3]  ;;  %5232 = vst.msk [vmem:[#allocation2 + $0x4c] sm:$0x1] %vm183_vm8, %v5168_v0  ;;  %26837 = vst [vmem:[#allocation25_spill] sm:$0xff] %v22498_v11  ;;  %v5923_v21 = vrot.slane %v22491_v32, 5  ;;  %v16251_v42 = vpack.c.bf16 %v5097_v34, %v5097_v34 }
 0x430   :  { %26836 = vst [vmem:[#allocation15_spill] sm:$0xff] %v22489_v3  ;;  %v22500_v23 = vld [vmem:[#allocation2 + $0x1c] sm:$0x3]  ;;  %5228 = vst.msk [vmem:[#allocation2 + $0x3c] sm:$0x1] %vm183_vm8, %v5164_v45  ;;  %v5098_v18 = vmax.f32 %v18563_v38, 0.0  ;;  %17557 = vmatmul.mubr.msk.bf16.vlgmr.msra.gmra.mrb[16].mxu0 %vm322_vm4, %v22489_v3  ;;  %v16254_v63 = vpack.c.bf16 %v5100_v60, %v5100_v60 }
 0x431   :  { %v15308_v1 = vrot.slane %v22481_v31, 9  ;;  %v5927_v0 = vrot.slane %v22500_v23, 5  ;;  %v5173_v48 = vrot.slane %v16253_v17, 7  ;;  %17560 = vmatprep.mubr.msk.bf16.mxu0 %vm322_vm4, %v22498_v11  ;;  %v22510_v43 = vld [vmem:[#allocation2 + $0x2c] sm:$0x3]  ;;  %v22514_v37 = vsel %vm20735_vm11, %v15307_v15, %v5923_v21  ;;  %17573 = vmatpush3.bf16.msra.mxu0 %v22342_v47  ;;  %v17550_v36 = vpop.f32.mrb[12].mxu0 }
 0x432   :  { %26838 = vst [vmem:[#allocation35_spill] sm:$0xff] %v22514_v37  ;;  %v5931_v45 = vrot.slane %v22493_v22, 5  ;;  %v5169_v34 = vrot.slane %v16251_v42, 7  ;;  %v16252_v38 = vpack.c.bf16 %v5098_v18, %v5098_v18  ;;  %v15310_v60 = vrot.slane %v22475_v59, 9  ;;  %19795 = vmatprep.subr.msk.bf16.mxu0 %vm347_vm0, %v22416_v28  ;;  %v22526_v15 = vld [vmem:[%s26192_s5 + $0x18] sm:$0xff]   ;;  %v5058_v18 = vpop.f32.mrb[13].mxu0 }
 0x433   :  { %v5928_v17 = vsel %vm20735_vm11, %v15308_v1, %v5927_v0  ;;  %v5174_v21 = vrot.slane %v5173_v48, 4  ;;  %5237 = vst.msk [vmem:[#allocation2 + $0x80] sm:$0xe] %vm181_vm2, %v5173_v48  ;;  %v5175_v47 = vrot.slane %v16254_v63, 7  ;;  %v18564_v42 = vadd.f32 %v17550_v36, %v22369_v49  ;;  %v22530_v29 = vld [vmem:[#allocation2 + $0x30] sm:$0xf] }
 0x434   :  { %v5932_v1 = vsel %vm20735_vm11, %v15309_v16, %v5931_v45  ;;  %v5170_v0 = vrot.slane %v5169_v34, 4  ;;  %5233 = vst.msk [vmem:[#allocation2 + $0x70] sm:$0xe] %vm181_vm2, %v5169_v34  ;;  %v5171_v28 = vrot.slane %v16252_v38, 7  ;;  %v18565_v19 = vadd.f32 %v22369_v49, %v5058_v18  ;;  %v17551_v41 = vpop.f32.mrb[14].mxu0 }
 0x435   :  { %v5935_v55 = vrot.slane %v22510_v43, 5  ;;  %5238 = vst.msk [vmem:[#allocation2 + $0x84] sm:$0x1] %vm183_vm8, %v5174_v21  ;;  %v5176_v48 = vrot.slane %v5175_v47, 4  ;;  %v5103_v36 = vmax.f32 %v18564_v42, 0.0  ;;  %v18566_v63 = vadd.f32 %v17551_v41, %v22369_v49  ;;  %v5061_v35 = vpop.f32.mrb[15].mxu0  ;;  %17575 = vmatpush3.bf16.msra.mxu0 %v22450_v30 }
 0x436   :  { %5239 = vst.msk [vmem:[#allocation2 + $0x88] sm:$0xe] %vm181_vm2, %v5175_v47  ;;  %v22540_v62 = vld [vmem:[#allocation2 + $0x34] sm:$0x3]  ;;  %v15311_v16 = vrot.slane %v22530_v29, 9  ;;  %v5172_v45 = vrot.slane %v5171_v28, 4  ;;  %v18567_v38 = vadd.f32 %v22369_v49, %v5061_v35  ;;  %17592 = vmatprep.subr.bf16.mxu0 %v22526_v15  ;;  %v22553_v30 = vcombine.low %v22514_v37, %v5928_v17 }
 0x437   :  { %5234 = vst.msk [vmem:[#allocation2 + $0x74] sm:$0x1] %vm183_vm8, %v5170_v0  ;;  %v5101_v34 = vmax.f32 %v18565_v19, 0.0  ;;  %v5936_v21 = vsel %vm20735_vm11, %v15310_v60, %v5935_v55  ;;  %5240 = vst.msk [vmem:[#allocation2 + $0x8c] sm:$0x1] %vm183_vm8, %v5176_v48  ;;  %v16257_v41 = vpack.c.bf16 %v5103_v36, %v5103_v36  ;;  %v5104_v47 = vmax.f32 %v18566_v63, 0.0 }
 0x438   :  { %5235 = vst.msk [vmem:[#allocation2 + $0x78] sm:$0xe] %vm181_vm2, %v5171_v28  ;;  %v5939_v42 = vrot.slane %v22540_v62, 5  ;;  %26839 = vst [vmem:[#allocation42_spill] sm:$0xff] %v22553_v30  ;;  %v5102_v19 = vmax.f32 %v18567_v38, 0.0  ;;  %v22556_v0 = vcombine.low %v5932_v1, %v5936_v21  ;;  %v22566_v35 = vsel %vm20447_vm7, %v22465_v27, %v22457_v51  ;;  %17796 = vmatprep.mubr.msk.bf16.mxu1 %vm322_vm4, %v22553_v30 }
 0x439   :  { %5236 = vst.msk [vmem:[#allocation2 + $0x7c] sm:$0x1] %vm183_vm8, %v5172_v45  ;;  %v16255_v18 = vpack.c.bf16 %v5101_v34, %v5101_v34  ;;  %v22558_v49 = vld [vmem:[#allocation2 + $0x38] sm:$0xf]  ;;  %v22560_v55 = vld [vmem:[#allocation2 + $0x40] sm:$0xf]  ;;  %v16258_v48 = vpack.c.bf16 %v5104_v47, %v5104_v47  ;;  %v22585_v38 = vcombine.low %v5928_v17, %v5932_v1 }
 0x43a   :  { %26840 = vst [vmem:[#allocation49_spill] sm:$0xff] %v22556_v0  ;;  %26841 = vst [vmem:[#allocation50_spill] sm:$0xff] %v22566_v35  ;;  %v22571_v60 = vld [vmem:[%s26192_s5 + $0xb0] ss:$0 sps:$4 sm:$0x33]   ;;  %v5181_v28 = vrot.slane %v16257_v41, 7  ;;  %v5940_v36 = vsel %vm20735_vm11, %v15311_v16, %v5939_v42  ;;  %v16256_v34 = vpack.c.bf16 %v5102_v19, %v5102_v19  ;;  %17797 = vmatmul.mubr.msk.bf16.vlgmr.msra.gmra.mrb[0].mxu1 %vm322_vm4, %v22556_v0 }
 0x43b   :  { %v22577_v63 = vld [vmem:[#allocation2 + $0x3c] sm:$0x3]  ;;  %v22579_v45 = vld [vmem:[#allocation2 + $0x44] sm:$0x3]  ;;  %v5177_v27 = vrot.slane %v16255_v18, 7  ;;  %26842 = vst [vmem:[#allocation51_spill] sm:$0xff] %v22585_v38  ;;  %v22587_v41 = vcombine.low %v5936_v21, %v5940_v36  ;;  %17813 = vmatpush3.bf16.msra.mxu1 %v22336_v40  ;;  %v22599_v18 = vcombine.low %v22530_v29, %v22558_v49 }
 0x43c   :  { %v22591_v16 = vld [vmem:[#allocation2 + $0x48] sm:$0xf]  ;;  %v22593_v47 = vld [vmem:[#allocation2 + $0x4c] sm:$0x3]  ;;  %v5182_v42 = vrot.slane %v5181_v28, 4  ;;  %v5183_v56 = vrot.slane %v16258_v48, 7  ;;  %19807 = vmatprep.subr.msk.bf16.mxu1 %vm347_vm0, %v22411_v46 }
 0x43d   :  { %26843 = vst [vmem:[#allocation52_spill] sm:$0xff] %v22587_v41  ;;  %5245 = vst.msk [vmem:[#allocation2 + $0xa0] sm:$0xe] %vm181_vm2, %v5181_v28  ;;  %v15312_v17 = vrot.slane %v22558_v49, 9  ;;  %v22602_v1 = vld [vmem:[#allocation2 + $0x70] sm:$0xf]  ;;  %17561 = vmatmul.mubr.msk.bf16.gmra.mrb[20].mxu0 %vm322_vm4, %v22599_v18 }
 0x43e   :  { %26844 = vst [vmem:[#allocation43_spill] sm:$0xff] %v22599_v18  ;;  %v22607_v21 = vld [vmem:[%s26192_s5 + $0xa8] sm:$0xff]   ;;  %v5178_v19 = vrot.slane %v5177_v27, 4  ;;  %5241 = vst.msk [vmem:[#allocation2 + $0x90] sm:$0xe] %vm181_vm2, %v5177_v27  ;;  %v5179_v28 = vrot.slane %v16256_v34, 7  ;;  %v26846_v18 = vcombine.low %v22379_v26, %v22373_v10 }
 0x43f   :  { %v5943_v48 = vrot.slane %v22577_v63, 5  ;;  %v15442_v40 = vrot.slane %v22560_v55, 9  ;;  %v22612_v58 = vld [vmem:[#allocation2 + $0x80] sm:$0xf]  ;;  %v22614_v51 = vld [vmem:[#allocation2 + $0x88] sm:$0xf]  ;;  %17815 = vmatpush3.bf16.msra.mxu1 %v22446_v8 }
 0x440   :  { %5246 = vst.msk [vmem:[#allocation2 + $0xa4] sm:$0x1] %vm183_vm8, %v5182_v42  ;;  %v5184_v4 = vrot.slane %v5183_v56, 4  ;;  %v7092_v27 = vrot.slane %v22579_v45, 5  ;;  %v15539_v34 = vrot.slane %v22591_v16, 9  ;;  %v7927_v3 = vrot.slane %v22593_v47, 5  ;;  %17564 = vmatprep.mubr.msk.bf16.mxu0 %vm322_vm4, %v26846_v18  ;;  %17832 = vmatprep.subr.bf16.mxu1 %v22607_v21 }
 0x441   :  { %5247 = vst.msk [vmem:[#allocation2 + $0xa8] sm:$0xe] %vm181_vm2, %v5183_v56  ;;  %v22625_v11 = vld [vmem:[#allocation2 + $0x78] sm:$0xf]  ;;  %v5180_v42 = vrot.slane %v5179_v28, 4  ;;  %v22636_v56 = vsel %vm20735_vm11, %v15312_v17, %v5943_v48  ;;  %v15315_v48 = vrot.slane %v22602_v1, 9 }
 0x442   :  { %v22630_v46 = vld [vmem:[%s26192_s5 + $0x20] ss:$0 sps:$4 sm:$0x33]   ;;  %5242 = vst.msk [vmem:[#allocation2 + $0x94] sm:$0x1] %vm183_vm8, %v5178_v19  ;;  %26845 = vst [vmem:[#allocation57_spill] sm:$0xff] %v22636_v56  ;;  %v22644_v37 = vcombine.low %v22602_v1, %v22625_v11  ;;  %v22656_v17 = vcombine.low %v5940_v36, %v22636_v56  ;;  %v22660_v10 = vsel %vm20735_vm11, %v15442_v40, %v7092_v27 }
 0x443   :  { %5243 = vst.msk [vmem:[#allocation2 + $0x98] sm:$0xe] %vm181_vm2, %v5179_v28  ;;  %v22646_v2 = vld [vmem:[#allocation2 + $0x74] sm:$0x3]  ;;  %v22648_v41 = vld [vmem:[#allocation2 + $0x84] sm:$0x3]  ;;  %v22664_v18 = vsel %vm20735_vm11, %v15539_v34, %v7927_v3 }
 0x444   :  { %26847 = vst [vmem:[#allocation14_spill] sm:$0xff] %v22644_v37  ;;  %v22652_v19 = vsel %vm347_vm0, %v22571_v60, 0  ;;  %5248 = vst.msk [vmem:[#allocation2 + $0xac] sm:$0x1] %vm183_vm8, %v5184_v4  ;;  %v22666_v28 = vld [vmem:[#allocation2 + $0x7c] sm:$0x3]  ;;  %v22675_v4 = vcombine.low %v22660_v10, %v22664_v18  ;;  %17800 = vmatprep.mubr.msk.bf16.mxu1 %vm322_vm4, %v22656_v17 }
 0x445   :  { %26848 = vst [vmem:[#allocation11_spill] sm:$0xff] %v22656_v17  ;;  %26849 = vst [vmem:[#allocation56_spill] sm:$0xff] %v22660_v10  ;;  %v22669_v38 = vld [vmem:[#allocation2 + $0x8c] sm:$0x3]  ;;  %v5955_v36 = vrot.slane %v22646_v2, 5  ;;  %v15316_v40 = vrot.slane %v22625_v11, 9  ;;  %17565 = vmatmul.mubr.msk.bf16.gmra.mrb[24].mxu0 %vm322_vm4, %v22644_v37  ;;  %v26861_v37 = vsel %vm20447_vm7, %v22471_v61, %v22463_v14 }
 0x446   :  { %26850 = vst [vmem:[#allocation45_spill] sm:$0xff] %v22664_v18  ;;  %5244 = vst.msk [vmem:[#allocation2 + $0x9c] sm:$0x1] %vm183_vm8, %v5180_v42  ;;  %v5959_v3 = vrot.slane %v22666_v28, 5  ;;  %v15317_v27 = vrot.slane %v22612_v58, 9  ;;  %v5963_v8 = vrot.slane %v22648_v41, 5  ;;  %17801 = vmatmul.mubr.msk.bf16.gmra.mrb[4].mxu1 %vm322_vm4, %v22675_v4  ;;  %v22749_v20 = vcombine.low %v26861_v37, %v22566_v35 }
 0x447   :  { %26851 = vst [vmem:[#allocation7_spill] sm:$0xff] %v22675_v4  ;;  %v15318_v34 = vrot.slane %v22614_v51, 9  ;;  %v5967_v42 = vrot.slane %v22669_v38, 5  ;;  %v22691_v18 = vsel %vm20735_vm11, %v15315_v48, %v5955_v36  ;;  %v22697_v10 = vld [vmem:[#allocation2 + $0xa0] sm:$0xf]  ;;  %v5525_v33 = vshrl.u32 %v22469_v6, 16 }
 0x448   :  { %26852 = vst [vmem:[#allocation8_spill] sm:$0xff] %v22691_v18  ;;  %v22695_v56 = vsel %vm20735_vm11, %v15316_v40, %v5959_v3  ;;  %v5528_v26 = vshll.u32 %v22469_v6, 16  ;;  %v22709_v48 = vld [vmem:[#allocation2 + $0x90] sm:$0xf]  ;;  %v15443_v36 = vrot.slane %v22697_v10, 9  ;;  %v22714_v40 = vsel %vm347_vm0, %v22630_v46, 0 }
 0x449   :  { %26853 = vst [vmem:[#allocation19_spill] sm:$0xff] %v22695_v56  ;;  %v22703_v24 = vcombine.low %v22691_v18, %v22695_v56  ;;  %v22707_v4 = vsel %vm20735_vm11, %v15318_v34, %v5967_v42  ;;  %v22718_v3 = vcombine.low %v22612_v58, %v22614_v51  ;;  %v22722_v18 = vsel %vm20735_vm11, %v15317_v27, %v5963_v8  ;;  %v22725_v34 = vld [vmem:[#allocation2 + $0xa4] sm:$0x3]  ;;  %v22727_v42 = vld [vmem:[#allocation2 + $0xa8] sm:$0xf] }
 0x44a   :  { %26855 = vst [vmem:[#allocation13_spill] sm:$0xff] %v22707_v4  ;;  %26857 = vst [vmem:[#allocation17_spill] sm:$0xff] %v22722_v18  ;;  %v15319_v56 = vrot.slane %v22709_v48, 9  ;;  %v5527_v5 = vrot.slane %v5525_v33, 4  ;;  %v22735_v17 = vcombine.low %v22722_v18, %v22707_v4  ;;  %v22737_v57 = vld [vmem:[#allocation2 + $0x98] sm:$0xf] }
 0x44b   :  { %26854 = vst [vmem:[#allocation12_spill] sm:$0xff] %v22703_v24  ;;  %26856 = vst [vmem:[#allocation16_spill] sm:$0xff] %v22718_v3  ;;  %17804 = vmatprep.mubr.msk.bf16.mxu1 %vm322_vm4, %v22703_v24  ;;  %v22739_v27 = vld [vmem:[#allocation2 + $0x94] sm:$0x3]  ;;  %v7096_v8 = vrot.slane %v22725_v34, 5  ;;  %v15540_v12 = vrot.slane %v22727_v42, 9  ;;  %17568 = vmatprep.mubr.msk.bf16.mxu0 %vm322_vm4, %v22718_v3  ;;  %v22755_v4 = vcombine.low %v22709_v48, %v22737_v57 }
 0x44c   :  { %26858 = vst [vmem:[#allocation21_spill] sm:$0xff] %v22725_v34  ;;  %26859 = vst [vmem:[#allocation30_spill] sm:$0xff] %v22727_v42  ;;  %v5971_v18 = vrot.slane %v22739_v27, 5  ;;  %v15320_v24 = vrot.slane %v22737_v57, 9  ;;  %v22759_v52 = vld [vmem:[#allocation2 + $0xac] sm:$0x3] }
 0x44d   :  { %26860 = vst [vmem:[#allocation34_spill] sm:$0xff] %v22735_v17  ;;  %26862 = vst [vmem:[#allocation18_spill] sm:$0xff] %v22755_v4  ;;  %v5530_v54 = vrot.slane %v5528_v26, 5  ;;  %v22761_v0 = vld [vmem:[#allocation2 + $0x9c] sm:$0x3]  ;;  %v22765_v37 = vsel %vm20735_vm11, %v15443_v36, %v7096_v8  ;;  %v7931_v14 = vrot.slane %v22759_v52, 5  ;;  %17569 = vmatmul.mubr.msk.bf16.gmra.mrb[28].mxu0 %vm322_vm4, %v22755_v4 }
 0x44e   :  { %26863 = vst [vmem:[#allocation38_spill] sm:$0xff] %v22759_v52  ;;  %26864 = vst [vmem:[#allocation41_spill] sm:$0xff] %v22765_v37  ;;  %v5534_v61 = vshll.u32 %v22491_v32, 16  ;;  %v5539_v3 = vshrl.u32 %v22481_v31, 16  ;;  %v22772_v35 = vsel %vm20735_vm11, %v15319_v56, %v5971_v18  ;;  %v5975_v30 = vrot.slane %v22761_v0, 5  ;;  %17805 = vmatmul.mubr.msk.bf16.gmra.mrb[8].mxu1 %vm322_vm4, %v22735_v17  ;;  %17576 = vmatprep.mubr.msk.bf16.mxu0 %vm322_vm4, %v22453_v7 }
 0x44f   :  { %26865 = vst [vmem:[#allocation20_spill] sm:$0xff] %v22772_v35  ;;  %v5531_v50 = vor.u32 %v5530_v54, %v5527_v5  ;;  %v5542_v6 = vshll.u32 %v22481_v31, 16  ;;  %v22778_v44 = vsel %vm20735_vm11, %v15540_v12, %v7931_v14  ;;  %v5548_v39 = vshll.u32 %v22500_v23, 16 }
 0x450   :  { %26866 = vst [vmem:[#allocation44_spill] sm:$0xff] %v22778_v44  ;;  %v5536_v36 = vrot.slane %v5534_v61, 5  ;;  %v5541_v8 = vrot.slane %v5539_v3, 4  ;;  %v22785_v56 = vsel %vm20735_vm11, %v15320_v24, %v5975_v30  ;;  %v22789_v54 = vcombine.low %v22765_v37, %v22778_v44 }
 0x451   :  { %26867 = vst [vmem:[#allocation47_spill] sm:$0xff] %v22785_v56  ;;  %v5532_v5 = vrot.slane %v5531_v50, 4  ;;  %v5544_v18 = vrot.slane %v5542_v6, 5  ;;  %v22793_v12 = vcombine.low %v22772_v35, %v22785_v56  ;;  %v5550_v14 = vrot.slane %v5548_v39, 5 }
 0x452   :  { %26868 = vst [vmem:[#allocation53_spill] sm:$0xff] %v22789_v54  ;;  %v6174_v31 = vrot.slane %v5525_v33, 5  ;;  %v6175_v52 = vrot.slane %v5528_v26, 6  ;;  %v6178_v17 = vshrl.u32 %v22491_v32, 16  ;;  %v6181_v34 = vrot.slane %v5534_v61, 6 }
 0x453   :  { %26869 = vst [vmem:[#allocation55_spill] sm:$0xff] %v22793_v12  ;;  %v5545_v42 = vor.u32 %v5544_v18, %v5541_v8  ;;  %v6184_v25 = vrot.slane %v5539_v3, 5  ;;  %17808 = vmatprep.mubr.msk.bf16.mxu1 %vm322_vm4, %v22793_v12  ;;  %v6185_v24 = vrot.slane %v5542_v6, 6  ;;  %v6188_v30 = vshrl.u32 %v22500_v23, 16 }
 0x454   :  { %v6176_v50 = vor.u32 %v6175_v52, %v6174_v31  ;;  %v6191_v44 = vrot.slane %v5548_v39, 6  ;;  %v6180_v33 = vrot.slane %v6178_v17, 5  ;;  %v22805_v61 = vsel %vm20447_vm7, %v5532_v5, %v5536_v36 }
 0x455   :  { %v5546_v26 = vrot.slane %v5545_v42, 4  ;;  %26870 = vst [vmem:[#allocation23_spill] sm:$0xff] %v22805_v61  ;;  %v5553_v3 = vshrl.u32 %v22459_v53, 16  ;;  %v6186_v18 = vor.u32 %v6185_v24, %v6184_v25  ;;  %v6190_v4 = vrot.slane %v6188_v30, 5 }
 0x456   :  { %v6177_v8 = vrot.slane %v6176_v50, 4  ;;  %v5556_v52 = vshll.u32 %v22459_v53, 16  ;;  %v6182_v6 = vor.u32 %v6181_v34, %v6180_v33  ;;  %v5562_v7 = vshll.u32 %v22493_v22, 16  ;;  %17809 = vmatmul.mubr.msk.bf16.gmra.mrb[12].mxu1 %vm322_vm4, %v22789_v54 }
 0x457   :  { %v22811_v39 = vsel %vm20447_vm7, %v5546_v26, %v5550_v14  ;;  %v5555_v31 = vrot.slane %v5553_v3, 4  ;;  %v6187_v17 = vrot.slane %v6186_v18, 4  ;;  %v6192_v42 = vor.u32 %v6191_v44, %v6190_v4 }
 0x458   :  { %26871 = vst [vmem:[#allocation58_spill] sm:$0xff] %v22811_v39  ;;  %v22816_v36 = vcombine.low %v22805_v61, %v22811_v39  ;;  %v5558_v5 = vrot.slane %v5556_v52, 5  ;;  %v22822_v25 = vsel %vm20931_vm14, %v6177_v8, %v6182_v6  ;;  %v5564_v53 = vrot.slane %v5562_v7, 5 }
 0x459   :  { %26873 = vst [vmem:[#allocation59_spill] sm:$0xff] %v22822_v25  ;;  %v5567_v34 = vshrl.u32 %v22475_v59, 16  ;;  %v5570_v14 = vshll.u32 %v22475_v59, 16  ;;  %v22828_v44 = vsel %vm20931_vm14, %v6187_v17, %v6192_v42  ;;  %v5576_v50 = vshll.u32 %v22510_v43, 16 }
 0x45a   :  { %26872 = vst [vmem:[#allocation22_spill] sm:$0xff] %v22816_v36  ;;  %26874 = vst [vmem:[#allocation60_spill] sm:$0xff] %v22828_v44  ;;  %v5559_v4 = vor.u32 %v5558_v5, %v5555_v31  ;;  %v6194_v24 = vrot.slane %v5553_v3, 5  ;;  %v22833_v30 = vcombine.low %v22822_v25, %v22828_v44  ;;  %v6195_v8 = vrot.slane %v5556_v52, 6  ;;  %17577 = vmatmul.mubr.msk.bf16.vlgmr.msra.gmra.mrb[16].mxu0 %vm322_vm4, %v22816_v36 }
 0x45b   :  { %v5569_v26 = vrot.slane %v5567_v34, 4  ;;  %v5572_v33 = vrot.slane %v5570_v14, 5  ;;  %v5578_v6 = vrot.slane %v5576_v50, 5  ;;  %v6198_v54 = vshrl.u32 %v22493_v22, 16  ;;  %17593 = vmatpush3.bf16.msra.mxu0 %v22526_v15 }
 0x45c   :  { %26875 = vst [vmem:[#allocation61_spill] sm:$0xff] %v22833_v30  ;;  %v5560_v18 = vrot.slane %v5559_v4, 4  ;;  %v6201_v17 = vrot.slane %v5562_v7, 6  ;;  %17816 = vmatprep.mubr.msk.bf16.mxu1 %vm322_vm4, %v22833_v30  ;;  %v6196_v3 = vor.u32 %v6195_v8, %v6194_v24  ;;  %v6204_v42 = vrot.slane %v5567_v34, 5  ;;  %19796 = vmatprep.subr.msk.bf16.mxu0 %vm347_vm0, %v22630_v46  ;;  %v22851_v7 = vld [vmem:[%s26192_s5 + $0x24] sm:$0xff]  }
 0x45d   :  { %v5573_v31 = vor.u32 %v5572_v33, %v5569_v26  ;;  %v6205_v5 = vrot.slane %v5570_v14, 6  ;;  %v6200_v25 = vrot.slane %v6198_v54, 5  ;;  %v6208_v4 = vshrl.u32 %v22510_v43, 16 }
 0x45e   :  { %v22843_v52 = vsel %vm20447_vm7, %v5560_v18, %v5564_v53  ;;  %v6211_v36 = vrot.slane %v5576_v50, 6  ;;  %v6197_v14 = vrot.slane %v6196_v3, 4  ;;  %v5581_v15 = vshrl.u32 %v22530_v29, 16 }
 0x45f   :  { %26876 = vst [vmem:[#allocation62_spill] sm:$0xff] %v22843_v52  ;;  %v5574_v34 = vrot.slane %v5573_v31, 4  ;;  %v6206_v24 = vor.u32 %v6205_v5, %v6204_v42  ;;  %v6202_v26 = vor.u32 %v6201_v17, %v6200_v25  ;;  %v6210_v53 = vrot.slane %v6208_v4, 5  ;;  %17595 = vmatpush3.bf16.msra.mxu0 %v22714_v40 }
 0x460   :  { %v5584_v54 = vshll.u32 %v22530_v29, 16  ;;  %v5590_v33 = vshll.u32 %v22540_v62, 16  ;;  %v5595_v8 = vshrl.u32 %v22558_v49, 16  ;;  %v5598_v18 = vshll.u32 %v22558_v49, 16  ;;  %17612 = vmatprep.subr.bf16.mxu0 %v22851_v7 }
 0x461   :  { %v5579_v50 = vsel %vm20447_vm7, %v5574_v34, %v5578_v6  ;;  %v6207_v46 = vrot.slane %v6206_v24, 4  ;;  %v6212_v3 = vor.u32 %v6211_v36, %v6210_v53  ;;  %v22866_v25 = vsel %vm20931_vm14, %v6197_v14, %v6202_v26 }
 0x462   :  { %v22862_v31 = vcombine.low %v22843_v52, %v5579_v50  ;;  %26878 = vst [vmem:[#allocation64_spill] sm:$0xff] %v22866_v25  ;;  %v5604_v17 = vshll.u32 %v22577_v63, 16  ;;  %v6214_v6 = vrot.slane %v5581_v15, 5  ;;  %v6215_v42 = vrot.slane %v5584_v54, 6 }
 0x463   :  { %v6218_v5 = vshrl.u32 %v22540_v62, 16  ;;  %v6221_v4 = vrot.slane %v5590_v33, 6  ;;  %v6213_v40 = vsel %vm20931_vm14, %v6207_v46, %v6212_v3  ;;  %v6224_v36 = vrot.slane %v5595_v8, 5 }
 0x464   :  { %26877 = vst [vmem:[#allocation63_spill] sm:$0xff] %v22862_v31  ;;  %17580 = vmatprep.mubr.msk.bf16.mxu0 %vm322_vm4, %v22862_v31  ;;  %v6225_v34 = vrot.slane %v5598_v18, 6  ;;  %v6228_v14 = vshrl.u32 %v22577_v63, 16  ;;  %v22877_v24 = vcombine.low %v22866_v25, %v6213_v40  ;;  %v6216_v26 = vor.u32 %v6215_v42, %v6214_v6 }
 0x465   :  { %v6220_v53 = vrot.slane %v6218_v5, 5  ;;  %v6231_v44 = vrot.slane %v5604_v17, 6  ;;  %v5583_v37 = vrot.slane %v5581_v15, 4  ;;  %v5586_v35 = vrot.slane %v5584_v54, 5 }
 0x466   :  { %26879 = vst [vmem:[#allocation65_spill] sm:$0xff] %v22877_v24  ;;  %v6226_v61 = vor.u32 %v6225_v34, %v6224_v36  ;;  %v6230_v56 = vrot.slane %v6228_v14, 5  ;;  %17817 = vmatmul.mubr.msk.bf16.vlgmr.msra.gmra.mrb[0].mxu1 %vm322_vm4, %v22877_v24  ;;  %v6217_v31 = vrot.slane %v6216_v26, 4  ;;  %v5592_v46 = vrot.slane %v5590_v33, 5  ;;  %v22891_v33 = vld [vmem:[%s26192_s5 + $0xb4] sm:$0xff]  }
 0x467   :  { %v6222_v39 = vor.u32 %v6221_v4, %v6220_v53  ;;  %v5597_v3 = vrot.slane %v5595_v8, 4  ;;  %17833 = vmatpush3.bf16.msra.mxu1 %v22607_v21  ;;  %v5587_v25 = vor.u32 %v5586_v35, %v5583_v37  ;;  %v5600_v12 = vrot.slane %v5598_v18, 5 }
 0x468   :  { %v6227_v52 = vrot.slane %v6226_v61, 4  ;;  %v6232_v30 = vor.u32 %v6231_v44, %v6230_v56  ;;  %v5606_v42 = vrot.slane %v5604_v17, 5  ;;  %v26422_v15 = vshrl.u32 %v22560_v55, 16  ;;  %19808 = vmatprep.subr.msk.bf16.mxu1 %vm347_vm0, %v22571_v60 }
 0x469   :  { %v6223_v6 = vsel %vm20931_vm14, %v6217_v31, %v6222_v39  ;;  %v26421_v54 = vshll.u32 %v22560_v55, 16  ;;  %v5588_v37 = vrot.slane %v5587_v25, 4  ;;  %v5601_v56 = vor.u32 %v5600_v12, %v5597_v3 }
 0x46a   :  { %v22895_v35 = vsel %vm20931_vm14, %v6227_v52, %v6232_v30  ;;  %v22897_v21 = vcombine.low %v6213_v40, %v6223_v6  ;;  %v26418_v39 = vshll.u32 %v22579_v45, 16  ;;  %v7261_v60 = vrot.slane %v26422_v15, 5 }
 0x46b   :  { %26880 = vst [vmem:[#allocation66_spill] sm:$0xff] %v22895_v35  ;;  %v22900_v61 = vcombine.low %v6223_v6, %v22895_v35  ;;  %v7262_v44 = vrot.slane %v26421_v54, 6  ;;  %v5593_v8 = vsel %vm20447_vm7, %v5588_v37, %v5592_v46  ;;  %v5602_v30 = vrot.slane %v5601_v56, 4  ;;  %17835 = vmatpush3.bf16.msra.mxu1 %v22652_v19 }
 0x46c   :  { %26881 = vst [vmem:[#allocation67_spill] sm:$0xff] %v22897_v21  ;;  %v7265_v52 = vshrl.u32 %v22579_v45, 16  ;;  %v26420_v18 = vshrl.u32 %v22591_v16, 16  ;;  %v22914_v12 = vcombine.low %v5579_v50, %v5593_v8  ;;  %v7268_v25 = vrot.slane %v26418_v39, 6  ;;  %17852 = vmatprep.subr.bf16.mxu1 %v22891_v33 }
 0x46d   :  { %26882 = vst [vmem:[#allocation68_spill] sm:$0xff] %v22900_v61  ;;  %17820 = vmatprep.mubr.msk.bf16.mxu1 %vm322_vm4, %v22900_v61  ;;  %v7263_v31 = vor.u32 %v7262_v44, %v7261_v60  ;;  %v26419_v17 = vshll.u32 %v22591_v16, 16  ;;  %v22922_v5 = vsel %vm20447_vm7, %v5602_v30, %v5606_v42  ;;  %v26417_v19 = vshll.u32 %v22593_v47, 16 }
 0x46e   :  { %26883 = vst [vmem:[#allocation69_spill] sm:$0xff] %v22914_v12  ;;  %26884 = vst [vmem:[#allocation70_spill] sm:$0xff] %v22922_v5  ;;  %v7267_v4 = vrot.slane %v7265_v52, 5  ;;  %v8072_v40 = vrot.slane %v26420_v18, 5  ;;  %v22928_v50 = vcombine.low %v5593_v8, %v22922_v5  ;;  %v8076_v14 = vshrl.u32 %v22593_v47, 16 }
 0x46f   :  { %v7264_v36 = vrot.slane %v7263_v31, 4  ;;  %v8073_v34 = vrot.slane %v26419_v17, 6  ;;  %v8079_v53 = vrot.slane %v26417_v19, 6  ;;  %v5637_v46 = vshrl.u32 %v22602_v1, 16 }
 0x470   :  { %26885 = vst [vmem:[#allocation71_spill] sm:$0xff] %v22928_v50  ;;  %v7269_v26 = vor.u32 %v7268_v25, %v7267_v4  ;;  %v5640_v3 = vshll.u32 %v22602_v1, 16  ;;  %17581 = vmatmul.mubr.msk.bf16.gmra.mrb[20].mxu0 %vm322_vm4, %v22928_v50  ;;  %v8078_v42 = vrot.slane %v8076_v14, 5  ;;  %v5646_v37 = vshll.u32 %v22646_v2, 16 }
 0x471   :  { %v8074_v6 = vor.u32 %v8073_v34, %v8072_v40  ;;  %v5651_v56 = vshrl.u32 %v22625_v11, 16  ;;  %17584 = vmatprep.mubr.msk.bf16.mxu0 %vm322_vm4, %v22749_v20  ;;  %v5654_v44 = vshll.u32 %v22625_v11, 16  ;;  %v5660_v8 = vshll.u32 %v22666_v28, 16 }
 0x472   :  { %v22943_v60 = vsel %vm20931_vm14, %v7264_v36, %v7269_v26  ;;  %v6254_v30 = vrot.slane %v5637_v46, 5  ;;  %v8080_v31 = vor.u32 %v8079_v53, %v8078_v42  ;;  %v6255_v25 = vrot.slane %v5640_v3, 6 }
 0x473   :  { %26886 = vst [vmem:[#allocation72_spill] sm:$0xff] %v22943_v60  ;;  %v8075_v52 = vrot.slane %v8074_v6, 4  ;;  %v6258_v4 = vshrl.u32 %v22646_v2, 16  ;;  %v6261_v40 = vrot.slane %v5646_v37, 6  ;;  %v6264_v34 = vrot.slane %v5651_v56, 5 }
 0x474   :  { %v6265_v14 = vrot.slane %v5654_v44, 6  ;;  %v6268_v19 = vshrl.u32 %v22666_v28, 16  ;;  %v6256_v20 = vor.u32 %v6255_v25, %v6254_v30  ;;  %v6271_v39 = vrot.slane %v5660_v8, 6 }
 0x475   :  { %v22953_v36 = vsel %vm20931_vm14, %v8075_v52, %v8080_v31  ;;  %v6260_v26 = vrot.slane %v6258_v4, 5  ;;  %v5639_v42 = vrot.slane %v5637_v46, 4  ;;  %v5642_v15 = vrot.slane %v5640_v3, 5 }
 0x476   :  { %26887 = vst [vmem:[#allocation73_spill] sm:$0xff] %v22953_v36  ;;  %v22957_v17 = vcombine.low %v22943_v60, %v22953_v36  ;;  %v6266_v53 = vor.u32 %v6265_v14, %v6264_v34  ;;  %v6270_v6 = vrot.slane %v6268_v19, 5  ;;  %v6257_v18 = vrot.slane %v6256_v20, 4 }
 0x477   :  { %v6262_v54 = vor.u32 %v6261_v40, %v6260_v26  ;;  %v5648_v50 = vrot.slane %v5646_v37, 5  ;;  %v5653_v31 = vrot.slane %v5651_v56, 4  ;;  %v5656_v30 = vrot.slane %v5654_v44, 5 }
 0x478   :  { %26888 = vst [vmem:[#allocation74_spill] sm:$0xff] %v22957_v17  ;;  %17821 = vmatmul.mubr.msk.bf16.gmra.mrb[4].mxu1 %vm322_vm4, %v22957_v17  ;;  %v6267_v21 = vrot.slane %v6266_v53, 4  ;;  %v6272_v52 = vor.u32 %v6271_v39, %v6270_v6  ;;  %v5643_v4 = vor.u32 %v5642_v15, %v5639_v42  ;;  %v5662_v36 = vrot.slane %v5660_v8, 5 }
 0x479   :  { %v22963_v25 = vsel %vm20931_vm14, %v6257_v18, %v6262_v54  ;;  %v5665_v19 = vshrl.u32 %v22612_v58, 16  ;;  %v5657_v3 = vor.u32 %v5656_v30, %v5653_v31  ;;  %v5668_v37 = vshll.u32 %v22612_v58, 16 }
 0x47a   :  { %26889 = vst [vmem:[#allocation75_spill] sm:$0xff] %v22963_v25  ;;  %v22968_v46 = vsel %vm20931_vm14, %v6267_v21, %v6272_v52  ;;  %v5674_v40 = vshll.u32 %v22648_v41, 16  ;;  %v5644_v56 = vrot.slane %v5643_v4, 4  ;;  %v5679_v15 = vshrl.u32 %v22614_v51, 16 }
 0x47b   :  { %26890 = vst [vmem:[#allocation76_spill] sm:$0xff] %v22968_v46  ;;  %v22974_v39 = vcombine.low %v22963_v25, %v22968_v46  ;;  %v5667_v54 = vrot.slane %v5665_v19, 4  ;;  %v5658_v18 = vrot.slane %v5657_v3, 4  ;;  %v5670_v44 = vrot.slane %v5668_v37, 5 }
 0x47c   :  { %v5676_v8 = vrot.slane %v5674_v40, 5  ;;  %v5682_v34 = vshll.u32 %v22614_v51, 16  ;;  %v22982_v21 = vsel %vm20447_vm7, %v5644_v56, %v5648_v50  ;;  %v5681_v14 = vrot.slane %v5679_v15, 4 }
 0x47d   :  { %26891 = vst [vmem:[#allocation77_spill] sm:$0xff] %v22974_v39  ;;  %17824 = vmatprep.mubr.msk.bf16.mxu1 %vm322_vm4, %v22974_v39  ;;  %26892 = vst [vmem:[#allocation78_spill] sm:$0xff] %v22982_v21  ;;  %v5688_v20 = vshll.u32 %v22669_v38, 16  ;;  %v6274_v26 = vrot.slane %v5665_v19, 5  ;;  %v22987_v53 = vsel %vm20447_vm7, %v5658_v18, %v5662_v36  ;;  %v5671_v6 = vor.u32 %v5670_v44, %v5667_v54 }
 0x47e   :  { %v5684_v42 = vrot.slane %v5682_v34, 5  ;;  %v6275_v52 = vrot.slane %v5668_v37, 6  ;;  %v22991_v31 = vcombine.low %v22982_v21, %v22987_v53  ;;  %v6278_v4 = vshrl.u32 %v22648_v41, 16 }
 0x47f   :  { %v5690_v30 = vrot.slane %v5688_v20, 5  ;;  %v6281_v50 = vrot.slane %v5674_v40, 6  ;;  %v5672_v3 = vrot.slane %v5671_v6, 4  ;;  %v6284_v25 = vrot.slane %v5679_v15, 5 }
 0x480   :  { %26893 = vst [vmem:[#allocation79_spill] sm:$0xff] %v22991_v31  ;;  %v5685_v56 = vor.u32 %v5684_v42, %v5681_v14  ;;  %v6276_v17 = vor.u32 %v6275_v52, %v6274_v26  ;;  %17585 = vmatmul.mubr.msk.bf16.gmra.mrb[24].mxu0 %vm322_vm4, %v22991_v31  ;;  %v6280_v36 = vrot.slane %v6278_v4, 5  ;;  %v6285_v19 = vrot.slane %v5682_v34, 6 }
 0x481   :  { %v6288_v54 = vshrl.u32 %v22669_v38, 16  ;;  %v6291_v37 = vrot.slane %v5688_v20, 6  ;;  %v22999_v18 = vsel %vm20447_vm7, %v5672_v3, %v5676_v8  ;;  %v5693_v40 = vshrl.u32 %v22709_v48, 16 }
 0x482   :  { %v5686_v44 = vrot.slane %v5685_v56, 4  ;;  %v6277_v46 = vrot.slane %v6276_v17, 4  ;;  %v6282_v6 = vor.u32 %v6281_v50, %v6280_v36  ;;  %v6286_v14 = vor.u32 %v6285_v19, %v6284_v25 }
 0x483   :  { %v6290_v26 = vrot.slane %v6288_v54, 5  ;;  %v5696_v15 = vshll.u32 %v22709_v48, 16  ;;  %v5702_v34 = vshll.u32 %v22739_v27, 16  ;;  %v5707_v20 = vshrl.u32 %v22737_v57, 16 }
 0x484   :  { %v23005_v42 = vsel %vm20447_vm7, %v5686_v44, %v5690_v30  ;;  %v5710_v8 = vshll.u32 %v22737_v57, 16  ;;  %v23016_v25 = vsel %vm20931_vm14, %v6277_v46, %v6282_v6  ;;  %v6287_v52 = vrot.slane %v6286_v14, 4 }
 0x485   :  { %v23012_v17 = vcombine.low %v22999_v18, %v23005_v42  ;;  %26895 = vst [vmem:[#allocation81_spill] sm:$0xff] %v23016_v25  ;;  %v6292_v4 = vor.u32 %v6291_v37, %v6290_v26  ;;  %v5716_v50 = vshll.u32 %v22761_v0, 16  ;;  %v6294_v30 = vrot.slane %v5693_v40, 5 }
 0x486   :  { %v6295_v3 = vrot.slane %v5696_v15, 6  ;;  %v6298_v56 = vshrl.u32 %v22739_v27, 16  ;;  %v6301_v19 = vrot.slane %v5702_v34, 6  ;;  %v6304_v54 = vrot.slane %v5707_v20, 5 }
 0x487   :  { %26894 = vst [vmem:[#allocation80_spill] sm:$0xff] %v23012_v17  ;;  %17588 = vmatprep.mubr.msk.bf16.mxu0 %vm322_vm4, %v23012_v17  ;;  %v23024_v36 = vsel %vm20931_vm14, %v6287_v52, %v6292_v4  ;;  %v6305_v44 = vrot.slane %v5710_v8, 6  ;;  %v6308_v14 = vshrl.u32 %v22761_v0, 16  ;;  %v6311_v31 = vrot.slane %v5716_v50, 6 }
 0x488   :  { %v23028_v46 = vcombine.low %v23016_v25, %v23024_v36  ;;  %v6296_v37 = vor.u32 %v6295_v3, %v6294_v30  ;;  %v6300_v6 = vrot.slane %v6298_v56, 5  ;;  %v5695_v21 = vrot.slane %v5693_v40, 4 }
 0x489   :  { %v6306_v26 = vor.u32 %v6305_v44, %v6304_v54  ;;  %v5698_v35 = vrot.slane %v5696_v15, 5  ;;  %v6310_v17 = vrot.slane %v6308_v14, 5  ;;  %v5704_v60 = vrot.slane %v5702_v34, 5 }
 0x48a   :  { %26896 = vst [vmem:[#allocation82_spill] sm:$0xff] %v23028_v46  ;;  %17825 = vmatmul.mubr.msk.bf16.gmra.mrb[8].mxu1 %vm322_vm4, %v23028_v46  ;;  %v6297_v52 = vrot.slane %v6296_v37, 4  ;;  %v6302_v4 = vor.u32 %v6301_v19, %v6300_v6  ;;  %v5709_v39 = vrot.slane %v5707_v20, 4  ;;  %v5712_v25 = vrot.slane %v5710_v8, 5  ;;  %v26897_v37 = vld [vmem:[#allocation21_spill] sm:$0xff]  ;;  %v26898_v20 = vld [vmem:[#allocation30_spill] sm:$0xff] }
 0x48b   :  { %v6307_v12 = vrot.slane %v6306_v26, 4  ;;  %v5699_v5 = vor.u32 %v5698_v35, %v5695_v21  ;;  %v6312_v3 = vor.u32 %v6311_v31, %v6310_v17  ;;  %v5718_v56 = vrot.slane %v5716_v50, 5  ;;  %v26900_v6 = vld [vmem:[#allocation38_spill] sm:$0xff] }
 0x48c   :  { %v23035_v30 = vsel %vm20931_vm14, %v6297_v52, %v6302_v4  ;;  %v26443_v40 = vshrl.u32 %v22697_v10, 16  ;;  %v5713_v54 = vor.u32 %v5712_v25, %v5709_v39  ;;  %v26442_v44 = vshll.u32 %v22697_v10, 16 }
 0x48d   :  { %v5700_v15 = vrot.slane %v5699_v5, 4  ;;  %v26440_v19 = vshll.u32 %v26897_v37, 16  ;;  %v23042_v34 = vsel %vm20931_vm14, %v6307_v12, %v6312_v3  ;;  %v7275_v21 = vshrl.u32 %v26897_v37, 16 }
 0x48e   :  { %v7271_v35 = vrot.slane %v26443_v40, 5  ;;  %v26441_v31 = vshrl.u32 %v26898_v20, 16  ;;  %v23050_v8 = vcombine.low %v23035_v30, %v23042_v34  ;;  %v5714_v39 = vrot.slane %v5713_v54, 4 }
 0x48f   :  { %v23054_v5 = vsel %vm20447_vm7, %v5700_v15, %v5704_v60  ;;  %v7272_v12 = vrot.slane %v26442_v44, 6  ;;  %v7277_v17 = vrot.slane %v7275_v21, 5  ;;  %v7278_v25 = vrot.slane %v26440_v19, 6  ;;  %v26903_v44 = vld [vmem:[#allocation29_spill] sm:$0xff] }
 0x490   :  { %26899 = vst [vmem:[#allocation21_spill] sm:$0xff] %v23050_v8  ;;  %v26444_v50 = vshll.u32 %v26898_v20, 16  ;;  %v26449_v14 = vshll.u32 %v26900_v6, 16  ;;  %17828 = vmatprep.mubr.msk.bf16.mxu1 %vm322_vm4, %v23050_v8  ;;  %v23066_v26 = vsel %vm20447_vm7, %v5714_v39, %v5718_v56  ;;  %v8082_v52 = vrot.slane %v26441_v31, 5  ;;  %v26902_v31 = vld [vmem:[#allocation33_spill] sm:$0xff]  ;;  %v26905_v8 = vld [vmem:[#allocation10_spill] sm:$0xff] }
 0x491   :  { %v7273_v60 = vor.u32 %v7272_v12, %v7271_v35  ;;  %v8086_v4 = vshrl.u32 %v26900_v6, 16  ;;  %v23073_v3 = vcombine.low %v23054_v5, %v23066_v26  ;;  %v7279_v35 = vor.u32 %v7278_v25, %v7277_v17 }
 0x492   :  { %v8083_v15 = vrot.slane %v26444_v50, 6  ;;  %v8089_v54 = vrot.slane %v26449_v14, 6  ;;  %v6505_v12 = vrot.slane %v22500_v23, 6  ;;  %v26904_v40 = vcombine.low %v26902_v31, %v26903_v44 }
 0x493   :  { %26901 = vst [vmem:[#allocation30_spill] sm:$0xff] %v23073_v3  ;;  %v8088_v21 = vrot.slane %v8086_v4, 5  ;;  %17589 = vmatmul.mubr.msk.bf16.gmra.mrb[28].mxu0 %vm322_vm4, %v23073_v3  ;;  %v7274_v56 = vrot.slane %v7273_v60, 4  ;;  %v6501_v50 = vrot.slane %v22491_v32, 6  ;;  %v15366_v46 = vrot.slane %v26905_v8, 10  ;;  %v26906_v4 = vld [vmem:[#allocation6_spill] sm:$0xff] }
 0x494   :  { %v8084_v39 = vor.u32 %v8083_v15, %v8082_v52  ;;  %17596 = vmatprep.mubr.msk.bf16.mxu0 %vm322_vm4, %v26904_v40  ;;  %v15365_v61 = vrot.slane %v26906_v4, 10  ;;  %v6513_v3 = vrot.slane %v22510_v43, 6  ;;  %v15368_v23 = vrot.slane %v22475_v59, 10  ;;  %v23105_v8 = vld [vmem:[#allocation2 + $0x6c] sm:$0x3]  ;;  %v26916_v4 = vld [vmem:[#allocation49_spill] sm:$0xff] }
 0x495   :  { %v8090_v19 = vor.u32 %v8089_v54, %v8088_v21  ;;  %v23092_v17 = vsel %vm21155_vm1, %v15366_v46, %v6505_v12  ;;  %v15369_v25 = vrot.slane %v22530_v29, 10  ;;  %v6517_v31 = vrot.slane %v22540_v62, 6  ;;  %v23126_v52 = vld [vmem:[#allocation2 + $0x60] sm:$0xf]  ;;  %v23129_v54 = vld [vmem:[#allocation2 + $0x64] sm:$0x3] }
 0x496   :  { %v8085_v14 = vrot.slane %v8084_v39, 4  ;;  %26908 = vst [vmem:[#allocation38_spill] sm:$0xff] %v23092_v17  ;;  %v23099_v32 = vsel %vm20931_vm14, %v7274_v56, %v7279_v35  ;;  %v6248_v43 = vshrl.u32 %v23105_v8, 16  ;;  %v23114_v29 = vsel %vm21155_vm1, %v15365_v61, %v6501_v50  ;;  %26914 = vst [vmem:[#allocation85_spill] sm:$0xff] %v23126_v52  ;;  %v26915_v56 = vld [vmem:[#allocation42_spill] sm:$0xff] }
 0x497   :  { %26911 = vst [vmem:[#allocation6_spill] sm:$0xff] %v23114_v29  ;;  %v6514_v62 = vsel %vm21155_vm1, %v15368_v23, %v6513_v3  ;;  %v6518_v59 = vsel %vm21155_vm1, %v15369_v25, %v6517_v31  ;;  %v15313_v15 = vrot.slane %v23126_v52, 9  ;;  %v5947_v61 = vrot.slane %v23129_v54, 5  ;;  %v19940_v50 = vld [vmem:[%s26192_s5 + $0x2c] ss:$0 sps:$4 sm:$0x33]  }
 0x498   :  { %v23103_v40 = vsel %vm20931_vm14, %v8085_v14, %v8090_v19  ;;  %v23122_v19 = vcombine.low %v23114_v29, %v23092_v17  ;;  %v23124_v14 = vcombine.low %v6514_v62, %v6518_v59  ;;  %v6521_v3 = vrot.slane %v22577_v63, 6  ;;  %v23143_v35 = vld [vmem:[#allocation2 + $0x68] sm:$0xf]  ;;  %v26927_v29 = vld [vmem:[#allocation37_spill] sm:$0xff] }
 0x499   :  { %26909 = vst [vmem:[#allocation33_spill] sm:$0xff] %v23103_v40  ;;  %v23110_v46 = vcombine.low %v23099_v32, %v23103_v40  ;;  %v6509_v21 = vrot.slane %v22493_v22, 6  ;;  %v15314_v39 = vrot.slane %v23143_v35, 9  ;;  %v5951_v12 = vrot.slane %v23105_v8, 5  ;;  %v26917_v22 = vld [vmem:[#allocation27_spill] sm:$0xff] }
 0x49a   :  { %26912 = vst [vmem:[#allocation83_spill] sm:$0xff] %v23122_v19  ;;  %26913 = vst [vmem:[#allocation84_spill] sm:$0xff] %v23124_v14  ;;  %v15370_v23 = vrot.slane %v22558_v49, 10  ;;  %v26918_v63 = vshrl.u32 %v26917_v22, 16  ;;  %v26919_v31 = vshll.u32 %v26917_v22, 16  ;;  %v5948_v44 = vsel %vm20735_vm11, %v15313_v15, %v5947_v61 }
 0x49b   :  { %26910 = vst [vmem:[#allocation10_spill] sm:$0xff] %v23110_v46  ;;  %17829 = vmatmul.mubr.msk.bf16.gmra.mrb[12].mxu1 %vm322_vm4, %v23110_v46  ;;  %17597 = vmatmul.mubr.msk.bf16.vlgmr.msra.gmra.mrb[16].mxu0 %vm322_vm4, %v26915_v56  ;;  %v23155_v56 = vld [vmem:[#allocation2 + $0x20] sm:$0xf] }
 0x49c   :  { %17836 = vmatprep.mubr.msk.bf16.mxu1 %vm322_vm4, %v23122_v19  ;;  %17600 = vmatprep.mubr.msk.bf16.mxu0 %vm322_vm4, %v26916_v4  ;;  %v6164_v25 = vrot.slane %v26918_v63, 5  ;;  %v6165_v46 = vrot.slane %v26919_v31, 6  ;;  %v15367_v14 = vrot.slane %v23155_v56, 10  ;;  %v6250_v4 = vrot.slane %v6248_v43, 5  ;;  %v26921_v19 = vld [vmem:[#allocation46_spill] sm:$0xff] }
 0x49d   :  { %17613 = vmatpush3.bf16.msra.mxu0 %v22851_v7  ;;  %v26922_v49 = vshll.u32 %v26921_v19, 16  ;;  %v23166_v7 = vld [vmem:[%s26192_s5 + $0x30] sm:$0xff]   ;;  %v23170_v22 = vsel %vm21155_vm1, %v15370_v23, %v6521_v3  ;;  %v23172_v63 = vld [vmem:[#allocation2 + $0xc] sm:$0x3]  ;;  %v23181_v43 = vsel %vm20735_vm11, %v15314_v39, %v5951_v12  ;;  %v6376_v19 = vsel %vm347_vm0, %v19940_v50, 0 }
 0x49e   :  { %19797 = vmatprep.subr.msk.bf16.mxu0 %vm347_vm0, %v19940_v50  ;;  %26923 = vst [vmem:[#allocation42_spill] sm:$0xff] %v23170_v22  ;;  %v6168_v31 = vshrl.u32 %v23172_v63, 16  ;;  %v23177_v15 = vsel %vm21155_vm1, %v15367_v14, %v6509_v21  ;;  %26925 = vst [vmem:[#allocation46_spill] sm:$0xff] %v23181_v43  ;;  %v15328_v3 = vcombine.low %v5948_v44, %v23181_v43  ;;  %v19938_v23 = vld [vmem:[%s26192_s5 + $0xbc] ss:$0 sps:$4 sm:$0x33]  }
 0x49f   :  { %v6251_v52 = vrot.slane %v26922_v49, 6  ;;  %26924 = vst [vmem:[#allocation27_spill] sm:$0xff] %v23177_v15  ;;  %v23185_v61 = vcombine.low %v23177_v15, %v6514_v62  ;;  %v6166_v49 = vor.u32 %v6165_v46, %v6164_v25  ;;  %v26928_v14 = vld [vmem:[#allocation36_spill] sm:$0xff]  ;;  %v23195_v39 = vcombine.low %v6518_v59, %v23170_v22 }
 0x4a0   :  { %v26929_v21 = vor.u32 %v26927_v29, %v26928_v14  ;;  %v8233_v50 = vrot.slane %v22593_v47, 6  ;;  %v6537_v62 = vrot.slane %v22666_v28, 6  ;;  %v26931_v44 = vld [vmem:[#allocation24_spill] sm:$0xff]  ;;  %v23206_v14 = vld [vmem:[#allocation2 + $0x4] sm:$0x3]  ;;  %v7446_v28 = vrot.slane %v22579_v45, 6 }
 0x4a1   :  { %26926 = vst [vmem:[#allocation86_spill] sm:$0xff] %v23185_v61  ;;  %17615 = vmatpush3.bf16.msra.mxu0 %v6376_v19  ;;  %26930 = vst [vmem:[#allocation37_spill] sm:$0xff] %v23195_v39  ;;  %v6252_v12 = vor.u32 %v6251_v52, %v6250_v4  ;;  %v26932_v19 = vshrl.u32 %v26931_v44, 16  ;;  %v26933_v25 = vshll.u32 %v26931_v44, 16  ;;  %v6158_v59 = vshrl.u32 %v23206_v14, 16  ;;  %v26935_v44 = vld [vmem:[#allocation11_spill] sm:$0xff] }
 0x4a2   :  { %v6247_v17 = vrot.slane %v26929_v21, 4  ;;  %17632 = vmatprep.subr.bf16.mxu0 %v23166_v7  ;;  %26934 = vst [vmem:[#allocation36_spill] sm:$0xff] %v23206_v14  ;;  %v6170_v21 = vrot.slane %v6168_v31, 5  ;;  %v15571_v52 = vrot.slane %v22591_v16, 10  ;;  %v6533_v4 = vrot.slane %v22646_v2, 6  ;;  %v26936_v43 = vld [vmem:[#allocation32_spill] sm:$0xff] }
 0x4a3   :  { %17837 = vmatmul.mubr.msk.bf16.vlgmr.msra.gmra.mrb[0].mxu1 %vm322_vm4, %v23185_v61  ;;  %v6154_v46 = vrot.slane %v26932_v19, 5  ;;  %v6155_v29 = vrot.slane %v26933_v25, 6  ;;  %v15374_v19 = vrot.slane %v22625_v11, 10  ;;  %17601 = vmatmul.mubr.msk.bf16.gmra.mrb[20].mxu0 %vm322_vm4, %v26935_v44  ;;  %v15486_v25 = vrot.slane %v22560_v55, 10  ;;  %v23227_v2 = vld [vmem:[%s26192_s5 + $0xc0] sm:$0xff]   ;;  %v26938_v61 = vld [vmem:[#allocation28_spill] sm:$0xff] }
 0x4a4   :  { %17853 = vmatpush3.bf16.msra.mxu1 %v22891_v33  ;;  %17840 = vmatprep.mubr.msk.bf16.mxu1 %vm322_vm4, %v23195_v39  ;;  %v15373_v31 = vrot.slane %v22602_v1, 10  ;;  %v8404_v33 = vsel %vm347_vm0, %v19938_v23, 0  ;;  %v26937_v40 = vshll.u32 %v26936_v43, 16  ;;  %v23231_v11 = vsel %vm21155_vm1, %v15571_v52, %v8233_v50 }
 0x4a5   :  { %19809 = vmatprep.subr.msk.bf16.mxu1 %vm347_vm0, %v19938_v23  ;;  %17604 = vmatprep.mubr.msk.bf16.mxu0 %vm322_vm4, %v15328_v3  ;;  %v23236_v1 = vsel %vm21155_vm1, %v15374_v19, %v6537_v62  ;;  %v6545_v23 = vrot.slane %v22669_v38, 6  ;;  %v6156_v43 = vor.u32 %v6155_v29, %v6154_v46  ;;  %v6160_v44 = vrot.slane %v6158_v59, 5 }
 0x4a6   :  { %v6171_v39 = vrot.slane %v26937_v40, 6  ;;  %v23241_v40 = vsel %vm20931_vm14, %v6247_v17, %v6252_v12  ;;  %v26939_v14 = vshll.u32 %v26938_v61, 16  ;;  %v6167_v15 = vrot.slane %v6166_v49, 4 }
 0x4a7   :  { %v23247_v50 = vsel %vm21155_vm1, %v15486_v25, %v7446_v28  ;;  %v23251_v3 = vsel %vm21155_vm1, %v15373_v31, %v6533_v4  ;;  %v6541_v38 = vrot.slane %v22648_v41, 6  ;;  %v15376_v62 = vrot.slane %v22614_v51, 10  ;;  %v26945_v31 = vld [vmem:[#allocation12_spill] sm:$0xff] }
 0x4a8   :  { %v6161_v22 = vrot.slane %v26939_v14, 6  ;;  %17855 = vmatpush3.bf16.msra.mxu1 %v8404_v33  ;;  %v23257_v17 = vcombine.low %v23247_v50, %v23231_v11  ;;  %v23261_v61 = vcombine.low %v23251_v3, %v23236_v1  ;;  %v15375_v49 = vrot.slane %v22612_v58, 10  ;;  %v26947_v33 = vld [vmem:[#allocation34_spill] sm:$0xff] }
 0x4a9   :  { %v6172_v12 = vor.u32 %v6171_v39, %v6170_v21  ;;  %17872 = vmatprep.subr.bf16.mxu1 %v23227_v2  ;;  %v23267_v46 = vsel %vm21155_vm1, %v15376_v62, %v6545_v23  ;;  %v6553_v51 = vrot.slane %v22761_v0, 6  ;;  %v26941_v41 = vshrl.u32 %v22560_v55, 16 }
 0x4aa   :  { %26940 = vst [vmem:[#allocation24_spill] sm:$0xff] %v23257_v17  ;;  %v26942_v14 = vshll.u32 %v22560_v55, 16  ;;  %v6549_v58 = vrot.slane %v22739_v27, 6  ;;  %v6157_v39 = vrot.slane %v6156_v43, 4  ;;  %v6162_v21 = vor.u32 %v6161_v22, %v6160_v44 }
 0x4ab   :  { %v6900_v29 = vrot.slane %v26941_v41, 4  ;;  %17841 = vmatmul.mubr.msk.bf16.gmra.mrb[4].mxu1 %vm322_vm4, %v23257_v17  ;;  %v26943_v28 = vshrl.u32 %v22591_v16, 16  ;;  %v23283_v0 = vsel %vm21155_vm1, %v15375_v49, %v6541_v38  ;;  %v15378_v55 = vrot.slane %v22737_v57, 10  ;;  %17605 = vmatmul.mubr.msk.bf16.gmra.mrb[24].mxu0 %vm322_vm4, %v26945_v31 }
 0x4ac   :  { %v6903_v59 = vrot.slane %v26942_v14, 5  ;;  %17844 = vmatprep.mubr.msk.bf16.mxu1 %vm322_vm4, %v23261_v61  ;;  %v26944_v19 = vshll.u32 %v22591_v16, 16  ;;  %v23292_v27 = vcombine.low %v23283_v0, %v23267_v46  ;;  %v15377_v22 = vrot.slane %v22709_v48, 10  ;;  %17608 = vmatprep.mubr.msk.bf16.mxu0 %vm322_vm4, %v26947_v33 }
 0x4ad   :  { %v7759_v52 = vrot.slane %v26943_v28, 4  ;;  %v23297_v44 = vsel %vm20931_vm14, %v6167_v15, %v6172_v12  ;;  %v23303_v57 = vsel %vm21155_vm1, %v15378_v55, %v6553_v51  ;;  %v26948_v23 = vshll.u32 %v22579_v45, 16 }
 0x4ae   :  { %v6904_v4 = vor.u32 %v6903_v59, %v6900_v29  ;;  %v7762_v25 = vrot.slane %v26944_v19, 5  ;;  %26946 = vst [vmem:[#allocation32_spill] sm:$0xff] %v23292_v27  ;;  %v23309_v62 = vsel %vm21155_vm1, %v15377_v22, %v6549_v58  ;;  %v8237_v48 = vrot.slane %v26900_v6, 6  ;;  %v26951_v59 = vld [vmem:[#allocation31_spill] sm:$0xff] }
 0x4af   :  { %v6909_v43 = vrot.slane %v26948_v23, 5  ;;  %v6163_v15 = vsel %vm20931_vm14, %v6157_v39, %v6162_v21  ;;  %v23316_v49 = vcombine.low %v22987_v53, %v22999_v18  ;;  %v26949_v51 = vshll.u32 %v22593_v47, 16 }
 0x4b0   :  { %v6905_v16 = vrot.slane %v6904_v4, 4  ;;  %v7763_v38 = vor.u32 %v7762_v25, %v7759_v52  ;;  %v23326_v29 = vcombine.low %v23005_v42, %v23054_v5  ;;  %v23330_v14 = vcombine.low %v23309_v62, %v23303_v57 }
 0x4b1   :  { %v7768_v41 = vrot.slane %v26949_v51, 5  ;;  %v26952_v58 = vshrl.u32 %v26951_v59, 16  ;;  %v26953_v18 = vshll.u32 %v26951_v59, 16  ;;  %v6238_v21 = vshrl.u32 %v23129_v54, 16  ;;  %v26959_v51 = vld [vmem:[#allocation40_spill] sm:$0xff] }
 0x4b2   :  { %v23320_v12 = vsel %vm20447_vm7, %v6905_v16, %v6909_v43  ;;  %v7764_v45 = vrot.slane %v7763_v38, 4  ;;  %26950 = vst [vmem:[#allocation28_spill] sm:$0xff] %v23330_v14  ;;  %v15345_v28 = vcombine.low %v6163_v15, %v23297_v44  ;;  %v26954_v42 = vshrl.u32 %v22697_v10, 16  ;;  %v26958_v43 = vld [vmem:[#allocation55_spill] sm:$0xff] }
 0x4b3   :  { %v6234_v53 = vrot.slane %v26952_v58, 5  ;;  %v6235_v39 = vrot.slane %v26953_v18, 6  ;;  %v26955_v52 = vshll.u32 %v22697_v10, 16  ;;  %17845 = vmatmul.mubr.msk.bf16.gmra.mrb[8].mxu1 %vm322_vm4, %v23292_v27  ;;  %v15572_v4 = vrot.slane %v26898_v20, 10  ;;  %17609 = vmatmul.mubr.msk.bf16.gmra.mrb[28].mxu0 %vm322_vm4, %v26958_v43  ;;  %v23366_v58 = vld [vmem:[#allocation2 + $0x50] sm:$0xf] }
 0x4b4   :  { %v23340_v47 = vsel %vm20447_vm7, %v7764_v45, %v7768_v41  ;;  %v6914_v5 = vrot.slane %v26954_v42, 4  ;;  %17848 = vmatprep.mubr.msk.bf16.mxu1 %vm322_vm4, %v23330_v14  ;;  %v7450_v19 = vrot.slane %v26897_v37, 6  ;;  %v26956_v31 = vshrl.u32 %v26898_v20, 16  ;;  %17616 = vmatprep.mubr.msk.bf16.mxu0 %vm322_vm4, %v15345_v28  ;;  %v26983_v43 = vld [vmem:[#allocation37_spill] sm:$0xff] }
 0x4b5   :  { %v6917_v55 = vrot.slane %v26955_v52, 5  ;;  %v26957_v16 = vshll.u32 %v26898_v20, 16  ;;  %v15487_v38 = vrot.slane %v22697_v10, 10  ;;  %v23361_v15 = vsel %vm21155_vm1, %v15572_v4, %v8237_v48 }
 0x4b6   :  { %v7773_v22 = vrot.slane %v26956_v31, 4  ;;  %v6236_v45 = vor.u32 %v6235_v39, %v6234_v53  ;;  %v26960_v41 = vshll.u32 %v26959_v51, 16  ;;  %v6240_v18 = vrot.slane %v6238_v21, 5  ;;  %v23381_v21 = vld [vmem:[#allocation2 + $0xb0] sm:$0xf] }
 0x4b7   :  { %v6918_v25 = vor.u32 %v6917_v55, %v6914_v5  ;;  %v7776_v23 = vrot.slane %v26957_v16, 5  ;;  %v26961_v42 = vshll.u32 %v26897_v37, 16  ;;  %v7451_v10 = vsel %vm21155_vm1, %v15487_v38, %v7450_v19 }
 0x4b8   :  { %v6241_v59 = vrot.slane %v26960_v41, 6  ;;  %v26962_v39 = vshll.u32 %v26900_v6, 16  ;;  %v23379_v28 = vcombine.low %v7451_v10, %v23361_v15  ;;  %v26474_v37 = vshrl.u32 %v23366_v58, 16 }
 0x4b9   :  { %v6919_v20 = vrot.slane %v6918_v25, 4  ;;  %v6923_v5 = vrot.slane %v26961_v42, 5  ;;  %v7777_v52 = vor.u32 %v7776_v23, %v7773_v22  ;;  %v26473_v4 = vshll.u32 %v23366_v58, 16  ;;  %v20086_v25 = vld [vmem:[#allocation2 + $0x18] sm:$0xf] }
 0x4ba   :  { %v7782_v55 = vrot.slane %v26962_v39, 5  ;;  %26963 = vst [vmem:[#allocation12_spill] sm:$0xff] %v23379_v28  ;;  %v23390_v31 = vcombine.low %v20086_v25, %v23155_v56  ;;  %v6237_v22 = vrot.slane %v6236_v45, 4  ;;  %v6242_v6 = vor.u32 %v6241_v59, %v6240_v18  ;;  %v19949_v23 = vld [vmem:[%s26192_s5 + $0x38] ss:$0 sps:$4 sm:$0x33]  }
 0x4bb   :  { %v23374_v48 = vsel %vm20447_vm7, %v6919_v20, %v6923_v5  ;;  %v7778_v53 = vrot.slane %v7777_v52, 4  ;;  %17849 = vmatmul.mubr.msk.bf16.gmra.mrb[12].mxu1 %vm322_vm4, %v23379_v28  ;;  %v26964_v56 = vld [vmem:[#allocation61_spill] sm:$0xff]  ;;  %v26471_v38 = vshll.u32 %v23381_v21, 16  ;;  %v23409_v45 = vrot.slane %v26474_v37, 5  ;;  %v23433_v5 = vld [vmem:[#allocation2 + $0x8] sm:$0xf] }
 0x4bc   :  { %v23387_v19 = vcombine.low %v23066_v26, %v23374_v48  ;;  %17856 = vmatprep.mubr.msk.bf16.mxu1 %vm322_vm4, %v23390_v31  ;;  %v26472_v26 = vshrl.u32 %v23381_v21, 16  ;;  %17617 = vmatmul.mubr.msk.bf16.vlgmr.msra.gmra.mrb[16].mxu0 %vm322_vm4, %v26964_v56  ;;  %v23413_v51 = vrot.slane %v26473_v4, 6  ;;  %v6243_v41 = vsel %vm20931_vm14, %v6237_v22, %v6242_v6  ;;  %v23425_v18 = vld [vmem:[%s26192_s5 + $0x3c] sm:$0xff]   ;;  %v20089_v25 = vld [vmem:[#allocation2 + $0x30] sm:$0xf] }
 0x4bd   :  { %v23394_v16 = vsel %vm20447_vm7, %v7778_v53, %v7782_v55  ;;  %17620 = vmatprep.mubr.msk.bf16.mxu0 %vm322_vm4, %v22877_v24  ;;  %17633 = vmatpush3.bf16.msra.mxu0 %v23166_v7  ;;  %v6617_v59 = vsel %vm347_vm0, %v19949_v23, 0  ;;  %v23431_v42 = vcombine.low %v23024_v36, %v23035_v30  ;;  %v15364_v7 = vrot.slane %v23433_v5, 10  ;;  %v20088_v55 = vld [vmem:[#allocation2 + $0x28] sm:$0xf]  ;;  %v20090_v36 = vld [vmem:[#allocation2 + $0x38] sm:$0xf] }
 0x4be   :  { %19798 = vmatprep.subr.msk.bf16.mxu0 %vm347_vm0, %v19949_v23  ;;  %v6497_v52 = vrot.slane %v23172_v63, 6  ;;  %v23439_v53 = vcombine.low %v23042_v34, %v23099_v32  ;;  %v23443_v39 = vrot.slane %v26472_v26, 5  ;;  %v23445_v22 = vcombine.low %v20088_v55, %v20089_v25  ;;  %v23447_v30 = vld [vmem:[#allocation2 + $0x40] sm:$0xf]  ;;  %v26965_v55 = vld [vmem:[#allocation27_spill] sm:$0xff]  ;;  %v26971_v26 = vld [vmem:[#allocation77_spill] sm:$0xff] }
 0x4bf   :  { %v23450_v6 = vcombine.low %v20090_v36, %v23447_v30  ;;  %v15349_v63 = vcombine.low %v6243_v41, %v23241_v40  ;;  %v19945_v34 = vld [vmem:[%s26192_s5 + $0xc8] ss:$0 sps:$4 sm:$0x33]   ;;  %v23458_v32 = vrot.slane %v26471_v38, 6  ;;  %v15372_v23 = vrot.slane %v23143_v35, 10  ;;  %v26966_v25 = vld [vmem:[#allocation38_spill] sm:$0xff] }
 0x4c0   :  { %v6529_v56 = vrot.slane %v23105_v8, 6  ;;  %v23464_v20 = vcombine.low %v26966_v25, %v26965_v55  ;;  %v26967_v36 = vld [vmem:[#allocation42_spill] sm:$0xff]  ;;  %v23480_v8 = vcombine.low %v23236_v1, %v23283_v0  ;;  %v26968_v55 = vld [vmem:[#allocation68_spill] sm:$0xff]  ;;  %v8571_v25 = vsel %vm347_vm0, %v19945_v34, 0 }
 0x4c1   :  { %17635 = vmatpush3.bf16.msra.mxu0 %v6617_v59  ;;  %v23468_v41 = vcombine.low %v26967_v36, %v23247_v50  ;;  %v23484_v50 = vcombine.low %v23267_v46, %v23309_v62  ;;  %v19951_v1 = vld [vmem:[%s26192_s5 + $0xcc] sm:$0xff]   ;;  %v23498_v0 = vcombine.low %v23303_v57, %v7451_v10  ;;  %v26969_v62 = vld [vmem:[#allocation6_spill] sm:$0xff]  ;;  %v26977_v17 = vshll.u32 %v23366_v58, 16 }
 0x4c2   :  { %17652 = vmatprep.subr.bf16.mxu0 %v23425_v18  ;;  %v23503_v46 = vsel %vm21155_vm1, %v15372_v23, %v6529_v56  ;;  %v20093_v23 = vld [vmem:[#allocation2 + $0x80] sm:$0xf]  ;;  %v20094_v56 = vld [vmem:[#allocation2 + $0x78] sm:$0xf]  ;;  %v26970_v59 = vld [vmem:[#allocation36_spill] sm:$0xff] }
 0x4c3   :  { %17857 = vmatmul.mubr.msk.bf16.vlgmr.msra.gmra.mrb[0].mxu1 %vm322_vm4, %v23445_v22  ;;  %v23521_v36 = vcombine.low %v20094_v56, %v20093_v23  ;;  %v6493_v38 = vrot.slane %v26970_v59, 6  ;;  %v26972_v10 = vld [vmem:[#allocation82_spill] sm:$0xff]  ;;  %v20096_v23 = vld [vmem:[#allocation2 + $0x88] sm:$0xf]  ;;  %v20097_v56 = vld [vmem:[#allocation2 + $0x90] sm:$0xf] }
 0x4c4   :  { %17873 = vmatpush3.bf16.msra.mxu1 %v23227_v2  ;;  %17860 = vmatprep.mubr.msk.bf16.mxu1 %vm322_vm4, %v23450_v6  ;;  %v23492_v2 = vsel %vm21155_vm1, %v15364_v7, %v6497_v52  ;;  %v23509_v7 = vcombine.low %v23320_v12, %v23340_v47  ;;  %v23511_v52 = vld [vmem:[#allocation2 + $0x48] sm:$0xf]  ;;  %v23533_v4 = vcombine.low %v20096_v23, %v20097_v56  ;;  %v26974_v23 = vld [vmem:[#allocation62_spill] sm:$0xff] }
 0x4c5   :  { %17621 = vmatmul.mubr.msk.bf16.gmra.mrb[20].mxu0 %vm322_vm4, %v26968_v55  ;;  %19810 = vmatprep.subr.msk.bf16.mxu1 %vm347_vm0, %v19945_v34  ;;  %v15591_v57 = vcombine.low %v23511_v52, %v23366_v58  ;;  %v26975_v56 = vld [vmem:[#allocation58_spill] sm:$0xff] }
 0x4c6   :  { %17624 = vmatprep.mubr.msk.bf16.mxu0 %vm322_vm4, %v15349_v63  ;;  %v23519_v63 = vcombine.low %v23374_v48, %v23394_v16  ;;  %v19954_v24 = vld [vmem:[%s26192_s5 + $0x44] ss:$0 sps:$4 sm:$0x33]  }
 0x4c8   :  { %17875 = vmatpush3.bf16.msra.mxu1 %v8571_v25  ;;  %v20095_v25 = vld [vmem:[#allocation2] sm:$0xf] }
 0x4c9   :  { %17892 = vmatprep.subr.bf16.mxu1 %v19951_v1  ;;  %v15363_v34 = vrot.slane %v20095_v25, 10  ;;  %v20099_v25 = vld [vmem:[#allocation2 + $0x98] sm:$0xf] }
 0x4cb   :  { %17861 = vmatmul.mubr.msk.bf16.gmra.mrb[4].mxu1 %vm322_vm4, %v15591_v57  ;;  %v6494_v48 = vsel %vm21155_vm1, %v15363_v34, %v6493_v38  ;;  %v23535_v57 = vld [vmem:[#allocation2 + $0xa0] sm:$0xf]  ;;  %v23548_v38 = vld [vmem:[#allocation2 + $0xa8] sm:$0xf] }
 0x4cc   :  { %17864 = vmatprep.mubr.msk.bf16.mxu1 %vm322_vm4, %v23521_v36  ;;  %v23538_v59 = vcombine.low %v20099_v25, %v23535_v57  ;;  %v15382_v37 = vcombine.low %v6494_v48, %v23492_v2  ;;  %v15592_v34 = vcombine.low %v23548_v38, %v23381_v21  ;;  %v23554_v25 = vcombine.low %v26975_v56, %v26974_v23  ;;  %v26979_v23 = vld [vmem:[#allocation83_spill] sm:$0xff]  ;;  %v23570_v56 = vld [vmem:[#allocation2 + $0x54] sm:$0x3] }
 0x4cd   :  { %17625 = vmatmul.mubr.msk.bf16.gmra.mrb[24].mxu0 %vm322_vm4, %v26971_v26  ;;  %v26973_v26 = vld [vmem:[#allocation21_spill] sm:$0xff]  ;;  %v26976_v48 = vshrl.u32 %v23366_v58, 16 }
 0x4ce   :  { %17628 = vmatprep.mubr.msk.bf16.mxu0 %vm322_vm4, %v26972_v10  ;;  %v8525_v10 = vrot.slane %v26977_v17, 5 }
 0x4cf   :  { %v8522_v28 = vrot.slane %v26976_v48, 4  ;;  %v26980_v48 = vld [vmem:[#allocation86_spill] sm:$0xff] }
 0x4d1   :  { %v8526_v17 = vor.u32 %v8525_v10, %v8522_v28  ;;  %v26981_v28 = vld [vmem:[#allocation70_spill] sm:$0xff] }
 0x4d3   :  { %17865 = vmatmul.mubr.msk.bf16.gmra.mrb[8].mxu1 %vm322_vm4, %v23533_v4  ;;  %v8527_v10 = vrot.slane %v8526_v17, 4  ;;  %v19955_v17 = vld [vmem:[%s26192_s5 + $0xd8] sm:$0xff]  }
 0x4d4   :  { %17868 = vmatprep.mubr.msk.bf16.mxu1 %vm322_vm4, %v23538_v59 }
 0x4d5   :  { %17629 = vmatmul.mubr.msk.bf16.gmra.mrb[28].mxu0 %vm322_vm4, %v26973_v26  ;;  %v26978_v26 = vld [vmem:[#allocation85_spill] sm:$0xff] }
 0x4d6   :  { %17636 = vmatprep.mubr.msk.bf16.mxu0 %vm322_vm4, %v15382_v37  ;;  %v15371_v55 = vrot.slane %v26978_v26, 10  ;;  %v6525_v37 = vrot.slane %v23129_v54, 6  ;;  %v6782_v26 = vsel %vm347_vm0, %v19954_v24, 0 }
 0x4d8   :  { %v6526_v54 = vsel %vm21155_vm1, %v15371_v55, %v6525_v37  ;;  %v26982_v37 = vld [vmem:[#allocation69_spill] sm:$0xff] }
 0x4db   :  { %17869 = vmatmul.mubr.msk.bf16.gmra.mrb[12].mxu1 %vm322_vm4, %v15592_v34  ;;  %v19958_v34 = vld [vmem:[%s26192_s5 + $0x48] sm:$0xff]  }
 0x4dc   :  { %17876 = vmatprep.mubr.msk.bf16.mxu1 %vm322_vm4, %v23554_v25 }
 0x4dd   :  { %17637 = vmatmul.mubr.msk.bf16.vlgmr.msra.gmra.mrb[16].mxu0 %vm322_vm4, %v26979_v23  ;;  %v26478_v23 = vshll.u32 %v23570_v56, 16 }
 0x4de   :  { %17640 = vmatprep.mubr.msk.bf16.mxu0 %vm322_vm4, %v26980_v48  ;;  %17653 = vmatpush3.bf16.msra.mxu0 %v23425_v18  ;;  %v19952_v48 = vld [vmem:[%s26192_s5 + $0xd4] ss:$0 sps:$4 sm:$0x33]   ;;  %v23588_v18 = vcombine.low %v26981_v28, %v23320_v12 }
 0x4df   :  { %19799 = vmatprep.subr.msk.bf16.mxu0 %vm347_vm0, %v19954_v24  ;;  %v8531_v55 = vrot.slane %v26478_v23, 5  ;;  %v15386_v24 = vcombine.low %v6526_v54, %v23503_v46  ;;  %v8720_v12 = vsel %vm347_vm0, %v19952_v48, 0 }
 0x4e1   :  { %v23606_v54 = vsel %vm20447_vm7, %v8527_v10, %v8531_v55  ;;  %v23620_v10 = vld [vmem:[#allocation2 + $0xb4] sm:$0x3] }
 0x4e2   :  { %17655 = vmatpush3.bf16.msra.mxu0 %v6782_v26  ;;  %v26984_v26 = vshrl.u32 %v23381_v21, 16  ;;  %v26479_v55 = vshll.u32 %v23620_v10, 16 }
 0x4e3   :  { %17877 = vmatmul.mubr.msk.bf16.vlgmr.msra.gmra.mrb[0].mxu1 %vm322_vm4, %v26982_v37  ;;  %17672 = vmatprep.subr.bf16.mxu0 %v19958_v34 }
 0x4e4   :  { %17893 = vmatpush3.bf16.msra.mxu1 %v19951_v1  ;;  %17880 = vmatprep.mubr.msk.bf16.mxu1 %vm322_vm4, %v23588_v18  ;;  %v15606_v1 = vcombine.low %v23340_v47, %v23606_v54  ;;  %v8536_v28 = vrot.slane %v26984_v26, 4 }
 0x4e5   :  { %17641 = vmatmul.mubr.msk.bf16.gmra.mrb[20].mxu0 %vm322_vm4, %v26983_v43  ;;  %19811 = vmatprep.subr.msk.bf16.mxu1 %vm347_vm0, %v19952_v48  ;;  %v26985_v48 = vshll.u32 %v23381_v21, 16  ;;  %v8839_v43 = vshrl.u32 %v23570_v56, 16 }
 0x4e6   :  { %17644 = vmatprep.mubr.msk.bf16.mxu0 %vm322_vm4, %v15386_v24 }
 0x4e7   :  { %v8539_v23 = vrot.slane %v26985_v48, 5  ;;  %v26986_v48 = vld [vmem:[#allocation51_spill] sm:$0xff] }
 0x4e8   :  { %17895 = vmatpush3.bf16.msra.mxu1 %v8720_v12  ;;  %v8545_v12 = vrot.slane %v26479_v55, 5 }
 0x4e9   :  { %17912 = vmatprep.subr.bf16.mxu1 %v19955_v17  ;;  %v8540_v47 = vor.u32 %v8539_v23, %v8536_v28  ;;  %v19959_v28 = vld [vmem:[%s26192_s5 + $0x50] ss:$0 sps:$4 sm:$0x33]  }
 0x4eb   :  { %17881 = vmatmul.mubr.msk.bf16.gmra.mrb[4].mxu1 %vm322_vm4, %v15606_v1  ;;  %v8541_v24 = vrot.slane %v8540_v47, 4  ;;  %v20101_v1 = vld [vmem:[#allocation2 + $0x10] sm:$0xf]  ;;  %v19957_v47 = vld [vmem:[%s26192_s5 + $0xe0] ss:$0 sps:$4 sm:$0x33]  }
 0x4ec   :  { %17884 = vmatprep.mubr.msk.bf16.mxu1 %vm322_vm4, %v23316_v49 }
 0x4ed   :  { %17645 = vmatmul.mubr.msk.bf16.gmra.mrb[24].mxu0 %vm322_vm4, %v23261_v61  ;;  %v15403_v61 = vcombine.low %v23433_v5, %v20101_v1  ;;  %v23637_v23 = vsel %vm20447_vm7, %v8541_v24, %v8545_v12  ;;  %v19962_v5 = vld [vmem:[%s26192_s5 + $0x54] sm:$0xff]  }
 0x4ee   :  { %17648 = vmatprep.mubr.msk.bf16.mxu0 %vm322_vm4, %v23292_v27  ;;  %v15607_v26 = vcombine.low %v23394_v16, %v23637_v23  ;;  %v6973_v16 = vsel %vm347_vm0, %v19959_v28, 0  ;;  %v26987_v24 = vld [vmem:[#allocation56_spill] sm:$0xff]  ;;  %v26988_v12 = vld [vmem:[#allocation57_spill] sm:$0xff] }
 0x4ef   :  { %v23661_v1 = vcombine.low %v26988_v12, %v26987_v24 }
 0x4f3   :  { %17885 = vmatmul.mubr.msk.bf16.gmra.mrb[8].mxu1 %vm322_vm4, %v23326_v29 }
 0x4f4   :  { %17888 = vmatprep.mubr.msk.bf16.mxu1 %vm322_vm4, %v23387_v19 }
 0x4f5   :  { %17649 = vmatmul.mubr.msk.bf16.gmra.mrb[28].mxu0 %vm322_vm4, %v23330_v14  ;;  %v27003_v14 = vld [vmem:[#allocation60_spill] sm:$0xff] }
 0x4f6   :  { %17656 = vmatprep.mubr.msk.bf16.mxu0 %vm322_vm4, %v15403_v61  ;;  %v20102_v61 = vld [vmem:[#allocation2 + $0x70] sm:$0xf] }
 0x4fb   :  { %17889 = vmatmul.mubr.msk.bf16.gmra.mrb[12].mxu1 %vm322_vm4, %v15607_v26  ;;  %v15407_v26 = vcombine.low %v23143_v35, %v20102_v61  ;;  %v26991_v35 = vld [vmem:[#allocation45_spill] sm:$0xff]  ;;  %v26993_v61 = vld [vmem:[#allocation19_spill] sm:$0xff] }
 0x4fc   :  { %17896 = vmatprep.mubr.msk.bf16.mxu1 %vm322_vm4, %v26986_v48 }
 0x4fd   :  { %17657 = vmatmul.mubr.msk.bf16.vlgmr.msra.gmra.mrb[16].mxu0 %vm322_vm4, %v23390_v31  ;;  %v15618_v31 = vrot.slane %v23366_v58, 9 }
 0x4fe   :  { %17660 = vmatprep.mubr.msk.bf16.mxu0 %vm322_vm4, %v23445_v22  ;;  %17673 = vmatpush3.bf16.msra.mxu0 %v19958_v34  ;;  %v8690_v22 = vrot.slane %v23570_v56, 5  ;;  %v26989_v34 = vld [vmem:[#allocation52_spill] sm:$0xff] }
 0x4ff   :  { %19800 = vmatprep.subr.msk.bf16.mxu0 %vm347_vm0, %v19959_v28  ;;  %v8879_v28 = vsel %vm347_vm0, %v19957_v47, 0 }
 0x500   :  { %v23680_v24 = vsel %vm20735_vm11, %v15618_v31, %v8690_v22  ;;  %v26995_v31 = vld [vmem:[#allocation13_spill] sm:$0xff] }
 0x501   :  { %v15623_v12 = vcombine.low %v26991_v35, %v23680_v24 }
 0x502   :  { %17675 = vmatpush3.bf16.msra.mxu0 %v6973_v16  ;;  %v19960_v16 = vld [vmem:[%s26192_s5 + $0xe4] sm:$0xff]  }
 0x503   :  { %17897 = vmatmul.mubr.msk.bf16.vlgmr.msra.gmra.mrb[0].mxu1 %vm322_vm4, %v26989_v34  ;;  %17692 = vmatprep.subr.bf16.mxu0 %v19962_v5 }
 0x504   :  { %17913 = vmatpush3.bf16.msra.mxu1 %v19955_v17  ;;  %17900 = vmatprep.mubr.msk.bf16.mxu1 %vm322_vm4, %v23661_v1 }
 0x505   :  { %17661 = vmatmul.mubr.msk.bf16.gmra.mrb[20].mxu0 %vm322_vm4, %v23450_v6  ;;  %19812 = vmatprep.subr.msk.bf16.mxu1 %vm347_vm0, %v19957_v47  ;;  %v26992_v6 = vld [vmem:[#allocation17_spill] sm:$0xff]  ;;  %v26994_v47 = vld [vmem:[#allocation20_spill] sm:$0xff] }
 0x506   :  { %17664 = vmatprep.mubr.msk.bf16.mxu0 %vm322_vm4, %v15407_v26  ;;  %v23686_v55 = vcombine.low %v26993_v61, %v26992_v6  ;;  %v23697_v22 = vcombine.low %v26995_v31, %v26994_v47  ;;  %v26996_v26 = vld [vmem:[#allocation41_spill] sm:$0xff]  ;;  %v15619_v6 = vrot.slane %v23381_v21, 9  ;;  %v27001_v31 = vld [vmem:[#allocation44_spill] sm:$0xff] }
 0x508   :  { %17915 = vmatpush3.bf16.msra.mxu1 %v8879_v28  ;;  %v26997_v28 = vld [vmem:[#allocation47_spill] sm:$0xff] }
 0x509   :  { %17932 = vmatprep.subr.bf16.mxu1 %v19960_v16  ;;  %v23701_v35 = vcombine.low %v26997_v28, %v26996_v26  ;;  %v27002_v28 = vld [vmem:[#allocation64_spill] sm:$0xff] }
 0x50a   :  { %v23722_v27 = vcombine.low %v27003_v14, %v27002_v28  ;;  %v27004_v14 = vshll.u32 %v23570_v56, 16  ;;  %v27008_v28 = vld [vmem:[#allocation67_spill] sm:$0xff] }
 0x50b   :  { %17901 = vmatmul.mubr.msk.bf16.gmra.mrb[4].mxu1 %vm322_vm4, %v15623_v12  ;;  %v8694_v12 = vrot.slane %v23620_v10, 5 }
 0x50c   :  { %17904 = vmatprep.mubr.msk.bf16.mxu1 %vm322_vm4, %v23686_v55 }
 0x50d   :  { %17665 = vmatmul.mubr.msk.bf16.gmra.mrb[24].mxu0 %vm322_vm4, %v23521_v36  ;;  %v26998_v36 = vld [vmem:[#allocation23_spill] sm:$0xff]  ;;  %v23716_v47 = vsel %vm20735_vm11, %v15619_v6, %v8694_v12  ;;  %v8841_v6 = vrot.slane %v8839_v43, 5  ;;  %v8842_v12 = vrot.slane %v27004_v14, 6  ;;  %v27007_v43 = vor.u32 %v23413_v51, %v23409_v45  ;;  %v27010_v14 = vld [vmem:[#allocation50_spill] sm:$0xff]  ;;  %v19964_v51 = vld [vmem:[%s26192_s5 + $0xf0] sm:$0xff]  }
 0x50e   :  { %17668 = vmatprep.mubr.msk.bf16.mxu0 %vm322_vm4, %v23533_v4  ;;  %v26999_v4 = vld [vmem:[#allocation39_spill] sm:$0xff]  ;;  %27000 = vst [vmem:[#allocation34_spill] sm:$0xff] %v23716_v47  ;;  %v15624_v26 = vcombine.low %v27001_v31, %v23716_v47  ;;  %v27006_v31 = vld [vmem:[#allocation66_spill] sm:$0xff] }
 0x50f   :  { %v15424_v61 = vcombine.low %v26999_v4, %v26998_v36  ;;  %v19966_v4 = vld [vmem:[%s26192_s5 + $0x60] sm:$0xff]  }
 0x513   :  { %17905 = vmatmul.mubr.msk.bf16.gmra.mrb[8].mxu1 %vm322_vm4, %v23697_v22 }
 0x514   :  { %17908 = vmatprep.mubr.msk.bf16.mxu1 %vm322_vm4, %v23701_v35 }
 0x515   :  { %17669 = vmatmul.mubr.msk.bf16.gmra.mrb[28].mxu0 %vm322_vm4, %v23538_v59  ;;  %v19963_v59 = vld [vmem:[%s26192_s5 + $0x5c] ss:$0 sps:$4 sm:$0x33]  }
 0x516   :  { %17676 = vmatprep.mubr.msk.bf16.mxu0 %vm322_vm4, %v15424_v61  ;;  %v7146_v36 = vsel %vm347_vm0, %v19963_v59, 0  ;;  %v27005_v61 = vld [vmem:[#allocation72_spill] sm:$0xff] }
 0x51b   :  { %17909 = vmatmul.mubr.msk.bf16.gmra.mrb[12].mxu1 %vm322_vm4, %v15624_v26  ;;  %v8843_v26 = vor.u32 %v8842_v12, %v8841_v6  ;;  %v27011_v6 = vld [vmem:[#allocation73_spill] sm:$0xff] }
 0x51c   :  { %17916 = vmatprep.mubr.msk.bf16.mxu1 %vm322_vm4, %v23722_v27 }
 0x51d   :  { %17677 = vmatmul.mubr.msk.bf16.vlgmr.msra.gmra.mrb[16].mxu0 %vm322_vm4, %v23554_v25  ;;  %v19961_v25 = vld [vmem:[%s26192_s5 + $0xec] ss:$0 sps:$4 sm:$0x33]  }
 0x51e   :  { %17680 = vmatprep.mubr.msk.bf16.mxu0 %vm322_vm4, %v26982_v37  ;;  %17693 = vmatpush3.bf16.msra.mxu0 %v19962_v5  ;;  %v23747_v37 = vcombine.low %v27006_v31, %v27005_v61  ;;  %v8838_v5 = vrot.slane %v27007_v43, 4  ;;  %v9026_v45 = vsel %vm347_vm0, %v19961_v25, 0  ;;  %v27014_v31 = vshll.u32 %v23620_v10, 16 }
 0x51f   :  { %19801 = vmatprep.subr.msk.bf16.mxu0 %vm347_vm0, %v19963_v59  ;;  %v27009_v59 = vld [vmem:[#allocation78_spill] sm:$0xff] }
 0x520   :  { %v15428_v47 = vcombine.low %v27010_v14, %v27009_v59  ;;  %v8852_v43 = vrot.slane %v27014_v31, 6  ;;  %v27016_v14 = vld [vmem:[#allocation35_spill] sm:$0xff] }
 0x522   :  { %17695 = vmatpush3.bf16.msra.mxu0 %v7146_v36  ;;  %v27013_v36 = vld [vmem:[#allocation76_spill] sm:$0xff] }
 0x523   :  { %17917 = vmatmul.mubr.msk.bf16.vlgmr.msra.gmra.mrb[0].mxu1 %vm322_vm4, %v27008_v28  ;;  %17712 = vmatprep.subr.bf16.mxu0 %v19966_v4 }
 0x524   :  { %17933 = vmatpush3.bf16.msra.mxu1 %v19960_v16  ;;  %17920 = vmatprep.mubr.msk.bf16.mxu1 %vm322_vm4, %v23747_v37  ;;  %v23768_v16 = vsel %vm20931_vm14, %v8838_v5, %v8843_v26  ;;  %v27015_v5 = vor.u32 %v23458_v32, %v23443_v39  ;;  %v19967_v32 = vld [vmem:[%s26192_s5 + $0x68] ss:$0 sps:$4 sm:$0x33]  }
 0x525   :  { %17681 = vmatmul.mubr.msk.bf16.gmra.mrb[20].mxu0 %vm322_vm4, %v23588_v18  ;;  %19813 = vmatprep.subr.msk.bf16.mxu1 %vm347_vm0, %v19961_v25  ;;  %v15638_v12 = vcombine.low %v27011_v6, %v23768_v16  ;;  %v27012_v18 = vld [vmem:[#allocation81_spill] sm:$0xff]  ;;  %v8849_v25 = vshrl.u32 %v23620_v10, 16 }
 0x526   :  { %17684 = vmatprep.mubr.msk.bf16.mxu0 %vm322_vm4, %v15428_v47  ;;  %v23774_v61 = vcombine.low %v27013_v36, %v27012_v18  ;;  %v8848_v26 = vrot.slane %v27015_v5, 4  ;;  %v19965_v18 = vld [vmem:[%s26192_s5 + $0xf8] ss:$0 sps:$4 sm:$0x33]   ;;  %v15650_v36 = vrot.slane %v23366_v58, 10 }
 0x527   :  { %v8851_v47 = vrot.slane %v8849_v25, 5  ;;  %v27019_v25 = vld [vmem:[#allocation84_spill] sm:$0xff] }
 0x528   :  { %17935 = vmatpush3.bf16.msra.mxu1 %v9026_v45  ;;  %v27017_v45 = vld [vmem:[#allocation29_spill] sm:$0xff] }
 0x529   :  { %17952 = vmatprep.subr.bf16.mxu1 %v19964_v51  ;;  %v8853_v59 = vor.u32 %v8852_v43, %v8851_v47  ;;  %v15447_v6 = vcombine.low %v27017_v45, %v27016_v14  ;;  %v27021_v47 = vld [vmem:[#allocation46_spill] sm:$0xff] }
 0x52b   :  { %17921 = vmatmul.mubr.msk.bf16.gmra.mrb[4].mxu1 %vm322_vm4, %v15638_v12  ;;  %v19973_v12 = vld [vmem:[%s26192_s5 + $0x6c] sm:$0xff]  }
 0x52c   :  { %17924 = vmatprep.mubr.msk.bf16.mxu1 %vm322_vm4, %v23774_v61 }
 0x52d   :  { %17685 = vmatmul.mubr.msk.bf16.gmra.mrb[24].mxu0 %vm322_vm4, %v23316_v49  ;;  %v23800_v49 = vsel %vm20931_vm14, %v8848_v26, %v8853_v59 }
 0x52e   :  { %17688 = vmatprep.mubr.msk.bf16.mxu0 %vm322_vm4, %v23326_v29  ;;  %v27018_v29 = vld [vmem:[#allocation33_spill] sm:$0xff] }
 0x52f   :  { %v15639_v39 = vcombine.low %v27018_v29, %v23800_v49  ;;  %v9000_v29 = vrot.slane %v23620_v10, 6 }
 0x533   :  { %17925 = vmatmul.mubr.msk.bf16.gmra.mrb[8].mxu1 %vm322_vm4, %v23431_v42 }
 0x534   :  { %17928 = vmatprep.mubr.msk.bf16.mxu1 %vm322_vm4, %v23439_v53 }
 0x535   :  { %17689 = vmatmul.mubr.msk.bf16.gmra.mrb[28].mxu0 %vm322_vm4, %v23387_v19  ;;  %v7329_v19 = vsel %vm347_vm0, %v19967_v32, 0 }
 0x536   :  { %17696 = vmatprep.mubr.msk.bf16.mxu0 %vm322_vm4, %v15447_v6  ;;  %v15651_v6 = vrot.slane %v23381_v21, 10 }
 0x53b   :  { %17929 = vmatmul.mubr.msk.bf16.gmra.mrb[12].mxu1 %vm322_vm4, %v15639_v39  ;;  %v23867_v39 = vld [vmem:[#allocation2 + $0xb8] sm:$0xf] }
 0x53c   :  { %17936 = vmatprep.mubr.msk.bf16.mxu1 %vm322_vm4, %v23464_v20 }
 0x53d   :  { %17697 = vmatmul.mubr.msk.bf16.vlgmr.msra.gmra.mrb[16].mxu0 %vm322_vm4, %v26986_v48  ;;  %v8996_v48 = vrot.slane %v23570_v56, 6  ;;  %v9167_v56 = vsel %vm347_vm0, %v19965_v18, 0 }
 0x53e   :  { %17700 = vmatprep.mubr.msk.bf16.mxu0 %vm322_vm4, %v26989_v34  ;;  %17713 = vmatpush3.bf16.msra.mxu0 %v19966_v4  ;;  %v23826_v34 = vld [vmem:[#allocation2 + $0x58] sm:$0xf]  ;;  %v27020_v4 = vld [vmem:[#allocation8_spill] sm:$0xff] }
 0x53f   :  { %19802 = vmatprep.subr.msk.bf16.mxu0 %vm347_vm0, %v19967_v32  ;;  %v15451_v31 = vcombine.low %v27021_v47, %v27020_v4  ;;  %v9283_v43 = vshrl.u32 %v23826_v34, 16  ;;  %v9286_v5 = vshll.u32 %v23826_v34, 16  ;;  %v23844_v26 = vsel %vm21155_vm1, %v15650_v36, %v8996_v48  ;;  %v19974_v36 = vld [vmem:[%s26192_s5 + $0x74] ss:$0 sps:$4 sm:$0x33]   ;;  %v27023_v48 = vld [vmem:[#allocation25_spill] sm:$0xff] }
 0x540   :  { %v15655_v45 = vcombine.low %v23231_v11, %v23844_v26  ;;  %v9297_v11 = vshrl.u32 %v23867_v39, 16  ;;  %v9300_v32 = vshll.u32 %v23867_v39, 16  ;;  %v19978_v4 = vld [vmem:[%s26192_s5 + $0x78] sm:$0xff]   ;;  %v19971_v47 = vld [vmem:[%s26192_s5 + $0x104] ss:$0 sps:$4 sm:$0x33]  }
 0x541   :  { %v23848_v59 = vrot.slane %v9283_v43, 5 }
 0x542   :  { %17715 = vmatpush3.bf16.msra.mxu0 %v7329_v19  ;;  %v23881_v10 = vrot.slane %v9297_v11, 5 }
 0x543   :  { %17937 = vmatmul.mubr.msk.bf16.vlgmr.msra.gmra.mrb[0].mxu1 %vm322_vm4, %v27019_v25  ;;  %17732 = vmatprep.subr.bf16.mxu0 %v19973_v12 }
 0x544   :  { %17953 = vmatpush3.bf16.msra.mxu1 %v19964_v51  ;;  %17940 = vmatprep.mubr.msk.bf16.mxu1 %vm322_vm4, %v23468_v41  ;;  %v19968_v51 = vld [vmem:[%s26192_s5 + $0xfc] sm:$0xff]  }
 0x545   :  { %17701 = vmatmul.mubr.msk.bf16.gmra.mrb[20].mxu0 %vm322_vm4, %v23661_v1  ;;  %19814 = vmatprep.subr.msk.bf16.mxu1 %vm347_vm0, %v19965_v18  ;;  %v23852_v1 = vrot.slane %v9286_v5, 6  ;;  %v23890_v18 = vsel %vm21155_vm1, %v15651_v6, %v9000_v29  ;;  %v27030_v29 = vld [vmem:[#allocation71_spill] sm:$0xff] }
 0x546   :  { %17704 = vmatprep.mubr.msk.bf16.mxu0 %vm322_vm4, %v15451_v31  ;;  %v23916_v31 = vcombine.low %v23447_v30, %v23511_v52  ;;  %v9334_v30 = vsel %vm347_vm0, %v19971_v47, 0  ;;  %v19976_v52 = vld [vmem:[%s26192_s5 + $0x108] sm:$0xff]  }
 0x547   :  { %v9600_v14 = vor.u32 %v23852_v1, %v23848_v59  ;;  %v27046_v1 = vld [vmem:[#allocation79_spill] sm:$0xff] }
 0x548   :  { %17955 = vmatpush3.bf16.msra.mxu1 %v9167_v56  ;;  %v15670_v56 = vcombine.low %v23366_v58, %v23826_v34  ;;  %v27028_v58 = vcombine.low %v23492_v2, %v26969_v62  ;;  %v27029_v2 = vld [vmem:[#allocation63_spill] sm:$0xff] }
 0x549   :  { %17972 = vmatprep.subr.bf16.mxu1 %v19968_v51 }
 0x54b   :  { %17941 = vmatmul.mubr.msk.bf16.gmra.mrb[4].mxu1 %vm322_vm4, %v15655_v45 }
 0x54c   :  { %17944 = vmatprep.mubr.msk.bf16.mxu1 %vm322_vm4, %v23480_v8 }
 0x54d   :  { %17705 = vmatmul.mubr.msk.bf16.gmra.mrb[24].mxu0 %vm322_vm4, %v23686_v55  ;;  %v27022_v55 = vld [vmem:[#allocation59_spill] sm:$0xff] }
 0x54e   :  { %17708 = vmatprep.mubr.msk.bf16.mxu0 %vm322_vm4, %v23697_v22  ;;  %v15468_v19 = vcombine.low %v23297_v44, %v27022_v55  ;;  %v23885_v22 = vrot.slane %v9300_v32, 6 }
 0x550   :  { %v9610_v44 = vor.u32 %v23885_v22, %v23881_v10  ;;  %v15729_v10 = vrot.slane %v23826_v34, 10 }
 0x553   :  { %17945 = vmatmul.mubr.msk.bf16.gmra.mrb[8].mxu1 %vm322_vm4, %v23484_v50 }
 0x554   :  { %17948 = vmatprep.mubr.msk.bf16.mxu1 %vm322_vm4, %v23498_v0 }
 0x555   :  { %17709 = vmatmul.mubr.msk.bf16.gmra.mrb[28].mxu0 %vm322_vm4, %v23701_v35  ;;  %v15656_v35 = vcombine.low %v23361_v15, %v23890_v18  ;;  %v7500_v15 = vsel %vm347_vm0, %v19974_v36, 0 }
 0x556   :  { %17716 = vmatprep.mubr.msk.bf16.mxu0 %vm322_vm4, %v15468_v19  ;;  %v19980_v19 = vld [vmem:[%s26192_s5 + $0x114] sm:$0xff]  }
 0x55b   :  { %17949 = vmatmul.mubr.msk.bf16.gmra.mrb[12].mxu1 %vm322_vm4, %v15656_v35  ;;  %v27031_v35 = vcombine.low %v23503_v46, %v23251_v3 }
 0x55c   :  { %17956 = vmatprep.mubr.msk.bf16.mxu1 %vm322_vm4, %v27023_v48 }
 0x55d   :  { %17717 = vmatmul.mubr.msk.bf16.vlgmr.msra.gmra.mrb[16].mxu0 %vm322_vm4, %v23722_v27  ;;  %v27024_v27 = vld [vmem:[#allocation43_spill] sm:$0xff] }
 0x55e   :  { %17720 = vmatprep.mubr.msk.bf16.mxu0 %vm322_vm4, %v27008_v28  ;;  %17733 = vmatpush3.bf16.msra.mxu0 %v19973_v12  ;;  %v27025_v28 = vld [vmem:[#allocation75_spill] sm:$0xff] }
 0x55f   :  { %19803 = vmatprep.subr.msk.bf16.mxu0 %vm347_vm0, %v19974_v36  ;;  %v15472_v12 = vcombine.low %v23241_v40, %v27025_v28  ;;  %v27026_v40 = vld [vmem:[#allocation16_spill] sm:$0xff] }
 0x562   :  { %17735 = vmatpush3.bf16.msra.mxu0 %v7500_v15  ;;  %v9299_v15 = vrot.slane %v9297_v11, 4 }
 0x563   :  { %17957 = vmatmul.mubr.msk.bf16.vlgmr.msra.gmra.mrb[0].mxu1 %vm322_vm4, %v27024_v27  ;;  %17752 = vmatprep.subr.bf16.mxu0 %v19978_v4 }
 0x564   :  { %17973 = vmatpush3.bf16.msra.mxu1 %v19968_v51  ;;  %17960 = vmatprep.mubr.msk.bf16.mxu1 %vm322_vm4, %v23916_v31  ;;  %v27027_v51 = vld [vmem:[#allocation18_spill] sm:$0xff] }
 0x565   :  { %17721 = vmatmul.mubr.msk.bf16.gmra.mrb[20].mxu0 %vm322_vm4, %v23747_v37  ;;  %19815 = vmatprep.subr.msk.bf16.mxu1 %vm347_vm0, %v19971_v47  ;;  %v23943_v37 = vcombine.low %v23535_v57, %v23548_v38  ;;  %v9285_v57 = vrot.slane %v9283_v43, 4  ;;  %v9288_v38 = vrot.slane %v9286_v5, 5  ;;  %v19982_v5 = vld [vmem:[%s26192_s5 + $0x84] sm:$0xff]   ;;  %v27032_v47 = vld [vmem:[#allocation80_spill] sm:$0xff] }
 0x566   :  { %17724 = vmatprep.mubr.msk.bf16.mxu0 %vm322_vm4, %v15472_v12  ;;  %v19983_v12 = vld [vmem:[%s26192_s5 + $0x8c] ss:$0 sps:$4 sm:$0x33]  }
 0x567   :  { %v9289_v62 = vor.u32 %v9288_v38, %v9285_v57  ;;  %v19984_v57 = vld [vmem:[%s26192_s5 + $0x120] sm:$0xff]  }
 0x568   :  { %17975 = vmatpush3.bf16.msra.mxu1 %v9334_v30  ;;  %v27035_v30 = vld [vmem:[#allocation49_spill] sm:$0xff]  ;;  %v27038_v38 = vld [vmem:[#allocation14_spill] sm:$0xff] }
 0x569   :  { %17992 = vmatprep.subr.bf16.mxu1 %v19976_v52  ;;  %v9290_v45 = vrot.slane %v9289_v62, 4 }
 0x56b   :  { %17961 = vmatmul.mubr.msk.bf16.gmra.mrb[4].mxu1 %vm322_vm4, %v15670_v56  ;;  %v19981_v56 = vld [vmem:[%s26192_s5 + $0x11c] ss:$0 sps:$4 sm:$0x33]  }
 0x56c   :  { %17964 = vmatprep.mubr.msk.bf16.mxu1 %vm322_vm4, %v27026_v40 }
 0x56d   :  { %17725 = vmatmul.mubr.msk.bf16.gmra.mrb[24].mxu0 %vm322_vm4, %v23774_v61  ;;  %v23961_v61 = vld [vmem:[#allocation2 + $0x5c] sm:$0x3] }
 0x56e   :  { %17728 = vmatprep.mubr.msk.bf16.mxu0 %vm322_vm4, %v23431_v42  ;;  %v15671_v42 = vcombine.low %v23381_v21, %v23867_v39  ;;  %v9292_v21 = vshll.u32 %v23961_v61, 16  ;;  %v9759_v22 = vrot.slane %v23961_v61, 6 }
 0x570   :  { %v9294_v6 = vrot.slane %v9292_v21, 5 }
 0x573   :  { %17965 = vmatmul.mubr.msk.bf16.gmra.mrb[8].mxu1 %vm322_vm4, %v27027_v51 }
 0x574   :  { %17968 = vmatprep.mubr.msk.bf16.mxu1 %vm322_vm4, %v23943_v37 }
 0x575   :  { %17729 = vmatmul.mubr.msk.bf16.gmra.mrb[28].mxu0 %vm322_vm4, %v23439_v53  ;;  %v19979_v53 = vld [vmem:[%s26192_s5 + $0x80] ss:$0 sps:$4 sm:$0x33]  }
 0x576   :  { %17736 = vmatprep.mubr.msk.bf16.mxu0 %vm322_vm4, %v27028_v58  ;;  %v7641_v43 = vsel %vm347_vm0, %v19979_v53, 0  ;;  %v27036_v58 = vld [vmem:[#allocation11_spill] sm:$0xff] }
 0x57b   :  { %17969 = vmatmul.mubr.msk.bf16.gmra.mrb[12].mxu1 %vm322_vm4, %v15671_v42  ;;  %v9642_v42 = vsel %vm347_vm0, %v19981_v56, 0 }
 0x57c   :  { %17976 = vmatprep.mubr.msk.bf16.mxu1 %vm322_vm4, %v27029_v2 }
 0x57d   :  { %17737 = vmatmul.mubr.msk.bf16.vlgmr.msra.gmra.mrb[16].mxu0 %vm322_vm4, %v23464_v20  ;;  %v19977_v20 = vld [vmem:[%s26192_s5 + $0x110] ss:$0 sps:$4 sm:$0x33]  }
 0x57e   :  { %17740 = vmatprep.mubr.msk.bf16.mxu0 %vm322_vm4, %v27019_v25  ;;  %17753 = vmatpush3.bf16.msra.mxu0 %v19978_v4  ;;  %v9295_v25 = vsel %vm20447_vm7, %v9290_v45, %v9294_v6  ;;  %v9483_v55 = vsel %vm347_vm0, %v19977_v20, 0  ;;  %v24006_v4 = vld [vmem:[#allocation2 + $0xbc] sm:$0x3]  ;;  %v9602_v45 = vshrl.u32 %v23961_v61, 16 }
 0x57f   :  { %19804 = vmatprep.subr.msk.bf16.mxu0 %vm347_vm0, %v19979_v53  ;;  %v15685_v36 = vcombine.low %v23606_v54, %v9295_v25  ;;  %v9306_v46 = vshll.u32 %v24006_v4, 16  ;;  %v9457_v62 = vrot.slane %v24006_v4, 5  ;;  %v27043_v6 = vld [vmem:[#allocation65_spill] sm:$0xff]  ;;  %v9605_v25 = vrot.slane %v9292_v21, 6  ;;  %v27045_v21 = vld [vmem:[#allocation74_spill] sm:$0xff] }
 0x581   :  { %v9308_v11 = vrot.slane %v9306_v46, 5 }
 0x582   :  { %17755 = vmatpush3.bf16.msra.mxu0 %v7641_v43  ;;  %v27039_v43 = vld [vmem:[#allocation55_spill] sm:$0xff] }
 0x583   :  { %17977 = vmatmul.mubr.msk.bf16.vlgmr.msra.gmra.mrb[0].mxu1 %vm322_vm4, %v27030_v29  ;;  %17772 = vmatprep.subr.bf16.mxu0 %v19982_v5 }
 0x584   :  { %17993 = vmatpush3.bf16.msra.mxu1 %v19976_v52  ;;  %17980 = vmatprep.mubr.msk.bf16.mxu1 %vm322_vm4, %v23509_v7  ;;  %v9453_v52 = vrot.slane %v23961_v61, 5  ;;  %v9763_v61 = vrot.slane %v24006_v4, 6 }
 0x585   :  { %17741 = vmatmul.mubr.msk.bf16.gmra.mrb[20].mxu0 %vm322_vm4, %v23468_v41  ;;  %19816 = vmatprep.subr.msk.bf16.mxu1 %vm347_vm0, %v19977_v20  ;;  %v9302_v41 = vrot.slane %v9300_v32, 5  ;;  %v27033_v32 = vld [vmem:[#allocation30_spill] sm:$0xff]  ;;  %v9604_v20 = vrot.slane %v9602_v45, 5 }
 0x586   :  { %17744 = vmatprep.mubr.msk.bf16.mxu0 %vm322_vm4, %v27031_v35  ;;  %v27044_v35 = vld [vmem:[#allocation68_spill] sm:$0xff] }
 0x587   :  { %v9303_v3 = vor.u32 %v9302_v41, %v9299_v15 }
 0x588   :  { %17995 = vmatpush3.bf16.msra.mxu1 %v9483_v55  ;;  %v9606_v55 = vor.u32 %v9605_v25, %v9604_v20  ;;  %v24211_v20 = vld [vmem:[#allocation2 + $0x68] sm:$0xf] }
 0x589   :  { %18012 = vmatprep.subr.bf16.mxu1 %v19980_v19  ;;  %v9304_v54 = vrot.slane %v9303_v3, 4  ;;  %v27048_v3 = vld [vmem:[#allocation21_spill] sm:$0xff] }
 0x58b   :  { %17981 = vmatmul.mubr.msk.bf16.gmra.mrb[4].mxu1 %vm322_vm4, %v15685_v36  ;;  %v9309_v28 = vsel %vm20447_vm7, %v9304_v54, %v9308_v11  ;;  %v27047_v36 = vld [vmem:[#allocation82_spill] sm:$0xff] }
 0x58c   :  { %17984 = vmatprep.mubr.msk.bf16.mxu1 %vm322_vm4, %v27032_v47  ;;  %v27049_v54 = vld [vmem:[#allocation10_spill] sm:$0xff] }
 0x58d   :  { %17745 = vmatmul.mubr.msk.bf16.gmra.mrb[24].mxu0 %vm322_vm4, %v23480_v8  ;;  %v27034_v8 = vld [vmem:[#allocation15_spill] sm:$0xff]  ;;  %v27050_v11 = vld [vmem:[#allocation86_spill] sm:$0xff] }
 0x58e   :  { %17748 = vmatprep.mubr.msk.bf16.mxu0 %vm322_vm4, %v23484_v50  ;;  %v15686_v50 = vcombine.low %v23637_v23, %v9309_v28  ;;  %v15697_v23 = vrot.slane %v23826_v34, 9  ;;  %v27053_v28 = vld [vmem:[#allocation32_spill] sm:$0xff]  ;;  %v15730_v34 = vrot.slane %v23867_v39, 10 }
 0x593   :  { %17985 = vmatmul.mubr.msk.bf16.gmra.mrb[8].mxu1 %vm322_vm4, %v27033_v32 }
 0x594   :  { %17988 = vmatprep.mubr.msk.bf16.mxu1 %vm322_vm4, %v23519_v63 }
 0x595   :  { %17749 = vmatmul.mubr.msk.bf16.gmra.mrb[28].mxu0 %vm322_vm4, %v23498_v0  ;;  %v7808_v0 = vsel %vm347_vm0, %v19983_v12, 0 }
 0x596   :  { %17756 = vmatprep.mubr.msk.bf16.mxu0 %vm322_vm4, %v27034_v8  ;;  %v27054_v8 = vld [vmem:[#allocation28_spill] sm:$0xff] }
 0x59b   :  { %17989 = vmatmul.mubr.msk.bf16.gmra.mrb[12].mxu1 %vm322_vm4, %v15686_v50  ;;  %v27055_v50 = vld [vmem:[#allocation12_spill] sm:$0xff] }
 0x59c   :  { %17996 = vmatprep.mubr.msk.bf16.mxu1 %vm322_vm4, %v27035_v30  ;;  %v19986_v30 = vld [vmem:[%s26194_s7] sm:$0xff]  }
 0x59d   :  { %17757 = vmatmul.mubr.msk.bf16.vlgmr.msra.gmra.mrb[16].mxu0 %vm322_vm4, %v27023_v48  ;;  %v27037_v48 = vld [vmem:[#allocation7_spill] sm:$0xff] }
 0x59e   :  { %17760 = vmatprep.mubr.msk.bf16.mxu0 %vm322_vm4, %v27024_v27  ;;  %17773 = vmatpush3.bf16.msra.mxu0 %v19982_v5  ;;  %v9454_v27 = vsel %vm20735_vm11, %v15697_v23, %v9453_v52  ;;  %v24173_v23 = vld [vmem:[%s26194_s7 + $0xc] sm:$0xff]  }
 0x59f   :  { %19805 = vmatprep.subr.msk.bf16.mxu0 %vm347_vm0, %v19983_v12  ;;  %v15702_v53 = vcombine.low %v23680_v24, %v9454_v27  ;;  %v27040_v24 = vld [vmem:[#allocation53_spill] sm:$0xff]  ;;  %v9764_v12 = vsel %vm21155_vm1, %v15730_v34, %v9763_v61 }
 0x5a2   :  { %17775 = vmatpush3.bf16.msra.mxu0 %v7808_v0  ;;  %v24166_v0 = vld [vmem:[#allocation2] sm:$0xf] }
 0x5a3   :  { %17997 = vmatmul.mubr.msk.bf16.vlgmr.msra.gmra.mrb[0].mxu1 %vm322_vm4, %v27036_v58 }
 0x5a4   :  { %18013 = vmatpush3.bf16.msra.mxu1 %v19980_v19  ;;  %18000 = vmatprep.mubr.msk.bf16.mxu1 %vm322_vm4, %v27037_v48  ;;  %v19985_v19 = vld [vmem:[%s26192_s5 + $0x128] ss:$0 sps:$4 sm:$0x33]  }
 0x5a5   :  { %17761 = vmatmul.mubr.msk.bf16.gmra.mrb[20].mxu0 %vm322_vm4, %v23916_v31  ;;  %19817 = vmatprep.subr.msk.bf16.mxu1 %vm347_vm0, %v19981_v56  ;;  %v15698_v31 = vrot.slane %v23867_v39, 9  ;;  %v9789_v59 = vsel %vm347_vm0, %v19985_v19, 0  ;;  %v19987_v39 = vld [vmem:[%s26194_s7 + $0x8] ss:$0 sps:$4 sm:$0x33]  }
 0x5a6   :  { %17764 = vmatprep.mubr.msk.bf16.mxu0 %vm322_vm4, %v27038_v38 }
 0x5a7   :  { %v9458_v5 = vsel %vm20735_vm11, %v15698_v31, %v9457_v62 }
 0x5a8   :  { %18015 = vmatpush3.bf16.msra.mxu1 %v9642_v42 }
 0x5a9   :  { %18032 = vmatprep.subr.bf16.mxu1 %v19984_v57 }
 0x5ab   :  { %18001 = vmatmul.mubr.msk.bf16.gmra.mrb[4].mxu1 %vm322_vm4, %v15702_v53 }
 0x5ac   :  { %18004 = vmatprep.mubr.msk.bf16.mxu1 %vm322_vm4, %v26947_v33  ;;  %v27041_v33 = vld [vmem:[#allocation22_spill] sm:$0xff] }
 0x5ad   :  { %17765 = vmatmul.mubr.msk.bf16.gmra.mrb[24].mxu0 %vm322_vm4, %v27026_v40  ;;  %v27042_v40 = vld [vmem:[#allocation34_spill] sm:$0xff] }
 0x5ae   :  { %17768 = vmatprep.mubr.msk.bf16.mxu0 %vm322_vm4, %v27027_v51  ;;  %v15703_v51 = vcombine.low %v27042_v40, %v9458_v5  ;;  %v10315_v40 = vshll.u32 %v24166_v0, 16 }
 0x5b3   :  { %18005 = vmatmul.mubr.msk.bf16.gmra.mrb[8].mxu1 %vm322_vm4, %v27039_v43 }
 0x5b4   :  { %18008 = vmatprep.mubr.msk.bf16.mxu1 %vm322_vm4, %v27040_v24 }
 0x5b5   :  { %17769 = vmatmul.mubr.msk.bf16.gmra.mrb[28].mxu0 %vm322_vm4, %v23943_v37  ;;  %v9601_v37 = vrot.slane %v9600_v14, 4 }
 0x5b6   :  { %17776 = vmatprep.mubr.msk.bf16.mxu0 %vm322_vm4, %v27041_v33  ;;  %v10312_v33 = vshrl.u32 %v24166_v0, 16 }
 0x5b8   :  { %v24207_v45 = vrot.slane %v10312_v33, 5 }
 0x5bb   :  { %18009 = vmatmul.mubr.msk.bf16.gmra.mrb[12].mxu1 %vm322_vm4, %v15703_v51 }
 0x5bc   :  { %18016 = vmatprep.mubr.msk.bf16.mxu1 %vm322_vm4, %v27043_v6  ;;  %v24209_v6 = vrot.slane %v10315_v40, 6 }
 0x5bd   :  { %17777 = vmatmul.mubr.msk.bf16.vlgmr.msra.gmra.mrb[16].mxu0 %vm322_vm4, %v27029_v2  ;;  %v9607_v2 = vsel %vm20931_vm14, %v9601_v37, %v9606_v55  ;;  %v24217_v55 = vld [vmem:[#allocation2 + $0x60] sm:$0xf] }
 0x5be   :  { %17780 = vmatprep.mubr.msk.bf16.mxu0 %vm322_vm4, %v27030_v29  ;;  %v15717_v14 = vcombine.low %v23768_v16, %v9607_v2  ;;  %v9612_v29 = vshrl.u32 %v24006_v4, 16  ;;  %v9611_v16 = vrot.slane %v9610_v44, 4  ;;  %v27051_v44 = vld [vmem:[#allocation37_spill] sm:$0xff]  ;;  %v10196_v4 = vsel %vm347_vm0, %v19987_v39, 0 }
 0x5c0   :  { %v9614_v15 = vrot.slane %v9612_v29, 5  ;;  %v10427_v29 = vshll.u32 %v24217_v55, 16 }
 0x5c3   :  { %18017 = vmatmul.mubr.msk.bf16.vlgmr.msra.gmra.mrb[0].mxu1 %vm322_vm4, %v27044_v35  ;;  %v10317_v35 = vrot.slane %v10315_v40, 5 }
 0x5c4   :  { %18033 = vmatpush3.bf16.msra.mxu1 %v19984_v57  ;;  %18020 = vmatprep.mubr.msk.bf16.mxu1 %vm322_vm4, %v27045_v21 }
 0x5c5   :  { %17781 = vmatmul.mubr.msk.bf16.gmra.mrb[20].mxu0 %vm322_vm4, %v23509_v7  ;;  %19818 = vmatprep.subr.msk.bf16.mxu1 %vm347_vm0, %v19985_v19  ;;  %v9615_v7 = vrot.slane %v9306_v46, 6  ;;  %v10314_v19 = vrot.slane %v10312_v33, 4 }
 0x5c6   :  { %17784 = vmatprep.mubr.msk.bf16.mxu0 %vm322_vm4, %v27046_v1 }
 0x5c7   :  { %v9616_v41 = vor.u32 %v9615_v7, %v9614_v15  ;;  %v10438_v7 = vshrl.u32 %v24211_v20, 16 }
 0x5c8   :  { %18035 = vmatpush3.bf16.msra.mxu1 %v9789_v59  ;;  %v24221_v59 = vld [vmem:[#allocation2 + $0x4] sm:$0x3] }
 0x5c9   :  { %v9617_v46 = vsel %vm20931_vm14, %v9611_v16, %v9616_v41  ;;  %18052 = vmatprep.subr.bf16.mxu1 %v19986_v30  ;;  %v10441_v16 = vshll.u32 %v24211_v20, 16 }
 0x5cb   :  { %18021 = vmatmul.mubr.msk.bf16.gmra.mrb[4].mxu1 %vm322_vm4, %v15717_v14  ;;  %v10424_v14 = vshrl.u32 %v24217_v55, 16 }
 0x5cc   :  { %18024 = vmatprep.mubr.msk.bf16.mxu1 %vm322_vm4, %v27047_v36 }
 0x5cd   :  { %17785 = vmatmul.mubr.msk.bf16.gmra.mrb[24].mxu0 %vm322_vm4, %v27032_v47  ;;  %v15718_v47 = vcombine.low %v23800_v49, %v9617_v46  ;;  %v10318_v46 = vor.u32 %v10317_v35, %v10314_v19 }
 0x5ce   :  { %17788 = vmatprep.mubr.msk.bf16.mxu0 %vm322_vm4, %v27033_v32  ;;  %v27052_v32 = vld [vmem:[#allocation24_spill] sm:$0xff] }
 0x5cf   :  { %v10319_v61 = vrot.slane %v10318_v46, 4  ;;  %v24280_v46 = vld [vmem:[%s26194_s7 + $0x20] ss:$0 sps:$4 sm:$0x33]  }
 0x5d3   :  { %18025 = vmatmul.mubr.msk.bf16.gmra.mrb[8].mxu1 %vm322_vm4, %v27048_v3 }
 0x5d4   :  { %18028 = vmatprep.mubr.msk.bf16.mxu1 %vm322_vm4, %v27049_v54  ;;  %v24235_v54 = vld [vmem:[#allocation2 + $0xc] sm:$0x3] }
 0x5d5   :  { %17789 = vmatmul.mubr.msk.bf16.gmra.mrb[28].mxu0 %vm322_vm4, %v23519_v63  ;;  %v9760_v63 = vsel %vm21155_vm1, %v15729_v10, %v9759_v22  ;;  %v10426_v22 = vrot.slane %v10424_v14, 4  ;;  %v10335_v34 = vshll.u32 %v24235_v54, 16 }
 0x5d6   :  { %v15734_v49 = vcombine.low %v23844_v26, %v9760_v63  ;;  %v15735_v26 = vcombine.low %v23890_v18, %v9764_v12  ;;  %v24168_v18 = vld [vmem:[#allocation2 + $0x8] sm:$0xf]  ;;  %v10440_v63 = vrot.slane %v10438_v7, 4 }
 0x5d7   :  { %v15763_v52 = vcombine.low %v24166_v0, %v24168_v18  ;;  %v10326_v43 = vshrl.u32 %v24168_v18, 16  ;;  %v10329_v24 = vshll.u32 %v24168_v18, 16 }
 0x5d9   :  { %v24213_v25 = vrot.slane %v10326_v43, 5  ;;  %v24215_v37 = vrot.slane %v10329_v24, 6  ;;  %v10328_v21 = vrot.slane %v10326_v43, 4  ;;  %v10331_v1 = vrot.slane %v10329_v24, 5  ;;  %v24259_v43 = vld [vmem:[%s26193_s6] ss:$0 sm:$0xff] }
 0x5db   :  { %18029 = vmatmul.mubr.msk.bf16.gmra.mrb[12].mxu1 %vm322_vm4, %v15718_v47  ;;  %v10321_v47 = vshll.u32 %v24221_v59, 16  ;;  %v10332_v10 = vor.u32 %v10331_v1, %v10328_v21 }
 0x5dc   :  { %18036 = vmatprep.mubr.msk.bf16.mxu1 %vm322_vm4, %v27050_v11 }
 0x5dd   :  { %v10333_v12 = vrot.slane %v10332_v10, 4 }
 0x5e3   :  { %18037 = vmatmul.mubr.msk.bf16.vlgmr.msra.gmra.mrb[0].mxu1 %vm322_vm4, %v27051_v44  ;;  %v10429_v44 = vrot.slane %v10427_v29, 5 }
 0x5e4   :  { %18040 = vmatprep.mubr.msk.bf16.mxu1 %vm322_vm4, %v27052_v32  ;;  %18053 = vmatpush3.bf16.msra.mxu1 %v19986_v30  ;;  %v24240_v32 = vld [vmem:[#allocation2 + $0x64] sm:$0x3] }
 0x5e5   :  { %19819 = vmatprep.subr.msk.bf16.mxu1 %vm347_vm0, %v19987_v39  ;;  %v10430_v30 = vor.u32 %v10429_v44, %v10426_v22  ;;  %v26484_v39 = vshll.u32 %v24240_v32, 16  ;;  %v15802_v22 = vrot.slane %v24166_v0, 9  ;;  %v24283_v44 = vrot.slane %v10424_v14, 5 }
 0x5e6   :  { %v15803_v0 = vrot.slane %v24168_v18, 9  ;;  %v24313_v14 = vsel %vm347_vm0, %v24280_v46, 0 }
 0x5e7   :  { %v10431_v35 = vrot.slane %v10430_v30, 4  ;;  %v10435_v21 = vrot.slane %v26484_v39, 5  ;;  %27058 = vst [vmem:[#allocation61_spill] sm:$0xff] %v24283_v44 }
 0x5e8   :  { %18055 = vmatpush3.bf16.msra.mxu1 %v10196_v4 }
 0x5e9   :  { %18072 = vmatprep.subr.bf16.mxu1 %v24173_v23  ;;  %v10436_v18 = vsel %vm20447_vm7, %v10431_v35, %v10435_v21  ;;  %v10762_v35 = vrot.slane %v24240_v32, 5 }
 0x5eb   :  { %18041 = vmatmul.mubr.msk.bf16.gmra.mrb[4].mxu1 %vm322_vm4, %v15734_v49  ;;  %v10443_v49 = vrot.slane %v10441_v16, 5 }
 0x5ec   :  { %18044 = vmatprep.mubr.msk.bf16.mxu1 %vm322_vm4, %v27053_v28  ;;  %v24245_v28 = vld [vmem:[%s26194_s7 + $0x14] ss:$0 sps:$4 sm:$0x33]  }
 0x5ed   :  { %v10444_v4 = vor.u32 %v10443_v49, %v10440_v63  ;;  %v24265_v33 = vsel %vm347_vm0, %v24245_v28, 0  ;;  %v24285_v63 = vrot.slane %v10427_v29, 6 }
 0x5ef   :  { %v10445_v10 = vrot.slane %v10444_v4, 4  ;;  %27059 = vst [vmem:[#allocation27_spill] sm:$0xff] %v24285_v63 }
 0x5f3   :  { %18045 = vmatmul.mubr.msk.bf16.gmra.mrb[8].mxu1 %vm322_vm4, %v27054_v8  ;;  %v10323_v8 = vrot.slane %v10321_v47, 5 }
 0x5f4   :  { %18048 = vmatprep.mubr.msk.bf16.mxu1 %vm322_vm4, %v27055_v50  ;;  %v24250_v50 = vld [vmem:[#allocation2 + $0x6c] sm:$0x3] }
 0x5f5   :  { %27056 = vst [vmem:[#allocation31_spill] sm:$0xff] %v24250_v50  ;;  %v10324_v40 = vsel %vm20447_vm7, %v10319_v61, %v10323_v8  ;;  %v10730_v61 = vrot.slane %v24221_v59, 5  ;;  %v24290_v8 = vrot.slane %v10438_v7, 5 }
 0x5f7   :  { %27060 = vst [vmem:[#allocation38_spill] sm:$0xff] %v24290_v8 }
 0x5fb   :  { %18049 = vmatmul.mubr.msk.bf16.gmra.mrb[12].mxu1 %vm322_vm4, %v15735_v26  ;;  %v10337_v26 = vrot.slane %v10335_v34, 5 }
 0x5fc   :  { %18056 = vmatprep.mubr.msk.bf16.mxu1 %vm322_vm4, %v15763_v52  ;;  %v26483_v52 = vshll.u32 %v24250_v50, 16 }
 0x5fd   :  { %v24271_v19 = vsel %vm20447_vm7, %v10333_v12, %v10337_v26  ;;  %v24292_v12 = vrot.slane %v10441_v16, 6  ;;  %v10734_v16 = vrot.slane %v24235_v54, 5 }
 0x5fe   :  { %27057 = vst [vmem:[#allocation40_spill] sm:$0xff] %v24271_v19  ;;  %v10449_v1 = vrot.slane %v26483_v52, 5  ;;  %v24297_v4 = vcombine.low %v10324_v40, %v24271_v19  ;;  %v24321_v52 = vsel %vm20735_vm11, %v15802_v22, %v10730_v61  ;;  %v15811_v61 = vrot.slane %v24211_v20, 9  ;;  %v27185_v17 = vld [vmem:[#allocation38_spill] sm:$0xff] }
 0x5ff   :  { %27061 = vst [vmem:[#allocation42_spill] sm:$0xff] %v24292_v12 }
 0x600   :  { %v24317_v36 = vsel %vm20447_vm7, %v10445_v10, %v10449_v1 }
 0x601   :  { %27062 = vst [vmem:[#allocation6_spill] sm:$0xff] %v24317_v36 }
 0x690   :  { %v24179_v56 = vpop.f32.mrb[16].mxu0 }
 0x691   :  { %v24181_v58 = vpop.f32.mrb[17].mxu0  ;;  %v18568_v49 = vadd.f32 %v24179_v56, %v24259_v43 }
 0x692   :  { %v24183_v48 = vpop.f32.mrb[18].mxu0  ;;  %v18570_v26 = vadd.f32 %v24259_v43, %v24181_v58 }
 0x693   :  { %v24185_v27 = vpop.f32.mrb[19].mxu0  ;;  %v18572_v56 = vadd.f32 %v24183_v48, %v24259_v43 }
 0x694   :  { %v18574_v58 = vadd.f32 %v24259_v43, %v24185_v27 }
 0x698   :  { %v24187_v42 = vpop.f32.mrb[20].mxu0 }
 0x699   :  { %v24189_v57 = vpop.f32.mrb[21].mxu0 }
 0x69a   :  { %v24191_v38 = vpop.f32.mrb[22].mxu0 }
 0x69b   :  { %v24193_v53 = vpop.f32.mrb[23].mxu0 }
 0x69c   :  { %v18582_v22 = vadd.f32 %v24259_v43, %v24193_v53 }
 0x6a0   :  { %v24195_v31 = vpop.f32.mrb[24].mxu0 }
 0x6a1   :  { %v24197_v62 = vpop.f32.mrb[25].mxu0 }
 0x6a2   :  { %v24201_v5 = vpop.f32.mrb[26].mxu0 }
 0x6a3   :  { %v24205_v51 = vpop.f32.mrb[27].mxu0 }
 0x6a8   :  { %v24227_v15 = vpop.f32.mrb[28].mxu0 }
 0x6a9   :  { %v24231_v41 = vpop.f32.mrb[29].mxu0 }
 0x6aa   :  { %v24233_v3 = vpop.f32.mrb[30].mxu0 }
 0x6ab   :  { %v24238_v11 = vpop.f32.mrb[31].mxu0 }
 0x6b6   :  { %v18038_v30 = vpop.f32.mrb[0].mxu1 }
 0x6b7   :  { %v18569_v29 = vadd.f32 %v18568_v49, %v18038_v30  ;;  %v9825_v7 = vpop.f32.mrb[1].mxu1 }
 0x6b8   :  { %v18571_v40 = vadd.f32 %v18570_v26, %v9825_v7  ;;  %v18039_v39 = vpop.f32.mrb[2].mxu1  ;;  %v15810_v7 = vrot.slane %v24217_v55, 9 }
 0x6b9   :  { %v9906_v48 = vmax.f32 %v18569_v29, 0.0  ;;  %v18573_v49 = vadd.f32 %v18572_v56, %v18039_v39  ;;  %v9828_v30 = vpop.f32.mrb[3].mxu1  ;;  %v24326_v29 = vcombine.low %v10436_v18, %v24317_v36  ;;  %v24330_v39 = vsel %vm20735_vm11, %v15803_v0, %v10734_v16 }
 0x6ba   :  { %v9904_v27 = vmax.f32 %v18571_v40, 0.0  ;;  %v18575_v26 = vadd.f32 %v18574_v58, %v9828_v30  ;;  %27063 = vst [vmem:[#allocation36_spill] sm:$0xff] %v24330_v39  ;;  %v18576_v56 = vadd.f32 %v24187_v42, %v24259_v43  ;;  %v18578_v18 = vadd.f32 %v24259_v43, %v24189_v57 }
 0x6bb   :  { %v16261_v21 = vpack.c.bf16 %v9906_v48, %v9906_v48  ;;  %v9907_v2 = vmax.f32 %v18573_v49, 0.0  ;;  %v10766_v48 = vrot.slane %v24250_v50, 5  ;;  %v24342_v30 = vsel %vm20735_vm11, %v15810_v7, %v10762_v35 }
 0x6bc   :  { %v16259_v1 = vpack.c.bf16 %v9904_v27, %v9904_v27  ;;  %v9905_v10 = vmax.f32 %v18575_v26, 0.0  ;;  %v18580_v27 = vadd.f32 %v24191_v38, %v24259_v43 }
 0x6bd   :  { %v9972_v58 = vrot.slane %v16261_v21, 7  ;;  %v16262_v40 = vpack.c.bf16 %v9907_v2, %v9907_v2 }
 0x6be   :  { %v9968_v49 = vrot.slane %v16259_v1, 7  ;;  %v16260_v0 = vpack.c.bf16 %v9905_v10, %v9905_v10  ;;  %v18042_v16 = vpop.f32.mrb[4].mxu1 }
 0x6bf   :  { %v9973_v26 = vrot.slane %v9972_v58, 4  ;;  %10036 = vst.msk [vmem:[#allocation2 + $0x20] sm:$0xe] %vm181_vm2, %v9972_v58  ;;  %v9974_v42 = vrot.slane %v16262_v40, 7  ;;  %v18577_v2 = vadd.f32 %v18576_v56, %v18042_v16  ;;  %v9841_v21 = vpop.f32.mrb[5].mxu1  ;;  %v24354_v56 = vsel %vm20735_vm11, %v15811_v61, %v10766_v48 }
 0x6c0   :  { %v9969_v57 = vrot.slane %v9968_v49, 4  ;;  %10032 = vst.msk [vmem:[#allocation2 + $0x10] sm:$0xe] %vm181_vm2, %v9968_v49  ;;  %v9970_v1 = vrot.slane %v16260_v0, 7  ;;  %v18579_v10 = vadd.f32 %v18578_v18, %v9841_v21  ;;  %v18043_v24 = vpop.f32.mrb[6].mxu1  ;;  %27064 = vst [vmem:[#allocation77_spill] sm:$0xff] %v24354_v56  ;;  %v18584_v0 = vadd.f32 %v24195_v31, %v24259_v43 }
 0x6c1   :  { %10037 = vst.msk [vmem:[#allocation2 + $0x24] sm:$0x1] %vm183_vm8, %v9973_v26  ;;  %v9975_v7 = vrot.slane %v9974_v42, 4  ;;  %v9910_v38 = vmax.f32 %v18577_v2, 0.0  ;;  %v18581_v35 = vadd.f32 %v18580_v27, %v18043_v24  ;;  %v9844_v58 = vpop.f32.mrb[7].mxu1  ;;  %v10973_v49 = vshrl.u32 %v24221_v59, 16 }
 0x6c2   :  { %10038 = vst.msk [vmem:[#allocation2 + $0x28] sm:$0xe] %vm181_vm2, %v9974_v42  ;;  %v9971_v53 = vrot.slane %v9970_v1, 4  ;;  %10034 = vst.msk [vmem:[#allocation2 + $0x18] sm:$0xe] %vm181_vm2, %v9970_v1  ;;  %v9908_v40 = vmax.f32 %v18579_v10, 0.0  ;;  %v18583_v18 = vadd.f32 %v18582_v22, %v9844_v58  ;;  %v18586_v61 = vadd.f32 %v24259_v43, %v24197_v62 }
 0x6c3   :  { %10033 = vst.msk [vmem:[#allocation2 + $0x14] sm:$0x1] %vm183_vm8, %v9969_v57  ;;  %10039 = vst.msk [vmem:[#allocation2 + $0x2c] sm:$0x1] %vm183_vm8, %v9975_v7  ;;  %v16265_v24 = vpack.c.bf16 %v9910_v38, %v9910_v38  ;;  %v9911_v16 = vmax.f32 %v18581_v35, 0.0  ;;  %v10983_v27 = vshrl.u32 %v24235_v54, 16  ;;  %v18588_v48 = vadd.f32 %v24201_v5, %v24259_v43 }
 0x6c4   :  { %10035 = vst.msk [vmem:[#allocation2 + $0x1c] sm:$0x1] %vm183_vm8, %v9971_v53  ;;  %v16263_v22 = vpack.c.bf16 %v9908_v40, %v9908_v40  ;;  %v9909_v26 = vmax.f32 %v18583_v18, 0.0  ;;  %v18590_v42 = vadd.f32 %v24259_v43, %v24205_v51  ;;  %v24372_v21 = vrot.slane %v10321_v47, 6 }
 0x6c5   :  { %v9980_v31 = vrot.slane %v16265_v24, 7  ;;  %v16266_v2 = vpack.c.bf16 %v9911_v16, %v9911_v16  ;;  %v24374_v62 = vrot.slane %v10973_v49, 5  ;;  %v24378_v5 = vrot.slane %v10335_v34, 6 }
 0x6c6   :  { %v9976_v57 = vrot.slane %v16263_v22, 7  ;;  %v16264_v1 = vpack.c.bf16 %v9909_v26, %v9909_v26  ;;  %v18046_v10 = vpop.f32.mrb[8].mxu1  ;;  %v24383_v59 = vrot.slane %v10983_v27, 5  ;;  %v18592_v47 = vadd.f32 %v24227_v15, %v24259_v43 }
 0x6c7   :  { %v9981_v7 = vrot.slane %v9980_v31, 4  ;;  %10044 = vst.msk [vmem:[#allocation2 + $0x40] sm:$0xe] %vm181_vm2, %v9980_v31  ;;  %v9982_v38 = vrot.slane %v16266_v2, 7  ;;  %v18585_v51 = vadd.f32 %v18584_v0, %v18046_v10  ;;  %v9857_v35 = vpop.f32.mrb[9].mxu1  ;;  %v18594_v49 = vadd.f32 %v24259_v43, %v24231_v41 }
 0x6c8   :  { %v24381_v58 = vld [vmem:[#allocation2 + $0x10] sm:$0xf]  ;;  %v9977_v53 = vrot.slane %v9976_v57, 4  ;;  %10040 = vst.msk [vmem:[#allocation2 + $0x30] sm:$0xe] %vm181_vm2, %v9976_v57  ;;  %v9978_v40 = vrot.slane %v16264_v1, 7  ;;  %v18587_v54 = vadd.f32 %v18586_v61, %v9857_v35  ;;  %v18596_v2 = vadd.f32 %v24233_v3, %v24259_v43 }
 0x6c9   :  { %27065 = vst [vmem:[#allocation62_spill] sm:$0xff] %v24381_v58  ;;  %v18047_v34 = vpop.f32.mrb[10].mxu1  ;;  %v24388_v18 = vld [vmem:[#allocation2 + $0x28] sm:$0xf]  ;;  %10045 = vst.msk [vmem:[#allocation2 + $0x44] sm:$0x1] %vm183_vm8, %v9981_v7 }
 0x6ca   :  { %27066 = vst [vmem:[#allocation58_spill] sm:$0xff] %v24388_v18  ;;  %v9983_v0 = vrot.slane %v9982_v38, 4  ;;  %10046 = vst.msk [vmem:[#allocation2 + $0x48] sm:$0xe] %vm181_vm2, %v9982_v38  ;;  %v9914_v24 = vmax.f32 %v18585_v51, 0.0  ;;  %v18589_v16 = vadd.f32 %v18588_v48, %v18047_v34  ;;  %v9860_v27 = vpop.f32.mrb[11].mxu1 }
 0x6cb   :  { %v24394_v15 = vld [vmem:[#allocation2 + $0x18] sm:$0xf]  ;;  %10041 = vst.msk [vmem:[#allocation2 + $0x34] sm:$0x1] %vm183_vm8, %v9977_v53  ;;  %v9979_v22 = vrot.slane %v9978_v40, 4  ;;  %v9912_v61 = vmax.f32 %v18587_v54, 0.0  ;;  %v18591_v26 = vadd.f32 %v18590_v42, %v9860_v27  ;;  %v18598_v42 = vadd.f32 %v24259_v43, %v24238_v11 }
 0x6cc   :  { %10042 = vst.msk [vmem:[#allocation2 + $0x38] sm:$0xe] %vm181_vm2, %v9978_v40  ;;  %v24400_v41 = vcombine.low %v24381_v58, %v24394_v15  ;;  %v24402_v31 = vld [vmem:[#allocation2 + $0x20] sm:$0xf]  ;;  %v16269_v48 = vpack.c.bf16 %v9914_v24, %v9914_v24  ;;  %v9915_v57 = vmax.f32 %v18589_v16, 0.0  ;;  %v26485_v3 = vshrl.u32 %v24394_v15, 16 }
 0x6cd   :  { %10047 = vst.msk [vmem:[#allocation2 + $0x4c] sm:$0x1] %vm183_vm8, %v9983_v0  ;;  %v24409_v1 = vcombine.low %v24402_v31, %v24388_v18  ;;  %10043 = vst.msk [vmem:[#allocation2 + $0x3c] sm:$0x1] %vm183_vm8, %v9979_v22  ;;  %v16267_v10 = vpack.c.bf16 %v9912_v61, %v9912_v61  ;;  %v9913_v7 = vmax.f32 %v18591_v26, 0.0  ;;  %v26494_v35 = vshrl.u32 %v24381_v58, 16 }
 0x6ce   :  { %27067 = vst [vmem:[#allocation85_spill] sm:$0xff] %v24400_v41  ;;  %18057 = vmatmul.mubr.msk.bf16.vlgmr.msra.gmra.mrb[16].mxu1 %vm322_vm4, %v24400_v41  ;;  %v9988_v38 = vrot.slane %v16269_v48, 7  ;;  %v16270_v51 = vpack.c.bf16 %v9915_v57, %v9915_v57  ;;  %v26486_v11 = vshll.u32 %v24394_v15, 16  ;;  %v18050_v40 = vpop.f32.mrb[12].mxu1  ;;  %v24427_v54 = vld [vmem:[%s26194_s7 + $0x18] sm:$0xff]   ;;  %v26492_v34 = vshrl.u32 %v24402_v31, 16 }
 0x6cf   :  { %27068 = vst [vmem:[#allocation83_spill] sm:$0xff] %v24409_v1  ;;  %18073 = vmatpush3.bf16.msra.mxu1 %v24173_v23  ;;  %18060 = vmatprep.mubr.msk.bf16.mxu1 %vm322_vm4, %v24409_v1  ;;  %v9984_v43 = vrot.slane %v16267_v10, 7  ;;  %v16268_v53 = vpack.c.bf16 %v9913_v7, %v9913_v7  ;;  %v26487_v23 = vshll.u32 %v24381_v58, 16  ;;  %v18593_v16 = vadd.f32 %v18592_v47, %v18050_v40  ;;  %v9873_v27 = vpop.f32.mrb[13].mxu1  ;;  %v24432_v22 = vld [vmem:[#allocation2 + $0x1c] sm:$0x3] }
 0x6d0   :  { %19820 = vmatprep.subr.msk.bf16.mxu1 %vm347_vm0, %v24245_v28  ;;  %v9989_v0 = vrot.slane %v9988_v38, 4  ;;  %10052 = vst.msk [vmem:[#allocation2 + $0x80] sm:$0xe] %vm181_vm2, %v9988_v38  ;;  %v9990_v24 = vrot.slane %v16270_v51, 7  ;;  %v10356_v28 = vrot.slane %v26485_v3, 4  ;;  %v18595_v48 = vadd.f32 %v18594_v49, %v9873_v27  ;;  %v18051_v57 = vpop.f32.mrb[14].mxu1 }
 0x6d1   :  { %v9985_v61 = vrot.slane %v9984_v43, 4  ;;  %10048 = vst.msk [vmem:[#allocation2 + $0x70] sm:$0xe] %vm181_vm2, %v9984_v43  ;;  %v9986_v26 = vrot.slane %v16268_v53, 7  ;;  %v24437_v10 = vld [vmem:[#allocation2 + $0x30] sm:$0xf]  ;;  %v18597_v51 = vadd.f32 %v18596_v2, %v18051_v57 }
 0x6d2   :  { %v10359_v7 = vrot.slane %v26486_v11, 5  ;;  %10053 = vst.msk [vmem:[#allocation2 + $0x84] sm:$0x1] %vm183_vm8, %v9989_v0  ;;  %v9991_v47 = vrot.slane %v9990_v24, 4  ;;  %v9918_v38 = vmax.f32 %v18593_v16, 0.0  ;;  %v9876_v40 = vpop.f32.mrb[15].mxu1 }
 0x6d3   :  { %10054 = vst.msk [vmem:[#allocation2 + $0x88] sm:$0xe] %vm181_vm2, %v9990_v24  ;;  %v24443_v3 = vld [vmem:[#allocation2 + $0x38] sm:$0xf]  ;;  %18075 = vmatpush3.bf16.msra.mxu1 %v24265_v33  ;;  %v24448_v49 = vrot.slane %v26494_v35, 4  ;;  %v9987_v43 = vrot.slane %v9986_v26, 4  ;;  %v18599_v0 = vadd.f32 %v18598_v42, %v9876_v40 }
 0x6d4   :  { %10049 = vst.msk [vmem:[#allocation2 + $0x74] sm:$0x1] %vm183_vm8, %v9985_v61  ;;  %v9916_v53 = vmax.f32 %v18595_v48, 0.0  ;;  %v24454_v24 = vcombine.low %v24437_v10, %v24443_v3  ;;  %18092 = vmatprep.subr.bf16.mxu1 %v24427_v54  ;;  %10055 = vst.msk [vmem:[#allocation2 + $0x8c] sm:$0x1] %vm183_vm8, %v9991_v47  ;;  %v16273_v33 = vpack.c.bf16 %v9918_v38, %v9918_v38  ;;  %v9919_v2 = vmax.f32 %v18597_v51, 0.0 }
 0x6d5   :  { %10050 = vst.msk [vmem:[#allocation2 + $0x78] sm:$0xe] %vm181_vm2, %v9986_v26  ;;  %v24460_v16 = vrot.slane %v26487_v23, 5  ;;  %v10360_v27 = vor.u32 %v10359_v7, %v10356_v28  ;;  %v24462_v61 = vld [vmem:[#allocation2 + $0x24] sm:$0x3]  ;;  %v9917_v26 = vmax.f32 %v18599_v0, 0.0  ;;  %v27070_v51 = vcombine.low %v24217_v55, %v24211_v20 }
 0x6d6   :  { %27069 = vst [vmem:[#allocation70_spill] sm:$0xff] %v24454_v24  ;;  %10051 = vst.msk [vmem:[#allocation2 + $0x7c] sm:$0x1] %vm183_vm8, %v9987_v43  ;;  %v16271_v42 = vpack.c.bf16 %v9916_v53, %v9916_v53  ;;  %18061 = vmatmul.mubr.msk.bf16.gmra.mrb[20].mxu1 %vm322_vm4, %v24454_v24  ;;  %v26493_v48 = vshll.u32 %v24432_v22, 16  ;;  %v10370_v57 = vrot.slane %v26492_v34, 4  ;;  %v9996_v47 = vrot.slane %v16273_v33, 7 }
 0x6d7   :  { %v16274_v38 = vpack.c.bf16 %v9919_v2, %v9919_v2  ;;  %18064 = vmatprep.mubr.msk.bf16.mxu1 %vm322_vm4, %v27070_v51  ;;  %v10361_v28 = vrot.slane %v10360_v27, 4  ;;  %v26488_v7 = vshll.u32 %v24402_v31, 16  ;;  %v16272_v43 = vpack.c.bf16 %v9917_v26, %v9917_v26  ;;  %v24487_v26 = vld [vmem:[#allocation2 + $0x14] sm:$0x3]  ;;  %v24546_v34 = vld [vmem:[#allocation2 + $0x2c] sm:$0x3] }
 0x6d8   :  { %v9992_v40 = vrot.slane %v16271_v42, 7  ;;  %v26489_v53 = vshll.u32 %v24462_v61, 16  ;;  %v27071_v0 = vor.u32 %v24209_v6, %v24207_v45  ;;  %v9997_v23 = vrot.slane %v9996_v47, 4  ;;  %10060 = vst.msk [vmem:[#allocation2 + $0xa0] sm:$0xe] %vm181_vm2, %v9996_v47  ;;  %27072 = vst [vmem:[#allocation69_spill] sm:$0xff] %v24487_v26 }
 0x6d9   :  { %v9998_v33 = vrot.slane %v16274_v38, 7  ;;  %v10365_v20 = vrot.slane %v26493_v48, 5  ;;  %v10373_v55 = vrot.slane %v26488_v7, 5  ;;  %v9994_v27 = vrot.slane %v16272_v43, 7  ;;  %v24494_v38 = vld [vmem:[#allocation2 + $0x70] sm:$0xf] }
 0x6da   :  { %v10972_v11 = vrot.slane %v27071_v0, 4  ;;  %v9993_v2 = vrot.slane %v9992_v40, 4  ;;  %10056 = vst.msk [vmem:[#allocation2 + $0x90] sm:$0xe] %vm181_vm2, %v9992_v40  ;;  %v24485_v42 = vld [vmem:[#allocation2 + $0x88] sm:$0xf]  ;;  %v10977_v6 = vor.u32 %v24372_v21, %v24374_v62  ;;  %v10346_v40 = vor.u32 %v24460_v16, %v24448_v49 }
 0x6db   :  { %v26490_v45 = vshrl.u32 %v24388_v18, 16  ;;  %10061 = vst.msk [vmem:[#allocation2 + $0xa4] sm:$0x1] %vm183_vm8, %v9997_v23  ;;  %v9999_v47 = vrot.slane %v9998_v33, 4  ;;  %v10366_v43 = vsel %vm20447_vm7, %v10361_v28, %v10365_v20  ;;  %v10374_v0 = vor.u32 %v10373_v55, %v10370_v57  ;;  %v24508_v62 = vld [vmem:[#allocation2 + $0x80] sm:$0xf] }
 0x6dc   :  { %10062 = vst.msk [vmem:[#allocation2 + $0xa8] sm:$0xe] %vm181_vm2, %v9998_v33  ;;  %v24496_v51 = vld [vmem:[#allocation2 + $0x78] sm:$0xf]  ;;  %v9995_v7 = vrot.slane %v9994_v27, 4  ;;  %v10379_v23 = vrot.slane %v26489_v53, 5  ;;  %v24516_v16 = vcombine.low %v24508_v62, %v24485_v42  ;;  %v27075_v53 = vor.u32 %v24215_v37, %v24213_v25 }
 0x6dd   :  { %10057 = vst.msk [vmem:[#allocation2 + $0x94] sm:$0x1] %vm183_vm8, %v9993_v2  ;;  %v24506_v21 = vcombine.low %v24494_v38, %v24496_v51  ;;  %v26491_v49 = vshll.u32 %v24388_v18, 16  ;;  %10063 = vst.msk [vmem:[#allocation2 + $0xac] sm:$0x1] %vm183_vm8, %v9999_v47  ;;  %v10375_v57 = vrot.slane %v10374_v0, 4 }
 0x6de   :  { %10058 = vst.msk [vmem:[#allocation2 + $0x98] sm:$0xe] %vm181_vm2, %v9994_v27  ;;  %27074 = vst [vmem:[#allocation56_spill] sm:$0xff] %v24516_v16  ;;  %v26496_v28 = vshrl.u32 %v24437_v10, 16  ;;  %v26497_v33 = vshll.u32 %v24437_v10, 16  ;;  %v10384_v55 = vrot.slane %v26490_v45, 4 }
 0x6df   :  { %27073 = vst [vmem:[#allocation51_spill] sm:$0xff] %v24506_v21  ;;  %v24523_v20 = vld [vmem:[%s26194_s7 + $0x2c] ss:$0 sps:$4 sm:$0x33]   ;;  %10059 = vst.msk [vmem:[#allocation2 + $0x9c] sm:$0x1] %vm183_vm8, %v9995_v7  ;;  %18065 = vmatmul.mubr.msk.bf16.gmra.mrb[24].mxu1 %vm322_vm4, %v24506_v21  ;;  %v24539_v7 = vsel %vm20447_vm7, %v10375_v57, %v10379_v23  ;;  %v24557_v23 = vsel %vm20931_vm14, %v10972_v11, %v10977_v6 }
 0x6e0   :  { %v10387_v2 = vrot.slane %v26491_v49, 5  ;;  %v26495_v27 = vshrl.u32 %v24443_v3, 16  ;;  %v26500_v47 = vshll.u32 %v24443_v3, 16  ;;  %18068 = vmatprep.mubr.msk.bf16.mxu1 %vm322_vm4, %v24516_v16  ;;  %v10982_v45 = vrot.slane %v27075_v53, 4  ;;  %v24559_v37 = vld [vmem:[#allocation2 + $0x34] sm:$0x3] }
 0x6e1   :  { %v10987_v49 = vor.u32 %v24378_v5, %v24383_v59  ;;  %v24549_v48 = vcombine.low %v10366_v43, %v24539_v7  ;;  %v10347_v25 = vrot.slane %v10346_v40, 4  ;;  %v10398_v5 = vrot.slane %v26496_v28, 4  ;;  %v24575_v40 = vld [vmem:[#allocation2 + $0x90] sm:$0xf]  ;;  %v24657_v8 = vld [vmem:[#allocation2 + $0x8c] sm:$0x3] }
 0x6e2   :  { %v10412_v35 = vrot.slane %v26495_v27, 4  ;;  %v10401_v59 = vrot.slane %v26497_v33, 5  ;;  %v10415_v53 = vrot.slane %v26500_v47, 5  ;;  %v10388_v57 = vor.u32 %v10387_v2, %v10384_v55  ;;  %v24567_v27 = vld [vmem:[#allocation2 + $0x3c] sm:$0x3] }
 0x6e3   :  { %27076 = vst [vmem:[#allocation57_spill] sm:$0xff] %v24549_v48  ;;  %v24573_v6 = vsel %vm347_vm0, %v24523_v20, 0  ;;  %v27077_v33 = vshll.u32 %v24487_v26, 16  ;;  %v24584_v2 = vsel %vm20931_vm14, %v10982_v45, %v10987_v49  ;;  %v24599_v45 = vld [vmem:[#allocation2 + $0x74] sm:$0x3]  ;;  %v27081_v47 = vshrl.u32 %v24494_v38, 16 }
 0x6e4   :  { %v10416_v55 = vor.u32 %v10415_v53, %v10412_v35  ;;  %27078 = vst [vmem:[#allocation52_spill] sm:$0xff] %v24584_v2  ;;  %v10402_v35 = vor.u32 %v10401_v59, %v10398_v5  ;;  %v10389_v0 = vrot.slane %v10388_v57, 4  ;;  %v27082_v24 = vshll.u32 %v24494_v38, 16  ;;  %v24616_v53 = vld [vmem:[#allocation2 + $0x7c] sm:$0x3] }
 0x6e5   :  { %v24577_v28 = vld [vmem:[#allocation2 + $0x98] sm:$0xf]  ;;  %v10351_v16 = vrot.slane %v27077_v33, 5  ;;  %v10454_v21 = vrot.slane %v27081_v47, 4  ;;  %v27084_v5 = vshll.u32 %v24546_v34, 16  ;;  %v27085_v47 = vshll.u32 %v24559_v37, 16 }
 0x6e6   :  { %v24588_v11 = vcombine.low %v24575_v40, %v24577_v28  ;;  %v10457_v1 = vrot.slane %v27082_v24, 5  ;;  %v10417_v49 = vrot.slane %v10416_v55, 4  ;;  %v10403_v41 = vrot.slane %v10402_v35, 4 }
 0x6e7   :  { %v24596_v33 = vsel %vm20447_vm7, %v10347_v25, %v10351_v16  ;;  %v10393_v59 = vrot.slane %v27084_v5, 5  ;;  %v27087_v5 = vshrl.u32 %v24496_v51, 16  ;;  %v27088_v48 = vshll.u32 %v24496_v51, 16 }
 0x6e8   :  { %27079 = vst [vmem:[#allocation45_spill] sm:$0xff] %v24588_v11  ;;  %27080 = vst [vmem:[#allocation17_spill] sm:$0xff] %v24596_v33  ;;  %18069 = vmatmul.mubr.msk.bf16.gmra.mrb[28].mxu1 %vm322_vm4, %v24588_v11  ;;  %v24612_v25 = vcombine.low %v24596_v33, %v10366_v43  ;;  %v10407_v11 = vrot.slane %v27085_v47, 5  ;;  %v27086_v43 = vshll.u32 %v24567_v27, 16  ;;  %v10458_v47 = vor.u32 %v10457_v1, %v10454_v21 }
 0x6e9   :  { %18076 = vmatprep.mubr.msk.bf16.mxu1 %vm322_vm4, %v24297_v4  ;;  %v10468_v55 = vrot.slane %v27087_v5, 4  ;;  %v10471_v19 = vrot.slane %v27088_v48, 5  ;;  %v24632_v57 = vsel %vm20447_vm7, %v10389_v0, %v10393_v59  ;;  %v26515_v16 = vshll.u32 %v24485_v42, 16 }
 0x6ea   :  { %27083 = vst [vmem:[#allocation19_spill] sm:$0xff] %v24612_v25  ;;  %v10421_v36 = vrot.slane %v27086_v43, 5  ;;  %27089 = vst [vmem:[#allocation20_spill] sm:$0xff] %v24632_v57  ;;  %v24640_v43 = vld [vmem:[#allocation2 + $0x84] sm:$0x3]  ;;  %v27091_v5 = vshrl.u32 %v24485_v42, 16 }
 0x6eb   :  { %v26516_v48 = vshrl.u32 %v24575_v40, 16  ;;  %v27092_v0 = vshrl.u32 %v24508_v62, 16  ;;  %v27093_v21 = vshll.u32 %v24508_v62, 16  ;;  %v10499_v24 = vrot.slane %v26515_v16, 5  ;;  %v24682_v16 = vld [vmem:[#allocation2 + $0x94] sm:$0x3] }
 0x6ec   :  { %v24638_v35 = vsel %vm20447_vm7, %v10417_v49, %v10421_v36  ;;  %v10496_v4 = vrot.slane %v27091_v5, 4  ;;  %v26518_v36 = vshrl.u32 %v24577_v28, 16  ;;  %v24655_v49 = vcombine.low %v24539_v7, %v24632_v57 }
 0x6ed   :  { %27090 = vst [vmem:[#allocation13_spill] sm:$0xff] %v24638_v35  ;;  %v10482_v1 = vrot.slane %v27092_v0, 4  ;;  %v10485_v59 = vrot.slane %v27093_v21, 5  ;;  %v10472_v5 = vor.u32 %v10471_v19, %v10468_v55  ;;  %v10510_v33 = vrot.slane %v26516_v48, 4 }
 0x6ee   :  { %27094 = vst [vmem:[#allocation41_spill] sm:$0xff] %v24655_v49  ;;  %v27095_v0 = vshll.u32 %v24575_v40, 16  ;;  %v24667_v21 = vsel %vm20447_vm7, %v10403_v41, %v10407_v11  ;;  %v10524_v19 = vrot.slane %v26518_v36, 4  ;;  %v27098_v41 = vshll.u32 %v24599_v45, 16 }
 0x6ef   :  { %27096 = vst [vmem:[#allocation47_spill] sm:$0xff] %v24667_v21  ;;  %v24678_v55 = vcombine.low %v24667_v21, %v24638_v35  ;;  %v10500_v48 = vor.u32 %v10499_v24, %v10496_v4  ;;  %v10486_v7 = vor.u32 %v10485_v59, %v10482_v1  ;;  %v27100_v35 = vshll.u32 %v24577_v28, 16  ;;  %v24696_v24 = vld [vmem:[%s26194_s7 + $0x24] sm:$0xff]  }
 0x6f0   :  { %v10513_v12 = vrot.slane %v27095_v0, 5  ;;  %18077 = vmatmul.mubr.msk.bf16.vlgmr.msra.gmra.mrb[16].mxu1 %vm322_vm4, %v24612_v25  ;;  %v10459_v0 = vrot.slane %v10458_v47, 4  ;;  %v10463_v11 = vrot.slane %v27098_v41, 5  ;;  %v24684_v25 = vld [vmem:[#allocation2 + $0x9c] sm:$0x3]  ;;  %v10473_v4 = vrot.slane %v10472_v5, 4 }
 0x6f1   :  { %18093 = vmatpush3.bf16.msra.mxu1 %v24427_v54  ;;  %18080 = vmatprep.mubr.msk.bf16.mxu1 %vm322_vm4, %v24655_v49  ;;  %27097 = vst [vmem:[#allocation23_spill] sm:$0xff] %v24678_v55  ;;  %v27099_v54 = vshll.u32 %v24616_v53, 16  ;;  %v10527_v47 = vrot.slane %v27100_v35, 5  ;;  %v15805_v57 = vrot.slane %v24394_v15, 9  ;;  %v27101_v21 = vshll.u32 %v24640_v43, 16 }
 0x6f2   :  { %19821 = vmatprep.subr.msk.bf16.mxu1 %vm347_vm0, %v24280_v46  ;;  %v10514_v41 = vor.u32 %v10513_v12, %v10510_v33  ;;  %v10742_v46 = vrot.slane %v24432_v22, 5  ;;  %v26528_v1 = vshll.u32 %v24682_v16, 16  ;;  %v26527_v49 = vshll.u32 %v24684_v25, 16 }
 0x6f3   :  { %v10477_v36 = vrot.slane %v27099_v54, 5  ;;  %v10491_v54 = vrot.slane %v27101_v21, 5  ;;  %v10528_v59 = vor.u32 %v10527_v47, %v10524_v19  ;;  %v10501_v35 = vrot.slane %v10500_v48, 4 }
 0x6f4   :  { %v10743_v44 = vsel %vm20735_vm11, %v15805_v57, %v10742_v46  ;;  %v15806_v12 = vrot.slane %v24402_v31, 9  ;;  %v10746_v33 = vrot.slane %v24462_v61, 5  ;;  %v10487_v5 = vrot.slane %v10486_v7, 4 }
 0x6f5   :  { %18095 = vmatpush3.bf16.msra.mxu1 %v24313_v14  ;;  %v27102_v63 = vshll.u32 %v24657_v8, 16  ;;  %v10529_v21 = vrot.slane %v10528_v59, 4  ;;  %v10750_v19 = vrot.slane %v24546_v34, 5  ;;  %v24715_v14 = vsel %vm20447_vm7, %v10473_v4, %v10477_v36 }
 0x6f6   :  { %18112 = vmatprep.subr.bf16.mxu1 %v24696_v24  ;;  %v10515_v48 = vrot.slane %v10514_v41, 4  ;;  %v10738_v57 = vrot.slane %v24487_v26, 5  ;;  %v10747_v47 = vsel %vm20735_vm11, %v15806_v12, %v10746_v33  ;;  %v15807_v7 = vrot.slane %v24388_v18, 9  ;;  %v27212_v60 = vld [vmem:[#allocation47_spill] sm:$0xff] }
 0x6f7   :  { %v10505_v50 = vrot.slane %v27102_v63, 5  ;;  %v10533_v63 = vrot.slane %v26527_v49, 5  ;;  %v24725_v46 = vcombine.low %v10743_v44, %v10747_v47  ;;  %v10758_v59 = vrot.slane %v24567_v27, 5 }
 0x6f8   :  { %18081 = vmatmul.mubr.msk.bf16.gmra.mrb[20].mxu1 %vm322_vm4, %v24678_v55  ;;  %v24732_v36 = vsel %vm20447_vm7, %v10459_v0, %v10463_v11  ;;  %v15804_v41 = vrot.slane %v24381_v58, 9  ;;  %v10754_v12 = vrot.slane %v24559_v37, 5  ;;  %v10519_v33 = vrot.slane %v26528_v1, 5 }
 0x6f9   :  { %27103 = vst [vmem:[#allocation39_spill] sm:$0xff] %v24725_v46  ;;  %18084 = vmatprep.mubr.msk.bf16.mxu1 %vm322_vm4, %v24326_v29  ;;  %27104 = vst [vmem:[#allocation44_spill] sm:$0xff] %v24732_v36  ;;  %v24736_v4 = vsel %vm20447_vm7, %v10501_v35, %v10505_v50  ;;  %v24744_v49 = vsel %vm20447_vm7, %v10529_v21, %v10533_v63  ;;  %v24748_v29 = vsel %vm20735_vm11, %v15807_v7, %v10750_v19 }
 0x6fa   :  { %27105 = vst [vmem:[#allocation64_spill] sm:$0xff] %v24736_v4  ;;  %27106 = vst [vmem:[#allocation60_spill] sm:$0xff] %v24744_v49  ;;  %v15809_v0 = vrot.slane %v24443_v3, 9  ;;  %v24753_v50 = vcombine.low %v24732_v36, %v24715_v14  ;;  %v24757_v11 = vsel %vm20447_vm7, %v10487_v5, %v10491_v54  ;;  %v24761_v35 = vsel %vm20735_vm11, %v15804_v41, %v10738_v57 }
 0x6fb   :  { %27107 = vst [vmem:[#allocation72_spill] sm:$0xff] %v24748_v29  ;;  %27109 = vst [vmem:[#allocation67_spill] sm:$0xff] %v24761_v35  ;;  %v15808_v21 = vrot.slane %v24437_v10, 9  ;;  %v24766_v19 = vcombine.low %v24757_v11, %v24736_v4  ;;  %v24770_v63 = vsel %vm20447_vm7, %v10515_v48, %v10519_v33  ;;  %v24773_v7 = vcombine.low %v24761_v35, %v10743_v44 }
 0x6fc   :  { %27108 = vst [vmem:[#allocation66_spill] sm:$0xff] %v24753_v50  ;;  %v24777_v54 = vsel %vm20735_vm11, %v15809_v0, %v10758_v59  ;;  %v24781_v5 = vcombine.low %v24770_v63, %v24744_v49  ;;  %v24784_v57 = vcombine.low %v10747_v47, %v24748_v29  ;;  %v27116_v59 = vshrl.u32 %v24381_v58, 16 }
 0x6fd   :  { %27110 = vst [vmem:[#allocation78_spill] sm:$0xff] %v24766_v19  ;;  %27111 = vst [vmem:[#allocation50_spill] sm:$0xff] %v24773_v7  ;;  %v24788_v41 = vsel %vm20735_vm11, %v15808_v21, %v10754_v12  ;;  %v27117_v1 = vshll.u32 %v24381_v58, 16  ;;  %v10993_v12 = vshrl.u32 %v24487_v26, 16  ;;  %v27119_v21 = vshll.u32 %v24487_v26, 16 }
 0x6fe   :  { %27112 = vst [vmem:[#allocation73_spill] sm:$0xff] %v24777_v54  ;;  %27113 = vst [vmem:[#allocation81_spill] sm:$0xff] %v24781_v5  ;;  %v10989_v0 = vrot.slane %v27116_v59, 5  ;;  %v24799_v47 = vcombine.low %v24788_v41, %v24777_v54  ;;  %v27120_v33 = vshrl.u32 %v24394_v15, 16  ;;  %v27121_v35 = vshll.u32 %v24394_v15, 16 }
 0x6ff   :  { %27114 = vst [vmem:[#allocation76_spill] sm:$0xff] %v24784_v57  ;;  %27115 = vst [vmem:[#allocation35_spill] sm:$0xff] %v24788_v41  ;;  %v10990_v55 = vrot.slane %v27117_v1, 6  ;;  %v10996_v48 = vrot.slane %v27119_v21, 6  ;;  %v10995_v49 = vrot.slane %v10993_v12, 5  ;;  %v11003_v21 = vshrl.u32 %v24432_v22, 16 }
 0x700   :  { %27118 = vst [vmem:[#allocation29_spill] sm:$0xff] %v24799_v47  ;;  %18085 = vmatmul.mubr.msk.bf16.gmra.mrb[24].mxu1 %vm322_vm4, %v24753_v50  ;;  %v10999_v1 = vrot.slane %v27120_v33, 5  ;;  %v11000_v54 = vrot.slane %v27121_v35, 6  ;;  %v27122_v36 = vshll.u32 %v24432_v22, 16  ;;  %v27124_v33 = vshll.u32 %v24402_v31, 16 }
 0x701   :  { %v10991_v59 = vor.u32 %v10990_v55, %v10989_v0  ;;  %18088 = vmatprep.mubr.msk.bf16.mxu1 %vm322_vm4, %v24766_v19  ;;  %v27123_v55 = vshrl.u32 %v24402_v31, 16  ;;  %v10997_v35 = vor.u32 %v10996_v48, %v10995_v49  ;;  %v11005_v26 = vrot.slane %v11003_v21, 5 }
 0x702   :  { %v11006_v50 = vrot.slane %v27122_v36, 6  ;;  %v11001_v44 = vor.u32 %v11000_v54, %v10999_v1  ;;  %v11010_v58 = vrot.slane %v27124_v33, 6  ;;  %v11013_v19 = vshrl.u32 %v24462_v61, 16 }
 0x703   :  { %v10992_v9 = vrot.slane %v10991_v59, 4  ;;  %v11009_v0 = vrot.slane %v27123_v55, 5  ;;  %v27125_v46 = vshll.u32 %v24462_v61, 16  ;;  %v27126_v4 = vshrl.u32 %v24388_v18, 16 }
 0x704   :  { %v11002_v29 = vrot.slane %v11001_v44, 4  ;;  %v27127_v54 = vshll.u32 %v24388_v18, 16  ;;  %v11007_v55 = vor.u32 %v11006_v50, %v11005_v26  ;;  %v11015_v49 = vrot.slane %v11013_v19, 5 }
 0x705   :  { %v11016_v12 = vrot.slane %v27125_v46, 6  ;;  %v11011_v41 = vor.u32 %v11010_v58, %v11009_v0  ;;  %v11019_v36 = vrot.slane %v27126_v4, 5  ;;  %v24831_v1 = vsel %vm20931_vm14, %v10992_v9, %v10997_v35 }
 0x706   :  { %v11020_v59 = vrot.slane %v27127_v54, 6  ;;  %27128 = vst [vmem:[#allocation33_spill] sm:$0xff] %v24831_v1  ;;  %v11023_v48 = vshrl.u32 %v24546_v34, 16  ;;  %v27129_v46 = vshll.u32 %v24546_v34, 16  ;;  %v27130_v58 = vshrl.u32 %v24437_v10, 16 }
 0x707   :  { %v11012_v21 = vrot.slane %v11011_v41, 4  ;;  %v11008_v4 = vsel %vm20931_vm14, %v11002_v29, %v11007_v55  ;;  %v11017_v54 = vor.u32 %v11016_v12, %v11015_v49  ;;  %v27131_v9 = vshll.u32 %v24437_v10, 16 }
 0x708   :  { %v11021_v33 = vor.u32 %v11020_v59, %v11019_v36  ;;  %v11026_v44 = vrot.slane %v27129_v46, 6  ;;  %v11029_v0 = vrot.slane %v27130_v58, 5  ;;  %v11025_v18 = vrot.slane %v11023_v48, 5  ;;  %18089 = vmatmul.mubr.msk.bf16.gmra.mrb[28].mxu1 %vm322_vm4, %v24781_v5 }
 0x709   :  { %v11030_v35 = vrot.slane %v27131_v9, 6  ;;  %v24845_v26 = vcombine.low %v24831_v1, %v11008_v4  ;;  %v11033_v19 = vshrl.u32 %v24559_v37, 16  ;;  %v27133_v41 = vshll.u32 %v24559_v37, 16 }
 0x70a   :  { %v11022_v50 = vrot.slane %v11021_v33, 4  ;;  %v27134_v29 = vcombine.low %v24321_v52, %v24330_v39  ;;  %v11018_v12 = vsel %vm20931_vm14, %v11012_v21, %v11017_v54  ;;  %v11027_v59 = vor.u32 %v11026_v44, %v11025_v18 }
 0x70b   :  { %27132 = vst [vmem:[#allocation84_spill] sm:$0xff] %v24845_v26  ;;  %v11036_v36 = vrot.slane %v27133_v41, 6  ;;  %v11031_v55 = vor.u32 %v11030_v35, %v11029_v0  ;;  %v27135_v49 = vshrl.u32 %v24443_v3, 16  ;;  %v24858_v46 = vcombine.low %v11008_v4, %v11018_v12 }
 0x70c   :  { %18096 = vmatprep.mubr.msk.bf16.mxu1 %vm322_vm4, %v27134_v29  ;;  %v11035_v33 = vrot.slane %v11033_v19, 5  ;;  %v27137_v58 = vshll.u32 %v24443_v3, 16  ;;  %v11043_v41 = vshrl.u32 %v24567_v27, 16  ;;  %v24865_v52 = vsel %vm20931_vm14, %v11022_v50, %v11027_v59 }
 0x70d   :  { %v11039_v48 = vrot.slane %v27135_v49, 5  ;;  %27136 = vst [vmem:[#allocation8_spill] sm:$0xff] %v24858_v46  ;;  %v11032_v29 = vrot.slane %v11031_v55, 4  ;;  %v27138_v21 = vshll.u32 %v24567_v27, 16  ;;  %v27139_v44 = vshrl.u32 %v24494_v38, 16 }
 0x70e   :  { %v11040_v9 = vrot.slane %v27137_v58, 6  ;;  %v24872_v4 = vcombine.low %v11018_v12, %v24865_v52  ;;  %v11037_v54 = vor.u32 %v11036_v36, %v11035_v33  ;;  %v11045_v19 = vrot.slane %v11043_v41, 5 }
 0x70f   :  { %v11046_v18 = vrot.slane %v27138_v21, 6  ;;  %v11069_v0 = vrot.slane %v27139_v44, 5  ;;  %v27141_v49 = vshll.u32 %v24494_v38, 16  ;;  %v11073_v5 = vshrl.u32 %v24599_v45, 16 }
 0x710   :  { %27140 = vst [vmem:[#allocation46_spill] sm:$0xff] %v24872_v4  ;;  %v11041_v35 = vor.u32 %v11040_v9, %v11039_v48  ;;  %v27142_v50 = vshll.u32 %v24599_v45, 16  ;;  %v27143_v55 = vshrl.u32 %v24496_v51, 16  ;;  %v24883_v44 = vsel %vm20931_vm14, %v11032_v29, %v11037_v54  ;;  %18097 = vmatmul.mubr.msk.bf16.vlgmr.msra.gmra.mrb[16].mxu1 %vm322_vm4, %v24773_v7 }
 0x711   :  { %v11070_v58 = vrot.slane %v27141_v49, 6  ;;  %v11047_v46 = vor.u32 %v11046_v18, %v11045_v19  ;;  %v27144_v36 = vshll.u32 %v24496_v51, 16  ;;  %v11075_v9 = vrot.slane %v11073_v5, 5  ;;  %18113 = vmatpush3.bf16.msra.mxu1 %v24696_v24  ;;  %18100 = vmatprep.mubr.msk.bf16.mxu1 %vm322_vm4, %v24784_v57 }
 0x712   :  { %v11076_v59 = vrot.slane %v27142_v50, 6  ;;  %v11079_v21 = vrot.slane %v27143_v55, 5  ;;  %v11042_v12 = vrot.slane %v11041_v35, 4  ;;  %v11083_v41 = vshrl.u32 %v24616_v53, 16  ;;  %19822 = vmatprep.subr.msk.bf16.mxu1 %vm347_vm0, %v24523_v20  ;;  %v24912_v55 = vld [vmem:[%s26194_s7 + $0x30] sm:$0xff]  }
 0x713   :  { %v11080_v48 = vrot.slane %v27144_v36, 6  ;;  %v11071_v33 = vor.u32 %v11070_v58, %v11069_v0  ;;  %v27145_v49 = vshll.u32 %v24616_v53, 16  ;;  %v27146_v18 = vshrl.u32 %v24508_v62, 16 }
 0x714   :  { %v24894_v50 = vsel %vm20931_vm14, %v11042_v12, %v11047_v46  ;;  %v27147_v35 = vshll.u32 %v24508_v62, 16  ;;  %v11077_v58 = vor.u32 %v11076_v59, %v11075_v9  ;;  %v11085_v46 = vrot.slane %v11083_v41, 5 }
 0x715   :  { %v11086_v1 = vrot.slane %v27145_v49, 6  ;;  %v11081_v29 = vor.u32 %v11080_v48, %v11079_v21  ;;  %v11089_v54 = vrot.slane %v27146_v18, 5  ;;  %v24905_v5 = vcombine.low %v24883_v44, %v24894_v50  ;;  %18115 = vmatpush3.bf16.msra.mxu1 %v24573_v6 }
 0x716   :  { %v11090_v0 = vrot.slane %v27147_v35, 6  ;;  %v11072_v19 = vrot.slane %v11071_v33, 4  ;;  %v11093_v12 = vshrl.u32 %v24640_v43, 16  ;;  %v27149_v36 = vshll.u32 %v24640_v43, 16  ;;  %18132 = vmatprep.subr.bf16.mxu1 %v24912_v55 }
 0x717   :  { %27148 = vst [vmem:[#allocation59_spill] sm:$0xff] %v24905_v5  ;;  %v11082_v21 = vrot.slane %v11081_v29, 4  ;;  %v11087_v59 = vor.u32 %v11086_v1, %v11085_v46  ;;  %v27151_v9 = vshrl.u32 %v24485_v42, 16  ;;  %v27152_v41 = vshll.u32 %v24485_v42, 16 }
 0x718   :  { %v11091_v24 = vor.u32 %v11090_v0, %v11089_v54  ;;  %v11096_v48 = vrot.slane %v27149_v36, 6  ;;  %v24919_v33 = vsel %vm20931_vm14, %v11072_v19, %v11077_v58  ;;  %v11095_v35 = vrot.slane %v11093_v12, 5  ;;  %18101 = vmatmul.mubr.msk.bf16.gmra.mrb[20].mxu1 %vm322_vm4, %v24799_v47 }
 0x719   :  { %27150 = vst [vmem:[#allocation25_spill] sm:$0xff] %v24919_v33  ;;  %v11099_v20 = vrot.slane %v27151_v9, 5  ;;  %v11100_v49 = vrot.slane %v27152_v41, 6  ;;  %v11103_v29 = vshrl.u32 %v24657_v8, 16  ;;  %v27153_v54 = vshll.u32 %v24657_v8, 16 }
 0x71a   :  { %v11092_v18 = vrot.slane %v11091_v24, 4  ;;  %v24931_v19 = vsel %vm20931_vm14, %v11082_v21, %v11087_v59  ;;  %v27154_v58 = vshrl.u32 %v24575_v40, 16  ;;  %v27155_v36 = vshll.u32 %v24575_v40, 16 }
 0x71b   :  { %v11106_v0 = vrot.slane %v27153_v54, 6  ;;  %v11101_v1 = vor.u32 %v11100_v49, %v11099_v20  ;;  %v24940_v24 = vcombine.low %v24919_v33, %v24931_v19  ;;  %v11097_v12 = vor.u32 %v11096_v48, %v11095_v35 }
 0x71c   :  { %v11109_v46 = vrot.slane %v27154_v58, 5  ;;  %v11110_v9 = vrot.slane %v27155_v36, 6  ;;  %v11105_v41 = vrot.slane %v11103_v29, 5  ;;  %v11113_v6 = vshrl.u32 %v24682_v16, 16 }
 0x71d   :  { %27156 = vst [vmem:[#allocation43_spill] sm:$0xff] %v24940_v24  ;;  %v11102_v54 = vrot.slane %v11101_v1, 4  ;;  %v27157_v59 = vshll.u32 %v24682_v16, 16  ;;  %v27158_v49 = vshrl.u32 %v24577_v28, 16  ;;  %v15815_v36 = vrot.slane %v24485_v42, 9 }
 0x71e   :  { %v11111_v21 = vor.u32 %v11110_v9, %v11109_v46  ;;  %v11107_v57 = vor.u32 %v11106_v0, %v11105_v41  ;;  %v11115_v7 = vrot.slane %v11113_v6, 5  ;;  %v27159_v48 = vshll.u32 %v24577_v28, 16 }
 0x71f   :  { %v11116_v20 = vrot.slane %v27157_v59, 6  ;;  %v11119_v58 = vrot.slane %v27158_v49, 5  ;;  %v27160_v29 = vcombine.low %v24342_v30, %v24354_v56  ;;  %v27161_v1 = vrot.slane %v24616_v53, 5 }
 0x720   :  { %v11120_v35 = vrot.slane %v27159_v48, 6  ;;  %v27162_v46 = vrot.slane %v24496_v51, 9  ;;  %v10778_v59 = vrot.slane %v24640_v43, 5  ;;  %v11123_v0 = vshrl.u32 %v24684_v25, 16 }
 0x721   :  { %18104 = vmatprep.mubr.msk.bf16.mxu1 %vm322_vm4, %v27160_v29  ;;  %v27163_v41 = vshll.u32 %v24684_v25, 16  ;;  %v27164_v49 = vrot.slane %v24657_v8, 5  ;;  %v24976_v48 = vsel %vm20931_vm14, %v11092_v18, %v11097_v12  ;;  %v24980_v29 = vsel %vm20931_vm14, %v11102_v54, %v11107_v57 }
 0x722   :  { %v24962_v9 = vsel %vm20735_vm11, %v27162_v46, %v27161_v1  ;;  %v11121_v1 = vor.u32 %v11120_v35, %v11119_v58  ;;  %v24984_v46 = vcombine.low %v24976_v48, %v24980_v29  ;;  %v11117_v47 = vor.u32 %v11116_v20, %v11115_v7 }
 0x723   :  { %v11126_v6 = vrot.slane %v27163_v41, 6  ;;  %v24972_v30 = vsel %vm20735_vm11, %v15815_v36, %v27164_v49  ;;  %v11112_v41 = vrot.slane %v11111_v21, 4  ;;  %v11125_v33 = vrot.slane %v11123_v0, 5 }
 0x724   :  { %27165 = vst [vmem:[#allocation75_spill] sm:$0xff] %v24984_v46  ;;  %v27166_v56 = vrot.slane %v24599_v45, 5  ;;  %v27167_v36 = vrot.slane %v24494_v38, 9  ;;  %v11122_v12 = vrot.slane %v11121_v1, 4  ;;  %v15863_v57 = vrot.slane %v24394_v15, 10 }
 0x725   :  { %v11320_v54 = vrot.slane %v24432_v22, 6  ;;  %v27169_v58 = vrot.slane %v24508_v62, 9  ;;  %v11127_v7 = vor.u32 %v11126_v6, %v11125_v33  ;;  %v15864_v20 = vrot.slane %v24402_v31, 10 }
 0x726   :  { %v24992_v18 = vsel %vm20735_vm11, %v27167_v36, %v27166_v56  ;;  %v11324_v35 = vrot.slane %v24462_v61, 6  ;;  %v10790_v22 = vrot.slane %v24684_v25, 5  ;;  %v25019_v33 = vsel %vm20931_vm14, %v11112_v41, %v11117_v47  ;;  %v25044_v41 = vld [vmem:[#allocation2 + $0x6c] sm:$0x3] }
 0x727   :  { %27168 = vst [vmem:[#allocation16_spill] sm:$0xff] %v24992_v18  ;;  %v25000_v21 = vsel %vm20735_vm11, %v27169_v58, %v10778_v59  ;;  %v25006_v56 = vcombine.low %v24992_v18, %v24962_v9  ;;  %v25015_v0 = vsel %vm21155_vm1, %v15863_v57, %v11320_v54  ;;  %v25023_v31 = vsel %vm20931_vm14, %v11122_v12, %v11127_v7  ;;  %v27184_v18 = vld [vmem:[#allocation42_spill] sm:$0xff] }
 0x728   :  { %v25010_v15 = vcombine.low %v25000_v21, %v24972_v30  ;;  %v25027_v61 = vsel %vm21155_vm1, %v15864_v20, %v11324_v35  ;;  %v11332_v59 = vrot.slane %v24559_v37, 6  ;;  %v10786_v6 = vrot.slane %v24682_v16, 5 }
 0x729   :  { %27170 = vst [vmem:[#allocation18_spill] sm:$0xff] %v25006_v56  ;;  %18105 = vmatmul.mubr.msk.bf16.gmra.mrb[24].mxu1 %vm322_vm4, %v25006_v56  ;;  %v15817_v49 = vrot.slane %v24577_v28, 9  ;;  %v25036_v47 = vcombine.low %v25019_v33, %v25023_v31  ;;  %v25040_v1 = vcombine.low %v25015_v0, %v25027_v61  ;;  %v11063_v37 = vshrl.u32 %v25044_v41, 16  ;;  %v20105_v56 = vld [vmem:[#allocation2 + $0xc] sm:$0x3] }
 0x72a   :  { %27171 = vst [vmem:[#allocation63_spill] sm:$0xff] %v25010_v15  ;;  %18108 = vmatprep.mubr.msk.bf16.mxu1 %vm322_vm4, %v25010_v15  ;;  %v15866_v36 = vrot.slane %v24437_v10, 10  ;;  %v15867_v12 = vrot.slane %v24443_v3, 10  ;;  %v11336_v57 = vrot.slane %v24567_v27, 6  ;;  %v15816_v54 = vrot.slane %v24575_v40, 9 }
 0x72b   :  { %27172 = vst [vmem:[#allocation71_spill] sm:$0xff] %v25040_v1  ;;  %v25053_v58 = vsel %vm20735_vm11, %v15817_v49, %v10790_v22  ;;  %v15870_v7 = vrot.slane %v24494_v38, 10  ;;  %v11348_v20 = vrot.slane %v24599_v45, 6  ;;  %v15871_v3 = vrot.slane %v24496_v51, 10 }
 0x72c   :  { %27173 = vst [vmem:[#allocation80_spill] sm:$0xff] %v25053_v58  ;;  %v25059_v35 = vsel %vm21155_vm1, %v15866_v36, %v11332_v59  ;;  %v25063_v10 = vsel %vm21155_vm1, %v15867_v12, %v11336_v57  ;;  %v11352_v27 = vrot.slane %v24616_v53, 6  ;;  %v10787_v22 = vsel %vm20735_vm11, %v15816_v54, %v10786_v6 }
 0x72d   :  { %v25071_v38 = vcombine.low %v25059_v35, %v25063_v10  ;;  %v25075_v45 = vsel %vm21155_vm1, %v15870_v7, %v11348_v20  ;;  %v15872_v59 = vrot.slane %v24508_v62, 10  ;;  %v11356_v51 = vrot.slane %v24640_v43, 6 }
 0x72e   :  { %v25080_v49 = vsel %vm21155_vm1, %v15871_v3, %v11352_v27  ;;  %v15873_v53 = vrot.slane %v24485_v42, 10  ;;  %v11360_v6 = vrot.slane %v24657_v8, 6  ;;  %v25086_v36 = vcombine.low %v10787_v22, %v25053_v58  ;;  %v25151_v58 = vld [vmem:[#allocation2 + $0x44] sm:$0x3] }
 0x72f   :  { %v25090_v12 = vcombine.low %v25075_v45, %v25080_v49  ;;  %v15874_v57 = vrot.slane %v24575_v40, 10  ;;  %v11364_v62 = vrot.slane %v24682_v16, 6  ;;  %v25096_v54 = vsel %vm21155_vm1, %v15872_v59, %v11356_v51 }
 0x730   :  { %27174 = vst [vmem:[#allocation30_spill] sm:$0xff] %v25086_v36  ;;  %v25100_v42 = vsel %vm21155_vm1, %v15873_v53, %v11360_v6  ;;  %v15875_v8 = vrot.slane %v24577_v28, 10  ;;  %v11368_v43 = vrot.slane %v24684_v25, 6  ;;  %v27175_v7 = vshrl.u32 %v24240_v32, 16  ;;  %v27178_v6 = vld [vmem:[#allocation31_spill] sm:$0xff] }
 0x731   :  { %18109 = vmatmul.mubr.msk.bf16.gmra.mrb[28].mxu1 %vm322_vm4, %v25086_v36  ;;  %v27176_v16 = vshll.u32 %v24240_v32, 16  ;;  %v25112_v27 = vcombine.low %v25096_v54, %v25100_v42  ;;  %v27177_v59 = vcombine.low %v24557_v23, %v24584_v2  ;;  %v25120_v25 = vsel %vm21155_vm1, %v15874_v57, %v11364_v62  ;;  %v20003_v23 = vld [vmem:[%s26194_s7 + $0x38] ss:$0 sps:$4 sm:$0x33]   ;;  %v27180_v62 = vld [vmem:[#allocation27_spill] sm:$0xff] }
 0x732   :  { %v11055_v20 = vrot.slane %v27175_v7, 5  ;;  %v25124_v51 = vsel %vm21155_vm1, %v15875_v8, %v11368_v43  ;;  %v11065_v53 = vrot.slane %v11063_v37, 5  ;;  %v27179_v7 = vshll.u32 %v27178_v6, 16  ;;  %v27181_v36 = vld [vmem:[#allocation61_spill] sm:$0xff]  ;;  %v25141_v2 = vld [vmem:[#allocation2 + $0x40] sm:$0xf] }
 0x733   :  { %v11056_v3 = vrot.slane %v27176_v16, 6  ;;  %18116 = vmatprep.mubr.msk.bf16.mxu1 %vm322_vm4, %v27177_v59  ;;  %v25128_v32 = vcombine.low %v25120_v25, %v25124_v51  ;;  %v25135_v59 = vld [vmem:[#allocation2 + $0x8] sm:$0xf]  ;;  %v27182_v8 = vor.u32 %v27180_v62, %v27181_v36  ;;  %v11312_v1 = vrot.slane %v20105_v56, 6  ;;  %v27183_v6 = vld [vmem:[#allocation64_spill] sm:$0xff] }
 0x734   :  { %v11066_v16 = vrot.slane %v27179_v7, 6  ;;  %v15861_v57 = vrot.slane %v25135_v59, 10  ;;  %v25145_v37 = vcombine.low %v24715_v14, %v24757_v11  ;;  %v25149_v7 = vcombine.low %v27183_v6, %v24770_v63  ;;  %v27187_v56 = vld [vmem:[#allocation35_spill] sm:$0xff] }
 0x735   :  { %v11052_v43 = vrot.slane %v27182_v8, 4  ;;  %v11057_v15 = vor.u32 %v11056_v3, %v11055_v20  ;;  %v27186_v39 = vor.u32 %v27184_v18, %v27185_v17  ;;  %v26568_v20 = vshrl.u32 %v25141_v2, 16  ;;  %v27188_v3 = vld [vmem:[#allocation72_spill] sm:$0xff]  ;;  %v25170_v17 = vld [vmem:[#allocation2 + $0xa0] sm:$0xf]  ;;  %v27190_v18 = vld [vmem:[#allocation69_spill] sm:$0xff] }
 0x736   :  { %v11067_v62 = vor.u32 %v11066_v16, %v11065_v53  ;;  %v25159_v8 = vcombine.low %v27188_v3, %v27187_v56  ;;  %v11432_v11 = vsel %vm347_vm0, %v20003_v23, 0  ;;  %v25168_v63 = vsel %vm21155_vm1, %v15861_v57, %v11312_v1  ;;  %v27192_v57 = vld [vmem:[#allocation62_spill] sm:$0xff]  ;;  %v25195_v3 = vld [vmem:[#allocation2 + $0x68] sm:$0xf] }
 0x737   :  { %v11062_v36 = vrot.slane %v27186_v39, 4  ;;  %v11058_v14 = vsel %vm20931_vm14, %v11052_v43, %v11057_v15  ;;  %v11316_v53 = vrot.slane %v27190_v18, 6  ;;  %v25178_v15 = vld [vmem:[#allocation2 + $0xa4] sm:$0x3]  ;;  %v25182_v43 = vcombine.low %v24962_v9, %v25000_v21 }
 0x738   :  { %27189 = vst [vmem:[#allocation15_spill] sm:$0xff] %v25159_v8  ;;  %v25185_v1 = vcombine.low %v24972_v30, %v10787_v22  ;;  %v15862_v6 = vrot.slane %v27192_v57, 10  ;;  %v11328_v56 = vrot.slane %v24546_v34, 6  ;;  %v15869_v18 = vrot.slane %v25195_v3, 10  ;;  %v27193_v57 = vld [vmem:[#allocation58_spill] sm:$0xff] }
 0x739   :  { %18117 = vmatmul.mubr.msk.bf16.vlgmr.msra.gmra.mrb[16].mxu1 %vm322_vm4, %v24845_v26  ;;  %v11344_v9 = vrot.slane %v25044_v41, 6  ;;  %v25203_v22 = vcombine.low %v24865_v52, %v24883_v44  ;;  %v25209_v34 = vsel %vm20931_vm14, %v11062_v36, %v11067_v62  ;;  %v15865_v16 = vrot.slane %v27193_v57, 10 }
 0x73a   :  { %18133 = vmatpush3.bf16.msra.mxu1 %v24912_v55  ;;  %18120 = vmatprep.mubr.msk.bf16.mxu1 %vm322_vm4, %v24872_v4  ;;  %27191 = vst [vmem:[#allocation49_spill] sm:$0xff] %v25185_v1  ;;  %v25191_v55 = vld [vmem:[%s26194_s7 + $0x3c] sm:$0xff]   ;;  %v26569_v39 = vshll.u32 %v25178_v15, 16  ;;  %v27194_v41 = vshll.u32 %v25141_v2, 16  ;;  %v15846_v21 = vcombine.low %v11058_v14, %v25209_v34  ;;  %v25218_v52 = vsel %vm21155_vm1, %v15862_v6, %v11316_v53 }
 0x73b   :  { %19823 = vmatprep.subr.msk.bf16.mxu1 %vm347_vm0, %v20003_v23  ;;  %v12076_v23 = vrot.slane %v26568_v20, 5  ;;  %v12080_v44 = vshrl.u32 %v25151_v58, 16  ;;  %v27195_v20 = vshll.u32 %v25151_v58, 16  ;;  %v25226_v62 = vsel %vm21155_vm1, %v15865_v16, %v11328_v56 }
 0x73c   :  { %v12077_v30 = vrot.slane %v27194_v41, 6  ;;  %v25230_v14 = vcombine.low %v24931_v19, %v24976_v48  ;;  %v25238_v53 = vsel %vm21155_vm1, %v15869_v18, %v11344_v9  ;;  %v27196_v6 = vshrl.u32 %v25170_v17, 16 }
 0x73d   :  { %v12083_v36 = vrot.slane %v27195_v20, 6  ;;  %v12082_v20 = vrot.slane %v12080_v44, 5  ;;  %v27197_v16 = vshll.u32 %v25170_v17, 16  ;;  %v12090_v48 = vshrl.u32 %v25178_v15, 16 }
 0x73e   :  { %18135 = vmatpush3.bf16.msra.mxu1 %v11432_v11  ;;  %v12078_v57 = vor.u32 %v12077_v30, %v12076_v23  ;;  %v25234_v11 = vcombine.low %v24980_v29, %v25019_v33  ;;  %v12086_v41 = vrot.slane %v27196_v6, 5  ;;  %v12093_v29 = vrot.slane %v26569_v39, 6 }
 0x73f   :  { %18152 = vmatprep.subr.bf16.mxu1 %v25191_v55  ;;  %v12087_v56 = vrot.slane %v27197_v16, 6  ;;  %v12084_v18 = vor.u32 %v12083_v36, %v12082_v20  ;;  %v25254_v30 = vcombine.low %v25226_v62, %v25059_v35  ;;  %v15983_v23 = vrot.slane %v25141_v2, 10 }
 0x740   :  { %v12079_v19 = vrot.slane %v12078_v57, 4  ;;  %v12092_v44 = vrot.slane %v12090_v48, 5  ;;  %v12261_v57 = vrot.slane %v25151_v58, 6  ;;  %v25262_v16 = vcombine.low %v25080_v49, %v25096_v54  ;;  %v25277_v54 = vld [vmem:[#allocation2 + $0x48] sm:$0xf] }
 0x741   :  { %18121 = vmatmul.mubr.msk.bf16.gmra.mrb[20].mxu1 %vm322_vm4, %v24905_v5  ;;  %v12088_v9 = vor.u32 %v12087_v56, %v12086_v41  ;;  %v25268_v35 = vcombine.low %v25100_v42, %v25120_v25  ;;  %v15984_v20 = vrot.slane %v25170_v17, 10  ;;  %v12265_v49 = vrot.slane %v25178_v15, 6  ;;  %v20108_v42 = vld [vmem:[#allocation2 + $0x4] sm:$0x3] }
 0x742   :  { %18124 = vmatprep.mubr.msk.bf16.mxu1 %vm322_vm4, %v15846_v21  ;;  %v12085_v21 = vsel %vm20931_vm14, %v12079_v19, %v12084_v18  ;;  %v12094_v56 = vor.u32 %v12093_v29, %v12092_v44  ;;  %v12262_v48 = vsel %vm21155_vm1, %v15983_v23, %v12261_v57  ;;  %v20107_v18 = vld [vmem:[#allocation2] sm:$0xf]  ;;  %v11308_v25 = vrot.slane %v20108_v42, 6  ;;  %v25286_v29 = vld [vmem:[#allocation2 + $0x4c] sm:$0x3] }
 0x743   :  { %v12089_v36 = vrot.slane %v12088_v9, 4  ;;  %v25272_v41 = vcombine.low %v24894_v50, %v12085_v21  ;;  %v25280_v19 = vcombine.low %v25063_v10, %v12262_v48  ;;  %v15860_v9 = vrot.slane %v20107_v18, 10  ;;  %v25294_v10 = vld [vmem:[#allocation2 + $0xa8] sm:$0xf] }
 0x744   :  { %v12266_v50 = vsel %vm21155_vm1, %v15984_v20, %v12265_v49  ;;  %v26575_v57 = vshrl.u32 %v25277_v54, 16  ;;  %v26578_v18 = vshll.u32 %v25277_v54, 16  ;;  %v25303_v20 = vld [vmem:[#allocation2 + $0xac] sm:$0x3]  ;;  %v13048_v26 = vrot.slane %v25286_v29, 6 }
 0x745   :  { %v12095_v6 = vsel %vm20931_vm14, %v12089_v36, %v12094_v56  ;;  %v25292_v44 = vcombine.low %v25124_v51, %v12266_v50  ;;  %v26579_v51 = vshrl.u32 %v25294_v10, 16  ;;  %v26581_v56 = vshll.u32 %v25294_v10, 16 }
 0x746   :  { %v25289_v23 = vcombine.low %v25023_v31, %v12095_v6  ;;  %v11309_v31 = vsel %vm21155_vm1, %v15860_v9, %v11308_v25  ;;  %v12887_v49 = vrot.slane %v26575_v57, 5  ;;  %v12888_v42 = vrot.slane %v26578_v18, 6 }
 0x747   :  { %27198 = vst [vmem:[#allocation11_spill] sm:$0xff] %v25292_v44  ;;  %v26587_v33 = vshll.u32 %v25303_v20, 16  ;;  %v15879_v39 = vcombine.low %v11309_v31, %v25168_v63  ;;  %v12897_v25 = vrot.slane %v26579_v51, 5  ;;  %v12898_v5 = vrot.slane %v26581_v56, 6  ;;  %v25332_v44 = vld [vmem:[#allocation2 + $0x50] sm:$0xf] }
 0x748   :  { %v12889_v36 = vor.u32 %v12888_v42, %v12887_v49  ;;  %v12901_v18 = vshrl.u32 %v25303_v20, 16  ;;  %v16068_v51 = vrot.slane %v25277_v54, 10 }
 0x749   :  { %18125 = vmatmul.mubr.msk.bf16.gmra.mrb[24].mxu1 %vm322_vm4, %v24940_v24  ;;  %v27199_v24 = vshll.u32 %v25286_v29, 16  ;;  %v12899_v31 = vor.u32 %v12898_v5, %v12897_v25  ;;  %v12904_v49 = vrot.slane %v26587_v33, 6 }
 0x74a   :  { %18128 = vmatprep.mubr.msk.bf16.mxu1 %vm322_vm4, %v24984_v46  ;;  %v12891_v46 = vshrl.u32 %v25286_v29, 16  ;;  %v12890_v57 = vrot.slane %v12889_v36, 4  ;;  %v12903_v42 = vrot.slane %v12901_v18, 5  ;;  %v13052_v36 = vrot.slane %v25303_v20, 6 }
 0x74b   :  { %v12894_v9 = vrot.slane %v27199_v24, 6  ;;  %v12900_v56 = vrot.slane %v12899_v31, 4  ;;  %v25352_v31 = vld [vmem:[#allocation2 + $0xb0] sm:$0xf] }
 0x74c   :  { %v12893_v4 = vrot.slane %v12891_v46, 5  ;;  %v16069_v46 = vrot.slane %v25294_v10, 10  ;;  %v12905_v25 = vor.u32 %v12904_v49, %v12903_v42 }
 0x74e   :  { %v12895_v24 = vor.u32 %v12894_v9, %v12893_v4  ;;  %v25340_v4 = vsel %vm21155_vm1, %v16068_v51, %v13048_v26  ;;  %v25350_v9 = vsel %vm21155_vm1, %v16069_v46, %v13052_v36  ;;  %v25360_v26 = vsel %vm20931_vm14, %v12900_v56, %v12905_v25  ;;  %v20109_v51 = vld [vmem:[#allocation2 + $0x60] sm:$0xf]  ;;  %v20005_v46 = vld [vmem:[%s26194_s7 + $0x44] ss:$0 sps:$4 sm:$0x33]  }
 0x74f   :  { %27201 = vst [vmem:[#allocation14_spill] sm:$0xff] %v25340_v4  ;;  %v25346_v18 = vcombine.low %v12262_v48, %v25340_v4  ;;  %27202 = vst [vmem:[#allocation55_spill] sm:$0xff] %v25350_v9  ;;  %v26583_v48 = vshrl.u32 %v25332_v44, 16  ;;  %v15868_v49 = vrot.slane %v20109_v51, 10  ;;  %v26586_v36 = vshll.u32 %v25332_v44, 16 }
 0x750   :  { %v25336_v5 = vsel %vm20931_vm14, %v12890_v57, %v12895_v24  ;;  %v25356_v57 = vcombine.low %v25218_v52, %v25015_v0  ;;  %27203 = vst [vmem:[#allocation53_spill] sm:$0xff] %v25360_v26  ;;  %v20110_v24 = vld [vmem:[#allocation2 + $0x64] sm:$0x3]  ;;  %v25370_v0 = vcombine.low %v12095_v6, %v25360_v26  ;;  %v25375_v56 = vcombine.low %v25027_v61, %v25226_v62  ;;  %v27213_v26 = vld [vmem:[#allocation20_spill] sm:$0xff] }
 0x751   :  { %18129 = vmatmul.mubr.msk.bf16.gmra.mrb[28].mxu1 %vm322_vm4, %v25036_v47  ;;  %27200 = vst [vmem:[#allocation7_spill] sm:$0xff] %v25336_v5  ;;  %v11340_v42 = vrot.slane %v20110_v24, 6  ;;  %v26584_v25 = vshll.u32 %v25352_v31, 16  ;;  %v25386_v6 = vrot.slane %v26583_v48, 5  ;;  %v11597_v62 = vsel %vm347_vm0, %v20005_v46, 0 }
 0x752   :  { %18136 = vmatprep.mubr.msk.bf16.mxu1 %vm322_vm4, %v15879_v39  ;;  %v25343_v39 = vcombine.low %v12085_v21, %v25336_v5  ;;  %v25363_v21 = vcombine.low %v12266_v50, %v25350_v9  ;;  %v26585_v50 = vshrl.u32 %v25352_v31, 16  ;;  %v25397_v51 = vrot.slane %v26586_v36, 6  ;;  %v20113_v48 = vld [vmem:[#allocation2 + $0x20] sm:$0xf]  ;;  %v20115_v36 = vld [vmem:[#allocation2 + $0x30] sm:$0xf] }
 0x753   :  { %27204 = vst [vmem:[#allocation22_spill] sm:$0xff] %v25386_v6  ;;  %v11341_v61 = vsel %vm21155_vm1, %v15868_v49, %v11340_v42  ;;  %v25408_v42 = vrot.slane %v26584_v25, 6  ;;  %v20120_v9 = vld [vmem:[#allocation2 + $0x88] sm:$0xf] }
 0x754   :  { %27205 = vst [vmem:[#allocation34_spill] sm:$0xff] %v25397_v51  ;;  %v25401_v24 = vrot.slane %v26585_v50, 5  ;;  %v15883_v49 = vcombine.low %v11341_v61, %v25238_v53  ;;  %v20111_v61 = vld [vmem:[#allocation2 + $0x10] sm:$0xf]  ;;  %v20114_v50 = vld [vmem:[#allocation2 + $0x28] sm:$0xf] }
 0x755   :  { %27207 = vst [vmem:[#allocation68_spill] sm:$0xff] %v25408_v42  ;;  %v25428_v33 = vcombine.low %v20114_v50, %v20115_v36  ;;  %v20117_v50 = vld [vmem:[#allocation2 + $0x70] sm:$0xf]  ;;  %v27219_v42 = vld [vmem:[#allocation6_spill] sm:$0xff]  ;;  %v27230_v51 = vld [vmem:[#allocation77_spill] sm:$0xff] }
 0x756   :  { %27206 = vst [vmem:[#allocation65_spill] sm:$0xff] %v25401_v24  ;;  %v25473_v24 = vcombine.low %v27213_v26, %v27212_v60 }
 0x759   :  { %18137 = vmatmul.mubr.msk.bf16.vlgmr.msra.gmra.mrb[16].mxu1 %vm322_vm4, %v25356_v57 }
 0x75a   :  { %18153 = vmatpush3.bf16.msra.mxu1 %v25191_v55  ;;  %18140 = vmatprep.mubr.msk.bf16.mxu1 %vm322_vm4, %v25375_v56  ;;  %v20006_v55 = vld [vmem:[%s26194_s7 + $0x48] sm:$0xff]  }
 0x75b   :  { %19824 = vmatprep.subr.msk.bf16.mxu1 %vm347_vm0, %v20005_v46  ;;  %v20112_v46 = vld [vmem:[#allocation2 + $0x18] sm:$0xf] }
 0x75c   :  { %v25423_v25 = vcombine.low %v20112_v46, %v20113_v48  ;;  %v20013_v48 = vld [vmem:[%s26194_s7 + $0x54] sm:$0xff]  }
 0x75d   :  { %v20116_v46 = vld [vmem:[#allocation2 + $0x38] sm:$0xf] }
 0x75e   :  { %18155 = vmatpush3.bf16.msra.mxu1 %v11597_v62  ;;  %v15900_v62 = vcombine.low %v25135_v59, %v20111_v61  ;;  %v25440_v36 = vcombine.low %v20116_v46, %v25141_v2  ;;  %v20118_v61 = vld [vmem:[#allocation2 + $0x78] sm:$0xf] }
 0x75f   :  { %18172 = vmatprep.subr.bf16.mxu1 %v20006_v55  ;;  %v27208_v46 = vld [vmem:[#allocation17_spill] sm:$0xff] }
 0x761   :  { %18141 = vmatmul.mubr.msk.bf16.gmra.mrb[20].mxu1 %vm322_vm4, %v25071_v38 }
 0x762   :  { %18144 = vmatprep.mubr.msk.bf16.mxu1 %vm322_vm4, %v15883_v49  ;;  %v20009_v49 = vld [vmem:[%s26194_s7 + $0x50] ss:$0 sps:$4 sm:$0x33]  }
 0x763   :  { %v11788_v59 = vsel %vm347_vm0, %v20009_v49, 0 }
 0x769   :  { %18145 = vmatmul.mubr.msk.bf16.gmra.mrb[24].mxu1 %vm322_vm4, %v25090_v12 }
 0x76a   :  { %18148 = vmatprep.mubr.msk.bf16.mxu1 %vm322_vm4, %v25112_v27 }
 0x771   :  { %18149 = vmatmul.mubr.msk.bf16.gmra.mrb[28].mxu1 %vm322_vm4, %v25128_v32 }
 0x772   :  { %18156 = vmatprep.mubr.msk.bf16.mxu1 %vm322_vm4, %v15900_v62  ;;  %v20119_v62 = vld [vmem:[#allocation2 + $0x80] sm:$0xf] }
 0x779   :  { %18157 = vmatmul.mubr.msk.bf16.vlgmr.msra.gmra.mrb[16].mxu1 %vm322_vm4, %v25423_v25 }
 0x77a   :  { %18173 = vmatpush3.bf16.msra.mxu1 %v20006_v55  ;;  %18160 = vmatprep.mubr.msk.bf16.mxu1 %vm322_vm4, %v25428_v33  ;;  %v15904_v55 = vcombine.low %v25195_v3, %v20117_v50  ;;  %v25457_v3 = vcombine.low %v24577_v28, %v25170_v17  ;;  %v27209_v50 = vld [vmem:[#allocation40_spill] sm:$0xff]  ;;  %v20014_v28 = vld [vmem:[%s26194_s7 + $0x5c] ss:$0 sps:$4 sm:$0x33]  }
 0x77b   :  { %19825 = vmatprep.subr.msk.bf16.mxu1 %vm347_vm0, %v20009_v49  ;;  %v25446_v49 = vcombine.low %v20118_v61, %v20119_v62  ;;  %v27211_v61 = vshll.u32 %v25141_v2, 16 }
 0x77d   :  { %v11718_v62 = vrot.slane %v27211_v61, 5 }
 0x77e   :  { %18175 = vmatpush3.bf16.msra.mxu1 %v11788_v59  ;;  %v25449_v59 = vcombine.low %v20120_v9, %v24575_v40  ;;  %v27210_v40 = vshrl.u32 %v25141_v2, 16 }
 0x77f   :  { %18192 = vmatprep.subr.bf16.mxu1 %v20013_v48 }
 0x780   :  { %v11715_v9 = vrot.slane %v27210_v40, 4  ;;  %v20015_v40 = vld [vmem:[%s26194_s7 + $0x60] sm:$0xff]  }
 0x781   :  { %18161 = vmatmul.mubr.msk.bf16.gmra.mrb[20].mxu1 %vm322_vm4, %v25440_v36 }
 0x782   :  { %18164 = vmatprep.mubr.msk.bf16.mxu1 %vm322_vm4, %v15904_v55  ;;  %v15921_v55 = vcombine.low %v27209_v50, %v27208_v46  ;;  %v11719_v4 = vor.u32 %v11718_v62, %v11715_v9  ;;  %v27214_v46 = vld [vmem:[#allocation57_spill] sm:$0xff]  ;;  %v27215_v9 = vshll.u32 %v25151_v58, 16 }
 0x784   :  { %v11720_v50 = vrot.slane %v11719_v4, 4  ;;  %v11724_v60 = vrot.slane %v27215_v9, 5  ;;  %v27218_v4 = vld [vmem:[#allocation44_spill] sm:$0xff]  ;;  %v27220_v9 = vshrl.u32 %v25170_v17, 16 }
 0x786   :  { %v25488_v61 = vsel %vm20447_vm7, %v11720_v50, %v11724_v60  ;;  %v11729_v5 = vrot.slane %v27220_v9, 4  ;;  %v27221_v50 = vshll.u32 %v25170_v17, 16  ;;  %v27223_v9 = vld [vmem:[#allocation60_spill] sm:$0xff] }
 0x788   :  { %v11732_v60 = vrot.slane %v27221_v50, 5  ;;  %v27224_v50 = vld [vmem:[#allocation67_spill] sm:$0xff] }
 0x789   :  { %18165 = vmatmul.mubr.msk.bf16.gmra.mrb[24].mxu1 %vm322_vm4, %v25446_v49 }
 0x78a   :  { %18168 = vmatprep.mubr.msk.bf16.mxu1 %vm322_vm4, %v25449_v59 }
 0x791   :  { %18169 = vmatmul.mubr.msk.bf16.gmra.mrb[28].mxu1 %vm322_vm4, %v25457_v3 }
 0x792   :  { %18176 = vmatprep.mubr.msk.bf16.mxu1 %vm322_vm4, %v15921_v55  ;;  %v11961_v55 = vsel %vm347_vm0, %v20014_v28, 0 }
 0x799   :  { %18177 = vmatmul.mubr.msk.bf16.vlgmr.msra.gmra.mrb[16].mxu1 %vm322_vm4, %v27214_v46 }
 0x79a   :  { %18193 = vmatpush3.bf16.msra.mxu1 %v20013_v48  ;;  %18180 = vmatprep.mubr.msk.bf16.mxu1 %vm322_vm4, %v25473_v24  ;;  %v27217_v48 = vld [vmem:[#allocation13_spill] sm:$0xff] }
 0x79b   :  { %19826 = vmatprep.subr.msk.bf16.mxu1 %vm347_vm0, %v20014_v28  ;;  %v25492_v62 = vcombine.low %v27217_v48, %v25488_v61  ;;  %v15925_v28 = vcombine.low %v27219_v42, %v27218_v4  ;;  %v27222_v42 = vshll.u32 %v25178_v15, 16 }
 0x79d   :  { %v11738_v4 = vrot.slane %v27222_v42, 5  ;;  %v27226_v42 = vld [vmem:[#allocation39_spill] sm:$0xff] }
 0x79e   :  { %18195 = vmatpush3.bf16.msra.mxu1 %v11961_v55  ;;  %v11733_v55 = vor.u32 %v11732_v60, %v11729_v5  ;;  %v27225_v5 = vld [vmem:[#allocation36_spill] sm:$0xff] }
 0x79f   :  { %18212 = vmatprep.subr.bf16.mxu1 %v20015_v40  ;;  %v15944_v60 = vcombine.low %v27225_v5, %v27224_v50  ;;  %v15939_v50 = vrot.slane %v25141_v2, 9  ;;  %v20054_v5 = vld [vmem:[%s26194_s7 + $0x128] ss:$0 sps:$4 sm:$0x33]  }
 0x7a0   :  { %v11734_v48 = vrot.slane %v11733_v55, 4  ;;  %v20016_v55 = vld [vmem:[%s26194_s7 + $0x68] ss:$0 sps:$4 sm:$0x33]  }
 0x7a1   :  { %18181 = vmatmul.mubr.msk.bf16.gmra.mrb[20].mxu1 %vm322_vm4, %v25492_v62 }
 0x7a2   :  { %18184 = vmatprep.mubr.msk.bf16.mxu1 %vm322_vm4, %v15925_v28  ;;  %v25511_v28 = vsel %vm20447_vm7, %v11734_v48, %v11738_v4  ;;  %v11907_v48 = vrot.slane %v25151_v58, 5  ;;  %v12144_v4 = vsel %vm347_vm0, %v20016_v55, 0  ;;  %v27229_v58 = vld [vmem:[#allocation16_spill] sm:$0xff] }
 0x7a3   :  { %v25515_v13 = vcombine.low %v27223_v9, %v25511_v28  ;;  %v20017_v9 = vld [vmem:[%s26194_s7 + $0x6c] sm:$0xff]  }
 0x7a9   :  { %18185 = vmatmul.mubr.msk.bf16.gmra.mrb[24].mxu1 %vm322_vm4, %v25145_v37 }
 0x7aa   :  { %18188 = vmatprep.mubr.msk.bf16.mxu1 %vm322_vm4, %v25149_v7 }
 0x7b1   :  { %18189 = vmatmul.mubr.msk.bf16.gmra.mrb[28].mxu1 %vm322_vm4, %v25515_v13 }
 0x7b2   :  { %18196 = vmatprep.mubr.msk.bf16.mxu1 %vm322_vm4, %v15944_v60  ;;  %v25538_v60 = vsel %vm20735_vm11, %v15939_v50, %v11907_v48  ;;  %v15940_v48 = vrot.slane %v25170_v17, 9 }
 0x7b9   :  { %18197 = vmatmul.mubr.msk.bf16.vlgmr.msra.gmra.mrb[16].mxu1 %vm322_vm4, %v27226_v42 }
 0x7ba   :  { %18213 = vmatpush3.bf16.msra.mxu1 %v20015_v40  ;;  %18200 = vmatprep.mubr.msk.bf16.mxu1 %vm322_vm4, %v25159_v8  ;;  %v27228_v40 = vld [vmem:[#allocation73_spill] sm:$0xff]  ;;  %v15948_v8 = vcombine.low %v27230_v51, %v27229_v58  ;;  %v27231_v51 = vld [vmem:[#allocation80_spill] sm:$0xff] }
 0x7bb   :  { %19827 = vmatprep.subr.msk.bf16.mxu1 %vm347_vm0, %v20016_v55  ;;  %v25542_v6 = vcombine.low %v27228_v40, %v25538_v60  ;;  %v11911_v55 = vrot.slane %v25178_v15, 5  ;;  %v27232_v40 = vld [vmem:[#allocation33_spill] sm:$0xff]  ;;  %v20018_v15 = vld [vmem:[%s26194_s7 + $0x74] ss:$0 sps:$4 sm:$0x33]  }
 0x7be   :  { %18215 = vmatpush3.bf16.msra.mxu1 %v12144_v4  ;;  %v25557_v4 = vsel %vm20735_vm11, %v15940_v48, %v11911_v55  ;;  %v12315_v55 = vsel %vm347_vm0, %v20018_v15, 0  ;;  %v20019_v48 = vld [vmem:[%s26194_s7 + $0x78] sm:$0xff]  }
 0x7bf   :  { %18232 = vmatprep.subr.bf16.mxu1 %v20017_v9  ;;  %v25561_v50 = vcombine.low %v27231_v51, %v25557_v4  ;;  %v27235_v51 = vld [vmem:[#allocation25_spill] sm:$0xff] }
 0x7c1   :  { %18201 = vmatmul.mubr.msk.bf16.gmra.mrb[20].mxu1 %vm322_vm4, %v25542_v6 }
 0x7c2   :  { %18204 = vmatprep.mubr.msk.bf16.mxu1 %vm322_vm4, %v15948_v8  ;;  %v27233_v8 = vld [vmem:[#allocation52_spill] sm:$0xff] }
 0x7c3   :  { %v15965_v58 = vcombine.low %v27233_v8, %v27232_v40  ;;  %v15969_v40 = vcombine.low %v25209_v34, %v27235_v51  ;;  %v20020_v34 = vld [vmem:[%s26194_s7 + $0x80] ss:$0 sps:$4 sm:$0x33]   ;;  %v27237_v8 = vld [vmem:[#allocation71_spill] sm:$0xff] }
 0x7c4   :  { %v27241_v51 = vld [vmem:[#allocation83_spill] sm:$0xff] }
 0x7c9   :  { %18205 = vmatmul.mubr.msk.bf16.gmra.mrb[24].mxu1 %vm322_vm4, %v25182_v43 }
 0x7ca   :  { %18208 = vmatprep.mubr.msk.bf16.mxu1 %vm322_vm4, %v25185_v1  ;;  %v27234_v1 = vld [vmem:[#allocation8_spill] sm:$0xff] }
 0x7d1   :  { %18209 = vmatmul.mubr.msk.bf16.gmra.mrb[28].mxu1 %vm322_vm4, %v25561_v50 }
 0x7d2   :  { %18216 = vmatprep.mubr.msk.bf16.mxu1 %vm322_vm4, %v15965_v58  ;;  %v12456_v58 = vsel %vm347_vm0, %v20020_v34, 0 }
 0x7d9   :  { %18217 = vmatmul.mubr.msk.bf16.vlgmr.msra.gmra.mrb[16].mxu1 %vm322_vm4, %v27234_v1 }
 0x7da   :  { %18233 = vmatpush3.bf16.msra.mxu1 %v20017_v9  ;;  %18220 = vmatprep.mubr.msk.bf16.mxu1 %vm322_vm4, %v25203_v22  ;;  %v27236_v9 = vcombine.low %v25168_v63, %v25218_v52  ;;  %v20021_v63 = vld [vmem:[%s26194_s7 + $0x84] sm:$0xff]   ;;  %v27238_v52 = vcombine.low %v25238_v53, %v25075_v45 }
 0x7db   :  { %19828 = vmatprep.subr.msk.bf16.mxu1 %vm347_vm0, %v20018_v15  ;;  %v27239_v15 = vld [vmem:[#allocation11_spill] sm:$0xff]  ;;  %v27242_v45 = vld [vmem:[#allocation70_spill] sm:$0xff] }
 0x7de   :  { %18235 = vmatpush3.bf16.msra.mxu1 %v12315_v55  ;;  %v27240_v55 = vld [vmem:[#allocation85_spill] sm:$0xff] }
 0x7df   :  { %18252 = vmatprep.subr.bf16.mxu1 %v20019_v48 }
 0x7e1   :  { %18221 = vmatmul.mubr.msk.bf16.gmra.mrb[20].mxu1 %vm322_vm4, %v25272_v41 }
 0x7e2   :  { %18224 = vmatprep.mubr.msk.bf16.mxu1 %vm322_vm4, %v15969_v40  ;;  %v20025_v40 = vld [vmem:[%s26194_s7 + $0x90] sm:$0xff]  }
 0x7e9   :  { %18225 = vmatmul.mubr.msk.bf16.gmra.mrb[24].mxu1 %vm322_vm4, %v25230_v14 }
 0x7ea   :  { %18228 = vmatprep.mubr.msk.bf16.mxu1 %vm322_vm4, %v25234_v11 }
 0x7f1   :  { %18229 = vmatmul.mubr.msk.bf16.gmra.mrb[28].mxu1 %vm322_vm4, %v25289_v23 }
 0x7f2   :  { %18236 = vmatprep.mubr.msk.bf16.mxu1 %vm322_vm4, %v27236_v9  ;;  %v25635_v9 = vcombine.low %v25141_v2, %v25277_v54  ;;  %v27248_v2 = vshrl.u32 %v25277_v54, 16 }
 0x7f4   :  { %27243 = vst [vmem:[#allocation74_spill] sm:$0xff] %v25635_v9 }
 0x7f9   :  { %18237 = vmatmul.mubr.msk.bf16.vlgmr.msra.gmra.mrb[16].mxu1 %vm322_vm4, %v27237_v8 }
 0x7fa   :  { %18253 = vmatpush3.bf16.msra.mxu1 %v20019_v48  ;;  %18240 = vmatprep.mubr.msk.bf16.mxu1 %vm322_vm4, %v25254_v30  ;;  %v20023_v48 = vld [vmem:[%s26194_s7 + $0x8c] ss:$0 sps:$4 sm:$0x33]  }
 0x7fb   :  { %19829 = vmatprep.subr.msk.bf16.mxu1 %vm347_vm0, %v20020_v34  ;;  %v12623_v53 = vsel %vm347_vm0, %v20023_v48, 0  ;;  %v27244_v34 = vld [vmem:[#allocation51_spill] sm:$0xff] }
 0x7fe   :  { %18255 = vmatpush3.bf16.msra.mxu1 %v12456_v58  ;;  %v27245_v58 = vld [vmem:[#allocation56_spill] sm:$0xff] }
 0x7ff   :  { %18272 = vmatprep.subr.bf16.mxu1 %v20021_v63 }
 0x801   :  { %18241 = vmatmul.mubr.msk.bf16.gmra.mrb[20].mxu1 %vm322_vm4, %v25280_v19 }
 0x802   :  { %18244 = vmatprep.mubr.msk.bf16.mxu1 %vm322_vm4, %v27238_v52  ;;  %v25647_v52 = vcombine.low %v25170_v17, %v25294_v10  ;;  %v27251_v17 = vld [vmem:[#allocation41_spill] sm:$0xff] }
 0x804   :  { %27247 = vst [vmem:[#allocation79_spill] sm:$0xff] %v25647_v52 }
 0x809   :  { %18245 = vmatmul.mubr.msk.bf16.gmra.mrb[24].mxu1 %vm322_vm4, %v25262_v16 }
 0x80a   :  { %18248 = vmatprep.mubr.msk.bf16.mxu1 %vm322_vm4, %v25268_v35 }
 0x811   :  { %18249 = vmatmul.mubr.msk.bf16.gmra.mrb[28].mxu1 %vm322_vm4, %v27239_v15 }
 0x812   :  { %18256 = vmatprep.mubr.msk.bf16.mxu1 %vm322_vm4, %v27240_v55  ;;  %v12574_v55 = vrot.slane %v27248_v2, 4  ;;  %v27252_v2 = vld [vmem:[#allocation23_spill] sm:$0xff] }
 0x819   :  { %18257 = vmatmul.mubr.msk.bf16.vlgmr.msra.gmra.mrb[16].mxu1 %vm322_vm4, %v27241_v51 }
 0x81a   :  { %18273 = vmatpush3.bf16.msra.mxu1 %v20021_v63  ;;  %18260 = vmatprep.mubr.msk.bf16.mxu1 %vm322_vm4, %v27242_v45  ;;  %v27246_v63 = vld [vmem:[#allocation45_spill] sm:$0xff] }
 0x81b   :  { %19830 = vmatprep.subr.msk.bf16.mxu1 %vm347_vm0, %v20023_v48  ;;  %v27249_v48 = vshll.u32 %v25277_v54, 16 }
 0x81e   :  { %18275 = vmatpush3.bf16.msra.mxu1 %v12623_v53  ;;  %v12577_v53 = vrot.slane %v27249_v48, 5  ;;  %v27253_v48 = vshll.u32 %v25286_v29, 16 }
 0x81f   :  { %18292 = vmatprep.subr.bf16.mxu1 %v20025_v40 }
 0x820   :  { %v12583_v45 = vrot.slane %v27253_v48, 5 }
 0x821   :  { %18261 = vmatmul.mubr.msk.bf16.gmra.mrb[20].mxu1 %vm322_vm4, %v25635_v9 }
 0x822   :  { %18264 = vmatprep.mubr.msk.bf16.mxu1 %vm322_vm4, %v27244_v34  ;;  %v27250_v34 = vld [vmem:[#allocation19_spill] sm:$0xff] }
 0x829   :  { %18265 = vmatmul.mubr.msk.bf16.gmra.mrb[24].mxu1 %vm322_vm4, %v27245_v58  ;;  %v12578_v58 = vor.u32 %v12577_v53, %v12574_v55  ;;  %v20027_v55 = vld [vmem:[%s26194_s7 + $0x9c] sm:$0xff]   ;;  %v27255_v53 = vshrl.u32 %v25294_v10, 16 }
 0x82a   :  { %18268 = vmatprep.mubr.msk.bf16.mxu1 %vm322_vm4, %v27246_v63  ;;  %v20026_v63 = vld [vmem:[%s26194_s7 + $0x98] ss:$0 sps:$4 sm:$0x33]  }
 0x82b   :  { %v12579_v9 = vrot.slane %v12578_v58, 4  ;;  %v12588_v48 = vrot.slane %v27255_v53, 4 }
 0x82d   :  { %v25673_v58 = vsel %vm20447_vm7, %v12579_v9, %v12583_v45 }
 0x831   :  { %18269 = vmatmul.mubr.msk.bf16.gmra.mrb[28].mxu1 %vm322_vm4, %v25647_v52  ;;  %v27260_v52 = vshll.u32 %v25303_v20, 16 }
 0x832   :  { %18276 = vmatprep.mubr.msk.bf16.mxu1 %vm322_vm4, %v27250_v34  ;;  %v12772_v34 = vsel %vm347_vm0, %v20026_v63, 0 }
 0x833   :  { %v12597_v53 = vrot.slane %v27260_v52, 5  ;;  %v12742_v52 = vrot.slane %v25286_v29, 5 }
 0x839   :  { %18277 = vmatmul.mubr.msk.bf16.vlgmr.msra.gmra.mrb[16].mxu1 %vm322_vm4, %v27251_v17  ;;  %v27257_v17 = vld [vmem:[#allocation66_spill] sm:$0xff] }
 0x83a   :  { %18293 = vmatpush3.bf16.msra.mxu1 %v20025_v40  ;;  %18280 = vmatprep.mubr.msk.bf16.mxu1 %vm322_vm4, %v27252_v2  ;;  %v25677_v40 = vcombine.low %v25488_v61, %v25673_v58  ;;  %v27256_v2 = vshll.u32 %v25294_v10, 16  ;;  %v27259_v61 = vld [vmem:[#allocation81_spill] sm:$0xff] }
 0x83b   :  { %19831 = vmatprep.subr.msk.bf16.mxu1 %vm347_vm0, %v20026_v63 }
 0x83c   :  { %27254 = vst [vmem:[#allocation82_spill] sm:$0xff] %v25677_v40  ;;  %v12591_v63 = vrot.slane %v27256_v2, 5 }
 0x83e   :  { %18295 = vmatpush3.bf16.msra.mxu1 %v12772_v34  ;;  %v12592_v45 = vor.u32 %v12591_v63, %v12588_v48  ;;  %v27258_v34 = vld [vmem:[#allocation78_spill] sm:$0xff]  ;;  %v27262_v63 = vld [vmem:[#allocation76_spill] sm:$0xff] }
 0x83f   :  { %18312 = vmatprep.subr.bf16.mxu1 %v20027_v55  ;;  %v20028_v48 = vld [vmem:[%s26194_s7 + $0xa4] ss:$0 sps:$4 sm:$0x33]  }
 0x840   :  { %v12593_v9 = vrot.slane %v12592_v45, 4  ;;  %v27263_v45 = vld [vmem:[#allocation29_spill] sm:$0xff] }
 0x841   :  { %18281 = vmatmul.mubr.msk.bf16.gmra.mrb[20].mxu1 %vm322_vm4, %v25677_v40 }
 0x842   :  { %18284 = vmatprep.mubr.msk.bf16.mxu1 %vm322_vm4, %v27257_v17  ;;  %v25695_v2 = vsel %vm20447_vm7, %v12593_v9, %v12597_v53  ;;  %v27261_v17 = vld [vmem:[#allocation50_spill] sm:$0xff]  ;;  %v12931_v9 = vsel %vm347_vm0, %v20028_v48, 0  ;;  %v20029_v53 = vld [vmem:[%s26194_s7 + $0xa8] sm:$0xff]  }
 0x843   :  { %v25699_v40 = vcombine.low %v25511_v28, %v25695_v2  ;;  %v16036_v28 = vrot.slane %v25277_v54, 9 }
 0x845   :  { %v25721_v29 = vsel %vm20735_vm11, %v16036_v28, %v12742_v52  ;;  %v16037_v52 = vrot.slane %v25294_v10, 9 }
 0x849   :  { %18285 = vmatmul.mubr.msk.bf16.gmra.mrb[24].mxu1 %vm322_vm4, %v27258_v34 }
 0x84a   :  { %18288 = vmatprep.mubr.msk.bf16.mxu1 %vm322_vm4, %v27259_v61 }
 0x851   :  { %18289 = vmatmul.mubr.msk.bf16.gmra.mrb[28].mxu1 %vm322_vm4, %v25699_v40 }
 0x852   :  { %18296 = vmatprep.mubr.msk.bf16.mxu1 %vm322_vm4, %v27261_v17  ;;  %v27264_v17 = vld [vmem:[#allocation18_spill] sm:$0xff] }
 0x859   :  { %18297 = vmatmul.mubr.msk.bf16.vlgmr.msra.gmra.mrb[16].mxu1 %vm322_vm4, %v27262_v63  ;;  %v27266_v63 = vld [vmem:[#allocation30_spill] sm:$0xff] }
 0x85a   :  { %18313 = vmatpush3.bf16.msra.mxu1 %v20027_v55  ;;  %18300 = vmatprep.mubr.msk.bf16.mxu1 %vm322_vm4, %v27263_v45  ;;  %v25725_v55 = vcombine.low %v25538_v60, %v25721_v29  ;;  %v27265_v45 = vld [vmem:[#allocation63_spill] sm:$0xff] }
 0x85b   :  { %19832 = vmatprep.subr.msk.bf16.mxu1 %vm347_vm0, %v20028_v48  ;;  %v12746_v48 = vrot.slane %v25303_v20, 5  ;;  %v27267_v20 = vld [vmem:[#allocation84_spill] sm:$0xff] }
 0x85d   :  { %v25739_v60 = vsel %vm20735_vm11, %v16037_v52, %v12746_v48  ;;  %v27269_v48 = vld [vmem:[#allocation59_spill] sm:$0xff]  ;;  %v20031_v52 = vld [vmem:[%s26194_s7 + $0xb4] sm:$0xff]  }
 0x85e   :  { %18315 = vmatpush3.bf16.msra.mxu1 %v12931_v9  ;;  %v25743_v28 = vcombine.low %v25557_v4, %v25739_v60  ;;  %v20030_v9 = vld [vmem:[%s26194_s7 + $0xb0] ss:$0 sps:$4 sm:$0x33]  }
 0x85f   :  { %18332 = vmatprep.subr.bf16.mxu1 %v20029_v53  ;;  %v13078_v4 = vsel %vm347_vm0, %v20030_v9, 0 }
 0x861   :  { %18301 = vmatmul.mubr.msk.bf16.gmra.mrb[20].mxu1 %vm322_vm4, %v25725_v55 }
 0x862   :  { %18304 = vmatprep.mubr.msk.bf16.mxu1 %vm322_vm4, %v27264_v17  ;;  %v27268_v17 = vld [vmem:[#allocation46_spill] sm:$0xff] }
 0x869   :  { %18305 = vmatmul.mubr.msk.bf16.gmra.mrb[24].mxu1 %vm322_vm4, %v27265_v45 }
 0x86a   :  { %18308 = vmatprep.mubr.msk.bf16.mxu1 %vm322_vm4, %v27266_v63 }
 0x871   :  { %18309 = vmatmul.mubr.msk.bf16.gmra.mrb[28].mxu1 %vm322_vm4, %v25743_v28 }
 0x872   :  { %18316 = vmatprep.mubr.msk.bf16.mxu1 %vm322_vm4, %v27267_v20  ;;  %v27270_v20 = vld [vmem:[#allocation43_spill] sm:$0xff] }
 0x879   :  { %18317 = vmatmul.mubr.msk.bf16.vlgmr.msra.gmra.mrb[16].mxu1 %vm322_vm4, %v27268_v17 }
 0x87a   :  { %18333 = vmatpush3.bf16.msra.mxu1 %v20029_v53  ;;  %18320 = vmatprep.mubr.msk.bf16.mxu1 %vm322_vm4, %v27269_v48  ;;  %v27271_v53 = vld [vmem:[#allocation75_spill] sm:$0xff] }
 0x87b   :  { %19833 = vmatprep.subr.msk.bf16.mxu1 %vm347_vm0, %v20030_v9  ;;  %v20032_v9 = vld [vmem:[%s26194_s7 + $0xbc] ss:$0 sps:$4 sm:$0x33]  }
 0x87e   :  { %18335 = vmatpush3.bf16.msra.mxu1 %v13078_v4  ;;  %v13219_v4 = vsel %vm347_vm0, %v20032_v9, 0 }
 0x87f   :  { %18352 = vmatprep.subr.bf16.mxu1 %v20031_v52 }
 0x881   :  { %18321 = vmatmul.mubr.msk.bf16.gmra.mrb[20].mxu1 %vm322_vm4, %v25343_v39 }
 0x882   :  { %18324 = vmatprep.mubr.msk.bf16.mxu1 %vm322_vm4, %v27270_v20  ;;  %v20033_v20 = vld [vmem:[%s26194_s7 + $0xc0] sm:$0xff]  }
 0x889   :  { %18325 = vmatmul.mubr.msk.bf16.gmra.mrb[24].mxu1 %vm322_vm4, %v27271_v53 }
 0x88a   :  { %18328 = vmatprep.mubr.msk.bf16.mxu1 %vm322_vm4, %v25036_v47 }
 0x891   :  { %18329 = vmatmul.mubr.msk.bf16.gmra.mrb[28].mxu1 %vm322_vm4, %v25370_v0 }
 0x892   :  { %18336 = vmatprep.mubr.msk.bf16.mxu1 %vm322_vm4, %v25356_v57  ;;  %v20035_v57 = vld [vmem:[%s26194_s7 + $0xc8] ss:$0 sps:$4 sm:$0x33]  }
 0x899   :  { %18337 = vmatmul.mubr.msk.bf16.vlgmr.msra.gmra.mrb[16].mxu1 %vm322_vm4, %v25375_v56 }
 0x89a   :  { %18353 = vmatpush3.bf16.msra.mxu1 %v20031_v52  ;;  %18340 = vmatprep.mubr.msk.bf16.mxu1 %vm322_vm4, %v25071_v38  ;;  %v20037_v52 = vld [vmem:[%s26194_s7 + $0xcc] sm:$0xff]  }
 0x89b   :  { %19834 = vmatprep.subr.msk.bf16.mxu1 %vm347_vm0, %v20032_v9 }
 0x89e   :  { %18355 = vmatpush3.bf16.msra.mxu1 %v13219_v4 }
 0x89f   :  { %18372 = vmatprep.subr.bf16.mxu1 %v20033_v20 }
 0x8a1   :  { %18341 = vmatmul.mubr.msk.bf16.gmra.mrb[20].mxu1 %vm322_vm4, %v25346_v18 }
 0x8a2   :  { %18344 = vmatprep.mubr.msk.bf16.mxu1 %vm322_vm4, %v25090_v12  ;;  %v13386_v12 = vsel %vm347_vm0, %v20035_v57, 0 }
 0x8a9   :  { %18345 = vmatmul.mubr.msk.bf16.gmra.mrb[24].mxu1 %vm322_vm4, %v25112_v27 }
 0x8aa   :  { %18348 = vmatprep.mubr.msk.bf16.mxu1 %vm322_vm4, %v25128_v32 }
 0x8b1   :  { %18349 = vmatmul.mubr.msk.bf16.gmra.mrb[28].mxu1 %vm322_vm4, %v25363_v21 }
 0x8b2   :  { %18356 = vmatprep.mubr.msk.bf16.mxu1 %vm322_vm4, %v25423_v25  ;;  %v16088_v25 = vcombine.low %v25277_v54, %v25332_v44  ;;  %v27273_v54 = vshll.u32 %v25332_v44, 16 }
 0x8b4   :  { %v13340_v4 = vrot.slane %v27273_v54, 5 }
 0x8b9   :  { %18357 = vmatmul.mubr.msk.bf16.vlgmr.msra.gmra.mrb[16].mxu1 %vm322_vm4, %v25428_v33  ;;  %v16089_v33 = vcombine.low %v25294_v10, %v25352_v31  ;;  %v20038_v10 = vld [vmem:[%s26194_s7 + $0xd4] ss:$0 sps:$4 sm:$0x33]  }
 0x8ba   :  { %18373 = vmatpush3.bf16.msra.mxu1 %v20033_v20  ;;  %18360 = vmatprep.mubr.msk.bf16.mxu1 %vm322_vm4, %v25440_v36  ;;  %v27272_v36 = vshrl.u32 %v25332_v44, 16 }
 0x8bb   :  { %19835 = vmatprep.subr.msk.bf16.mxu1 %vm347_vm0, %v20035_v57 }
 0x8bc   :  { %v13337_v9 = vrot.slane %v27272_v36, 4 }
 0x8be   :  { %18375 = vmatpush3.bf16.msra.mxu1 %v13386_v12  ;;  %v20039_v12 = vld [vmem:[%s26194_s7 + $0xd8] sm:$0xff]  }
 0x8bf   :  { %18392 = vmatprep.subr.bf16.mxu1 %v20037_v52 }
 0x8c1   :  { %18361 = vmatmul.mubr.msk.bf16.gmra.mrb[20].mxu1 %vm322_vm4, %v16088_v25 }
 0x8c2   :  { %18364 = vmatprep.mubr.msk.bf16.mxu1 %vm322_vm4, %v25446_v49  ;;  %v25827_v49 = vld [vmem:[#allocation2 + $0x54] sm:$0x3] }
 0x8c3   :  { %v13344_v20 = vshll.u32 %v25827_v49, 16 }
 0x8c5   :  { %v13346_v57 = vrot.slane %v13344_v20, 5 }
 0x8c9   :  { %18365 = vmatmul.mubr.msk.bf16.gmra.mrb[24].mxu1 %vm322_vm4, %v25449_v59  ;;  %v13341_v59 = vor.u32 %v13340_v4, %v13337_v9  ;;  %v25855_v9 = vld [vmem:[#allocation2 + $0xb4] sm:$0x3] }
 0x8ca   :  { %18368 = vmatprep.mubr.msk.bf16.mxu1 %vm322_vm4, %v25457_v3  ;;  %v13358_v4 = vshll.u32 %v25855_v9, 16 }
 0x8cb   :  { %v13342_v3 = vrot.slane %v13341_v59, 4 }
 0x8cd   :  { %v25844_v25 = vsel %vm20447_vm7, %v13342_v3, %v13346_v57  ;;  %v20040_v3 = vld [vmem:[%s26194_s7 + $0xe0] ss:$0 sps:$4 sm:$0x33]   ;;  %v27276_v57 = vld [vmem:[#allocation15_spill] sm:$0xff] }
 0x8d1   :  { %18369 = vmatmul.mubr.msk.bf16.gmra.mrb[28].mxu1 %vm322_vm4, %v16089_v33  ;;  %v27275_v33 = vshll.u32 %v25352_v31, 16 }
 0x8d2   :  { %18376 = vmatprep.mubr.msk.bf16.mxu1 %vm322_vm4, %v27214_v46  ;;  %v13535_v46 = vsel %vm347_vm0, %v20038_v10, 0 }
 0x8d3   :  { %v13354_v36 = vrot.slane %v27275_v33, 5  ;;  %v13654_v33 = vshrl.u32 %v25827_v49, 16 }
 0x8d9   :  { %18377 = vmatmul.mubr.msk.bf16.vlgmr.msra.gmra.mrb[16].mxu1 %vm322_vm4, %v25473_v24  ;;  %v16103_v24 = vcombine.low %v25673_v58, %v25844_v25 }
 0x8da   :  { %18393 = vmatpush3.bf16.msra.mxu1 %v20037_v52  ;;  %18380 = vmatprep.mubr.msk.bf16.mxu1 %vm322_vm4, %v25492_v62  ;;  %v27274_v52 = vshrl.u32 %v25352_v31, 16 }
 0x8db   :  { %19836 = vmatprep.subr.msk.bf16.mxu1 %vm347_vm0, %v20038_v10  ;;  %v13360_v10 = vrot.slane %v13358_v4, 5 }
 0x8dc   :  { %v13351_v62 = vrot.slane %v27274_v52, 4  ;;  %v27277_v52 = vld [vmem:[#allocation49_spill] sm:$0xff] }
 0x8de   :  { %18395 = vmatpush3.bf16.msra.mxu1 %v13535_v46  ;;  %v13355_v54 = vor.u32 %v13354_v36, %v13351_v62  ;;  %v13657_v36 = vrot.slane %v13344_v20, 6 }
 0x8df   :  { %18412 = vmatprep.subr.bf16.mxu1 %v20039_v12 }
 0x8e0   :  { %v13356_v59 = vrot.slane %v13355_v54, 4  ;;  %v27278_v54 = vld [vmem:[#allocation34_spill] sm:$0xff] }
 0x8e1   :  { %18381 = vmatmul.mubr.msk.bf16.gmra.mrb[20].mxu1 %vm322_vm4, %v16103_v24 }
 0x8e2   :  { %18384 = vmatprep.mubr.msk.bf16.mxu1 %vm322_vm4, %v25145_v37  ;;  %v25864_v58 = vsel %vm20447_vm7, %v13356_v59, %v13360_v10  ;;  %v27279_v59 = vld [vmem:[#allocation22_spill] sm:$0xff] }
 0x8e3   :  { %v16104_v37 = vcombine.low %v25695_v2, %v25864_v58  ;;  %v13694_v2 = vsel %vm347_vm0, %v20040_v3, 0  ;;  %v27280_v10 = vor.u32 %v27278_v54, %v27279_v59 }
 0x8e9   :  { %18385 = vmatmul.mubr.msk.bf16.gmra.mrb[24].mxu1 %vm322_vm4, %v25149_v7  ;;  %v16115_v7 = vrot.slane %v25332_v44, 9 }
 0x8ea   :  { %18388 = vmatprep.mubr.msk.bf16.mxu1 %vm322_vm4, %v25515_v13  ;;  %v13505_v13 = vrot.slane %v25827_v49, 5 }
 0x8ec   :  { %v25887_v46 = vsel %vm20735_vm11, %v16115_v7, %v13505_v13  ;;  %v27282_v13 = vld [vmem:[#allocation7_spill] sm:$0xff] }
 0x8ed   :  { %v16120_v24 = vcombine.low %v25721_v29, %v25887_v46 }
 0x8f1   :  { %18389 = vmatmul.mubr.msk.bf16.gmra.mrb[28].mxu1 %vm322_vm4, %v16104_v37  ;;  %v13653_v37 = vrot.slane %v27280_v10, 4 }
 0x8f2   :  { %18396 = vmatprep.mubr.msk.bf16.mxu1 %vm322_vm4, %v27226_v42  ;;  %v20041_v42 = vld [vmem:[%s26194_s7 + $0xe4] sm:$0xff]  }
 0x8f9   :  { %18397 = vmatmul.mubr.msk.bf16.vlgmr.msra.gmra.mrb[16].mxu1 %vm322_vm4, %v27276_v57  ;;  %v13664_v57 = vshrl.u32 %v25855_v9, 16 }
 0x8fa   :  { %18413 = vmatpush3.bf16.msra.mxu1 %v20039_v12  ;;  %18400 = vmatprep.mubr.msk.bf16.mxu1 %vm322_vm4, %v25542_v6  ;;  %v16116_v6 = vrot.slane %v25352_v31, 9  ;;  %v13509_v12 = vrot.slane %v25855_v9, 5 }
 0x8fb   :  { %19837 = vmatprep.subr.msk.bf16.mxu1 %vm347_vm0, %v20040_v3 }
 0x8fc   :  { %v25902_v62 = vsel %vm20735_vm11, %v16116_v6, %v13509_v12 }
 0x8fd   :  { %v16121_v29 = vcombine.low %v25739_v60, %v25902_v62  ;;  %v20043_v60 = vld [vmem:[%s26194_s7 + $0xf0] sm:$0xff]  }
 0x8fe   :  { %18415 = vmatpush3.bf16.msra.mxu1 %v13694_v2  ;;  %v13667_v2 = vrot.slane %v13358_v4, 6  ;;  %v20044_v4 = vld [vmem:[%s26194_s7 + $0xf8] ss:$0 sps:$4 sm:$0x33]  }
 0x8ff   :  { %18432 = vmatprep.subr.bf16.mxu1 %v20041_v42  ;;  %v13982_v59 = vsel %vm347_vm0, %v20044_v4, 0 }
 0x901   :  { %18401 = vmatmul.mubr.msk.bf16.gmra.mrb[20].mxu1 %vm322_vm4, %v16120_v24  ;;  %v27284_v24 = vld [vmem:[#allocation65_spill] sm:$0xff] }
 0x902   :  { %18404 = vmatprep.mubr.msk.bf16.mxu1 %vm322_vm4, %v25182_v43  ;;  %v13656_v43 = vrot.slane %v13654_v33, 5  ;;  %v27286_v33 = vld [vmem:[#allocation53_spill] sm:$0xff] }
 0x904   :  { %v13658_v3 = vor.u32 %v13657_v36, %v13656_v43  ;;  %v13811_v43 = vrot.slane %v25827_v49, 6  ;;  %v20045_v49 = vld [vmem:[%s26194_s7 + $0xfc] sm:$0xff]  }
 0x906   :  { %v25927_v7 = vsel %vm20931_vm14, %v13653_v37, %v13658_v3 }
 0x909   :  { %18405 = vmatmul.mubr.msk.bf16.gmra.mrb[24].mxu1 %vm322_vm4, %v27277_v52 }
 0x90a   :  { %18408 = vmatprep.mubr.msk.bf16.mxu1 %vm322_vm4, %v25561_v50  ;;  %v20042_v50 = vld [vmem:[%s26194_s7 + $0xec] ss:$0 sps:$4 sm:$0x33]  }
 0x911   :  { %18409 = vmatmul.mubr.msk.bf16.gmra.mrb[28].mxu1 %vm322_vm4, %v16121_v29 }
 0x912   :  { %18416 = vmatprep.mubr.msk.bf16.mxu1 %vm322_vm4, %v27234_v1  ;;  %v13841_v1 = vsel %vm347_vm0, %v20042_v50, 0 }
 0x919   :  { %18417 = vmatmul.mubr.msk.bf16.vlgmr.msra.gmra.mrb[16].mxu1 %vm322_vm4, %v25203_v22  ;;  %v16135_v22 = vcombine.low %v27282_v13, %v25927_v7  ;;  %v13815_v13 = vrot.slane %v25855_v9, 6 }
 0x91a   :  { %18433 = vmatpush3.bf16.msra.mxu1 %v20041_v42  ;;  %18420 = vmatprep.mubr.msk.bf16.mxu1 %vm322_vm4, %v25272_v41  ;;  %v13666_v41 = vrot.slane %v13664_v57, 5  ;;  %v27283_v42 = vld [vmem:[#allocation68_spill] sm:$0xff] }
 0x91b   :  { %19838 = vmatprep.subr.msk.bf16.mxu1 %vm347_vm0, %v20042_v50  ;;  %v27285_v6 = vor.u32 %v27283_v42, %v27284_v24  ;;  %v27289_v42 = vld [vmem:[#allocation55_spill] sm:$0xff] }
 0x91c   :  { %v13668_v52 = vor.u32 %v13667_v2, %v13666_v41 }
 0x91d   :  { %v13663_v12 = vrot.slane %v27285_v6, 4  ;;  %v27291_v6 = vld [vmem:[#allocation74_spill] sm:$0xff] }
 0x91e   :  { %18435 = vmatpush3.bf16.msra.mxu1 %v13841_v1  ;;  %v25984_v1 = vld [vmem:[#allocation2 + $0xb8] sm:$0xf] }
 0x91f   :  { %18452 = vmatprep.subr.bf16.mxu1 %v20043_v60  ;;  %v25944_v29 = vsel %vm20931_vm14, %v13663_v12, %v13668_v52  ;;  %v14115_v57 = vshll.u32 %v25984_v1, 16  ;;  %v20049_v52 = vld [vmem:[%s26194_s7 + $0x108] sm:$0xff]  }
 0x921   :  { %18421 = vmatmul.mubr.msk.bf16.gmra.mrb[20].mxu1 %vm322_vm4, %v16135_v22  ;;  %v14112_v22 = vshrl.u32 %v25984_v1, 16  ;;  %v25996_v2 = vrot.slane %v14115_v57, 6 }
 0x922   :  { %18424 = vmatprep.mubr.msk.bf16.mxu1 %vm322_vm4, %v25230_v14  ;;  %v16136_v14 = vcombine.low %v27286_v33, %v25944_v29  ;;  %v27292_v33 = vld [vmem:[#allocation56_spill] sm:$0xff] }
 0x923   :  { %v25994_v41 = vrot.slane %v14112_v22, 5 }
 0x925   :  { %v14425_v9 = vor.u32 %v25996_v2, %v25994_v41 }
 0x929   :  { %18425 = vmatmul.mubr.msk.bf16.gmra.mrb[24].mxu1 %vm322_vm4, %v25234_v11  ;;  %v25954_v11 = vld [vmem:[#allocation2 + $0x58] sm:$0xf] }
 0x92a   :  { %18428 = vmatprep.mubr.msk.bf16.mxu1 %vm322_vm4, %v25289_v23  ;;  %v16147_v23 = vrot.slane %v25332_v44, 10  ;;  %v14098_v36 = vshrl.u32 %v25954_v11, 16  ;;  %v14101_v50 = vshll.u32 %v25954_v11, 16 }
 0x92c   :  { %v25966_v54 = vrot.slane %v14101_v50, 6  ;;  %v25975_v37 = vsel %vm21155_vm1, %v16147_v23, %v13811_v43  ;;  %v16168_v23 = vcombine.low %v25352_v31, %v25984_v1  ;;  %v14100_v43 = vrot.slane %v14098_v36, 4 }
 0x931   :  { %18429 = vmatmul.mubr.msk.bf16.gmra.mrb[28].mxu1 %vm322_vm4, %v16136_v14  ;;  %v27293_v14 = vld [vmem:[#allocation45_spill] sm:$0xff] }
 0x932   :  { %18436 = vmatprep.mubr.msk.bf16.mxu1 %vm322_vm4, %v27237_v8  ;;  %v25964_v8 = vrot.slane %v14098_v36, 5 }
 0x939   :  { %18437 = vmatmul.mubr.msk.bf16.vlgmr.msra.gmra.mrb[16].mxu1 %vm322_vm4, %v25254_v30  ;;  %v14415_v30 = vor.u32 %v25966_v54, %v25964_v8 }
 0x93a   :  { %18453 = vmatpush3.bf16.msra.mxu1 %v20043_v60  ;;  %18440 = vmatprep.mubr.msk.bf16.mxu1 %vm322_vm4, %v25280_v19  ;;  %v27288_v19 = vld [vmem:[#allocation14_spill] sm:$0xff]  ;;  %v16148_v60 = vrot.slane %v25352_v31, 10 }
 0x93b   :  { %19839 = vmatprep.subr.msk.bf16.mxu1 %vm347_vm0, %v20044_v4  ;;  %v16152_v3 = vcombine.low %v27288_v19, %v25975_v37  ;;  %v27294_v4 = vld [vmem:[#allocation79_spill] sm:$0xff]  ;;  %v27297_v31 = vld [vmem:[#allocation82_spill] sm:$0xff] }
 0x93e   :  { %18455 = vmatpush3.bf16.msra.mxu1 %v13982_v59  ;;  %v14103_v59 = vrot.slane %v14101_v50, 5 }
 0x93f   :  { %18472 = vmatprep.subr.bf16.mxu1 %v20045_v49 }
 0x940   :  { %v14104_v19 = vor.u32 %v14103_v59, %v14100_v43  ;;  %v27299_v43 = vld [vmem:[#allocation29_spill] sm:$0xff] }
 0x941   :  { %18441 = vmatmul.mubr.msk.bf16.gmra.mrb[20].mxu1 %vm322_vm4, %v16152_v3 }
 0x942   :  { %18444 = vmatprep.mubr.msk.bf16.mxu1 %vm322_vm4, %v25262_v16  ;;  %v26000_v16 = vsel %vm21155_vm1, %v16148_v60, %v13815_v13  ;;  %v14105_v60 = vrot.slane %v14104_v19, 4 }
 0x943   :  { %v16153_v24 = vcombine.low %v27289_v42, %v26000_v16  ;;  %v20050_v42 = vld [vmem:[%s26194_s7 + $0x110] ss:$0 sps:$4 sm:$0x33]  }
 0x944   :  { %v14298_v50 = vsel %vm347_vm0, %v20050_v42, 0 }
 0x949   :  { %18445 = vmatmul.mubr.msk.bf16.gmra.mrb[24].mxu1 %vm322_vm4, %v25268_v35  ;;  %v20047_v35 = vld [vmem:[%s26194_s7 + $0x104] ss:$0 sps:$4 sm:$0x33]  }
 0x94a   :  { %18448 = vmatprep.mubr.msk.bf16.mxu1 %vm322_vm4, %v27239_v15  ;;  %v27290_v15 = vld [vmem:[#allocation70_spill] sm:$0xff]  ;;  %v14149_v12 = vsel %vm347_vm0, %v20047_v35, 0 }
 0x951   :  { %18449 = vmatmul.mubr.msk.bf16.gmra.mrb[28].mxu1 %vm322_vm4, %v16153_v24  ;;  %v27296_v24 = vld [vmem:[#allocation23_spill] sm:$0xff] }
 0x952   :  { %18456 = vmatprep.mubr.msk.bf16.mxu1 %vm322_vm4, %v27241_v51  ;;  %v16167_v51 = vcombine.low %v25332_v44, %v25954_v11  ;;  %v27295_v44 = vld [vmem:[#allocation41_spill] sm:$0xff] }
 0x959   :  { %18457 = vmatmul.mubr.msk.bf16.vlgmr.msra.gmra.mrb[16].mxu1 %vm322_vm4, %v27290_v15 }
 0x95a   :  { %18473 = vmatpush3.bf16.msra.mxu1 %v20045_v49  ;;  %18460 = vmatprep.mubr.msk.bf16.mxu1 %vm322_vm4, %v27291_v6  ;;  %v26032_v49 = vld [vmem:[#allocation2 + $0x5c] sm:$0x3]  ;;  %v14114_v6 = vrot.slane %v14112_v22, 4 }
 0x95b   :  { %19840 = vmatprep.subr.msk.bf16.mxu1 %vm347_vm0, %v20047_v35  ;;  %v14107_v3 = vshll.u32 %v26032_v49, 16  ;;  %v20051_v35 = vld [vmem:[%s26194_s7 + $0x114] sm:$0xff]   ;;  %v14574_v41 = vrot.slane %v26032_v49, 6 }
 0x95d   :  { %v14109_v13 = vrot.slane %v14107_v3, 5 }
 0x95e   :  { %18475 = vmatpush3.bf16.msra.mxu1 %v14149_v12  ;;  %v14117_v12 = vrot.slane %v14115_v57, 5  ;;  %v27298_v57 = vld [vmem:[#allocation76_spill] sm:$0xff] }
 0x95f   :  { %18492 = vmatprep.subr.bf16.mxu1 %v20049_v52  ;;  %v14110_v36 = vsel %vm20447_vm7, %v14105_v60, %v14109_v13  ;;  %v14417_v60 = vshrl.u32 %v26032_v49, 16  ;;  %v14420_v13 = vrot.slane %v14107_v3, 6 }
 0x960   :  { %v16182_v15 = vcombine.low %v25844_v25, %v14110_v36 }
 0x961   :  { %18461 = vmatmul.mubr.msk.bf16.gmra.mrb[20].mxu1 %vm322_vm4, %v16167_v51  ;;  %v14118_v51 = vor.u32 %v14117_v12, %v14114_v6 }
 0x962   :  { %18464 = vmatprep.mubr.msk.bf16.mxu1 %vm322_vm4, %v27292_v33 }
 0x969   :  { %18465 = vmatmul.mubr.msk.bf16.gmra.mrb[24].mxu1 %vm322_vm4, %v27293_v14  ;;  %v14119_v14 = vrot.slane %v14118_v51, 4 }
 0x96a   :  { %18468 = vmatprep.mubr.msk.bf16.mxu1 %vm322_vm4, %v27294_v4 }
 0x971   :  { %18469 = vmatmul.mubr.msk.bf16.gmra.mrb[28].mxu1 %vm322_vm4, %v16168_v23  ;;  %v14268_v23 = vrot.slane %v26032_v49, 5 }
 0x972   :  { %18476 = vmatprep.mubr.msk.bf16.mxu1 %vm322_vm4, %v27295_v44 }
 0x979   :  { %18477 = vmatmul.mubr.msk.bf16.vlgmr.msra.gmra.mrb[16].mxu1 %vm322_vm4, %v27296_v24 }
 0x97a   :  { %18493 = vmatpush3.bf16.msra.mxu1 %v20049_v52  ;;  %18480 = vmatprep.mubr.msk.bf16.mxu1 %vm322_vm4, %v27297_v31  ;;  %v26053_v52 = vld [vmem:[#allocation2 + $0xbc] sm:$0x3] }
 0x97b   :  { %19841 = vmatprep.subr.msk.bf16.mxu1 %vm347_vm0, %v20050_v42  ;;  %v14121_v33 = vshll.u32 %v26053_v52, 16  ;;  %v14272_v44 = vrot.slane %v26053_v52, 5  ;;  %v14427_v8 = vshrl.u32 %v26053_v52, 16  ;;  %v14578_v20 = vrot.slane %v26053_v52, 6 }
 0x97d   :  { %v14123_v4 = vrot.slane %v14121_v33, 5  ;;  %v14430_v54 = vrot.slane %v14121_v33, 6 }
 0x97e   :  { %18495 = vmatpush3.bf16.msra.mxu1 %v14298_v50 }
 0x97f   :  { %18512 = vmatprep.subr.bf16.mxu1 %v20051_v35  ;;  %v14124_v25 = vsel %vm20447_vm7, %v14119_v14, %v14123_v4 }
 0x980   :  { %v16183_v22 = vcombine.low %v25864_v58, %v14124_v25  ;;  %v20053_v58 = vld [vmem:[%s26194_s7 + $0x120] sm:$0xff]  }
 0x981   :  { %18481 = vmatmul.mubr.msk.bf16.gmra.mrb[20].mxu1 %vm322_vm4, %v16182_v15 }
 0x982   :  { %18484 = vmatprep.mubr.msk.bf16.mxu1 %vm322_vm4, %v27258_v34  ;;  %v16194_v34 = vrot.slane %v25954_v11, 9 }
 0x984   :  { %v14269_v26 = vsel %vm20735_vm11, %v16194_v34, %v14268_v23 }
 0x985   :  { %v16199_v59 = vcombine.low %v25887_v46, %v14269_v26 }
 0x989   :  { %18485 = vmatmul.mubr.msk.bf16.gmra.mrb[24].mxu1 %vm322_vm4, %v27259_v61  ;;  %v20052_v61 = vld [vmem:[%s26194_s7 + $0x11c] ss:$0 sps:$4 sm:$0x33]  }
 0x98a   :  { %18488 = vmatprep.mubr.msk.bf16.mxu1 %vm322_vm4, %v25699_v40  ;;  %v14457_v40 = vsel %vm347_vm0, %v20052_v61, 0 }
 0x991   :  { %18489 = vmatmul.mubr.msk.bf16.gmra.mrb[28].mxu1 %vm322_vm4, %v16183_v22 }
 0x992   :  { %18496 = vmatprep.mubr.msk.bf16.mxu1 %vm322_vm4, %v27298_v57 }
 0x999   :  { %18497 = vmatmul.mubr.msk.bf16.vlgmr.msra.gmra.mrb[16].mxu1 %vm322_vm4, %v27299_v43 }
 0x99a   :  { %18513 = vmatpush3.bf16.msra.mxu1 %v20051_v35  ;;  %18500 = vmatprep.mubr.msk.bf16.mxu1 %vm322_vm4, %v25725_v55  ;;  %v16195_v55 = vrot.slane %v25984_v1, 9 }
 0x99b   :  { %19842 = vmatprep.subr.msk.bf16.mxu1 %vm347_vm0, %v20052_v61 }
 0x99c   :  { %v14273_v46 = vsel %vm20735_vm11, %v16195_v55, %v14272_v44 }
 0x99d   :  { %v16200_v19 = vcombine.low %v25902_v62, %v14273_v46 }
 0x99e   :  { %18515 = vmatpush3.bf16.msra.mxu1 %v14457_v40 }
 0x99f   :  { %18532 = vmatprep.subr.bf16.mxu1 %v20053_v58 }
 0x9a1   :  { %18501 = vmatmul.mubr.msk.bf16.gmra.mrb[20].mxu1 %vm322_vm4, %v16199_v59 }
 0x9a2   :  { %18504 = vmatprep.mubr.msk.bf16.mxu1 %vm322_vm4, %v27265_v45  ;;  %v14419_v45 = vrot.slane %v14417_v60, 5 }
 0x9a4   :  { %v14421_v42 = vor.u32 %v14420_v13, %v14419_v45 }
 0x9a9   :  { %18505 = vmatmul.mubr.msk.bf16.gmra.mrb[24].mxu1 %vm322_vm4, %v27266_v63  ;;  %v14416_v63 = vrot.slane %v14415_v30, 4 }
 0x9aa   :  { %18508 = vmatprep.mubr.msk.bf16.mxu1 %vm322_vm4, %v25743_v28 }
 0x9ab   :  { %v14422_v28 = vsel %vm20931_vm14, %v14416_v63, %v14421_v42 }
 0x9ac   :  { %v16214_v62 = vcombine.low %v25927_v7, %v14422_v28 }
 0x9b1   :  { %18509 = vmatmul.mubr.msk.bf16.gmra.mrb[28].mxu1 %vm322_vm4, %v16200_v19 }
 0x9b2   :  { %18516 = vmatprep.mubr.msk.bf16.mxu1 %vm322_vm4, %v27268_v17  ;;  %v14604_v17 = vsel %vm347_vm0, %v20054_v5, 0 }
 0x9b9   :  { %18517 = vmatmul.mubr.msk.bf16.vlgmr.msra.gmra.mrb[16].mxu1 %vm322_vm4, %v27269_v48  ;;  %v14429_v48 = vrot.slane %v14427_v8, 5 }
 0x9ba   :  { %18533 = vmatpush3.bf16.msra.mxu1 %v20053_v58  ;;  %18520 = vmatprep.mubr.msk.bf16.mxu1 %vm322_vm4, %v25343_v39  ;;  %v14426_v39 = vrot.slane %v14425_v9, 4 }
 0x9bb   :  { %19843 = vmatprep.subr.msk.bf16.mxu1 %vm347_vm0, %v20054_v5  ;;  %v14431_v30 = vor.u32 %v14430_v54, %v14429_v48 }
 0x9bd   :  { %v14432_v7 = vsel %vm20931_vm14, %v14426_v39, %v14431_v30 }
 0x9be   :  { %18535 = vmatpush3.bf16.msra.mxu1 %v14604_v17  ;;  %v16215_v3 = vcombine.low %v25944_v29, %v14432_v7 }
 0x9c1   :  { %18521 = vmatmul.mubr.msk.bf16.gmra.mrb[20].mxu1 %vm322_vm4, %v16214_v62 }
 0x9c2   :  { %18524 = vmatprep.mubr.msk.bf16.mxu1 %vm322_vm4, %v27271_v53  ;;  %v16226_v53 = vrot.slane %v25954_v11, 10 }
 0x9c9   :  { %18525 = vmatmul.mubr.msk.bf16.gmra.mrb[24].mxu1 %vm322_vm4, %v25036_v47  ;;  %v14575_v47 = vsel %vm21155_vm1, %v16226_v53, %v14574_v41 }
 0x9ca   :  { %18528 = vmatprep.mubr.msk.bf16.mxu1 %vm322_vm4, %v25370_v0  ;;  %v16231_v0 = vcombine.low %v25975_v37, %v14575_v47 }
 0x9d1   :  { %18529 = vmatmul.mubr.msk.bf16.gmra.mrb[28].mxu1 %vm322_vm4, %v16215_v3 }
 0x9d2   :  { %18536 = vmatprep.mubr.msk.bf16.mxu1 %vm322_vm4, %v25375_v56  ;;  %v16227_v56 = vrot.slane %v25984_v1, 10 }
 0x9d9   :  { %18537 = vmatmul.mubr.msk.bf16.vlgmr.msra.gmra.mrb[16].mxu1 %vm322_vm4, %v25071_v38  ;;  %v14579_v38 = vsel %vm21155_vm1, %v16227_v56, %v14578_v20 }
 0x9da   :  { %18540 = vmatprep.mubr.msk.bf16.mxu1 %vm322_vm4, %v25346_v18  ;;  %v16232_v18 = vcombine.low %v26000_v16, %v14579_v38 }
 0x9e1   :  { %18541 = vmatmul.mubr.msk.bf16.gmra.mrb[20].mxu1 %vm322_vm4, %v16231_v0 }
 0x9e2   :  { %18544 = vmatprep.mubr.msk.bf16.mxu1 %vm322_vm4, %v25112_v27  ;;  %v15762_v27 = vld [vmem:[%s26195_s8] ss:$0 sm:$0xff]  ;;  %s20146_s8 = smov [#allocation3]  }
 0x9e3   :  { %s14740_s16 = sshll.u32 %s20146_s8, 4  ;;  %s14741_s16 = int_to_ptr.vmem [resolvable:$true] %s14740_s16 }
 0x9e4   :  { %s20121_s17 = scalar_lea.vmem %s14741_s16, 2048  ;;  %p20126_p1 = scmp.lt.s32.totalorder %s14741_s16, %s14741_s16 }
 0x9e5   :  { %p20122_p0 = scmp.ne.s32.totalorder %s14741_s16, %s20121_s17  ;;  %p20127_p2 = scmp.lt.s32.totalorder %s20121_s17, %s20121_s17 }
 0x9e7   :  { %p20128_p3 = por %p20127_p2, %p20126_p1 }
 0x9e9   :  { %18545 = vmatmul.mubr.msk.bf16.gmra.mrb[24].mxu1 %vm322_vm4, %v25128_v32  ;;  %p20129_p4 = pnand %p20128_p3, %p20122_p0 }
 0x9ea   :  { %18548 = vmatprep.mubr.msk.bf16.mxu1 %vm322_vm4, %v25363_v21 }
 0x9f1   :  { %18549 = vmatmul.mubr.msk.bf16.gmra.mrb[28].mxu1 %vm322_vm4, %v16232_v18 }
 0xaac   :  { %v18538_v29 = vpop.f32.mrb[16].mxu1 }
 0xaad   :  { %v18600_v11 = vadd.f32 %v18538_v29, %v15762_v27  ;;  %v14640_v37 = vpop.f32.mrb[17].mxu1 }
 0xaae   :  { %v18601_v1 = vadd.f32 %v15762_v27, %v14640_v37  ;;  %v18539_v2 = vpop.f32.mrb[18].mxu1 }
 0xaaf   :  { %14721 = vst.msk [vmem:[#allocation3 + $0x10] sm:$0xff] %vm322_vm4, %v18600_v11  ;;  %v18602_v32 = vadd.f32 %v18539_v2, %v15762_v27  ;;  %v14643_v21 = vpop.f32.mrb[19].mxu1 }
 0xab0   :  { %14719 = vst.msk [vmem:[#allocation3] sm:$0xff] %vm322_vm4, %v18601_v1  ;;  %v18603_v10 = vadd.f32 %v15762_v27, %v14643_v21 }
 0xab1   :  { %14722 = vst.msk [vmem:[#allocation3 + $0x18] sm:$0xff] %vm322_vm4, %v18602_v32 }
 0xab2   :  { %14720 = vst.msk [vmem:[#allocation3 + $0x8] sm:$0xff] %vm322_vm4, %v18603_v10 }
 0xab4   :  { %v18542_v16 = vpop.f32.mrb[20].mxu1 }
 0xab5   :  { %v18604_v9 = vadd.f32 %v18542_v16, %v15762_v27  ;;  %v14656_v49 = vpop.f32.mrb[21].mxu1 }
 0xab6   :  { %v18605_v24 = vadd.f32 %v15762_v27, %v14656_v49  ;;  %v18543_v31 = vpop.f32.mrb[22].mxu1 }
 0xab7   :  { %14725 = vst.msk [vmem:[#allocation3 + $0x30] sm:$0xff] %vm322_vm4, %v18604_v9  ;;  %v18606_v36 = vadd.f32 %v18543_v31, %v15762_v27  ;;  %v14659_v50 = vpop.f32.mrb[23].mxu1 }
 0xab8   :  { %14723 = vst.msk [vmem:[#allocation3 + $0x20] sm:$0xff] %vm322_vm4, %v18605_v24  ;;  %v18607_v35 = vadd.f32 %v15762_v27, %v14659_v50 }
 0xab9   :  { %14726 = vst.msk [vmem:[#allocation3 + $0x38] sm:$0xff] %vm322_vm4, %v18606_v36 }
 0xaba   :  { %14724 = vst.msk [vmem:[#allocation3 + $0x28] sm:$0xff] %vm322_vm4, %v18607_v35 }
 0xabc   :  { %v18546_v15 = vpop.f32.mrb[24].mxu1 }
 0xabd   :  { %v18608_v6 = vadd.f32 %v18546_v15, %v15762_v27  ;;  %v14672_v12 = vpop.f32.mrb[25].mxu1 }
 0xabe   :  { %v18609_v52 = vadd.f32 %v15762_v27, %v14672_v12  ;;  %v18547_v51 = vpop.f32.mrb[26].mxu1 }
 0xabf   :  { %14729 = vst.msk [vmem:[#allocation3 + $0x50] sm:$0xff] %vm322_vm4, %v18608_v6  ;;  %v18610_v33 = vadd.f32 %v18547_v51, %v15762_v27  ;;  %v14675_v14 = vpop.f32.mrb[27].mxu1 }
 0xac0   :  { %14727 = vst.msk [vmem:[#allocation3 + $0x40] sm:$0xff] %vm322_vm4, %v18609_v52  ;;  %v18611_v4 = vadd.f32 %v15762_v27, %v14675_v14 }
 0xac1   :  { %14730 = vst.msk [vmem:[#allocation3 + $0x58] sm:$0xff] %vm322_vm4, %v18610_v33 }
 0xac2   :  { %14728 = vst.msk [vmem:[#allocation3 + $0x48] sm:$0xff] %vm322_vm4, %v18611_v4 }
 0xac4   :  { %v18550_v25 = vpop.f32.mrb[28].mxu1 }
 0xac5   :  { %v18612_v22 = vadd.f32 %v18550_v25, %v15762_v27  ;;  %v14688_v57 = vpop.f32.mrb[29].mxu1 }
 0xac6   :  { %v18613_v34 = vadd.f32 %v15762_v27, %v14688_v57  ;;  %v18551_v23 = vpop.f32.mrb[30].mxu1 }
 0xac7   :  { %14733 = vst.msk [vmem:[#allocation3 + $0x70] sm:$0xff] %vm322_vm4, %v18612_v22  ;;  %v18614_v61 = vadd.f32 %v18551_v23, %v15762_v27  ;;  %v14691_v43 = vpop.f32.mrb[31].mxu1 }
 0xac8   :  { %14731 = vst.msk [vmem:[#allocation3 + $0x60] sm:$0xff] %vm322_vm4, %v18613_v34  ;;  %v18615_v26 = vadd.f32 %v15762_v27, %v14691_v43 }
 0xac9   :  { %14734 = vst.msk [vmem:[#allocation3 + $0x78] sm:$0xff] %vm322_vm4, %v18614_v61 }
 0xaca   :  { %14732 = vst.msk [vmem:[#allocation3 + $0x68] sm:$0xff] %vm322_vm4, %v18615_v26 }
 0xacb   :  { %20132 = shalt.err (!%p20129_p4)
}
 0xacc   :  { %s20133_s20 = scalar_lea.hbm %s26196_s9, 2048 }
 0xacd   :  { %p20134_p5 = scmp.ne.s32.totalorder %s26196_s9, %s20133_s20  ;;  %p20137_p6 = scmp.lt.u32.totalorder %s20133_s20, %s26196_s9 }
 0xacf   :  { %p20139_p7 = pnand %p20137_p6, %p20134_p5 }
 0xad1   :  { %20142 = shalt.err (!%p20139_p7)
}
 0xad2   :  { %s20147_s5 = smov 128   ;;  %s20148_s25 = smov 8  }
 0xad3   :  { %14746 = dma.vmem_to_hbm [thread:$0]  %s14741_s16, 2048, %s26196_s9, [#allocation4], %s20147_s5, %s20147_s5, %s20148_s25  }
 0xad4   :  { %20143 = dma.done.wait [#allocation4], 2048  }
 0xad5   :  { %20144 = vsyncadd [#allocation4], 4294965248 }
 0xad6   :  { %14750 = vsyncpa [#allocation4], 1 }

</bundles_post_ra>
